<compile_context>
chip_gen: v6e
topology: v6e:2x2x1
jax: 0.10.0
libtpu: 0.0.40
codegen_flags: <defaults>
</compile_context>

<pallas_src>
import math
import numpy as np

import jax
import jax.numpy as jnp
from jax import lax
from jax.experimental import pallas as pl
from jax.experimental.pallas import tpu as pltpu

NEG = np.float32(-1e30)
LANE = 128        # lane / contraction dims padded to multiples of this
CHUNK = 32        # destination-row chunk for the ASAP scatter-max loop


def _rup(n, m=LANE):
    return ((n + m - 1) // m) * m


def _pad_to(a, shape):
    out = jnp.zeros(shape, a.dtype)
    return out.at[tuple(slice(0, s) for s in a.shape)].set(a)


# ----------------------------------------------------------------------------
# Pallas kernels
# ----------------------------------------------------------------------------
def _layer_a_kernel(adj_ref, x_ref, cw_ref, cb_ref, vatt_ref, a2_ref, batt_ref,
                    w123t_ref, b1_ref, b3_ref,
                    s_ref, xc_ref, fit_ref, m_s, sq_s):
    """Fused GCNConv(+ReLU) -> ASAP attention -> cluster rep -> LEConv fitness.

    adj_ref : [NP, NP] weighted symmetric adjacency (zero diag), zero padded.
    outputs : s (attention [NP,NP]), xc = S@h (clusters, [NP,CP]),
              fit (LEConv fitness, lane-dense row [1,NP]).
    """
    npad = adj_ref.shape[0]
    r_i = lax.broadcasted_iota(jnp.int32, (npad, npad), 0)
    c_i = lax.broadcasted_iota(jnp.int32, (npad, npad), 1)
    # (A + I) binarized: GCN add_remaining_self_loops (edge weights ignored) and
    # the ASAP self-loop neighbourhood mask are the same matrix.
    m_s[...] = jnp.where(jnp.logical_or(r_i == c_i, adj_ref[...] > 0.0), 1.0, 0.0)
    m = m_s[...]

    # ---- GCNConv + ReLU (graph symmetric -> sym norm folds onto the features)
    deg = jnp.sum(m, axis=1, keepdims=True)                       # [NP, 1]
    dinv = lax.rsqrt(deg)
    xw = jnp.dot(x_ref[...], cw_ref[...], preferred_element_type=jnp.float32)
    h = jnp.maximum(
        dinv * jnp.dot(m, dinv * xw, preferred_element_type=jnp.float32) + cb_ref[...],
        0.0)                                                      # [NP, CP], >= 0

    # ---- ASAP scatter-max over the self-loop neighbourhood, fused with the
    #      folded attention-query projection:  sq[i] = vatt . max_j m[i,j]*h[j].
    #      Multiply-masking is exact: h >= 0 and every row has a self loop.
    vatt = vatt_ref[...]                                          # [CP, 1]

    def _sm_body(i, carry):
        d0 = pl.multiple_of(i * CHUNK, CHUNK)
        mrow = m_s[pl.ds(d0, CHUNK), :]                           # [CHUNK, NP]
        xq_c = jnp.max(mrow[:, :, None] * h[None, :, :], axis=1)  # [CHUNK, CP]
        sq_s[pl.ds(d0, CHUNK), :] = jnp.dot(
            xq_c, vatt, preferred_element_type=jnp.float32)
        return carry

    lax.fori_loop(0, npad // CHUNK, _sm_body, 0)

    # ---- attention scores + masked softmax over source nodes j
    vrow = lax.dot_general(a2_ref[...], h, (((1,), (1,)), ((), ())),
                           preferred_element_type=jnp.float32)    # [1, NP]
    raw = sq_s[...] + vrow + batt_ref[...]                        # [NP, NP]
    raw = jnp.where(raw > 0.0, raw, 0.2 * raw)                    # leaky_relu(0.2)
    raw = jnp.where(m > 0.0, raw, NEG)
    rmax = jnp.max(raw, axis=1, keepdims=True)
    e = jnp.where(m > 0.0, jnp.exp(raw - rmax), 0.0)
    s = e * pl.reciprocal(jnp.sum(e, axis=1, keepdims=True), approx=True)
    # TODO(synk): F.dropout(score, p=dropout) skipped (inference mode).
    s_ref[...] = s

    # ---- cluster representation
    xc = jnp.dot(s, h, preferred_element_type=jnp.float32)        # [NP, CP]
    xc_ref[...] = xc

    # ---- LEConv fitness, computed directly in lane-dense row layout [1, NP]:
    #      fit = sigmoid( M @ (xc w1 + b1) - deg * (xc w2) + xc w3 + b3 )
    projT = lax.dot_general(w123t_ref[...], xc, (((1,), (1,)), ((), ())),
                            preferred_element_type=jnp.float32)   # [8, NP]
    l1r = projT[0:1, :] + b1_ref[...]
    l2r = projT[1:2, :]
    l3r = projT[2:3, :]
    msg_r = jnp.dot(l1r, m, preferred_element_type=jnp.float32)   # [1, NP] (M symmetric)
    deg_r = jnp.sum(m, axis=0, keepdims=True)                     # [1, NP]
    fit_ref[...] = jax.nn.sigmoid(msg_r - deg_r * l2r + l3r + b3_ref[...])


def _make_layer_b_kernel(segments):
    """segments: static tuple of (start, count) per graph in coarse-node order."""

    def kernel(perm_ref, adj_ref, s_ref, xc_ref, fit_ref, xs_ref,
               newx_ref, newadj_ref, xs_out_ref, mean_ref):
        kp = perm_ref.shape[0]

        colk = lax.broadcasted_iota(jnp.int32, (kp, adj_ref.shape[0]), 1)
        p = jnp.where(colk == perm_ref[...], 1.0, 0.0)            # one-hot rows (-1 -> 0)

        sp = jnp.dot(p, s_ref[...], preferred_element_type=jnp.float32)   # S[perm]
        # x' = (x_cluster * fitness)[perm]  ==  (P * fit_row) @ x_cluster
        newx = jnp.dot(p * fit_ref[...], xc_ref[...],
                       preferred_element_type=jnp.float32)        # [KP, CP], >= 0
        newx_ref[...] = newx

        # A' = S_p (A + I) S_p^T = (S_p A) S_p^T + S_p S_p^T, diagonal removed
        # (ASAP add_self_loops=False; the fine adjacency carries no diagonal).
        tmp = jnp.dot(sp, adj_ref[...], preferred_element_type=jnp.float32)
        anew = (lax.dot_general(tmp, sp, (((1,), (1,)), ((), ())),
                                preferred_element_type=jnp.float32)
                + lax.dot_general(sp, sp, (((1,), (1,)), ((), ())),
                                  preferred_element_type=jnp.float32))    # [KP, KP]
        rk = lax.broadcasted_iota(jnp.int32, (kp, kp), 0)
        ck = lax.broadcasted_iota(jnp.int32, (kp, kp), 1)
        newadj_ref[...] = jnp.where(rk == ck, 0.0, anew)

        # readout: scatter_mean / scatter_max per graph, accumulated into xs.
        # Coarse nodes are contiguous per graph, so membership masks are static;
        # newx >= 0 so multiply-masked max == masked max.
        rowk = lax.broadcasted_iota(jnp.int32, (kp, 1), 0)
        means, maxs = [], []
        for (st, c) in segments:
            sel = jnp.where(jnp.logical_and(rowk >= st, rowk < st + c), 1.0, 0.0)
            seg = sel * newx
            means.append(jnp.sum(seg, axis=0, keepdims=True) / np.float32(c))
            maxs.append(jnp.max(seg, axis=0, keepdims=True))
        mean = jnp.concatenate(means, axis=0)                     # [B, CP]
        xmax = jnp.concatenate(maxs, axis=0)                      # [B, CP]
        mean_ref[...] = mean
        xs_out_ref[...] = xs_ref[...] + jnp.concatenate([mean, xmax], axis=1)

    return kernel


def _mlp_kernel(xs_ref, w1_ref, b1_ref, w2_ref, b2_ref, out_ref):
    """relu(xs @ W1 + b1) @ W2 + b2.  F.dropout(p=0.5) is identity in eval."""
    h = jnp.maximum(
        jnp.dot(xs_ref[...], w1_ref[...], preferred_element_type=jnp.float32) + b1_ref[...],
        0.0)
    out_ref[...] = jnp.dot(h, w2_ref[...], preferred_element_type=jnp.float32) + b2_ref[...]


# ----------------------------------------------------------------------------
# pallas_call helper (whole arrays resident in VMEM, no grid -- shapes are small)
# ----------------------------------------------------------------------------
def _vmem_call(kernel, out_shapes, args, scratch_shapes=(), io_aliases=None):
    return pl.pallas_call(
        kernel,
        out_shape=tuple(out_shapes),
        in_specs=[pl.BlockSpec(memory_space=pltpu.MemorySpace.VMEM)] * len(args),
        out_specs=tuple(pl.BlockSpec(memory_space=pltpu.MemorySpace.VMEM)
                        for _ in out_shapes),
        scratch_shapes=tuple(scratch_shapes),
        input_output_aliases=dict(io_aliases or {}),
    )(*args)


# ----------------------------------------------------------------------------
# Parameters (deterministic synthetic init) + lane padding / host-side folding
# ----------------------------------------------------------------------------
def _glorot(key, shape):
    fi, fo = shape
    lim = math.sqrt(6.0 / (fi + fo))
    return jax.random.uniform(key, shape, jnp.float32, -lim, lim)


def init_params(key, cin, ch, cout, n_layers):
    params = {"convs": [], "pools": []}
    dims_in = [cin] + [ch] * (n_layers - 1)
    for l in range(n_layers):
        key, kc, k1, k2, k3, k4, k5, k6 = jax.random.split(key, 8)
        params["convs"].append({
            "w": _glorot(kc, (dims_in[l], ch)),
            "b": jnp.zeros((1, ch), jnp.float32),
        })
        params["pools"].append({
            "wlin": _glorot(k1, (ch, ch)), "blin": jnp.zeros((1, ch), jnp.float32),
            "a1": _glorot(k2, (ch, 1)),                 # att weight for target (x_q)
            "a2": _glorot(k3, (1, ch)),                 # att weight for source (x_j)
            "batt": jnp.zeros((1, 1), jnp.float32),
            "w1": _glorot(k4, (ch, 1)), "b1": jnp.zeros((1, 1), jnp.float32),
            "w2": _glorot(k5, (ch, 1)),                 # LEConv lin2 (no bias)
            "w3": _glorot(k6, (ch, 1)), "b3": jnp.zeros((1, 1), jnp.float32),
        })
    key, ka, kb = jax.random.split(key, 3)
    params["lin1_w"] = _glorot(ka, (2 * ch, ch))
    params["lin1_b"] = jnp.zeros((1, ch), jnp.float32)
    params["lin2_w"] = _glorot(kb, (ch, cout))
    params["lin2_b"] = jnp.zeros((1, cout), jnp.float32)
    return params


def pad_params(params, cin, ch, cout):
    """Zero-pad channel dims to LANE multiples, fold constant projections.

    Returns (arrays, meta): `arrays` contains only jnp arrays (safe to trace),
    `meta` carries the static ints (cp/cop/ch/cout) used for shapes/slicing.
    """
    cip, cp, cop = _rup(cin), _rup(ch), _rup(cout)
    arrays = {"convs": [], "pools": []}
    for l, conv in enumerate(params["convs"]):
        ci = cip if l == 0 else cp
        arrays["convs"].append({"w": _pad_to(conv["w"], (ci, cp)),
                                "b": _pad_to(conv["b"], (1, cp))})
    for pool in params["pools"]:
        # Fold lin (wlin, blin) and the att-query weight a1 into one vector:
        #   a1 . (xq @ wlin + blin) = xq @ (wlin @ a1) + (blin @ a1)
        vatt = pool["wlin"] @ pool["a1"]                          # [ch, 1]
        batt_eff = pool["batt"] + pool["blin"] @ pool["a1"]       # [1, 1]
        w123t = jnp.concatenate([pool["w1"], pool["w2"], pool["w3"]], axis=1).T  # [3, ch]
        arrays["pools"].append({
            "vatt": _pad_to(vatt, (cp, 1)),
            "a2": _pad_to(pool["a2"], (1, cp)),
            "batt": batt_eff,
            "w123t": _pad_to(w123t, (8, cp)),           # fused LEConv projections (rows)
            "b1": pool["b1"], "b3": pool["b3"],
        })
    # lin1 rows must match the padded xs layout: [mean(0:cp) | max(cp:2cp)].
    lin1 = jnp.zeros((2 * cp, cp), jnp.float32)
    lin1 = lin1.at[0:ch, 0:ch].set(params["lin1_w"][0:ch, :])
    lin1 = lin1.at[cp:cp + ch, 0:ch].set(params["lin1_w"][ch:2 * ch, :])
    arrays["lin1_w"] = lin1
    arrays["lin1_b"] = _pad_to(params["lin1_b"], (1, cp))
    arrays["lin2_w"] = _pad_to(params["lin2_w"], (cp, cop))
    arrays["lin2_b"] = _pad_to(params["lin2_b"], (1, cop))
    meta = {"cp": cp, "cop": cop, "ch": ch, "cout": cout}
    return arrays, meta


# ----------------------------------------------------------------------------
# Forward pass (thin glue around the two fused Pallas kernels per layer)
# ----------------------------------------------------------------------------
def graph_reduction_forward(x, adj_w, counts, params, meta, ratio):
    """counts: static python list of per-graph node counts (batch is contiguous).
    `meta` must be plain Python ints (captured statically, NOT jit-traced)."""
    n_layers = len(params["convs"])
    b = len(counts)
    cp, cop = meta["cp"], meta["cop"]

    npad = _rup(sum(counts))
    cur_x = _pad_to(x, (npad, _rup(x.shape[1])))
    cur_adj = _pad_to(adj_w, (npad, npad))
    cur_counts = list(counts)

    xs = jnp.zeros((b, 2 * cp), jnp.float32)
    last_mean = None

    for l in range(n_layers):
        npad = cur_adj.shape[0]
        conv, pool = params["convs"][l], params["pools"][l]

        # --- fused GCNConv + ASAP attention / cluster / fitness (one Pallas call) ---
        s, xc, fit_row = _vmem_call(
            _layer_a_kernel,
            [jax.ShapeDtypeStruct((npad, npad), jnp.float32),
             jax.ShapeDtypeStruct((npad, cp), jnp.float32),
             jax.ShapeDtypeStruct((1, npad), jnp.float32)],
            (cur_adj, cur_x, conv["w"], conv["b"],
             pool["vatt"], pool["a2"], pool["batt"],
             pool["w123t"], pool["b1"], pool["b3"]),
            scratch_shapes=(pltpu.VMEM((npad, npad), jnp.float32),   # mask m
                            pltpu.VMEM((npad, 1), jnp.float32)))     # sq column
        fit = fit_row[0]

        # --- per-graph top-k (static k per graph; tiny XLA glue) ---
        # TODO(synk): could be fused into kernel B via an in-kernel iterative argmax
        # (scalar-prefetched counts); kept as XLA glue for robustness.
        perm_parts, new_counts, start = [], [], 0
        for n_g in cur_counts:
            k_g = int(math.ceil(ratio * n_g))
            _, idx = lax.top_k(fit[start:start + n_g], k_g)
            perm_parts.append(idx + start)
            new_counts.append(k_g)
            start += n_g
        k_tot = sum(new_counts)
        kpad = _rup(k_tot)
        if kpad > k_tot:
            perm_parts.append(jnp.full((kpad - k_tot,), -1, jnp.int32))
        perm = jnp.concatenate(perm_parts).astype(jnp.int32).reshape(kpad, 1)

        segments, st = [], 0
        for c in new_counts:
            segments.append((st, c))
            st += c

        # --- fused gather + coarsening + readout accumulation (one Pallas call) ---
        new_x, new_adj, xs, mean_b = _vmem_call(
            _make_layer_b_kernel(tuple(segments)),
            [jax.ShapeDtypeStruct((kpad, cp), jnp.float32),
             jax.ShapeDtypeStruct((kpad, kpad), jnp.float32),
             jax.ShapeDtypeStruct((b, 2 * cp), jnp.float32),
             jax.ShapeDtypeStruct((b, cp), jnp.float32)],
            (perm, cur_adj, s, xc, fit_row, xs),
            io_aliases={5: 2})                    # accumulate xs in place

        cur_x, cur_adj, cur_counts, last_mean = new_x, new_adj, new_counts, mean_b

    # --- MLP head ---
    (pred_p,) = _vmem_call(
        _mlp_kernel,
        [jax.ShapeDtypeStruct((b, cop), jnp.float32)],
        (xs, params["lin1_w"], params["lin1_b"], params["lin2_w"], params["lin2_b"]))

    # un-pad final results
    ch, cout = meta["ch"], meta["cout"]
    k_final = sum(cur_counts)
    pred = pred_p[:, :cout]
    x_out = cur_x[:k_final, :ch]
    adj_out = cur_adj[:k_final, :k_final]          # dense weighted adjacency
    embedding = last_mean[:, :ch]                  # global_mean_pool of final graph
    # TODO(synk): edge_index is returned as a dense weighted adjacency [K, K] (nonzero
    # entries == edges) instead of a [2, E] COO tensor (E is data dependent).
    return pred, x_out, adj_out, embedding


# ----------------------------------------------------------------------------
if __name__ == "__main__":
    in_channels, hidden, out_channels, n_layers, ratio = 8, 32, 4, 3, 0.8
    counts = [10, 12]                       # two small graphs, batch contiguous
    n_total = sum(counts)

    # deterministic block-diagonal undirected graphs (ring + one chord each)
    adj_np = np.zeros((n_total, n_total), np.float32)
    start = 0
    for nb in counts:
        for i in range(nb):
            j = (i + 1) % nb
            adj_np[start + i, start + j] = 1.0
            adj_np[start + j, start + i] = 1.0
        adj_np[start, start + nb // 2] = 1.0
        adj_np[start + nb // 2, start] = 1.0
        start += nb
    adj = jnp.asarray(adj_np)

    key = jax.random.PRNGKey(0)
    key, kx, kp = jax.random.split(key, 3)
    x = jax.random.normal(kx, (n_total, in_channels), jnp.float32)
    params = init_params(kp, in_channels, hidden, out_channels, n_layers)
    arrays, meta = pad_params(params, in_channels, hidden, out_channels)

    # counts / meta / ratio are static Python objects captured by the closure,
    # so no shape-bearing ints ever become tracers.
    fwd = jax.jit(lambda x_, adj_, p_: graph_reduction_forward(
        x_, adj_, counts, p_, meta, ratio))
    pred, x_out, adj_out, emb = fwd(x, adj, arrays)
    jax.block_until_ready((pred, x_out, adj_out, emb))
    assert pred.shape == (len(counts), out_channels)
    assert emb.shape == (len(counts), hidden)
    print("KERNEL_OK")
</pallas_src>

<mosaic_0001>
module attributes {stable_mosaic.version = 11 : i64} {
  func.func @_layer_a_kernel(%arg0: memref<128x128xf32, #tpu.memory_space<vmem>>, %arg1: memref<128x128xf32, #tpu.memory_space<vmem>>, %arg2: memref<128x128xf32, #tpu.memory_space<vmem>>, %arg3: memref<1x128xf32, #tpu.memory_space<vmem>>, %arg4: memref<128x1xf32, #tpu.memory_space<vmem>>, %arg5: memref<1x128xf32, #tpu.memory_space<vmem>>, %arg6: memref<1x1xf32, #tpu.memory_space<vmem>>, %arg7: memref<8x128xf32, #tpu.memory_space<vmem>>, %arg8: memref<1x1xf32, #tpu.memory_space<vmem>>, %arg9: memref<1x1xf32, #tpu.memory_space<vmem>>, %arg10: memref<128x128xf32, #tpu.memory_space<vmem>>, %arg11: memref<128x128xf32, #tpu.memory_space<vmem>>, %arg12: memref<1x128xf32, #tpu.memory_space<vmem>>, %arg13: memref<128x128xf32, #tpu.memory_space<vmem>>, %arg14: memref<128x1xf32, #tpu.memory_space<vmem>>) attributes {dimension_semantics = [], scalar_prefetch = 0 : i64, scratch_operands = 2 : i64, tpu.core_type = #tpu.core_type<tc>} {
    %0 = tpu.iota {dimensions = array<i32: 0>} : vector<128x128xi32>
    %1 = tpu.iota {dimensions = array<i32: 1>} : vector<128x128xi32>
    %2 = arith.cmpi eq, %0, %1 : vector<128x128xi32>
    %c0 = arith.constant 0 : index
    %c0_0 = arith.constant 0 : index
    %3 = vector.load %arg0[%c0, %c0_0] : memref<128x128xf32, #tpu.memory_space<vmem>>, vector<128x128xf32>
    %cst = arith.constant 0.000000e+00 : f32
    %4 = vector.broadcast %cst : f32 to vector<128x128xf32>
    %5 = arith.cmpf ogt, %3, %4 : vector<128x128xf32>
    %6 = arith.ori %2, %5 : vector<128x128xi1>
    %cst_1 = arith.constant 1.000000e+00 : f32
    %cst_2 = arith.constant 0.000000e+00 : f32
    %7 = vector.broadcast %cst_1 : f32 to vector<128x128xf32>
    %8 = vector.broadcast %cst_2 : f32 to vector<128x128xf32>
    %9 = arith.select %6, %7, %8 : vector<128x128xi1>, vector<128x128xf32>
    %c0_3 = arith.constant 0 : index
    %c0_4 = arith.constant 0 : index
    %10 = vector.load %arg13[%c0_3, %c0_4] : memref<128x128xf32, #tpu.memory_space<vmem>>, vector<128x128xf32>
    tpu.vector_store %arg13[%c0_3, %c0_4], %9 {strides = array<i32>} : memref<128x128xf32, #tpu.memory_space<vmem>>, vector<128x128xf32>,
    %c0_5 = arith.constant 0 : index
    %c0_6 = arith.constant 0 : index
    %11 = vector.load %arg13[%c0_5, %c0_6] : memref<128x128xf32, #tpu.memory_space<vmem>>, vector<128x128xf32>
    %cst_7 = arith.constant dense<0.000000e+00> : vector<128xf32>
    %12 = vector.multi_reduction <add>, %11, %cst_7 [1] : vector<128x128xf32> to vector<128xf32>
    %13 = vector.shape_cast %12 : vector<128xf32> to vector<128x1xf32>
    %14 = math.rsqrt %13 : vector<128x1xf32>
    %c0_8 = arith.constant 0 : index
    %c0_9 = arith.constant 0 : index
    %15 = vector.load %arg1[%c0_8, %c0_9] : memref<128x128xf32, #tpu.memory_space<vmem>>, vector<128x128xf32>
    %c0_10 = arith.constant 0 : index
    %c0_11 = arith.constant 0 : index
    %16 = vector.load %arg2[%c0_10, %c0_11] : memref<128x128xf32, #tpu.memory_space<vmem>>, vector<128x128xf32>
    %cst_12 = arith.constant dense<0.000000e+00> : vector<128x128xf32>
    %17 = tpu.matmul %15, %16, %cst_12 {dimension_numbers = #tpu.dot_dimension_numbers<[1], [0], [0], [1], [0, 0, 1, 1], [], []>} : vector<128x128xf32>, vector<128x128xf32>, vector<128x128xf32> -> vector<128x128xf32>
    %18 = vector.broadcast %14 : vector<128x1xf32> to vector<128x128xf32>
    %19 = arith.mulf %18, %17 : vector<128x128xf32>
    %cst_13 = arith.constant dense<0.000000e+00> : vector<128x128xf32>
    %20 = tpu.matmul %11, %19, %cst_13 {dimension_numbers = #tpu.dot_dimension_numbers<[1], [0], [0], [1], [0, 0, 1, 1], [], []>} : vector<128x128xf32>, vector<128x128xf32>, vector<128x128xf32> -> vector<128x128xf32>
    %21 = vector.broadcast %14 : vector<128x1xf32> to vector<128x128xf32>
    %22 = arith.mulf %21, %20 : vector<128x128xf32>
    %c0_14 = arith.constant 0 : index
    %c0_15 = arith.constant 0 : index
    %23 = vector.load %arg3[%c0_14, %c0_15] : memref<1x128xf32, #tpu.memory_space<vmem>>, vector<1x128xf32>
    %24 = vector.broadcast %23 : vector<1x128xf32> to vector<128x128xf32>
    %25 = arith.addf %22, %24 : vector<128x128xf32>
    %cst_16 = arith.constant 0.000000e+00 : f32
    %26 = vector.broadcast %cst_16 : f32 to vector<128x128xf32>
    %27 = arith.maximumf %25, %26 : vector<128x128xf32>
    %c0_17 = arith.constant 0 : index
    %c0_18 = arith.constant 0 : index
    %28 = vector.load %arg4[%c0_17, %c0_18] : memref<128x1xf32, #tpu.memory_space<vmem>>, vector<128x1xf32>
    %c0_i32 = arith.constant 0 : i32
    %c4_i32 = arith.constant 4 : i32
    %29 = arith.addi %c0_i32, %c4_i32 : i32
    %c1_i32 = arith.constant 1 : i32
    scf.for %arg15 = %c0_i32 to %29 step %c1_i32  : i32 {
      %c32_i32 = arith.constant 32 : i32
      %88 = arith.muli %arg15, %c32_i32 : i32
      %89 = tpu.assume_multiple %88, 32 : i32
      %90 = arith.index_cast %89 : i32 to index
      %c0_52 = arith.constant 0 : index
      %91 = vector.load %arg13[%90, %c0_52] : memref<128x128xf32, #tpu.memory_space<vmem>>, vector<32x128xf32>
      %92 = vector.shape_cast %91 : vector<32x128xf32> to vector<32x128x1xf32>
      %93 = vector.shape_cast %27 : vector<128x128xf32> to vector<1x128x128xf32>
      %94 = vector.broadcast %92 : vector<32x128x1xf32> to vector<32x128x128xf32>
      %95 = vector.broadcast %93 : vector<1x128x128xf32> to vector<32x128x128xf32>
      %96 = arith.mulf %94, %95 : vector<32x128x128xf32>
      %cst_53 = arith.constant dense<0xFF800000> : vector<32x128xf32>
      %97 = vector.multi_reduction <maximumf>, %96, %cst_53 [1] : vector<32x128x128xf32> to vector<32x128xf32>
      %cst_54 = arith.constant dense<0.000000e+00> : vector<32x1xf32>
      %98 = tpu.matmul %97, %28, %cst_54 {dimension_numbers = #tpu.dot_dimension_numbers<[1], [0], [0], [1], [0, 0, 1, 1], [], []>} : vector<32x128xf32>, vector<128x1xf32>, vector<32x1xf32> -> vector<32x1xf32>
      %99 = arith.index_cast %89 : i32 to index
      %c0_55 = arith.constant 0 : index
      %100 = vector.load %arg14[%99, %c0_55] : memref<128x1xf32, #tpu.memory_space<vmem>>, vector<32x1xf32>
      tpu.vector_store %arg14[%99, %c0_55], %98 {strides = array<i32>} : memref<128x1xf32, #tpu.memory_space<vmem>>, vector<32x1xf32>,
    }
    %c4_i32_19 = arith.constant 4 : i32
    %c0_20 = arith.constant 0 : index
    %c0_21 = arith.constant 0 : index
    %30 = vector.load %arg5[%c0_20, %c0_21] : memref<1x128xf32, #tpu.memory_space<vmem>>, vector<1x128xf32>
    %cst_22 = arith.constant dense<0.000000e+00> : vector<1x128xf32>
    %31 = tpu.matmul %30, %27, %cst_22 {dimension_numbers = #tpu.dot_dimension_numbers<[1], [1], [0], [0], [0, 0, 1, 0], [], []>} : vector<1x128xf32>, vector<128x128xf32>, vector<1x128xf32> -> vector<1x128xf32>
    %c0_23 = arith.constant 0 : index
    %c0_24 = arith.constant 0 : index
    %32 = vector.load %arg14[%c0_23, %c0_24] : memref<128x1xf32, #tpu.memory_space<vmem>>, vector<128x1xf32>
    %33 = vector.broadcast %32 : vector<128x1xf32> to vector<128x128xf32>
    %34 = vector.broadcast %31 : vector<1x128xf32> to vector<128x128xf32>
    %35 = arith.addf %33, %34 : vector<128x128xf32>
    %c0_25 = arith.constant 0 : index
    %c0_26 = arith.constant 0 : index
    %36 = vector.load %arg6[%c0_25, %c0_26] : memref<1x1xf32, #tpu.memory_space<vmem>>, vector<1x1xf32>
    %37 = vector.broadcast %36 : vector<1x1xf32> to vector<128x128xf32>
    %38 = arith.addf %35, %37 : vector<128x128xf32>
    %cst_27 = arith.constant 0.000000e+00 : f32
    %39 = vector.broadcast %cst_27 : f32 to vector<128x128xf32>
    %40 = arith.cmpf ogt, %38, %39 : vector<128x128xf32>
    %cst_28 = arith.constant 2.000000e-01 : f32
    %41 = vector.broadcast %cst_28 : f32 to vector<128x128xf32>
    %42 = arith.mulf %41, %38 : vector<128x128xf32>
    %43 = arith.select %40, %38, %42 : vector<128x128xi1>, vector<128x128xf32>
    %cst_29 = arith.constant 0.000000e+00 : f32
    %44 = vector.broadcast %cst_29 : f32 to vector<128x128xf32>
    %45 = arith.cmpf ogt, %11, %44 : vector<128x128xf32>
    %cst_30 = arith.constant -1.000000e+30 : f32
    %46 = vector.broadcast %cst_30 : f32 to vector<128x128xf32>
    %47 = arith.select %45, %43, %46 : vector<128x128xi1>, vector<128x128xf32>
    %cst_31 = arith.constant dense<0xFF800000> : vector<128xf32>
    %48 = vector.multi_reduction <maximumf>, %47, %cst_31 [1] : vector<128x128xf32> to vector<128xf32>
    %49 = vector.shape_cast %48 : vector<128xf32> to vector<128x1xf32>
    %cst_32 = arith.constant 0.000000e+00 : f32
    %50 = vector.broadcast %cst_32 : f32 to vector<128x128xf32>
    %51 = arith.cmpf ogt, %11, %50 : vector<128x128xf32>
    %52 = vector.broadcast %49 : vector<128x1xf32> to vector<128x128xf32>
    %53 = arith.subf %47, %52 : vector<128x128xf32>
    %54 = math.exp %53 : vector<128x128xf32>
    %cst_33 = arith.constant 0.000000e+00 : f32
    %55 = vector.broadcast %cst_33 : f32 to vector<128x128xf32>
    %56 = arith.select %51, %54, %55 : vector<128x128xi1>, vector<128x128xf32>
    %cst_34 = arith.constant dense<0.000000e+00> : vector<128xf32>
    %57 = vector.multi_reduction <add>, %56, %cst_34 [1] : vector<128x128xf32> to vector<128xf32>
    %58 = vector.shape_cast %57 : vector<128xf32> to vector<128x1xf32>
    %59 = tpu.reciprocal %58 {approx = true} : vector<128x1xf32> -> vector<128x1xf32>
    %60 = vector.broadcast %59 : vector<128x1xf32> to vector<128x128xf32>
    %61 = arith.mulf %56, %60 : vector<128x128xf32>
    %c0_35 = arith.constant 0 : index
    %c0_36 = arith.constant 0 : index
    %62 = vector.load %arg10[%c0_35, %c0_36] : memref<128x128xf32, #tpu.memory_space<vmem>>, vector<128x128xf32>
    tpu.vector_store %arg10[%c0_35, %c0_36], %61 {strides = array<i32>} : memref<128x128xf32, #tpu.memory_space<vmem>>, vector<128x128xf32>,
    %cst_37 = arith.constant dense<0.000000e+00> : vector<128x128xf32>
    %63 = tpu.matmul %61, %27, %cst_37 {dimension_numbers = #tpu.dot_dimension_numbers<[1], [0], [0], [1], [0, 0, 1, 1], [], []>} : vector<128x128xf32>, vector<128x128xf32>, vector<128x128xf32> -> vector<128x128xf32>
    %c0_38 = arith.constant 0 : index
    %c0_39 = arith.constant 0 : index
    %64 = vector.load %arg11[%c0_38, %c0_39] : memref<128x128xf32, #tpu.memory_space<vmem>>, vector<128x128xf32>
    tpu.vector_store %arg11[%c0_38, %c0_39], %63 {strides = array<i32>} : memref<128x128xf32, #tpu.memory_space<vmem>>, vector<128x128xf32>,
    %c0_40 = arith.constant 0 : index
    %c0_41 = arith.constant 0 : index
    %65 = vector.load %arg7[%c0_40, %c0_41] : memref<8x128xf32, #tpu.memory_space<vmem>>, vector<8x128xf32>
    %cst_42 = arith.constant dense<0.000000e+00> : vector<8x128xf32>
    %66 = tpu.matmul %65, %63, %cst_42 {dimension_numbers = #tpu.dot_dimension_numbers<[1], [1], [0], [0], [0, 0, 1, 0], [], []>} : vector<8x128xf32>, vector<128x128xf32>, vector<8x128xf32> -> vector<8x128xf32>
    %67 = vector.extract_strided_slice %66 {offsets = [0, 0], sizes = [1, 128], strides = [1, 1]} : vector<8x128xf32> to vector<1x128xf32>
    %c0_43 = arith.constant 0 : index
    %c0_44 = arith.constant 0 : index
    %68 = vector.load %arg8[%c0_43, %c0_44] : memref<1x1xf32, #tpu.memory_space<vmem>>, vector<1x1xf32>
    %69 = vector.broadcast %68 : vector<1x1xf32> to vector<1x128xf32>
    %70 = arith.addf %67, %69 : vector<1x128xf32>
    %71 = vector.extract_strided_slice %66 {offsets = [1, 0], sizes = [1, 128], strides = [1, 1]} : vector<8x128xf32> to vector<1x128xf32>
    %72 = vector.extract_strided_slice %66 {offsets = [2, 0], sizes = [1, 128], strides = [1, 1]} : vector<8x128xf32> to vector<1x128xf32>
    %cst_45 = arith.constant dense<0.000000e+00> : vector<1x128xf32>
    %73 = tpu.matmul %70, %11, %cst_45 {dimension_numbers = #tpu.dot_dimension_numbers<[1], [0], [0], [1], [0, 0, 1, 1], [], []>} : vector<1x128xf32>, vector<128x128xf32>, vector<1x128xf32> -> vector<1x128xf32>
    %cst_46 = arith.constant dense<0.000000e+00> : vector<128xf32>
    %74 = vector.multi_reduction <add>, %11, %cst_46 [0] : vector<128x128xf32> to vector<128xf32>
    %75 = vector.shape_cast %74 : vector<128xf32> to vector<1x128xf32>
    %76 = arith.mulf %75, %71 : vector<1x128xf32>
    %77 = arith.subf %73, %76 : vector<1x128xf32>
    %78 = arith.addf %77, %72 : vector<1x128xf32>
    %c0_47 = arith.constant 0 : index
    %c0_48 = arith.constant 0 : index
    %79 = vector.load %arg9[%c0_47, %c0_48] : memref<1x1xf32, #tpu.memory_space<vmem>>, vector<1x1xf32>
    %80 = vector.broadcast %79 : vector<1x1xf32> to vector<1x128xf32>
    %81 = arith.addf %78, %80 : vector<1x128xf32>
    %82 = arith.negf %81 : vector<1x128xf32>
    %83 = math.exp %82 : vector<1x128xf32>
    %cst_49 = arith.constant 1.000000e+00 : f32
    %84 = vector.broadcast %cst_49 : f32 to vector<1x128xf32>
    %85 = arith.addf %84, %83 : vector<1x128xf32>
    %86 = arith.divf %84, %85 : vector<1x128xf32>
    %c0_50 = arith.constant 0 : index
    %c0_51 = arith.constant 0 : index
    %87 = vector.load %arg12[%c0_50, %c0_51] : memref<1x128xf32, #tpu.memory_space<vmem>>, vector<1x128xf32>
    tpu.vector_store %arg12[%c0_50, %c0_51], %86 {strides = array<i32>} : memref<1x128xf32, #tpu.memory_space<vmem>>, vector<1x128xf32>,
    return
  }
}

module attributes {stable_mosaic.version = 11 : i64} {
  func.func @kernel(%arg0: memref<128x1xi32, #tpu.memory_space<vmem>>, %arg1: memref<128x128xf32, #tpu.memory_space<vmem>>, %arg2: memref<128x128xf32, #tpu.memory_space<vmem>>, %arg3: memref<128x128xf32, #tpu.memory_space<vmem>>, %arg4: memref<1x128xf32, #tpu.memory_space<vmem>>, %arg5: memref<2x256xf32, #tpu.memory_space<vmem>>, %arg6: memref<128x128xf32, #tpu.memory_space<vmem>>, %arg7: memref<128x128xf32, #tpu.memory_space<vmem>>, %arg8: memref<2x256xf32, #tpu.memory_space<vmem>>, %arg9: memref<2x128xf32, #tpu.memory_space<vmem>>) attributes {dimension_semantics = [], scalar_prefetch = 0 : i64, scratch_operands = 0 : i64, tpu.core_type = #tpu.core_type<tc>} {
    %0 = tpu.iota {dimensions = array<i32: 1>} : vector<128x128xi32>
    %c0 = arith.constant 0 : index
    %c0_0 = arith.constant 0 : index
    %1 = vector.load %arg0[%c0, %c0_0] : memref<128x1xi32, #tpu.memory_space<vmem>>, vector<128x1xi32>
    %2 = vector.broadcast %1 : vector<128x1xi32> to vector<128x128xi32>
    %3 = arith.cmpi eq, %0, %2 : vector<128x128xi32>
    %cst = arith.constant 1.000000e+00 : f32
    %cst_1 = arith.constant 0.000000e+00 : f32
    %4 = vector.broadcast %cst : f32 to vector<128x128xf32>
    %5 = vector.broadcast %cst_1 : f32 to vector<128x128xf32>
    %6 = arith.select %3, %4, %5 : vector<128x128xi1>, vector<128x128xf32>
    %c0_2 = arith.constant 0 : index
    %c0_3 = arith.constant 0 : index
    %7 = vector.load %arg2[%c0_2, %c0_3] : memref<128x128xf32, #tpu.memory_space<vmem>>, vector<128x128xf32>
    %cst_4 = arith.constant dense<0.000000e+00> : vector<128x128xf32>
    %8 = tpu.matmul %6, %7, %cst_4 {dimension_numbers = #tpu.dot_dimension_numbers<[1], [0], [0], [1], [0, 0, 1, 1], [], []>} : vector<128x128xf32>, vector<128x128xf32>, vector<128x128xf32> -> vector<128x128xf32>
    %c0_5 = arith.constant 0 : index
    %c0_6 = arith.constant 0 : index
    %9 = vector.load %arg4[%c0_5, %c0_6] : memref<1x128xf32, #tpu.memory_space<vmem>>, vector<1x128xf32>
    %10 = vector.broadcast %9 : vector<1x128xf32> to vector<128x128xf32>
    %11 = arith.mulf %6, %10 : vector<128x128xf32>
    %c0_7 = arith.constant 0 : index
    %c0_8 = arith.constant 0 : index
    %12 = vector.load %arg3[%c0_7, %c0_8] : memref<128x128xf32, #tpu.memory_space<vmem>>, vector<128x128xf32>
    %cst_9 = arith.constant dense<0.000000e+00> : vector<128x128xf32>
    %13 = tpu.matmul %11, %12, %cst_9 {dimension_numbers = #tpu.dot_dimension_numbers<[1], [0], [0], [1], [0, 0, 1, 1], [], []>} : vector<128x128xf32>, vector<128x128xf32>, vector<128x128xf32> -> vector<128x128xf32>
    %c0_10 = arith.constant 0 : index
    %c0_11 = arith.constant 0 : index
    %14 = vector.load %arg6[%c0_10, %c0_11] : memref<128x128xf32, #tpu.memory_space<vmem>>, vector<128x128xf32>
    tpu.vector_store %arg6[%c0_10, %c0_11], %13 {strides = array<i32>} : memref<128x128xf32, #tpu.memory_space<vmem>>, vector<128x128xf32>,
    %c0_12 = arith.constant 0 : index
    %c0_13 = arith.constant 0 : index
    %15 = vector.load %arg1[%c0_12, %c0_13] : memref<128x128xf32, #tpu.memory_space<vmem>>, vector<128x128xf32>
    %cst_14 = arith.constant dense<0.000000e+00> : vector<128x128xf32>
    %16 = tpu.matmul %8, %15, %cst_14 {dimension_numbers = #tpu.dot_dimension_numbers<[1], [0], [0], [1], [0, 0, 1, 1], [], []>} : vector<128x128xf32>, vector<128x128xf32>, vector<128x128xf32> -> vector<128x128xf32>
    %cst_15 = arith.constant dense<0.000000e+00> : vector<128x128xf32>
    %17 = tpu.matmul %16, %8, %cst_15 {dimension_numbers = #tpu.dot_dimension_numbers<[1], [1], [0], [0], [0, 0, 1, 0], [], []>} : vector<128x128xf32>, vector<128x128xf32>, vector<128x128xf32> -> vector<128x128xf32>
    %cst_16 = arith.constant dense<0.000000e+00> : vector<128x128xf32>
    %18 = tpu.matmul %8, %8, %cst_16 {dimension_numbers = #tpu.dot_dimension_numbers<[1], [1], [0], [0], [0, 0, 1, 0], [], []>} : vector<128x128xf32>, vector<128x128xf32>, vector<128x128xf32> -> vector<128x128xf32>
    %19 = arith.addf %17, %18 : vector<128x128xf32>
    %20 = tpu.iota {dimensions = array<i32: 0>} : vector<128x128xi32>
    %21 = tpu.iota {dimensions = array<i32: 1>} : vector<128x128xi32>
    %22 = arith.cmpi eq, %20, %21 : vector<128x128xi32>
    %cst_17 = arith.constant 0.000000e+00 : f32
    %23 = vector.broadcast %cst_17 : f32 to vector<128x128xf32>
    %24 = arith.select %22, %23, %19 : vector<128x128xi1>, vector<128x128xf32>
    %c0_18 = arith.constant 0 : index
    %c0_19 = arith.constant 0 : index
    %25 = vector.load %arg7[%c0_18, %c0_19] : memref<128x128xf32, #tpu.memory_space<vmem>>, vector<128x128xf32>
    tpu.vector_store %arg7[%c0_18, %c0_19], %24 {strides = array<i32>} : memref<128x128xf32, #tpu.memory_space<vmem>>, vector<128x128xf32>,
    %26 = tpu.iota {dimensions = array<i32: 0>} : vector<128x1xi32>
    %c0_i32 = arith.constant 0 : i32
    %27 = vector.broadcast %c0_i32 : i32 to vector<128x1xi32>
    %28 = arith.cmpi sge, %26, %27 : vector<128x1xi32>
    %c8_i32 = arith.constant 8 : i32
    %29 = vector.broadcast %c8_i32 : i32 to vector<128x1xi32>
    %30 = arith.cmpi slt, %26, %29 : vector<128x1xi32>
    %31 = arith.andi %28, %30 : vector<128x1xi1>
    %cst_20 = arith.constant 1.000000e+00 : f32
    %cst_21 = arith.constant 0.000000e+00 : f32
    %32 = vector.broadcast %cst_20 : f32 to vector<128x1xf32>
    %33 = vector.broadcast %cst_21 : f32 to vector<128x1xf32>
    %34 = arith.select %31, %32, %33 : vector<128x1xi1>, vector<128x1xf32>
    %35 = vector.broadcast %34 : vector<128x1xf32> to vector<128x128xf32>
    %36 = arith.mulf %35, %13 : vector<128x128xf32>
    %cst_22 = arith.constant dense<0.000000e+00> : vector<128xf32>
    %37 = vector.multi_reduction <add>, %36, %cst_22 [0] : vector<128x128xf32> to vector<128xf32>
    %38 = vector.shape_cast %37 : vector<128xf32> to vector<1x128xf32>
    %cst_23 = arith.constant 8.000000e+00 : f32
    %39 = vector.broadcast %cst_23 : f32 to vector<1x128xf32>
    %40 = arith.divf %38, %39 : vector<1x128xf32>
    %cst_24 = arith.constant dense<0xFF800000> : vector<128xf32>
    %41 = vector.multi_reduction <maximumf>, %36, %cst_24 [0] : vector<128x128xf32> to vector<128xf32>
    %42 = vector.shape_cast %41 : vector<128xf32> to vector<1x128xf32>
    %c8_i32_25 = arith.constant 8 : i32
    %43 = vector.broadcast %c8_i32_25 : i32 to vector<128x1xi32>
    %44 = arith.cmpi sge, %26, %43 : vector<128x1xi32>
    %c18_i32 = arith.constant 18 : i32
    %45 = vector.broadcast %c18_i32 : i32 to vector<128x1xi32>
    %46 = arith.cmpi slt, %26, %45 : vector<128x1xi32>
    %47 = arith.andi %44, %46 : vector<128x1xi1>
    %cst_26 = arith.constant 1.000000e+00 : f32
    %cst_27 = arith.constant 0.000000e+00 : f32
    %48 = vector.broadcast %cst_26 : f32 to vector<128x1xf32>
    %49 = vector.broadcast %cst_27 : f32 to vector<128x1xf32>
    %50 = arith.select %47, %48, %49 : vector<128x1xi1>, vector<128x1xf32>
    %51 = vector.broadcast %50 : vector<128x1xf32> to vector<128x128xf32>
    %52 = arith.mulf %51, %13 : vector<128x128xf32>
    %cst_28 = arith.constant dense<0.000000e+00> : vector<128xf32>
    %53 = vector.multi_reduction <add>, %52, %cst_28 [0] : vector<128x128xf32> to vector<128xf32>
    %54 = vector.shape_cast %53 : vector<128xf32> to vector<1x128xf32>
    %cst_29 = arith.constant 1.000000e+01 : f32
    %55 = vector.broadcast %cst_29 : f32 to vector<1x128xf32>
    %56 = arith.divf %54, %55 : vector<1x128xf32>
    %cst_30 = arith.constant dense<0xFF800000> : vector<128xf32>
    %57 = vector.multi_reduction <maximumf>, %52, %cst_30 [0] : vector<128x128xf32> to vector<128xf32>
    %58 = vector.shape_cast %57 : vector<128xf32> to vector<1x128xf32>
    %59 = tpu.concatenate %40, %56 in 0 : vector<1x128xf32>, vector<1x128xf32> -> vector<2x128xf32>
    %60 = tpu.concatenate %42, %58 in 0 : vector<1x128xf32>, vector<1x128xf32> -> vector<2x128xf32>
    %c0_31 = arith.constant 0 : index
    %c0_32 = arith.constant 0 : index
    %61 = vector.load %arg9[%c0_31, %c0_32] : memref<2x128xf32, #tpu.memory_space<vmem>>, vector<2x128xf32>
    tpu.vector_store %arg9[%c0_31, %c0_32], %59 {strides = array<i32>} : memref<2x128xf32, #tpu.memory_space<vmem>>, vector<2x128xf32>,
    %c0_33 = arith.constant 0 : index
    %c0_34 = arith.constant 0 : index
    %62 = vector.load %arg5[%c0_33, %c0_34] : memref<2x256xf32, #tpu.memory_space<vmem>>, vector<2x256xf32>
    %63 = tpu.concatenate %59, %60 in 1 : vector<2x128xf32>, vector<2x128xf32> -> vector<2x256xf32>
    %64 = arith.addf %62, %63 : vector<2x256xf32>
    %c0_35 = arith.constant 0 : index
    %c0_36 = arith.constant 0 : index
    %65 = vector.load %arg8[%c0_35, %c0_36] : memref<2x256xf32, #tpu.memory_space<vmem>>, vector<2x256xf32>
    tpu.vector_store %arg8[%c0_35, %c0_36], %64 {strides = array<i32>} : memref<2x256xf32, #tpu.memory_space<vmem>>, vector<2x256xf32>,
    return
  }
}

module attributes {stable_mosaic.version = 11 : i64} {
  func.func @kernel(%arg0: memref<128x1xi32, #tpu.memory_space<vmem>>, %arg1: memref<128x128xf32, #tpu.memory_space<vmem>>, %arg2: memref<128x128xf32, #tpu.memory_space<vmem>>, %arg3: memref<128x128xf32, #tpu.memory_space<vmem>>, %arg4: memref<1x128xf32, #tpu.memory_space<vmem>>, %arg5: memref<2x256xf32, #tpu.memory_space<vmem>>, %arg6: memref<128x128xf32, #tpu.memory_space<vmem>>, %arg7: memref<128x128xf32, #tpu.memory_space<vmem>>, %arg8: memref<2x256xf32, #tpu.memory_space<vmem>>, %arg9: memref<2x128xf32, #tpu.memory_space<vmem>>) attributes {dimension_semantics = [], scalar_prefetch = 0 : i64, scratch_operands = 0 : i64, tpu.core_type = #tpu.core_type<tc>} {
    %0 = tpu.iota {dimensions = array<i32: 1>} : vector<128x128xi32>
    %c0 = arith.constant 0 : index
    %c0_0 = arith.constant 0 : index
    %1 = vector.load %arg0[%c0, %c0_0] : memref<128x1xi32, #tpu.memory_space<vmem>>, vector<128x1xi32>
    %2 = vector.broadcast %1 : vector<128x1xi32> to vector<128x128xi32>
    %3 = arith.cmpi eq, %0, %2 : vector<128x128xi32>
    %cst = arith.constant 1.000000e+00 : f32
    %cst_1 = arith.constant 0.000000e+00 : f32
    %4 = vector.broadcast %cst : f32 to vector<128x128xf32>
    %5 = vector.broadcast %cst_1 : f32 to vector<128x128xf32>
    %6 = arith.select %3, %4, %5 : vector<128x128xi1>, vector<128x128xf32>
    %c0_2 = arith.constant 0 : index
    %c0_3 = arith.constant 0 : index
    %7 = vector.load %arg2[%c0_2, %c0_3] : memref<128x128xf32, #tpu.memory_space<vmem>>, vector<128x128xf32>
    %cst_4 = arith.constant dense<0.000000e+00> : vector<128x128xf32>
    %8 = tpu.matmul %6, %7, %cst_4 {dimension_numbers = #tpu.dot_dimension_numbers<[1], [0], [0], [1], [0, 0, 1, 1], [], []>} : vector<128x128xf32>, vector<128x128xf32>, vector<128x128xf32> -> vector<128x128xf32>
    %c0_5 = arith.constant 0 : index
    %c0_6 = arith.constant 0 : index
    %9 = vector.load %arg4[%c0_5, %c0_6] : memref<1x128xf32, #tpu.memory_space<vmem>>, vector<1x128xf32>
    %10 = vector.broadcast %9 : vector<1x128xf32> to vector<128x128xf32>
    %11 = arith.mulf %6, %10 : vector<128x128xf32>
    %c0_7 = arith.constant 0 : index
    %c0_8 = arith.constant 0 : index
    %12 = vector.load %arg3[%c0_7, %c0_8] : memref<128x128xf32, #tpu.memory_space<vmem>>, vector<128x128xf32>
    %cst_9 = arith.constant dense<0.000000e+00> : vector<128x128xf32>
    %13 = tpu.matmul %11, %12, %cst_9 {dimension_numbers = #tpu.dot_dimension_numbers<[1], [0], [0], [1], [0, 0, 1, 1], [], []>} : vector<128x128xf32>, vector<128x128xf32>, vector<128x128xf32> -> vector<128x128xf32>
    %c0_10 = arith.constant 0 : index
    %c0_11 = arith.constant 0 : index
    %14 = vector.load %arg6[%c0_10, %c0_11] : memref<128x128xf32, #tpu.memory_space<vmem>>, vector<128x128xf32>
    tpu.vector_store %arg6[%c0_10, %c0_11], %13 {strides = array<i32>} : memref<128x128xf32, #tpu.memory_space<vmem>>, vector<128x128xf32>,
    %c0_12 = arith.constant 0 : index
    %c0_13 = arith.constant 0 : index
    %15 = vector.load %arg1[%c0_12, %c0_13] : memref<128x128xf32, #tpu.memory_space<vmem>>, vector<128x128xf32>
    %cst_14 = arith.constant dense<0.000000e+00> : vector<128x128xf32>
    %16 = tpu.matmul %8, %15, %cst_14 {dimension_numbers = #tpu.dot_dimension_numbers<[1], [0], [0], [1], [0, 0, 1, 1], [], []>} : vector<128x128xf32>, vector<128x128xf32>, vector<128x128xf32> -> vector<128x128xf32>
    %cst_15 = arith.constant dense<0.000000e+00> : vector<128x128xf32>
    %17 = tpu.matmul %16, %8, %cst_15 {dimension_numbers = #tpu.dot_dimension_numbers<[1], [1], [0], [0], [0, 0, 1, 0], [], []>} : vector<128x128xf32>, vector<128x128xf32>, vector<128x128xf32> -> vector<128x128xf32>
    %cst_16 = arith.constant dense<0.000000e+00> : vector<128x128xf32>
    %18 = tpu.matmul %8, %8, %cst_16 {dimension_numbers = #tpu.dot_dimension_numbers<[1], [1], [0], [0], [0, 0, 1, 0], [], []>} : vector<128x128xf32>, vector<128x128xf32>, vector<128x128xf32> -> vector<128x128xf32>
    %19 = arith.addf %17, %18 : vector<128x128xf32>
    %20 = tpu.iota {dimensions = array<i32: 0>} : vector<128x128xi32>
    %21 = tpu.iota {dimensions = array<i32: 1>} : vector<128x128xi32>
    %22 = arith.cmpi eq, %20, %21 : vector<128x128xi32>
    %cst_17 = arith.constant 0.000000e+00 : f32
    %23 = vector.broadcast %cst_17 : f32 to vector<128x128xf32>
    %24 = arith.select %22, %23, %19 : vector<128x128xi1>, vector<128x128xf32>
    %c0_18 = arith.constant 0 : index
    %c0_19 = arith.constant 0 : index
    %25 = vector.load %arg7[%c0_18, %c0_19] : memref<128x128xf32, #tpu.memory_space<vmem>>, vector<128x128xf32>
    tpu.vector_store %arg7[%c0_18, %c0_19], %24 {strides = array<i32>} : memref<128x128xf32, #tpu.memory_space<vmem>>, vector<128x128xf32>,
    %26 = tpu.iota {dimensions = array<i32: 0>} : vector<128x1xi32>
    %c0_i32 = arith.constant 0 : i32
    %27 = vector.broadcast %c0_i32 : i32 to vector<128x1xi32>
    %28 = arith.cmpi sge, %26, %27 : vector<128x1xi32>
    %c7_i32 = arith.constant 7 : i32
    %29 = vector.broadcast %c7_i32 : i32 to vector<128x1xi32>
    %30 = arith.cmpi slt, %26, %29 : vector<128x1xi32>
    %31 = arith.andi %28, %30 : vector<128x1xi1>
    %cst_20 = arith.constant 1.000000e+00 : f32
    %cst_21 = arith.constant 0.000000e+00 : f32
    %32 = vector.broadcast %cst_20 : f32 to vector<128x1xf32>
    %33 = vector.broadcast %cst_21 : f32 to vector<128x1xf32>
    %34 = arith.select %31, %32, %33 : vector<128x1xi1>, vector<128x1xf32>
    %35 = vector.broadcast %34 : vector<128x1xf32> to vector<128x128xf32>
    %36 = arith.mulf %35, %13 : vector<128x128xf32>
    %cst_22 = arith.constant dense<0.000000e+00> : vector<128xf32>
    %37 = vector.multi_reduction <add>, %36, %cst_22 [0] : vector<128x128xf32> to vector<128xf32>
    %38 = vector.shape_cast %37 : vector<128xf32> to vector<1x128xf32>
    %cst_23 = arith.constant 7.000000e+00 : f32
    %39 = vector.broadcast %cst_23 : f32 to vector<1x128xf32>
    %40 = arith.divf %38, %39 : vector<1x128xf32>
    %cst_24 = arith.constant dense<0xFF800000> : vector<128xf32>
    %41 = vector.multi_reduction <maximumf>, %36, %cst_24 [0] : vector<128x128xf32> to vector<128xf32>
    %42 = vector.shape_cast %41 : vector<128xf32> to vector<1x128xf32>
    %c7_i32_25 = arith.constant 7 : i32
    %43 = vector.broadcast %c7_i32_25 : i32 to vector<128x1xi32>
    %44 = arith.cmpi sge, %26, %43 : vector<128x1xi32>
    %c15_i32 = arith.constant 15 : i32
    %45 = vector.broadcast %c15_i32 : i32 to vector<128x1xi32>
    %46 = arith.cmpi slt, %26, %45 : vector<128x1xi32>
    %47 = arith.andi %44, %46 : vector<128x1xi1>
    %cst_26 = arith.constant 1.000000e+00 : f32
    %cst_27 = arith.constant 0.000000e+00 : f32
    %48 = vector.broadcast %cst_26 : f32 to vector<128x1xf32>
    %49 = vector.broadcast %cst_27 : f32 to vector<128x1xf32>
    %50 = arith.select %47, %48, %49 : vector<128x1xi1>, vector<128x1xf32>
    %51 = vector.broadcast %50 : vector<128x1xf32> to vector<128x128xf32>
    %52 = arith.mulf %51, %13 : vector<128x128xf32>
    %cst_28 = arith.constant dense<0.000000e+00> : vector<128xf32>
    %53 = vector.multi_reduction <add>, %52, %cst_28 [0] : vector<128x128xf32> to vector<128xf32>
    %54 = vector.shape_cast %53 : vector<128xf32> to vector<1x128xf32>
    %cst_29 = arith.constant 8.000000e+00 : f32
    %55 = vector.broadcast %cst_29 : f32 to vector<1x128xf32>
    %56 = arith.divf %54, %55 : vector<1x128xf32>
    %cst_30 = arith.constant dense<0xFF800000> : vector<128xf32>
    %57 = vector.multi_reduction <maximumf>, %52, %cst_30 [0] : vector<128x128xf32> to vector<128xf32>
    %58 = vector.shape_cast %57 : vector<128xf32> to vector<1x128xf32>
    %59 = tpu.concatenate %40, %56 in 0 : vector<1x128xf32>, vector<1x128xf32> -> vector<2x128xf32>
    %60 = tpu.concatenate %42, %58 in 0 : vector<1x128xf32>, vector<1x128xf32> -> vector<2x128xf32>
    %c0_31 = arith.constant 0 : index
    %c0_32 = arith.constant 0 : index
    %61 = vector.load %arg9[%c0_31, %c0_32] : memref<2x128xf32, #tpu.memory_space<vmem>>, vector<2x128xf32>
    tpu.vector_store %arg9[%c0_31, %c0_32], %59 {strides = array<i32>} : memref<2x128xf32, #tpu.memory_space<vmem>>, vector<2x128xf32>,
    %c0_33 = arith.constant 0 : index
    %c0_34 = arith.constant 0 : index
    %62 = vector.load %arg5[%c0_33, %c0_34] : memref<2x256xf32, #tpu.memory_space<vmem>>, vector<2x256xf32>
    %63 = tpu.concatenate %59, %60 in 1 : vector<2x128xf32>, vector<2x128xf32> -> vector<2x256xf32>
    %64 = arith.addf %62, %63 : vector<2x256xf32>
    %c0_35 = arith.constant 0 : index
    %c0_36 = arith.constant 0 : index
    %65 = vector.load %arg8[%c0_35, %c0_36] : memref<2x256xf32, #tpu.memory_space<vmem>>, vector<2x256xf32>
    tpu.vector_store %arg8[%c0_35, %c0_36], %64 {strides = array<i32>} : memref<2x256xf32, #tpu.memory_space<vmem>>, vector<2x256xf32>,
    return
  }
}

module attributes {stable_mosaic.version = 11 : i64} {
  func.func @kernel(%arg0: memref<128x1xi32, #tpu.memory_space<vmem>>, %arg1: memref<128x128xf32, #tpu.memory_space<vmem>>, %arg2: memref<128x128xf32, #tpu.memory_space<vmem>>, %arg3: memref<128x128xf32, #tpu.memory_space<vmem>>, %arg4: memref<1x128xf32, #tpu.memory_space<vmem>>, %arg5: memref<2x256xf32, #tpu.memory_space<vmem>>, %arg6: memref<128x128xf32, #tpu.memory_space<vmem>>, %arg7: memref<128x128xf32, #tpu.memory_space<vmem>>, %arg8: memref<2x256xf32, #tpu.memory_space<vmem>>, %arg9: memref<2x128xf32, #tpu.memory_space<vmem>>) attributes {dimension_semantics = [], scalar_prefetch = 0 : i64, scratch_operands = 0 : i64, tpu.core_type = #tpu.core_type<tc>} {
    %0 = tpu.iota {dimensions = array<i32: 1>} : vector<128x128xi32>
    %c0 = arith.constant 0 : index
    %c0_0 = arith.constant 0 : index
    %1 = vector.load %arg0[%c0, %c0_0] : memref<128x1xi32, #tpu.memory_space<vmem>>, vector<128x1xi32>
    %2 = vector.broadcast %1 : vector<128x1xi32> to vector<128x128xi32>
    %3 = arith.cmpi eq, %0, %2 : vector<128x128xi32>
    %cst = arith.constant 1.000000e+00 : f32
    %cst_1 = arith.constant 0.000000e+00 : f32
    %4 = vector.broadcast %cst : f32 to vector<128x128xf32>
    %5 = vector.broadcast %cst_1 : f32 to vector<128x128xf32>
    %6 = arith.select %3, %4, %5 : vector<128x128xi1>, vector<128x128xf32>
    %c0_2 = arith.constant 0 : index
    %c0_3 = arith.constant 0 : index
    %7 = vector.load %arg2[%c0_2, %c0_3] : memref<128x128xf32, #tpu.memory_space<vmem>>, vector<128x128xf32>
    %cst_4 = arith.constant dense<0.000000e+00> : vector<128x128xf32>
    %8 = tpu.matmul %6, %7, %cst_4 {dimension_numbers = #tpu.dot_dimension_numbers<[1], [0], [0], [1], [0, 0, 1, 1], [], []>} : vector<128x128xf32>, vector<128x128xf32>, vector<128x128xf32> -> vector<128x128xf32>
    %c0_5 = arith.constant 0 : index
    %c0_6 = arith.constant 0 : index
    %9 = vector.load %arg4[%c0_5, %c0_6] : memref<1x128xf32, #tpu.memory_space<vmem>>, vector<1x128xf32>
    %10 = vector.broadcast %9 : vector<1x128xf32> to vector<128x128xf32>
    %11 = arith.mulf %6, %10 : vector<128x128xf32>
    %c0_7 = arith.constant 0 : index
    %c0_8 = arith.constant 0 : index
    %12 = vector.load %arg3[%c0_7, %c0_8] : memref<128x128xf32, #tpu.memory_space<vmem>>, vector<128x128xf32>
    %cst_9 = arith.constant dense<0.000000e+00> : vector<128x128xf32>
    %13 = tpu.matmul %11, %12, %cst_9 {dimension_numbers = #tpu.dot_dimension_numbers<[1], [0], [0], [1], [0, 0, 1, 1], [], []>} : vector<128x128xf32>, vector<128x128xf32>, vector<128x128xf32> -> vector<128x128xf32>
    %c0_10 = arith.constant 0 : index
    %c0_11 = arith.constant 0 : index
    %14 = vector.load %arg6[%c0_10, %c0_11] : memref<128x128xf32, #tpu.memory_space<vmem>>, vector<128x128xf32>
    tpu.vector_store %arg6[%c0_10, %c0_11], %13 {strides = array<i32>} : memref<128x128xf32, #tpu.memory_space<vmem>>, vector<128x128xf32>,
    %c0_12 = arith.constant 0 : index
    %c0_13 = arith.constant 0 : index
    %15 = vector.load %arg1[%c0_12, %c0_13] : memref<128x128xf32, #tpu.memory_space<vmem>>, vector<128x128xf32>
    %cst_14 = arith.constant dense<0.000000e+00> : vector<128x128xf32>
    %16 = tpu.matmul %8, %15, %cst_14 {dimension_numbers = #tpu.dot_dimension_numbers<[1], [0], [0], [1], [0, 0, 1, 1], [], []>} : vector<128x128xf32>, vector<128x128xf32>, vector<128x128xf32> -> vector<128x128xf32>
    %cst_15 = arith.constant dense<0.000000e+00> : vector<128x128xf32>
    %17 = tpu.matmul %16, %8, %cst_15 {dimension_numbers = #tpu.dot_dimension_numbers<[1], [1], [0], [0], [0, 0, 1, 0], [], []>} : vector<128x128xf32>, vector<128x128xf32>, vector<128x128xf32> -> vector<128x128xf32>
    %cst_16 = arith.constant dense<0.000000e+00> : vector<128x128xf32>
    %18 = tpu.matmul %8, %8, %cst_16 {dimension_numbers = #tpu.dot_dimension_numbers<[1], [1], [0], [0], [0, 0, 1, 0], [], []>} : vector<128x128xf32>, vector<128x128xf32>, vector<128x128xf32> -> vector<128x128xf32>
    %19 = arith.addf %17, %18 : vector<128x128xf32>
    %20 = tpu.iota {dimensions = array<i32: 0>} : vector<128x128xi32>
    %21 = tpu.iota {dimensions = array<i32: 1>} : vector<128x128xi32>
    %22 = arith.cmpi eq, %20, %21 : vector<128x128xi32>
    %cst_17 = arith.constant 0.000000e+00 : f32
    %23 = vector.broadcast %cst_17 : f32 to vector<128x128xf32>
    %24 = arith.select %22, %23, %19 : vector<128x128xi1>, vector<128x128xf32>
    %c0_18 = arith.constant 0 : index
    %c0_19 = arith.constant 0 : index
    %25 = vector.load %arg7[%c0_18, %c0_19] : memref<128x128xf32, #tpu.memory_space<vmem>>, vector<128x128xf32>
    tpu.vector_store %arg7[%c0_18, %c0_19], %24 {strides = array<i32>} : memref<128x128xf32, #tpu.memory_space<vmem>>, vector<128x128xf32>,
    %26 = tpu.iota {dimensions = array<i32: 0>} : vector<128x1xi32>
    %c0_i32 = arith.constant 0 : i32
    %27 = vector.broadcast %c0_i32 : i32 to vector<128x1xi32>
    %28 = arith.cmpi sge, %26, %27 : vector<128x1xi32>
    %c6_i32 = arith.constant 6 : i32
    %29 = vector.broadcast %c6_i32 : i32 to vector<128x1xi32>
    %30 = arith.cmpi slt, %26, %29 : vector<128x1xi32>
    %31 = arith.andi %28, %30 : vector<128x1xi1>
    %cst_20 = arith.constant 1.000000e+00 : f32
    %cst_21 = arith.constant 0.000000e+00 : f32
    %32 = vector.broadcast %cst_20 : f32 to vector<128x1xf32>
    %33 = vector.broadcast %cst_21 : f32 to vector<128x1xf32>
    %34 = arith.select %31, %32, %33 : vector<128x1xi1>, vector<128x1xf32>
    %35 = vector.broadcast %34 : vector<128x1xf32> to vector<128x128xf32>
    %36 = arith.mulf %35, %13 : vector<128x128xf32>
    %cst_22 = arith.constant dense<0.000000e+00> : vector<128xf32>
    %37 = vector.multi_reduction <add>, %36, %cst_22 [0] : vector<128x128xf32> to vector<128xf32>
    %38 = vector.shape_cast %37 : vector<128xf32> to vector<1x128xf32>
    %cst_23 = arith.constant 6.000000e+00 : f32
    %39 = vector.broadcast %cst_23 : f32 to vector<1x128xf32>
    %40 = arith.divf %38, %39 : vector<1x128xf32>
    %cst_24 = arith.constant dense<0xFF800000> : vector<128xf32>
    %41 = vector.multi_reduction <maximumf>, %36, %cst_24 [0] : vector<128x128xf32> to vector<128xf32>
    %42 = vector.shape_cast %41 : vector<128xf32> to vector<1x128xf32>
    %c6_i32_25 = arith.constant 6 : i32
    %43 = vector.broadcast %c6_i32_25 : i32 to vector<128x1xi32>
    %44 = arith.cmpi sge, %26, %43 : vector<128x1xi32>
    %c13_i32 = arith.constant 13 : i32
    %45 = vector.broadcast %c13_i32 : i32 to vector<128x1xi32>
    %46 = arith.cmpi slt, %26, %45 : vector<128x1xi32>
    %47 = arith.andi %44, %46 : vector<128x1xi1>
    %cst_26 = arith.constant 1.000000e+00 : f32
    %cst_27 = arith.constant 0.000000e+00 : f32
    %48 = vector.broadcast %cst_26 : f32 to vector<128x1xf32>
    %49 = vector.broadcast %cst_27 : f32 to vector<128x1xf32>
    %50 = arith.select %47, %48, %49 : vector<128x1xi1>, vector<128x1xf32>
    %51 = vector.broadcast %50 : vector<128x1xf32> to vector<128x128xf32>
    %52 = arith.mulf %51, %13 : vector<128x128xf32>
    %cst_28 = arith.constant dense<0.000000e+00> : vector<128xf32>
    %53 = vector.multi_reduction <add>, %52, %cst_28 [0] : vector<128x128xf32> to vector<128xf32>
    %54 = vector.shape_cast %53 : vector<128xf32> to vector<1x128xf32>
    %cst_29 = arith.constant 7.000000e+00 : f32
    %55 = vector.broadcast %cst_29 : f32 to vector<1x128xf32>
    %56 = arith.divf %54, %55 : vector<1x128xf32>
    %cst_30 = arith.constant dense<0xFF800000> : vector<128xf32>
    %57 = vector.multi_reduction <maximumf>, %52, %cst_30 [0] : vector<128x128xf32> to vector<128xf32>
    %58 = vector.shape_cast %57 : vector<128xf32> to vector<1x128xf32>
    %59 = tpu.concatenate %40, %56 in 0 : vector<1x128xf32>, vector<1x128xf32> -> vector<2x128xf32>
    %60 = tpu.concatenate %42, %58 in 0 : vector<1x128xf32>, vector<1x128xf32> -> vector<2x128xf32>
    %c0_31 = arith.constant 0 : index
    %c0_32 = arith.constant 0 : index
    %61 = vector.load %arg9[%c0_31, %c0_32] : memref<2x128xf32, #tpu.memory_space<vmem>>, vector<2x128xf32>
    tpu.vector_store %arg9[%c0_31, %c0_32], %59 {strides = array<i32>} : memref<2x128xf32, #tpu.memory_space<vmem>>, vector<2x128xf32>,
    %c0_33 = arith.constant 0 : index
    %c0_34 = arith.constant 0 : index
    %62 = vector.load %arg5[%c0_33, %c0_34] : memref<2x256xf32, #tpu.memory_space<vmem>>, vector<2x256xf32>
    %63 = tpu.concatenate %59, %60 in 1 : vector<2x128xf32>, vector<2x128xf32> -> vector<2x256xf32>
    %64 = arith.addf %62, %63 : vector<2x256xf32>
    %c0_35 = arith.constant 0 : index
    %c0_36 = arith.constant 0 : index
    %65 = vector.load %arg8[%c0_35, %c0_36] : memref<2x256xf32, #tpu.memory_space<vmem>>, vector<2x256xf32>
    tpu.vector_store %arg8[%c0_35, %c0_36], %64 {strides = array<i32>} : memref<2x256xf32, #tpu.memory_space<vmem>>, vector<2x256xf32>,
    return
  }
}

module attributes {stable_mosaic.version = 11 : i64} {
  func.func @_mlp_kernel(%arg0: memref<2x256xf32, #tpu.memory_space<vmem>>, %arg1: memref<256x128xf32, #tpu.memory_space<vmem>>, %arg2: memref<1x128xf32, #tpu.memory_space<vmem>>, %arg3: memref<128x128xf32, #tpu.memory_space<vmem>>, %arg4: memref<1x128xf32, #tpu.memory_space<vmem>>, %arg5: memref<2x128xf32, #tpu.memory_space<vmem>>) attributes {dimension_semantics = [], scalar_prefetch = 0 : i64, scratch_operands = 0 : i64, tpu.core_type = #tpu.core_type<tc>} {
    %c0 = arith.constant 0 : index
    %c0_0 = arith.constant 0 : index
    %0 = vector.load %arg0[%c0, %c0_0] : memref<2x256xf32, #tpu.memory_space<vmem>>, vector<2x256xf32>
    %c0_1 = arith.constant 0 : index
    %c0_2 = arith.constant 0 : index
    %1 = vector.load %arg1[%c0_1, %c0_2] : memref<256x128xf32, #tpu.memory_space<vmem>>, vector<256x128xf32>
    %cst = arith.constant dense<0.000000e+00> : vector<2x128xf32>
    %2 = tpu.matmul %0, %1, %cst {dimension_numbers = #tpu.dot_dimension_numbers<[1], [0], [0], [1], [0, 0, 1, 1], [], []>} : vector<2x256xf32>, vector<256x128xf32>, vector<2x128xf32> -> vector<2x128xf32>
    %c0_3 = arith.constant 0 : index
    %c0_4 = arith.constant 0 : index
    %3 = vector.load %arg2[%c0_3, %c0_4] : memref<1x128xf32, #tpu.memory_space<vmem>>, vector<1x128xf32>
    %4 = vector.broadcast %3 : vector<1x128xf32> to vector<2x128xf32>
    %5 = arith.addf %2, %4 : vector<2x128xf32>
    %cst_5 = arith.constant 0.000000e+00 : f32
    %6 = vector.broadcast %cst_5 : f32 to vector<2x128xf32>
    %7 = arith.maximumf %5, %6 : vector<2x128xf32>
    %c0_6 = arith.constant 0 : index
    %c0_7 = arith.constant 0 : index
    %8 = vector.load %arg3[%c0_6, %c0_7] : memref<128x128xf32, #tpu.memory_space<vmem>>, vector<128x128xf32>
    %cst_8 = arith.constant dense<0.000000e+00> : vector<2x128xf32>
    %9 = tpu.matmul %7, %8, %cst_8 {dimension_numbers = #tpu.dot_dimension_numbers<[1], [0], [0], [1], [0, 0, 1, 1], [], []>} : vector<2x128xf32>, vector<128x128xf32>, vector<2x128xf32> -> vector<2x128xf32>
    %c0_9 = arith.constant 0 : index
    %c0_10 = arith.constant 0 : index
    %10 = vector.load %arg4[%c0_9, %c0_10] : memref<1x128xf32, #tpu.memory_space<vmem>>, vector<1x128xf32>
    %11 = vector.broadcast %10 : vector<1x128xf32> to vector<2x128xf32>
    %12 = arith.addf %9, %11 : vector<2x128xf32>
    %c0_11 = arith.constant 0 : index
    %c0_12 = arith.constant 0 : index
    %13 = vector.load %arg5[%c0_11, %c0_12] : memref<2x128xf32, #tpu.memory_space<vmem>>, vector<2x128xf32>
    tpu.vector_store %arg5[%c0_11, %c0_12], %12 {strides = array<i32>} : memref<2x128xf32, #tpu.memory_space<vmem>>, vector<2x128xf32>,
    return
  }
}

</mosaic_0001>

<bundles_post_ra>
// kernel: _lambda_.10
= control target key start
LH: loop header
LB: loop body
LE: loop exit
PB: predicated region body
PF: predicated region fallthrough
CT: control target
= control target key end

     0   :  { %v1781_v2 = vmov 0   ;;  %s2453_s0 = inlined_call_operand.vmem [shape: s32[128,1], index: 0, kind: input, shape index: {}]   ;;  %s2454_s1 = inlined_call_operand.vmem [shape: f32[128,128], index: 1, kind: input, shape index: {}]   ;;  %s2455_s2 = inlined_call_operand.vmem [shape: f32[128,128], index: 2, kind: input, shape index: {}]   ;;  %s2456_s3 = inlined_call_operand.vmem [shape: f32[128,128], index: 3, kind: input, shape index: {}]   ;;  %s2457_s4 = inlined_call_operand.vmem [shape: f32[1,128], index: 4, kind: input, shape index: {}]   ;;  %s2458_s5 = inlined_call_operand.vmem [shape: f32[2,256], index: 5, kind: input, shape index: {}, may-alias: {5,8}]   ;;  %s2459_s6 = inlined_call_operand.vmem [shape: f32[128,128], index: 6, kind: output, shape index: {0}]   ;;  %s2460_s7 = inlined_call_operand.vmem [shape: f32[128,128], index: 7, kind: output, shape index: {1}]   ;;  %s2461_s8 = inlined_call_operand.vmem [shape: f32[2,256], index: 8, kind: output, shape index: {2}, may-alias: {5,8}]   ;;  %s2462_s9 = inlined_call_operand.hbm [shape: f32[2,128], index: 9, kind: output, shape index: {3}]  }
   0x1   :  { %v32_v0 = vld [vmem:[%s2453_s0 + $0x10] sm:$0xff]  ;;  %v30_v1 = vld [vmem:[%s2453_s0] sm:$0xff]  ;;  %1758 = vset.pattern.permute.xlu1 %v1781_v2  ;;  %1757 = vset.pattern.permute.xlu0 %v1781_v2  ;;  %v33_v3 = vld [vmem:[%s2453_s0 + $0x18] sm:$0xff] }
   0x2   :  { %53 = vperm.xlu1 %1758, %v32_v0   ;;  %47 = vperm.xlu0 %1757, %v30_v1   ;;  %v31_v4 = vld [vmem:[%s2453_s0 + $0x8] sm:$0xff]  ;;  %v141_v5 = vld [vmem:[%s2455_s2 + $0x78] sm:$0xff]  ;;  %v140_v6 = vld [vmem:[%s2455_s2 + $0x70] sm:$0xff] }
   0x3   :  { %v325_v7 = vld [vmem:[%s2456_s3 + $0x78] sm:$0xff]  ;;  %v324_v8 = vld [vmem:[%s2456_s3 + $0x70] sm:$0xff]  ;;  %v35_v9 = vld [vmem:[%s2453_s0 + $0x28] sm:$0xff]  ;;  %1472 = vmatprep.subr.mxu0 %v141_v5 }
   0x4   :  { %v34_v10 = vld [vmem:[%s2453_s0 + $0x20] sm:$0xff]  ;;  %1528 = vmatprep.subr.mxu1 %v325_v7  ;;  %1473 = vmatpush3.msra.mxu0 %v141_v5  ;;  %v139_v11 = vld [vmem:[%s2455_s2 + $0x68] sm:$0xff]  ;;  %v37_v13 = vld [vmem:[%s2453_s0 + $0x38] sm:$0xff] }
   0x5   :  { %1529 = vmatpush3.msra.mxu1 %v325_v7  ;;  %1474 = vmatprep.subr.mxu0 %v140_v6  ;;  %v323_v12 = vld [vmem:[%s2456_s3 + $0x68] sm:$0xff]  ;;  %v36_v14 = vld [vmem:[%s2453_s0 + $0x30] sm:$0xff]  ;;  %v138_v15 = vld [vmem:[%s2455_s2 + $0x60] sm:$0xff] }
   0x6   :  { %56 = vperm.xlu1 %1758, %v33_v3   ;;  %50 = vperm.xlu0 %1757, %v31_v4   ;;  %v322_v16 = vld [vmem:[%s2456_s3 + $0x60] sm:$0xff]  ;;  %v137_v17 = vld [vmem:[%s2455_s2 + $0x58] sm:$0xff]  ;;  %v39_v19 = vld [vmem:[%s2453_s0 + $0x48] sm:$0xff] }
   0x7   :  { %1530 = vmatprep.subr.mxu1 %v324_v8  ;;  %1475 = vmatpush3.msra.mxu0 %v140_v6  ;;  %v321_v18 = vld [vmem:[%s2456_s3 + $0x58] sm:$0xff]  ;;  %v38_v20 = vld [vmem:[%s2453_s0 + $0x40] sm:$0xff] }
   0x8   :  { %1531 = vmatpush3.msra.mxu1 %v324_v8  ;;  %1476 = vmatprep.subr.mxu0 %v139_v11 }
   0x9   :  { %1532 = vmatprep.subr.mxu1 %v323_v12  ;;  %1477 = vmatpush3.msra.mxu0 %v139_v11 }
   0xa   :  { %62 = vperm.xlu1 %1758, %v35_v9   ;;  %59 = vperm.xlu0 %1757, %v34_v10  }
   0xb   :  { %1533 = vmatpush3.msra.mxu1 %v323_v12  ;;  %1478 = vmatprep.subr.mxu0 %v138_v15 }
   0xc   :  { %1534 = vmatprep.subr.mxu1 %v322_v16  ;;  %1479 = vmatpush3.msra.mxu0 %v138_v15 }
   0xd   :  { %1535 = vmatpush3.msra.mxu1 %v322_v16 }
   0xe   :  { %68 = vperm.xlu1 %1758, %v37_v13   ;;  %65 = vperm.xlu0 %1757, %v36_v14  }
   0xf   :  { %15 = vsyncpa [#allocation3], 0  ;;  %1480 = vmatprep.subr.mxu0 %v137_v17  ;;  %v136_v21 = vld [vmem:[%s2455_s2 + $0x50] sm:$0xff]  ;;  %1536 = vmatprep.subr.mxu1 %v321_v18  ;;  %v41_v23 = vld [vmem:[%s2453_s0 + $0x58] sm:$0xff]  ;;  %v28_v50 = vlaneseq  ;;  %v1782_v55 = vmov 1.0   ;;  %v1783_v56 = vmov 0.0  }
  0x10   :  { %v320_v22 = vld [vmem:[%s2456_s3 + $0x50] sm:$0xff]  ;;  %1481 = vmatpush3.msra.mxu0 %v137_v17  ;;  %1537 = vmatpush3.msra.mxu1 %v321_v18  ;;  %v135_v25 = vld [vmem:[%s2455_s2 + $0x48] sm:$0xff]  ;;  %v134_v27 = vld [vmem:[%s2455_s2 + $0x40] sm:$0xff] }
  0x11   :  { %v40_v24 = vld [vmem:[%s2453_s0 + $0x50] sm:$0xff]  ;;  %1482 = vmatprep.subr.mxu0 %v136_v21  ;;  %1538 = vmatprep.subr.mxu1 %v320_v22  ;;  %v319_v26 = vld [vmem:[%s2456_s3 + $0x48] sm:$0xff]  ;;  %v318_v28 = vld [vmem:[%s2456_s3 + $0x40] sm:$0xff]  ;;  %v1984_v51 = vand.u32 127, %v28_v50 }
  0x12   :  { %74 = vperm.xlu1 %1758, %v39_v19   ;;  %71 = vperm.xlu0 %1757, %v38_v20   ;;  %v43_v29 = vld [vmem:[%s2453_s0 + $0x68] sm:$0xff]  ;;  %v42_v30 = vld [vmem:[%s2453_s0 + $0x60] sm:$0xff]  ;;  %v133_v31 = vld [vmem:[%s2455_s2 + $0x38] sm:$0xff] }
  0x13   :  { %1483 = vmatpush3.msra.mxu0 %v136_v21  ;;  %1539 = vmatpush3.msra.mxu1 %v320_v22  ;;  %v317_v32 = vld [vmem:[%s2456_s3 + $0x38] sm:$0xff]  ;;  %v44_v34 = vld [vmem:[%s2453_s0 + $0x70] sm:$0xff]  ;;  %v131_v37 = vld [vmem:[%s2455_s2 + $0x28] sm:$0xff] }
  0x14   :  { %1484 = vmatprep.subr.mxu0 %v135_v25  ;;  %1540 = vmatprep.subr.mxu1 %v319_v26  ;;  %v45_v33 = vld [vmem:[%s2453_s0 + $0x78] sm:$0xff]  ;;  %v132_v35 = vld [vmem:[%s2455_s2 + $0x30] sm:$0xff]  ;;  %v315_v38 = vld [vmem:[%s2456_s3 + $0x28] sm:$0xff] }
  0x15   :  { %1485 = vmatpush3.msra.mxu0 %v135_v25  ;;  %1541 = vmatpush3.msra.mxu1 %v319_v26  ;;  %v316_v36 = vld [vmem:[%s2456_s3 + $0x30] sm:$0xff]  ;;  %v130_v39 = vld [vmem:[%s2455_s2 + $0x20] sm:$0xff]  ;;  %v129_v41 = vld [vmem:[%s2455_s2 + $0x18] sm:$0xff] }
  0x16   :  { %80 = vperm.xlu1 %1758, %v41_v23   ;;  %77 = vperm.xlu0 %1757, %v40_v24   ;;  %v314_v40 = vld [vmem:[%s2456_s3 + $0x20] sm:$0xff]  ;;  %v313_v42 = vld [vmem:[%s2456_s3 + $0x18] sm:$0xff]  ;;  %v128_v43 = vld [vmem:[%s2455_s2 + $0x10] sm:$0xff] }
  0x17   :  { %1486 = vmatprep.subr.mxu0 %v134_v27  ;;  %1542 = vmatprep.subr.mxu1 %v318_v28  ;;  %v312_v44 = vld [vmem:[%s2456_s3 + $0x10] sm:$0xff]  ;;  %v127_v45 = vld [vmem:[%s2455_s2 + $0x8] sm:$0xff]  ;;  %v126_v47 = vld [vmem:[%s2455_s2] sm:$0xff] }
  0x18   :  { %1487 = vmatpush3.msra.mxu0 %v134_v27  ;;  %1543 = vmatpush3.msra.mxu1 %v318_v28  ;;  %v311_v46 = vld [vmem:[%s2456_s3 + $0x8] sm:$0xff]  ;;  %v310_v48 = vld [vmem:[%s2456_s3] sm:$0xff]  ;;  %v502_v49 = vld [vmem:[%s2454_s1 + $0x78] sm:$0xff] }
  0x19   :  { %1488 = vmatprep.subr.mxu0 %v133_v31  ;;  %1544 = vmatprep.subr.mxu1 %v317_v32  ;;  %v1989_v52 = vld [vmem:[%s2457_s4] ss:$0 sm:$0xff]  ;;  %v501_v62 = vld [vmem:[%s2454_s1 + $0x70] sm:$0xff]  ;;  %v500_v5 = vld [vmem:[%s2454_s1 + $0x68] sm:$0xff] }
  0x1a   :  { %86 = vperm.xlu1 %1758, %v43_v29   ;;  %83 = vperm.xlu0 %1757, %v42_v30   ;;  %v499_v7 = vld [vmem:[%s2454_s1 + $0x60] sm:$0xff]  ;;  %v498_v13 = vld [vmem:[%s2454_s1 + $0x58] sm:$0xff]  ;;  %v497_v20 = vld [vmem:[%s2454_s1 + $0x50] sm:$0xff] }
  0x1b   :  { %1489 = vmatpush3.msra.mxu0 %v133_v31  ;;  %1545 = vmatpush3.msra.mxu1 %v317_v32  ;;  %v496_v22 = vld [vmem:[%s2454_s1 + $0x48] sm:$0xff]  ;;  %v495_v28 = vld [vmem:[%s2454_s1 + $0x40] sm:$0xff] }
  0x1c   :  { %1490 = vmatprep.subr.mxu0 %v132_v35  ;;  %1546 = vmatprep.subr.mxu1 %v316_v36 }
  0x1d   :  { %1491 = vmatpush3.msra.mxu0 %v132_v35  ;;  %1547 = vmatpush3.msra.mxu1 %v316_v36  ;;  %v494_v35 = vld [vmem:[%s2454_s1 + $0x38] sm:$0xff] }
  0x1e   :  { %92 = vperm.xlu1 %1758, %v45_v33   ;;  %89 = vperm.xlu0 %1757, %v44_v34  }
  0x1f   :  { %1492 = vmatprep.subr.mxu0 %v131_v37  ;;  %1548 = vmatprep.subr.mxu1 %v315_v38 }
  0x20   :  { %1493 = vmatpush3.msra.mxu0 %v131_v37  ;;  %1549 = vmatpush3.msra.mxu1 %v315_v38  ;;  %v493_v37 = vld [vmem:[%s2454_s1 + $0x30] sm:$0xff] }
  0x21   :  { %1494 = vmatprep.subr.mxu0 %v130_v39  ;;  %1550 = vmatprep.subr.mxu1 %v314_v40 }
  0x22   :  { %1495 = vmatpush3.msra.mxu0 %v130_v39  ;;  %1551 = vmatpush3.msra.mxu1 %v314_v40 }
  0x23   :  { %1496 = vmatprep.subr.mxu0 %v129_v41  ;;  %1552 = vmatprep.subr.mxu1 %v313_v42 }
  0x24   :  { %1497 = vmatpush3.msra.mxu0 %v129_v41  ;;  %1553 = vmatpush3.msra.mxu1 %v313_v42 }
  0x25   :  { %1498 = vmatprep.subr.mxu0 %v128_v43  ;;  %1554 = vmatprep.subr.mxu1 %v312_v44 }
  0x26   :  { %1499 = vmatpush3.msra.mxu0 %v128_v43  ;;  %1555 = vmatpush3.msra.mxu1 %v312_v44  ;;  %v492_v43 = vld [vmem:[%s2454_s1 + $0x28] sm:$0xff] }
  0x27   :  { %1500 = vmatprep.subr.mxu0 %v127_v45  ;;  %1556 = vmatprep.subr.mxu1 %v311_v46 }
  0x28   :  { %1501 = vmatpush3.msra.mxu0 %v127_v45  ;;  %1557 = vmatpush3.msra.mxu1 %v311_v46 }
  0x29   :  { %1502 = vmatprep.subr.mxu0 %v126_v47  ;;  %1558 = vmatprep.subr.mxu1 %v310_v48 }
  0x2a   :  { %1503 = vmatpush3.msra.mxu0 %v126_v47  ;;  %1559 = vmatpush3.msra.mxu1 %v310_v48  ;;  %v491_v48 = vld [vmem:[%s2454_s1 + $0x20] sm:$0xff] }
  0x2b   :  { %1584 = vmatprep.subr.mxu0 %v502_v49 }
  0x7d   :  { %v54_v53 = vpop.permute.xlu1 %53  ;;  %v48_v54 = vpop.permute.xlu0 %47 }
  0x7e   :  { %vm96_vm0 = vcmp.eq.s32.totalorder %v1984_v51, %v54_v53  ;;  %vm94_vm1 = vcmp.eq.s32.totalorder %v1984_v51, %v48_v54  ;;  %v489_v54 = vld [vmem:[%s2454_s1 + $0x10] sm:$0xff] }
  0x7f   :  { %1504 = vmatprep.mubr.msk.f32.mxu0 %vm94_vm1, %v1782_v55  ;;  %v110_v57 = vsel %vm94_vm1, 1.0, %v1783_v56  ;;  %v112_v58 = vsel %vm96_vm0, 1.0, %v1783_v56 }
  0x80   :  { %v294_v59 = vmul.f32 %v1989_v52, %v110_v57  ;;  %v296_v63 = vmul.f32 %v1989_v52, %v112_v58  ;;  %v2133_v57 = vshrl.u32 %v28_v50, 7 }
  0x81   :  { %v57_v60 = vpop.permute.xlu1 %56  ;;  %v51_v61 = vpop.permute.xlu0 %50 }
  0x82   :  { %vm97_vm2 = vcmp.eq.s32.totalorder %v1984_v51, %v57_v60  ;;  %vm95_vm3 = vcmp.eq.s32.totalorder %v1984_v51, %v51_v61  ;;  %1560 = vmatprep.mubr.f32.mxu1 %v294_v59  ;;  %v2136_v58 = vadd.s32 8, %v2133_v57  ;;  %vm1127_vm1 = vcmp.ge.s32.totalorder %v2133_v57, 7 }
  0x83   :  { %v111_v0 = vsel %vm95_vm3, 1.0, %v1783_v56  ;;  %1505 = vmatmul.mubr.msk.f32.vlgmr.msra.gmra.mxu0 %vm95_vm3, %v1782_v55  ;;  %v113_v2 = vsel %vm97_vm2, 1.0, %v1783_v56  ;;  %vm1251_vm3 = vcmask 1040384  }
  0x84   :  { %v295_v1 = vmul.f32 %v1989_v52, %v111_v0  ;;  %1507 = vmatprep.mubr.msk.f32.mxu0 %vm96_vm0, %v1782_v55  ;;  %1585 = vmatpush3.msra.mxu0 %v502_v49  ;;  %v297_v8 = vmul.f32 %v1989_v52, %v113_v2  ;;  %v490_v49 = vld [vmem:[%s2454_s1 + $0x18] sm:$0xff]  ;;  %vm1019_vm0 = vcmp.lt.s32.totalorder %v2133_v57, 7 }
  0x85   :  { %v63_v3 = vpop.permute.xlu1 %62  ;;  %v60_v4 = vpop.permute.xlu0 %59  ;;  %1586 = vmatprep.subr.mxu0 %v501_v62  ;;  %v1051_v50 = vsel %vm1019_vm0, 1.0, %v1783_v56 }
  0x86   :  { %vm99_vm4 = vcmp.eq.s32.totalorder %v1984_v51, %v63_v3  ;;  %vm98_vm5 = vcmp.eq.s32.totalorder %v1984_v51, %v60_v4  ;;  %1561 = vmatmul.mubr.f32.vlgmr.msra.gmra.mxu1 %v295_v1  ;;  %1587 = vmatpush3.msra.mxu0 %v501_v62  ;;  %v1175_v62 = vsel %vm1127_vm1, 1.0, %v1783_v56 }
  0x87   :  { %v114_v6 = vsel %vm98_vm5, 1.0, %v1783_v56  ;;  %1508 = vmatmul.mubr.msk.f32.gmra.mxu0 %vm97_vm2, %v1782_v55  ;;  %1563 = vmatprep.mubr.f32.mxu1 %v296_v63  ;;  %v115_v10 = vsel %vm99_vm4, 1.0, %v1783_v56  ;;  %vm1144_vm2 = vcmp.lt.s32.totalorder %v2136_v58, 15 }
  0x88   :  { %v298_v9 = vmul.f32 %v1989_v52, %v114_v6  ;;  %1510 = vmatprep.mubr.msk.f32.mxu0 %vm98_vm5, %v1782_v55  ;;  %1588 = vmatprep.subr.mxu0 %v500_v5  ;;  %v299_v15 = vmul.f32 %v1989_v52, %v115_v10  ;;  %v1176_v0 = vsel %vm1144_vm2, 1.0, %v1783_v56 }
  0x89   :  { %v69_v11 = vpop.permute.xlu1 %68  ;;  %v66_v12 = vpop.permute.xlu0 %65  ;;  %1589 = vmatpush3.msra.mxu0 %v500_v5 }
  0x8a   :  { %vm101_vm6 = vcmp.eq.s32.totalorder %v1984_v51, %v69_v11  ;;  %vm100_vm7 = vcmp.eq.s32.totalorder %v1984_v51, %v66_v12  ;;  %1564 = vmatmul.mubr.f32.gmra.mxu1 %v297_v8  ;;  %1590 = vmatprep.subr.mxu0 %v499_v7 }
  0x8b   :  { %v116_v14 = vsel %vm100_vm7, 1.0, %v1783_v56  ;;  %1511 = vmatmul.mubr.msk.f32.gmra.mxu0 %vm99_vm4, %v1782_v55  ;;  %1566 = vmatprep.mubr.f32.mxu1 %v298_v9  ;;  %v117_v17 = vsel %vm101_vm6, 1.0, %v1783_v56 }
  0x8c   :  { %v300_v16 = vmul.f32 %v1989_v52, %v116_v14  ;;  %1513 = vmatprep.mubr.msk.f32.mxu0 %vm100_vm7, %v1782_v55  ;;  %1591 = vmatpush3.msra.mxu0 %v499_v7  ;;  %v301_v23 = vmul.f32 %v1989_v52, %v117_v17 }
  0x8d   :  { %v75_v18 = vpop.permute.xlu1 %74  ;;  %v72_v19 = vpop.permute.xlu0 %71  ;;  %1592 = vmatprep.subr.mxu0 %v498_v13 }
  0x8e   :  { %vm103_vm8 = vcmp.eq.s32.totalorder %v1984_v51, %v75_v18  ;;  %vm102_vm9 = vcmp.eq.s32.totalorder %v1984_v51, %v72_v19  ;;  %1567 = vmatmul.mubr.f32.gmra.mxu1 %v299_v15  ;;  %1593 = vmatpush3.msra.mxu0 %v498_v13 }
  0x8f   :  { %v118_v21 = vsel %vm102_vm9, 1.0, %v1783_v56  ;;  %1514 = vmatmul.mubr.msk.f32.gmra.mxu0 %vm101_vm6, %v1782_v55  ;;  %1569 = vmatprep.mubr.f32.mxu1 %v300_v16  ;;  %v119_v25 = vsel %vm103_vm8, 1.0, %v1783_v56 }
  0x90   :  { %v302_v24 = vmul.f32 %v1989_v52, %v118_v21  ;;  %1516 = vmatprep.mubr.msk.f32.mxu0 %vm102_vm9, %v1782_v55  ;;  %1594 = vmatprep.subr.mxu0 %v497_v20  ;;  %v303_v30 = vmul.f32 %v1989_v52, %v119_v25 }
  0x91   :  { %v81_v26 = vpop.permute.xlu1 %80  ;;  %v78_v27 = vpop.permute.xlu0 %77  ;;  %1595 = vmatpush3.msra.mxu0 %v497_v20 }
  0x92   :  { %vm105_vm10 = vcmp.eq.s32.totalorder %v1984_v51, %v81_v26  ;;  %vm104_vm11 = vcmp.eq.s32.totalorder %v1984_v51, %v78_v27  ;;  %1570 = vmatmul.mubr.f32.gmra.mxu1 %v301_v23  ;;  %1596 = vmatprep.subr.mxu0 %v496_v22 }
  0x93   :  { %v120_v29 = vsel %vm104_vm11, 1.0, %v1783_v56  ;;  %1517 = vmatmul.mubr.msk.f32.gmra.mxu0 %vm103_vm8, %v1782_v55  ;;  %1572 = vmatprep.mubr.f32.mxu1 %v302_v24  ;;  %v121_v32 = vsel %vm105_vm10, 1.0, %v1783_v56 }
  0x94   :  { %v304_v31 = vmul.f32 %v1989_v52, %v120_v29  ;;  %1519 = vmatprep.mubr.msk.f32.mxu0 %vm104_vm11, %v1782_v55  ;;  %1597 = vmatpush3.msra.mxu0 %v496_v22  ;;  %v305_v38 = vmul.f32 %v1989_v52, %v121_v32 }
  0x95   :  { %v87_v33 = vpop.permute.xlu1 %86  ;;  %v84_v34 = vpop.permute.xlu0 %83  ;;  %1598 = vmatprep.subr.mxu0 %v495_v28 }
  0x96   :  { %vm107_vm12 = vcmp.eq.s32.totalorder %v1984_v51, %v87_v33  ;;  %vm106_vm13 = vcmp.eq.s32.totalorder %v1984_v51, %v84_v34  ;;  %1573 = vmatmul.mubr.f32.gmra.mxu1 %v303_v30  ;;  %1599 = vmatpush3.msra.mxu0 %v495_v28 }
  0x97   :  { %v122_v36 = vsel %vm106_vm13, 1.0, %v1783_v56  ;;  %1520 = vmatmul.mubr.msk.f32.gmra.mxu0 %vm105_vm10, %v1782_v55  ;;  %1575 = vmatprep.mubr.f32.mxu1 %v304_v31  ;;  %v123_v40 = vsel %vm107_vm12, 1.0, %v1783_v56 }
  0x98   :  { %v306_v39 = vmul.f32 %v1989_v52, %v122_v36  ;;  %1522 = vmatprep.mubr.msk.f32.mxu0 %vm106_vm13, %v1782_v55  ;;  %1600 = vmatprep.subr.mxu0 %v494_v35  ;;  %v307_v45 = vmul.f32 %v1989_v52, %v123_v40 }
  0x99   :  { %v93_v41 = vpop.permute.xlu1 %92  ;;  %v90_v42 = vpop.permute.xlu0 %89  ;;  %1601 = vmatpush3.msra.mxu0 %v494_v35 }
  0x9a   :  { %vm109_vm14 = vcmp.eq.s32.totalorder %v1984_v51, %v93_v41  ;;  %vm108_vm15 = vcmp.eq.s32.totalorder %v1984_v51, %v90_v42  ;;  %1576 = vmatmul.mubr.f32.gmra.mxu1 %v305_v38  ;;  %1602 = vmatprep.subr.mxu0 %v493_v37 }
  0x9b   :  { %v124_v44 = vsel %vm108_vm15, 1.0, %v1783_v56  ;;  %1523 = vmatmul.mubr.msk.f32.gmra.mxu0 %vm107_vm12, %v1782_v55  ;;  %1578 = vmatprep.mubr.f32.mxu1 %v306_v39  ;;  %v125_v47 = vsel %vm109_vm14, 1.0, %v1783_v56 }
  0x9c   :  { %v308_v46 = vmul.f32 %v1989_v52, %v124_v44  ;;  %1525 = vmatprep.mubr.msk.f32.mxu0 %vm108_vm15, %v1782_v55  ;;  %1603 = vmatpush3.msra.mxu0 %v493_v37  ;;  %v309_v53 = vmul.f32 %v1989_v52, %v125_v47  ;;  %v487_v52 = vld [vmem:[%s2454_s1] sm:$0xff] }
  0x9d   :  { %1604 = vmatprep.subr.mxu0 %v492_v43 }
  0x9e   :  { %1579 = vmatmul.mubr.f32.gmra.mxu1 %v307_v45  ;;  %1605 = vmatpush3.msra.mxu0 %v492_v43 }
  0x9f   :  { %1526 = vmatmul.mubr.msk.f32.gmra.mxu0 %vm109_vm14, %v1782_v55  ;;  %1581 = vmatprep.mubr.f32.mxu1 %v308_v46  ;;  %v488_v55 = vld [vmem:[%s2454_s1 + $0x8] sm:$0xff] }
  0xa0   :  { %1606 = vmatprep.subr.mxu0 %v491_v48 }
  0xa1   :  { %1607 = vmatpush3.msra.mxu0 %v491_v48 }
  0xa2   :  { %1582 = vmatmul.mubr.f32.gmra.mxu1 %v309_v53  ;;  %1608 = vmatprep.subr.mxu0 %v490_v49 }
  0xa3   :  { %1609 = vmatpush3.msra.mxu0 %v490_v49 }
  0xa4   :  { %1610 = vmatprep.subr.mxu0 %v489_v54 }
  0xa5   :  { %1611 = vmatpush3.msra.mxu0 %v489_v54 }
  0xa6   :  { %1612 = vmatprep.subr.mxu0 %v488_v55 }
  0xa7   :  { %1613 = vmatpush3.msra.mxu0 %v488_v55 }
  0xa8   :  { %1614 = vmatprep.subr.mxu0 %v487_v52 }
  0xa9   :  { %1615 = vmatpush3.msra.mxu0 %v487_v52 }
 0x143   :  { %v2138_v59 = vpop.f32.mrf.mxu0 }
 0x145   :  { %v2142_v60 = vpop.f32.mrf.mxu0 }
 0x146   :  { %v1562_v61 = vpop.f32.mrf.mxu1  ;;  %1616 = vmatprep.mubr.f32.mxu0 %v2142_v60  ;;  %1672 = vmatprep.mubr.f32.mxu1 %v2142_v60 }
 0x147   :  { %472 = vst [vmem:[%s2459_s6 + $0x8] sm:$0xff] %v1562_v61  ;;  %v2152_v63 = vpop.f32.mrf.mxu0  ;;  %1617 = vmatmul.mubr.f32.vlgmr.msra.gmra.mxu0 %v2138_v59  ;;  %v2166_v6 = vmul.f32 0.0, %v1562_v61  ;;  %v2168_v7 = vmul.f32 %v1562_v61, %v1176_v0 }
 0x148   :  { %v392_v1 = vpop.f32.mrf.mxu1 }
 0x149   :  { %471 = vst [vmem:[%s2459_s6] sm:$0xff] %v392_v1  ;;  %v2159_v2 = vmul.f32 %v1051_v50, %v392_v1  ;;  %v2161_v3 = vmul.f32 %v1175_v62, %v392_v1  ;;  %v2163_v4 = vpop.f32.mrf.mxu0 }
 0x14a   :  { %v1565_v5 = vpop.f32.mrf.mxu1  ;;  %1619 = vmatprep.mubr.f32.mxu0 %v2163_v4 }
 0x14b   :  { %474 = vst [vmem:[%s2459_s6 + $0x18] sm:$0xff] %v1565_v5  ;;  %v2173_v56 = vpop.f32.mrf.mxu0  ;;  %1620 = vmatmul.mubr.f32.gmra.mxu0 %v2152_v63  ;;  %v1083_v9 = vadd.f32 %v2166_v6, %v2159_v2  ;;  %v1207_v10 = vadd.f32 %v2168_v7, %v2161_v3  ;;  %v2188_v14 = vmul.f32 0.0, %v1565_v5 }
 0x14c   :  { %v402_v8 = vpop.f32.mrf.mxu1 }
 0x14d   :  { %473 = vst [vmem:[%s2459_s6 + $0x10] sm:$0xff] %v402_v8  ;;  %v2183_v11 = vmul.f32 0.0, %v402_v8  ;;  %v2185_v12 = vpop.f32.mrf.mxu0 }
 0x14e   :  { %v1568_v13 = vpop.f32.mrf.mxu1  ;;  %1622 = vmatprep.mubr.f32.mxu0 %v2185_v12 }
 0x14f   :  { %v1084_v15 = vadd.f32 %v1083_v9, %v2183_v11  ;;  %v1208_v16 = vadd.f32 %v1207_v10, %v2183_v11  ;;  %476 = vst [vmem:[%s2459_s6 + $0x28] sm:$0xff] %v1568_v13  ;;  %v2195_v17 = vpop.f32.mrf.mxu0  ;;  %1623 = vmatmul.mubr.f32.gmra.mxu0 %v2173_v56  ;;  %v2214_v25 = vmul.f32 0.0, %v1568_v13 }
 0x150   :  { %v412_v18 = vpop.f32.mrf.mxu1 }
 0x151   :  { %v1085_v19 = vadd.f32 %v1084_v15, %v2188_v14  ;;  %v1209_v20 = vadd.f32 %v1208_v16, %v2188_v14  ;;  %475 = vst [vmem:[%s2459_s6 + $0x20] sm:$0xff] %v412_v18  ;;  %v2203_v21 = vpop.f32.mrf.mxu0  ;;  %v2205_v22 = vmul.f32 0.0, %v412_v18  ;;  %v1107_v61 = vmax.f32 %v2166_v6, %v2214_v25 }
 0x152   :  { %v1571_v23 = vpop.f32.mrf.mxu1  ;;  %1625 = vmatprep.mubr.f32.mxu0 %v2203_v21  ;;  %v1231_v50 = vmax.f32 %v2168_v7, %v2214_v25 }
 0x153   :  { %478 = vst [vmem:[%s2459_s6 + $0x38] sm:$0xff] %v1571_v23  ;;  %v2211_v24 = vpop.f32.mrf.mxu0  ;;  %1626 = vmatmul.mubr.f32.gmra.mxu0 %v2195_v17  ;;  %v1086_v26 = vadd.f32 %v1085_v19, %v2205_v22  ;;  %v1210_v27 = vadd.f32 %v1209_v20, %v2205_v22  ;;  %v1074_v35 = vmul.f32 0.0, %v1571_v23  ;;  %v1106_v0 = vmax.f32 %v2159_v2, %v2205_v22 }
 0x154   :  { %v422_v28 = vpop.f32.mrf.mxu1  ;;  %v1230_v6 = vmax.f32 %v2161_v3, %v2205_v22 }
 0x155   :  { %477 = vst [vmem:[%s2459_s6 + $0x30] sm:$0xff] %v422_v28  ;;  %v2221_v29 = vmul.f32 0.0, %v422_v28  ;;  %v2223_v30 = vpop.f32.mrf.mxu0  ;;  %v1087_v31 = vadd.f32 %v1086_v26, %v2214_v25  ;;  %v1211_v32 = vadd.f32 %v1210_v27, %v2214_v25  ;;  %v1109_v7 = vmax.f32 %v2188_v14, %v1074_v35 }
 0x156   :  { %v1574_v33 = vpop.f32.mrf.mxu1  ;;  %1628 = vmatprep.mubr.f32.mxu0 %v2223_v30 }
 0x157   :  { %480 = vst [vmem:[%s2459_s6 + $0x48] sm:$0xff] %v1574_v33  ;;  %v2231_v34 = vpop.f32.mrf.mxu0  ;;  %1629 = vmatmul.mubr.f32.gmra.mxu0 %v2211_v24  ;;  %v1088_v36 = vadd.f32 %v1087_v31, %v2221_v29  ;;  %v1212_v37 = vadd.f32 %v1211_v32, %v2221_v29  ;;  %v1076_v45 = vmul.f32 0.0, %v1574_v33  ;;  %v1108_v10 = vmax.f32 %v2183_v11, %v2221_v29 }
 0x158   :  { %v432_v38 = vpop.f32.mrf.mxu1 }
 0x159   :  { %479 = vst [vmem:[%s2459_s6 + $0x40] sm:$0xff] %v432_v38  ;;  %v1075_v39 = vmul.f32 0.0, %v432_v38  ;;  %v2239_v40 = vpop.f32.mrf.mxu0  ;;  %v1089_v41 = vadd.f32 %v1088_v36, %v1074_v35  ;;  %v1213_v42 = vadd.f32 %v1212_v37, %v1074_v35  ;;  %v1111_v15 = vmax.f32 %v1107_v61, %v1076_v45 }
 0x15a   :  { %v1577_v43 = vpop.f32.mrf.mxu1  ;;  %1631 = vmatprep.mubr.f32.mxu0 %v2239_v40  ;;  %v1235_v22 = vmax.f32 %v1231_v50, %v1076_v45 }
 0x15b   :  { %482 = vst [vmem:[%s2459_s6 + $0x58] sm:$0xff] %v1577_v43  ;;  %v2245_v44 = vpop.f32.mrf.mxu0  ;;  %1632 = vmatmul.mubr.f32.gmra.mxu0 %v2231_v34  ;;  %v1090_v46 = vadd.f32 %v1089_v41, %v1075_v39  ;;  %v1214_v47 = vadd.f32 %v1213_v42, %v1075_v39  ;;  %v1078_v1 = vmul.f32 0.0, %v1577_v43  ;;  %v1110_v11 = vmax.f32 %v1106_v0, %v1075_v39 }
 0x15c   :  { %v442_v48 = vpop.f32.mrf.mxu1  ;;  %v1234_v14 = vmax.f32 %v1230_v6, %v1075_v39 }
 0x15d   :  { %481 = vst [vmem:[%s2459_s6 + $0x50] sm:$0xff] %v442_v48  ;;  %v1077_v49 = vmul.f32 0.0, %v442_v48  ;;  %v2251_v53 = vpop.f32.mrf.mxu0  ;;  %v1091_v54 = vadd.f32 %v1090_v46, %v1076_v45  ;;  %v1215_v55 = vadd.f32 %v1214_v47, %v1076_v45  ;;  %v1113_v23 = vmax.f32 %v1109_v7, %v1078_v1 }
 0x15e   :  { %v1580_v52 = vpop.f32.mrf.mxu1  ;;  %1634 = vmatprep.mubr.f32.mxu0 %v2251_v53 }
 0x15f   :  { %484 = vst [vmem:[%s2459_s6 + $0x68] sm:$0xff] %v1580_v52  ;;  %v2261_v62 = vpop.f32.mrf.mxu0  ;;  %1635 = vmatmul.mubr.f32.gmra.mxu0 %v2245_v44  ;;  %v1092_v5 = vadd.f32 %v1091_v54, %v1077_v49  ;;  %v1216_v8 = vadd.f32 %v1215_v55, %v1077_v49  ;;  %v1080_v19 = vmul.f32 0.0, %v1580_v52  ;;  %v1112_v28 = vmax.f32 %v1108_v10, %v1077_v49 }
 0x160   :  { %v452_v9 = vpop.f32.mrf.mxu1  ;;  %1640 = vmatprep.subr.mxu1 %v2261_v62  ;;  %1696 = vmatprep.subr.mxu0 %v2261_v62 }
 0x161   :  { %483 = vst [vmem:[%s2459_s6 + $0x60] sm:$0xff] %v452_v9  ;;  %v1079_v2 = vmul.f32 0.0, %v452_v9  ;;  %v2276_v13 = vpop.f32.mrf.mxu0  ;;  %1641 = vmatpush3.xpose.msra.mxu1 %v2261_v62  ;;  %1697 = vmatpush3.xpose.msra.mxu0 %v2261_v62  ;;  %v1093_v16 = vadd.f32 %v1092_v5, %v1078_v1  ;;  %v1217_v18 = vadd.f32 %v1216_v8, %v1078_v1 }
 0x162   :  { %v1583_v3 = vpop.f32.mrf.mxu1  ;;  %1637 = vmatprep.mubr.f32.mxu0 %v2276_v13  ;;  %1642 = vmatprep.subr.mxu1 %v2276_v13  ;;  %v1115_v36 = vmax.f32 %v1111_v15, %v1080_v19  ;;  %v1239_v37 = vmax.f32 %v1235_v22, %v1080_v19 }
 0x163   :  { %486 = vst [vmem:[%s2459_s6 + $0x78] sm:$0xff] %v1583_v3  ;;  %v1082_v20 = vmul.f32 0.0, %v1583_v3  ;;  %1698 = vmatprep.subr.mxu0 %v2276_v13  ;;  %1638 = vmatmul.mubr.f32.gmra.mxu0 %v2261_v62  ;;  %v1094_v25 = vadd.f32 %v1093_v16, %v1079_v2  ;;  %v1218_v26 = vadd.f32 %v1217_v18, %v1079_v2 }
 0x164   :  { %v462_v27 = vpop.f32.mrf.mxu1  ;;  %v1114_v29 = vmax.f32 %v1110_v11, %v1079_v2  ;;  %v1238_v31 = vmax.f32 %v1234_v14, %v1079_v2  ;;  %v1784_v2 = vmov 1983009808  }
 0x165   :  { %485 = vst [vmem:[%s2459_s6 + $0x70] sm:$0xff] %v462_v27  ;;  %v1081_v32 = vmul.f32 0.0, %v462_v27  ;;  %1643 = vmatpush3.xpose.msra.mxu1 %v2276_v13  ;;  %1699 = vmatpush3.xpose.msra.mxu0 %v2276_v13  ;;  %v1095_v33 = vadd.f32 %v1094_v25, %v1080_v19  ;;  %v1219_v35 = vadd.f32 %v1218_v26, %v1080_v19  ;;  %v1260_v15 = vunpack.c.l.s4 %v1784_v2 }
 0x166   :  { %1644 = vmatprep.subr.mxu1 %v2245_v44  ;;  %1700 = vmatprep.subr.mxu0 %v2245_v44  ;;  %v1117_v38 = vmax.f32 %v1113_v23, %v1082_v20  ;;  %v1118_v43 = vmax.f32 %v1114_v29, %v1115_v36  ;;  %v1242_v45 = vmax.f32 %v1238_v31, %v1239_v37  ;;  %v1255_v37 = vld [vmem:[%s2458_s5] sm:$0xf]  ;;  %s1785_s5 = smov [#allocation2]  }
 0x167   :  { %v1116_v39 = vmax.f32 %v1112_v28, %v1081_v32  ;;  %v1096_v41 = vadd.f32 %v1095_v33, %v1081_v32  ;;  %v1220_v42 = vadd.f32 %v1219_v35, %v1081_v32  ;;  %v1261_v23 = vunpack.c.0.s8 %v1260_v15 }
 0x169   :  { %v1119_v46 = vmax.f32 %v1116_v39, %v1117_v38  ;;  %1645 = vmatpush3.xpose.msra.mxu1 %v2245_v44  ;;  %1701 = vmatpush3.xpose.msra.mxu0 %v2245_v44  ;;  %v1097_v47 = vadd.f32 %v1096_v41, %v1082_v20  ;;  %v1221_v48 = vadd.f32 %v1220_v42, %v1082_v20 }
 0x16a   :  { %1646 = vmatprep.subr.mxu1 %v2251_v53  ;;  %1702 = vmatprep.subr.mxu0 %v2251_v53  ;;  %v1264_v33 = vsub.s32 %v1261_v23, %v2133_v57 }
 0x16b   :  { %v1120_v49 = vmax.f32 %v1118_v43, %v1119_v46  ;;  %v1244_v54 = vmax.f32 %v1242_v45, %v1119_v46  ;;  %v1098_v55 = vrot.slane %v1097_v47, 4  ;;  %v1222_v52 = vrot.slane %v1221_v48, 4 }
 0x16d   :  { %v1121_v61 = vrot.slane %v1120_v49, 4  ;;  %v1245_v50 = vrot.slane %v1244_v54, 4  ;;  %1647 = vmatpush3.xpose.msra.mxu1 %v2251_v53  ;;  %1703 = vmatpush3.xpose.msra.mxu0 %v2251_v53  ;;  %v1099_v0 = vadd.f32 %v1098_v55, %v1097_v47  ;;  %v1223_v1 = vadd.f32 %v1222_v52, %v1221_v48 }
 0x16e   :  { %1648 = vmatprep.subr.mxu1 %v2231_v34  ;;  %1704 = vmatprep.subr.mxu0 %v2231_v34 }
 0x16f   :  { %v1122_v5 = vmax.f32 %v1120_v49, %v1121_v61  ;;  %v1246_v8 = vmax.f32 %v1244_v54, %v1245_v50  ;;  %v1100_v9 = vrot.slane %v1099_v0, 2  ;;  %v1224_v6 = vrot.slane %v1223_v1, 2 }
 0x171   :  { %1649 = vmatpush3.xpose.msra.mxu1 %v2231_v34  ;;  %1705 = vmatpush3.xpose.msra.mxu0 %v2231_v34  ;;  %v1123_v7 = vrot.slane %v1122_v5, 2  ;;  %v1247_v10 = vrot.slane %v1246_v8, 2  ;;  %v1101_v16 = vadd.f32 %v1100_v9, %v1099_v0  ;;  %v1225_v18 = vadd.f32 %v1224_v6, %v1223_v1 }
 0x172   :  { %1650 = vmatprep.subr.mxu1 %v2239_v40  ;;  %1706 = vmatprep.subr.mxu0 %v2239_v40 }
 0x173   :  { %v1124_v3 = vmax.f32 %v1122_v5, %v1123_v7  ;;  %v1248_v11 = vmax.f32 %v1246_v8, %v1247_v10  ;;  %v1102_v14 = vrot.slane %v1101_v16, 1  ;;  %v1226_v19 = vrot.slane %v1225_v18, 1 }
 0x175   :  { %1651 = vmatpush3.xpose.msra.mxu1 %v2239_v40  ;;  %1707 = vmatpush3.xpose.msra.mxu0 %v2239_v40  ;;  %v1125_v20 = vrot.slane %v1124_v3, 1  ;;  %v1249_v22 = vrot.slane %v1248_v11, 1  ;;  %v1103_v25 = vadd.f32 %v1102_v14, %v1101_v16  ;;  %v1227_v26 = vadd.f32 %v1226_v19, %v1225_v18 }
 0x176   :  { %1652 = vmatprep.subr.mxu1 %v2211_v24  ;;  %1708 = vmatprep.subr.mxu0 %v2211_v24 }
 0x177   :  { %v1126_v27 = vmax.f32 %v1124_v3, %v1125_v20  ;;  %v1250_v28 = vmax.f32 %v1248_v11, %v1249_v22  ;;  %v1105_v29 = vmul.f32 0.14285715, %v1103_v25  ;;  %v1229_v31 = vmul.f32 0.125, %v1227_v26 }
 0x179   :  { %1653 = vmatpush3.xpose.msra.mxu1 %v2211_v24  ;;  %1709 = vmatpush3.xpose.msra.mxu0 %v2211_v24  ;;  %v1253_v32 = vsel %vm1251_vm3, %v1126_v27, %v1250_v28  ;;  %v1252_v35 = vsel %vm1251_vm3, %v1105_v29, %v1229_v31 }
 0x17a   :  { %1654 = vmatprep.subr.mxu1 %v2223_v30  ;;  %1710 = vmatprep.subr.mxu0 %v2223_v30  ;;  %1254 = vst [vmem:[#allocation2] sm:$0x3] %v1252_v35  ;;  %v1258_v36 = vcombine.low %v1252_v35, %v1253_v32 }
 0x17c   :  { %v1265_v38 = vrot.slane %v1258_v36, %v1264_v33 }
 0x17d   :  { %1655 = vmatpush3.xpose.msra.mxu1 %v2223_v30  ;;  %1711 = vmatpush3.xpose.msra.mxu0 %v2223_v30 }
 0x17e   :  { %1656 = vmatprep.subr.mxu1 %v2195_v17  ;;  %1712 = vmatprep.subr.mxu0 %v2195_v17  ;;  %v1267_v39 = vadd.f32 %v1265_v38, %v1255_v37 }
 0x180   :  { %1268 = vst [vmem:[%s2461_s8] sm:$0xf] %v1267_v39  ;;  %s1281_s8 = sshll.u32 %s1785_s5, 4  ;;  %s1282_s8 = int_to_ptr.vmem [resolvable:$true] %s1281_s8 }
 0x181   :  { %1657 = vmatpush3.xpose.msra.mxu1 %v2195_v17  ;;  %1713 = vmatpush3.xpose.msra.mxu0 %v2195_v17  ;;  %s1759_s12 = scalar_lea.vmem %s1282_s8, 32  ;;  %p1764_p1 = scmp.lt.s32.totalorder %s1282_s8, %s1282_s8 }
 0x182   :  { %1658 = vmatprep.subr.mxu1 %v2203_v21  ;;  %1714 = vmatprep.subr.mxu0 %v2203_v21  ;;  %p1760_p0 = scmp.ne.s32.totalorder %s1282_s8, %s1759_s12  ;;  %p1765_p2 = scmp.lt.s32.totalorder %s1759_s12, %s1759_s12 }
 0x184   :  { %p1766_p3 = por %p1765_p2, %p1764_p1 }
 0x185   :  { %1659 = vmatpush3.xpose.msra.mxu1 %v2203_v21  ;;  %1715 = vmatpush3.xpose.msra.mxu0 %v2203_v21 }
 0x186   :  { %1660 = vmatprep.subr.mxu1 %v2173_v56  ;;  %1716 = vmatprep.subr.mxu0 %v2173_v56  ;;  %p1767_p4 = pnand %p1766_p3, %p1760_p0 }
 0x189   :  { %1661 = vmatpush3.xpose.msra.mxu1 %v2173_v56  ;;  %1717 = vmatpush3.xpose.msra.mxu0 %v2173_v56 }
 0x18a   :  { %1662 = vmatprep.subr.mxu1 %v2185_v12  ;;  %1718 = vmatprep.subr.mxu0 %v2185_v12 }
 0x18d   :  { %1663 = vmatpush3.xpose.msra.mxu1 %v2185_v12  ;;  %1719 = vmatpush3.xpose.msra.mxu0 %v2185_v12 }
 0x18e   :  { %1664 = vmatprep.subr.mxu1 %v2152_v63  ;;  %1720 = vmatprep.subr.mxu0 %v2152_v63 }
 0x191   :  { %1665 = vmatpush3.xpose.msra.mxu1 %v2152_v63  ;;  %1721 = vmatpush3.xpose.msra.mxu0 %v2152_v63 }
 0x192   :  { %1666 = vmatprep.subr.mxu1 %v2163_v4  ;;  %1722 = vmatprep.subr.mxu0 %v2163_v4 }
 0x195   :  { %1667 = vmatpush3.xpose.msra.mxu1 %v2163_v4  ;;  %1723 = vmatpush3.xpose.msra.mxu0 %v2163_v4 }
 0x196   :  { %1668 = vmatprep.subr.mxu1 %v2138_v59  ;;  %1724 = vmatprep.subr.mxu0 %v2138_v59 }
 0x199   :  { %1669 = vmatpush3.xpose.msra.mxu1 %v2138_v59  ;;  %1725 = vmatpush3.xpose.msra.mxu0 %v2138_v59 }
 0x19a   :  { %1670 = vmatprep.subr.mxu1 %v2142_v60  ;;  %1726 = vmatprep.subr.mxu0 %v2142_v60 }
 0x19d   :  { %1671 = vmatpush3.xpose.msra.mxu1 %v2142_v60  ;;  %1727 = vmatpush3.xpose.msra.mxu0 %v2142_v60 }
 0x1a0   :  { %1673 = vmatmul.mubr.f32.vlgmr.msra.gmra.mxu1 %v2138_v59 }
 0x1a1   :  { %1675 = vmatprep.mubr.f32.mxu1 %v2163_v4 }
 0x1a4   :  { %1676 = vmatmul.mubr.f32.gmra.mxu1 %v2152_v63 }
 0x1a5   :  { %1678 = vmatprep.mubr.f32.mxu1 %v2185_v12 }
 0x1a8   :  { %1679 = vmatmul.mubr.f32.gmra.mxu1 %v2173_v56 }
 0x1a9   :  { %1681 = vmatprep.mubr.f32.mxu1 %v2203_v21 }
 0x1ac   :  { %1682 = vmatmul.mubr.f32.gmra.mxu1 %v2195_v17 }
 0x1ad   :  { %1684 = vmatprep.mubr.f32.mxu1 %v2223_v30 }
 0x1b0   :  { %1685 = vmatmul.mubr.f32.gmra.mxu1 %v2211_v24 }
 0x1b1   :  { %1687 = vmatprep.mubr.f32.mxu1 %v2239_v40 }
 0x1b4   :  { %1688 = vmatmul.mubr.f32.gmra.mxu1 %v2231_v34 }
 0x1b5   :  { %1690 = vmatprep.mubr.f32.mxu1 %v2251_v53 }
 0x1b8   :  { %1691 = vmatmul.mubr.f32.gmra.mxu1 %v2245_v44 }
 0x1b9   :  { %1693 = vmatprep.mubr.f32.mxu1 %v2276_v13 }
 0x1bc   :  { %1694 = vmatmul.mubr.f32.gmra.mxu1 %v2261_v62 }
 0x207   :  { %v1618_v59 = vpop.f32.mrf.mxu0 }
 0x209   :  { %v569_v60 = vpop.f32.mrf.mxu0 }
 0x20a   :  { %1728 = vmatprep.mubr.f32.mxu0 %v569_v60 }
 0x20b   :  { %v1621_v63 = vpop.f32.mrf.mxu0  ;;  %1729 = vmatmul.mubr.f32.vlgmr.msra.gmra.mxu0 %v1618_v59 }
 0x20d   :  { %v579_v4 = vpop.f32.mrf.mxu0 }
 0x20e   :  { %1731 = vmatprep.mubr.f32.mxu0 %v579_v4 }
 0x20f   :  { %v1624_v56 = vpop.f32.mrf.mxu0  ;;  %1732 = vmatmul.mubr.f32.gmra.mxu0 %v1621_v63 }
 0x211   :  { %v589_v12 = vpop.f32.mrf.mxu0 }
 0x212   :  { %1734 = vmatprep.mubr.f32.mxu0 %v589_v12 }
 0x213   :  { %v1627_v17 = vpop.f32.mrf.mxu0  ;;  %1735 = vmatmul.mubr.f32.gmra.mxu0 %v1624_v56 }
 0x215   :  { %v599_v21 = vpop.f32.mrf.mxu0 }
 0x216   :  { %1737 = vmatprep.mubr.f32.mxu0 %v599_v21 }
 0x217   :  { %v1630_v24 = vpop.f32.mrf.mxu0  ;;  %1738 = vmatmul.mubr.f32.gmra.mxu0 %v1627_v17 }
 0x219   :  { %v609_v30 = vpop.f32.mrf.mxu0 }
 0x21a   :  { %1740 = vmatprep.mubr.f32.mxu0 %v609_v30 }
 0x21b   :  { %v1633_v34 = vpop.f32.mrf.mxu0  ;;  %1741 = vmatmul.mubr.f32.gmra.mxu0 %v1630_v24 }
 0x21d   :  { %v619_v40 = vpop.f32.mrf.mxu0 }
 0x21e   :  { %1743 = vmatprep.mubr.f32.mxu0 %v619_v40 }
 0x21f   :  { %v1636_v44 = vpop.f32.mrf.mxu0  ;;  %1744 = vmatmul.mubr.f32.gmra.mxu0 %v1633_v34 }
 0x221   :  { %v629_v53 = vpop.f32.mrf.mxu0 }
 0x222   :  { %1746 = vmatprep.mubr.f32.mxu0 %v629_v53 }
 0x223   :  { %v1639_v62 = vpop.f32.mrf.mxu0  ;;  %1747 = vmatmul.mubr.f32.gmra.mxu0 %v1636_v44 }
 0x225   :  { %v639_v13 = vpop.f32.mrf.mxu0 }
 0x226   :  { %1749 = vmatprep.mubr.f32.mxu0 %v639_v13 }
 0x227   :  { %1750 = vmatmul.mubr.f32.gmra.mxu0 %v1639_v62 }
 0x228   :  { %1770 = shalt.err (!%p1767_p4)
}
 0x229   :  { %1284 = dma.vmem_to_hbm [thread:$0]  %s1282_s8, 32, %s2462_s9, [#allocation3]   ;;  %vm956_vm4 = vcmp.eq.s32.totalorder %v2136_v58, %v1984_v51  ;;  %v942_v55 = vadd.s32 24, %v2133_v57  ;;  %vm955_vm5 = vcmp.eq.s32.totalorder %v2133_v57, %v1984_v51  ;;  %v941_v0 = vadd.s32 16, %v2133_v57 }
 0x22a   :  { %v944_v58 = vadd.s32 40, %v2133_v57  ;;  %v943_v2 = vadd.s32 32, %v2133_v57  ;;  %v946_v3 = vadd.s32 56, %v2133_v57  ;;  %v945_v22 = vadd.s32 48, %v2133_v57 }
 0x22b   :  { %vm958_vm6 = vcmp.eq.s32.totalorder %v942_v55, %v1984_v51  ;;  %vm957_vm7 = vcmp.eq.s32.totalorder %v941_v0, %v1984_v51  ;;  %v948_v27 = vadd.s32 72, %v2133_v57  ;;  %v947_v33 = vadd.s32 64, %v2133_v57 }
 0x22c   :  { %vm960_vm8 = vcmp.eq.s32.totalorder %v944_v58, %v1984_v51  ;;  %vm959_vm9 = vcmp.eq.s32.totalorder %v943_v2, %v1984_v51  ;;  %vm962_vm10 = vcmp.eq.s32.totalorder %v946_v3, %v1984_v51  ;;  %vm961_vm11 = vcmp.eq.s32.totalorder %v945_v22, %v1984_v51 }
 0x22d   :  { %vm964_vm12 = vcmp.eq.s32.totalorder %v948_v27, %v1984_v51  ;;  %v950_v38 = vadd.s32 88, %v2133_v57  ;;  %vm963_vm13 = vcmp.eq.s32.totalorder %v947_v33, %v1984_v51  ;;  %v949_v4 = vadd.s32 80, %v2133_v57 }
 0x22e   :  { %v952_v21 = vadd.s32 104, %v2133_v57  ;;  %v951_v44 = vadd.s32 96, %v2133_v57 }
 0x22f   :  { %vm966_vm14 = vcmp.eq.s32.totalorder %v950_v38, %v1984_v51  ;;  %vm965_vm15 = vcmp.eq.s32.totalorder %v949_v4, %v1984_v51 }
 0x230   :  { %vm968_vm0 = vcmp.eq.s32.totalorder %v952_v21, %v1984_v51  ;;  %vm967_vm1 = vcmp.eq.s32.totalorder %v951_v44, %v1984_v51 }
 0x260   :  { %v1674_v41 = vpop.f32.mrf.mxu1 }
 0x262   :  { %v714_v42 = vpop.f32.mrf.mxu1 }
 0x264   :  { %v1677_v43 = vpop.f32.mrf.mxu1 }
 0x266   :  { %v724_v45 = vpop.f32.mrf.mxu1 }
 0x268   :  { %v1680_v46 = vpop.f32.mrf.mxu1 }
 0x26a   :  { %v734_v47 = vpop.f32.mrf.mxu1 }
 0x26c   :  { %v1683_v48 = vpop.f32.mrf.mxu1 }
 0x26e   :  { %v744_v49 = vpop.f32.mrf.mxu1 }
 0x270   :  { %v1686_v61 = vpop.f32.mrf.mxu1 }
 0x272   :  { %v754_v7 = vpop.f32.mrf.mxu1 }
 0x274   :  { %v1689_v19 = vpop.f32.mrf.mxu1 }
 0x276   :  { %v764_v31 = vpop.f32.mrf.mxu1 }
 0x278   :  { %v1692_v60 = vpop.f32.mrf.mxu1 }
 0x27a   :  { %v774_v34 = vpop.f32.mrf.mxu1 }
 0x2cb   :  { %v1730_v54 = vpop.f32.mrf.mxu0 }
 0x2cc   :  { %v865_v52 = vadd.f32 %v1730_v54, %v1674_v41  ;;  %v954_v41 = vadd.s32 120, %v2133_v57 }
 0x2cd   :  { %v859_v50 = vpop.f32.mrf.mxu0 }
 0x2ce   :  { %v972_v1 = vsel %vm956_vm4, 0.0, %v865_v52  ;;  %v860_v5 = vadd.f32 %v859_v50, %v714_v42  ;;  %vm970_vm2 = vcmp.eq.s32.totalorder %v954_v41, %v1984_v51 }
 0x2cf   :  { %988 = vst [vmem:[%s2460_s7 + $0x8] sm:$0xff] %v972_v1  ;;  %v1733_v8 = vpop.f32.mrf.mxu0 }
 0x2d0   :  { %v971_v9 = vsel %vm955_vm5, 0.0, %v860_v5  ;;  %v875_v6 = vadd.f32 %v1733_v8, %v1677_v43 }
 0x2d1   :  { %987 = vst [vmem:[%s2460_s7] sm:$0xff] %v971_v9  ;;  %v869_v10 = vpop.f32.mrf.mxu0 }
 0x2d2   :  { %v974_v15 = vsel %vm958_vm6, 0.0, %v875_v6  ;;  %v870_v16 = vadd.f32 %v869_v10, %v724_v45  ;;  %v1695_v45 = vpop.f32.mrf.mxu1 }
 0x2d3   :  { %990 = vst [vmem:[%s2460_s7 + $0x18] sm:$0xff] %v974_v15  ;;  %v1736_v18 = vpop.f32.mrf.mxu0 }
 0x2d4   :  { %v973_v11 = vsel %vm957_vm7, 0.0, %v870_v16  ;;  %v885_v14 = vadd.f32 %v1736_v18, %v1680_v46 }
 0x2d5   :  { %989 = vst [vmem:[%s2460_s7 + $0x10] sm:$0xff] %v973_v11  ;;  %v879_v20 = vpop.f32.mrf.mxu0 }
 0x2d6   :  { %v976_v23 = vsel %vm960_vm8, 0.0, %v885_v14  ;;  %v880_v25 = vadd.f32 %v879_v20, %v734_v47  ;;  %v953_v47 = vadd.s32 112, %v2133_v57 }
 0x2d7   :  { %992 = vst [vmem:[%s2460_s7 + $0x28] sm:$0xff] %v976_v23  ;;  %v1739_v26 = vpop.f32.mrf.mxu0 }
 0x2d8   :  { %v975_v28 = vsel %vm959_vm9, 0.0, %v880_v25  ;;  %v895_v29 = vadd.f32 %v1739_v26, %v1683_v48  ;;  %vm969_vm3 = vcmp.eq.s32.totalorder %v953_v47, %v1984_v51 }
 0x2d9   :  { %991 = vst [vmem:[%s2460_s7 + $0x20] sm:$0xff] %v975_v28  ;;  %v889_v32 = vpop.f32.mrf.mxu0 }
 0x2da   :  { %v978_v35 = vsel %vm962_vm10, 0.0, %v895_v29  ;;  %v890_v36 = vadd.f32 %v889_v32, %v744_v49 }
 0x2db   :  { %994 = vst [vmem:[%s2460_s7 + $0x38] sm:$0xff] %v978_v35  ;;  %v1742_v37 = vpop.f32.mrf.mxu0 }
 0x2dc   :  { %v977_v39 = vsel %vm961_vm11, 0.0, %v890_v36  ;;  %v905_v59 = vadd.f32 %v1742_v37, %v1686_v61  ;;  %v784_v61 = vpop.f32.mrf.mxu1 }
 0x2dd   :  { %993 = vst [vmem:[%s2460_s7 + $0x30] sm:$0xff] %v977_v39  ;;  %v899_v63 = vpop.f32.mrf.mxu0 }
 0x2de   :  { %v980_v56 = vsel %vm964_vm12, 0.0, %v905_v59  ;;  %v900_v12 = vadd.f32 %v899_v63, %v754_v7 }
 0x2df   :  { %996 = vst [vmem:[%s2460_s7 + $0x48] sm:$0xff] %v980_v56  ;;  %v1745_v17 = vpop.f32.mrf.mxu0 }
 0x2e0   :  { %v979_v24 = vsel %vm963_vm13, 0.0, %v900_v12  ;;  %v915_v30 = vadd.f32 %v1745_v17, %v1689_v19 }
 0x2e1   :  { %995 = vst [vmem:[%s2460_s7 + $0x40] sm:$0xff] %v979_v24  ;;  %v909_v40 = vpop.f32.mrf.mxu0 }
 0x2e2   :  { %v982_v53 = vsel %vm966_vm14, 0.0, %v915_v30  ;;  %v910_v62 = vadd.f32 %v909_v40, %v764_v31 }
 0x2e3   :  { %998 = vst [vmem:[%s2460_s7 + $0x58] sm:$0xff] %v982_v53  ;;  %v1748_v13 = vpop.f32.mrf.mxu0 }
 0x2e4   :  { %v981_v42 = vsel %vm965_vm15, 0.0, %v910_v62  ;;  %v925_v43 = vadd.f32 %v1748_v13, %v1692_v60 }
 0x2e5   :  { %997 = vst [vmem:[%s2460_s7 + $0x50] sm:$0xff] %v981_v42  ;;  %v919_v46 = vpop.f32.mrf.mxu0 }
 0x2e6   :  { %v984_v48 = vsel %vm968_vm0, 0.0, %v925_v43  ;;  %v920_v49 = vadd.f32 %v919_v46, %v774_v34 }
 0x2e7   :  { %1000 = vst [vmem:[%s2460_s7 + $0x68] sm:$0xff] %v984_v48  ;;  %v1751_v54 = vpop.f32.mrf.mxu0 }
 0x2e8   :  { %v983_v55 = vsel %vm967_vm1, 0.0, %v920_v49  ;;  %v935_v52 = vadd.f32 %v1751_v54, %v1695_v45 }
 0x2e9   :  { %999 = vst [vmem:[%s2460_s7 + $0x60] sm:$0xff] %v983_v55  ;;  %v929_v50 = vpop.f32.mrf.mxu0 }
 0x2ea   :  { %v986_v57 = vsel %vm970_vm2, 0.0, %v935_v52  ;;  %v930_v0 = vadd.f32 %v929_v50, %v784_v61 }
 0x2eb   :  { %1002 = vst [vmem:[%s2460_s7 + $0x78] sm:$0xff] %v986_v57 }
 0x2ec   :  { %v985_v1 = vsel %vm969_vm3, 0.0, %v930_v0 }
 0x2ed   :  { %1001 = vst [vmem:[%s2460_s7 + $0x70] sm:$0xff] %v985_v1 }
 0x2ee   :  { %1779 = dma.done.wait [#allocation3], 32  }
 0x2ef   :  { %1780 = vsyncadd [#allocation3], 4294967264 }
 0x2f0   :  { %1294 = vsyncpa [#allocation3], 1 }

// kernel: _lambda_.8
= control target key start
LH: loop header
LB: loop body
LE: loop exit
PB: predicated region body
PF: predicated region fallthrough
CT: control target
= control target key end

     0   :  { %v1781_v2 = vmov 0   ;;  %s2457_s0 = inlined_call_operand.vmem [shape: s32[128,1], index: 0, kind: input, shape index: {}]   ;;  %s2458_s1 = inlined_call_operand.vmem [shape: f32[128,128], index: 1, kind: input, shape index: {}]   ;;  %s2459_s2 = inlined_call_operand.vmem [shape: f32[128,128], index: 2, kind: input, shape index: {}]   ;;  %s2460_s3 = inlined_call_operand.vmem [shape: f32[128,128], index: 3, kind: input, shape index: {}]   ;;  %s2461_s4 = inlined_call_operand.vmem [shape: f32[1,128], index: 4, kind: input, shape index: {}]   ;;  %s2462_s5 = inlined_call_operand.vmem [shape: f32[2,256], index: 5, kind: input, shape index: {}, may-alias: {5,8}]   ;;  %s2463_s6 = inlined_call_operand.vmem [shape: f32[128,128], index: 6, kind: output, shape index: {0}]   ;;  %s2464_s7 = inlined_call_operand.vmem [shape: f32[128,128], index: 7, kind: output, shape index: {1}]   ;;  %s2465_s8 = inlined_call_operand.vmem [shape: f32[2,256], index: 8, kind: output, shape index: {2}, may-alias: {5,8}]   ;;  %s2466_s9 = inlined_call_operand.hbm [shape: f32[2,128], index: 9, kind: output, shape index: {3}]  }
   0x1   :  { %v32_v0 = vld [vmem:[%s2457_s0 + $0x10] sm:$0xff]  ;;  %v30_v1 = vld [vmem:[%s2457_s0] sm:$0xff]  ;;  %1758 = vset.pattern.permute.xlu1 %v1781_v2  ;;  %1757 = vset.pattern.permute.xlu0 %v1781_v2  ;;  %v33_v3 = vld [vmem:[%s2457_s0 + $0x18] sm:$0xff] }
   0x2   :  { %53 = vperm.xlu1 %1758, %v32_v0   ;;  %47 = vperm.xlu0 %1757, %v30_v1   ;;  %v31_v4 = vld [vmem:[%s2457_s0 + $0x8] sm:$0xff]  ;;  %v141_v5 = vld [vmem:[%s2459_s2 + $0x78] sm:$0xff]  ;;  %v140_v6 = vld [vmem:[%s2459_s2 + $0x70] sm:$0xff] }
   0x3   :  { %v325_v7 = vld [vmem:[%s2460_s3 + $0x78] sm:$0xff]  ;;  %v324_v8 = vld [vmem:[%s2460_s3 + $0x70] sm:$0xff]  ;;  %v35_v9 = vld [vmem:[%s2457_s0 + $0x28] sm:$0xff]  ;;  %1472 = vmatprep.subr.mxu0 %v141_v5 }
   0x4   :  { %v34_v10 = vld [vmem:[%s2457_s0 + $0x20] sm:$0xff]  ;;  %1528 = vmatprep.subr.mxu1 %v325_v7  ;;  %1473 = vmatpush3.msra.mxu0 %v141_v5  ;;  %v139_v11 = vld [vmem:[%s2459_s2 + $0x68] sm:$0xff]  ;;  %v37_v13 = vld [vmem:[%s2457_s0 + $0x38] sm:$0xff] }
   0x5   :  { %1529 = vmatpush3.msra.mxu1 %v325_v7  ;;  %1474 = vmatprep.subr.mxu0 %v140_v6  ;;  %v323_v12 = vld [vmem:[%s2460_s3 + $0x68] sm:$0xff]  ;;  %v36_v14 = vld [vmem:[%s2457_s0 + $0x30] sm:$0xff]  ;;  %v138_v15 = vld [vmem:[%s2459_s2 + $0x60] sm:$0xff] }
   0x6   :  { %56 = vperm.xlu1 %1758, %v33_v3   ;;  %50 = vperm.xlu0 %1757, %v31_v4   ;;  %v322_v16 = vld [vmem:[%s2460_s3 + $0x60] sm:$0xff]  ;;  %v137_v17 = vld [vmem:[%s2459_s2 + $0x58] sm:$0xff]  ;;  %v39_v19 = vld [vmem:[%s2457_s0 + $0x48] sm:$0xff] }
   0x7   :  { %1530 = vmatprep.subr.mxu1 %v324_v8  ;;  %1475 = vmatpush3.msra.mxu0 %v140_v6  ;;  %v321_v18 = vld [vmem:[%s2460_s3 + $0x58] sm:$0xff]  ;;  %v38_v20 = vld [vmem:[%s2457_s0 + $0x40] sm:$0xff] }
   0x8   :  { %1531 = vmatpush3.msra.mxu1 %v324_v8  ;;  %1476 = vmatprep.subr.mxu0 %v139_v11 }
   0x9   :  { %1532 = vmatprep.subr.mxu1 %v323_v12  ;;  %1477 = vmatpush3.msra.mxu0 %v139_v11 }
   0xa   :  { %62 = vperm.xlu1 %1758, %v35_v9   ;;  %59 = vperm.xlu0 %1757, %v34_v10  }
   0xb   :  { %1533 = vmatpush3.msra.mxu1 %v323_v12  ;;  %1478 = vmatprep.subr.mxu0 %v138_v15 }
   0xc   :  { %1534 = vmatprep.subr.mxu1 %v322_v16  ;;  %1479 = vmatpush3.msra.mxu0 %v138_v15 }
   0xd   :  { %1535 = vmatpush3.msra.mxu1 %v322_v16 }
   0xe   :  { %68 = vperm.xlu1 %1758, %v37_v13   ;;  %65 = vperm.xlu0 %1757, %v36_v14  }
   0xf   :  { %15 = vsyncpa [#allocation3], 0  ;;  %1480 = vmatprep.subr.mxu0 %v137_v17  ;;  %v136_v21 = vld [vmem:[%s2459_s2 + $0x50] sm:$0xff]  ;;  %1536 = vmatprep.subr.mxu1 %v321_v18  ;;  %v41_v23 = vld [vmem:[%s2457_s0 + $0x58] sm:$0xff]  ;;  %v28_v50 = vlaneseq  ;;  %v1782_v55 = vmov 1.0   ;;  %v1783_v56 = vmov 0.0  }
  0x10   :  { %v320_v22 = vld [vmem:[%s2460_s3 + $0x50] sm:$0xff]  ;;  %1481 = vmatpush3.msra.mxu0 %v137_v17  ;;  %1537 = vmatpush3.msra.mxu1 %v321_v18  ;;  %v135_v25 = vld [vmem:[%s2459_s2 + $0x48] sm:$0xff]  ;;  %v134_v27 = vld [vmem:[%s2459_s2 + $0x40] sm:$0xff] }
  0x11   :  { %v40_v24 = vld [vmem:[%s2457_s0 + $0x50] sm:$0xff]  ;;  %1482 = vmatprep.subr.mxu0 %v136_v21  ;;  %1538 = vmatprep.subr.mxu1 %v320_v22  ;;  %v319_v26 = vld [vmem:[%s2460_s3 + $0x48] sm:$0xff]  ;;  %v318_v28 = vld [vmem:[%s2460_s3 + $0x40] sm:$0xff]  ;;  %v1984_v51 = vand.u32 127, %v28_v50 }
  0x12   :  { %74 = vperm.xlu1 %1758, %v39_v19   ;;  %71 = vperm.xlu0 %1757, %v38_v20   ;;  %v43_v29 = vld [vmem:[%s2457_s0 + $0x68] sm:$0xff]  ;;  %v42_v30 = vld [vmem:[%s2457_s0 + $0x60] sm:$0xff]  ;;  %v133_v31 = vld [vmem:[%s2459_s2 + $0x38] sm:$0xff] }
  0x13   :  { %1483 = vmatpush3.msra.mxu0 %v136_v21  ;;  %1539 = vmatpush3.msra.mxu1 %v320_v22  ;;  %v317_v32 = vld [vmem:[%s2460_s3 + $0x38] sm:$0xff]  ;;  %v44_v34 = vld [vmem:[%s2457_s0 + $0x70] sm:$0xff]  ;;  %v131_v37 = vld [vmem:[%s2459_s2 + $0x28] sm:$0xff] }
  0x14   :  { %1484 = vmatprep.subr.mxu0 %v135_v25  ;;  %1540 = vmatprep.subr.mxu1 %v319_v26  ;;  %v45_v33 = vld [vmem:[%s2457_s0 + $0x78] sm:$0xff]  ;;  %v132_v35 = vld [vmem:[%s2459_s2 + $0x30] sm:$0xff]  ;;  %v315_v38 = vld [vmem:[%s2460_s3 + $0x28] sm:$0xff] }
  0x15   :  { %1485 = vmatpush3.msra.mxu0 %v135_v25  ;;  %1541 = vmatpush3.msra.mxu1 %v319_v26  ;;  %v316_v36 = vld [vmem:[%s2460_s3 + $0x30] sm:$0xff]  ;;  %v130_v39 = vld [vmem:[%s2459_s2 + $0x20] sm:$0xff]  ;;  %v129_v41 = vld [vmem:[%s2459_s2 + $0x18] sm:$0xff] }
  0x16   :  { %80 = vperm.xlu1 %1758, %v41_v23   ;;  %77 = vperm.xlu0 %1757, %v40_v24   ;;  %v314_v40 = vld [vmem:[%s2460_s3 + $0x20] sm:$0xff]  ;;  %v313_v42 = vld [vmem:[%s2460_s3 + $0x18] sm:$0xff]  ;;  %v128_v43 = vld [vmem:[%s2459_s2 + $0x10] sm:$0xff] }
  0x17   :  { %1486 = vmatprep.subr.mxu0 %v134_v27  ;;  %1542 = vmatprep.subr.mxu1 %v318_v28  ;;  %v312_v44 = vld [vmem:[%s2460_s3 + $0x10] sm:$0xff]  ;;  %v127_v45 = vld [vmem:[%s2459_s2 + $0x8] sm:$0xff]  ;;  %v126_v47 = vld [vmem:[%s2459_s2] sm:$0xff] }
  0x18   :  { %1487 = vmatpush3.msra.mxu0 %v134_v27  ;;  %1543 = vmatpush3.msra.mxu1 %v318_v28  ;;  %v311_v46 = vld [vmem:[%s2460_s3 + $0x8] sm:$0xff]  ;;  %v310_v48 = vld [vmem:[%s2460_s3] sm:$0xff]  ;;  %v502_v49 = vld [vmem:[%s2458_s1 + $0x78] sm:$0xff] }
  0x19   :  { %1488 = vmatprep.subr.mxu0 %v133_v31  ;;  %1544 = vmatprep.subr.mxu1 %v317_v32  ;;  %v1989_v52 = vld [vmem:[%s2461_s4] ss:$0 sm:$0xff]  ;;  %v501_v62 = vld [vmem:[%s2458_s1 + $0x70] sm:$0xff]  ;;  %v500_v5 = vld [vmem:[%s2458_s1 + $0x68] sm:$0xff] }
  0x1a   :  { %86 = vperm.xlu1 %1758, %v43_v29   ;;  %83 = vperm.xlu0 %1757, %v42_v30   ;;  %v499_v7 = vld [vmem:[%s2458_s1 + $0x60] sm:$0xff]  ;;  %v498_v13 = vld [vmem:[%s2458_s1 + $0x58] sm:$0xff]  ;;  %v497_v20 = vld [vmem:[%s2458_s1 + $0x50] sm:$0xff] }
  0x1b   :  { %1489 = vmatpush3.msra.mxu0 %v133_v31  ;;  %1545 = vmatpush3.msra.mxu1 %v317_v32  ;;  %v496_v22 = vld [vmem:[%s2458_s1 + $0x48] sm:$0xff]  ;;  %v495_v28 = vld [vmem:[%s2458_s1 + $0x40] sm:$0xff] }
  0x1c   :  { %1490 = vmatprep.subr.mxu0 %v132_v35  ;;  %1546 = vmatprep.subr.mxu1 %v316_v36 }
  0x1d   :  { %1491 = vmatpush3.msra.mxu0 %v132_v35  ;;  %1547 = vmatpush3.msra.mxu1 %v316_v36  ;;  %v494_v35 = vld [vmem:[%s2458_s1 + $0x38] sm:$0xff] }
  0x1e   :  { %92 = vperm.xlu1 %1758, %v45_v33   ;;  %89 = vperm.xlu0 %1757, %v44_v34  }
  0x1f   :  { %1492 = vmatprep.subr.mxu0 %v131_v37  ;;  %1548 = vmatprep.subr.mxu1 %v315_v38 }
  0x20   :  { %1493 = vmatpush3.msra.mxu0 %v131_v37  ;;  %1549 = vmatpush3.msra.mxu1 %v315_v38  ;;  %v493_v37 = vld [vmem:[%s2458_s1 + $0x30] sm:$0xff] }
  0x21   :  { %1494 = vmatprep.subr.mxu0 %v130_v39  ;;  %1550 = vmatprep.subr.mxu1 %v314_v40 }
  0x22   :  { %1495 = vmatpush3.msra.mxu0 %v130_v39  ;;  %1551 = vmatpush3.msra.mxu1 %v314_v40 }
  0x23   :  { %1496 = vmatprep.subr.mxu0 %v129_v41  ;;  %1552 = vmatprep.subr.mxu1 %v313_v42 }
  0x24   :  { %1497 = vmatpush3.msra.mxu0 %v129_v41  ;;  %1553 = vmatpush3.msra.mxu1 %v313_v42 }
  0x25   :  { %1498 = vmatprep.subr.mxu0 %v128_v43  ;;  %1554 = vmatprep.subr.mxu1 %v312_v44 }
  0x26   :  { %1499 = vmatpush3.msra.mxu0 %v128_v43  ;;  %1555 = vmatpush3.msra.mxu1 %v312_v44  ;;  %v492_v43 = vld [vmem:[%s2458_s1 + $0x28] sm:$0xff] }
  0x27   :  { %1500 = vmatprep.subr.mxu0 %v127_v45  ;;  %1556 = vmatprep.subr.mxu1 %v311_v46 }
  0x28   :  { %1501 = vmatpush3.msra.mxu0 %v127_v45  ;;  %1557 = vmatpush3.msra.mxu1 %v311_v46 }
  0x29   :  { %1502 = vmatprep.subr.mxu0 %v126_v47  ;;  %1558 = vmatprep.subr.mxu1 %v310_v48 }
  0x2a   :  { %1503 = vmatpush3.msra.mxu0 %v126_v47  ;;  %1559 = vmatpush3.msra.mxu1 %v310_v48  ;;  %v491_v48 = vld [vmem:[%s2458_s1 + $0x20] sm:$0xff] }
  0x2b   :  { %1584 = vmatprep.subr.mxu0 %v502_v49 }
  0x7d   :  { %v54_v53 = vpop.permute.xlu1 %53  ;;  %v48_v54 = vpop.permute.xlu0 %47 }
  0x7e   :  { %vm96_vm0 = vcmp.eq.s32.totalorder %v1984_v51, %v54_v53  ;;  %vm94_vm1 = vcmp.eq.s32.totalorder %v1984_v51, %v48_v54  ;;  %v489_v54 = vld [vmem:[%s2458_s1 + $0x10] sm:$0xff] }
  0x7f   :  { %1504 = vmatprep.mubr.msk.f32.mxu0 %vm94_vm1, %v1782_v55  ;;  %v110_v57 = vsel %vm94_vm1, 1.0, %v1783_v56  ;;  %v112_v58 = vsel %vm96_vm0, 1.0, %v1783_v56  ;;  %vm1251_vm1 = vcmask 1040384  }
  0x80   :  { %v294_v59 = vmul.f32 %v1989_v52, %v110_v57  ;;  %v296_v63 = vmul.f32 %v1989_v52, %v112_v58  ;;  %v2133_v57 = vshrl.u32 %v28_v50, 7 }
  0x81   :  { %v57_v60 = vpop.permute.xlu1 %56  ;;  %v51_v61 = vpop.permute.xlu0 %50 }
  0x82   :  { %vm97_vm2 = vcmp.eq.s32.totalorder %v1984_v51, %v57_v60  ;;  %vm95_vm3 = vcmp.eq.s32.totalorder %v1984_v51, %v51_v61  ;;  %1560 = vmatprep.mubr.f32.mxu1 %v294_v59  ;;  %v2138_v59 = vadd.s32 16, %v2133_v57 }
  0x83   :  { %v111_v0 = vsel %vm95_vm3, 1.0, %v1783_v56  ;;  %1505 = vmatmul.mubr.msk.f32.vlgmr.msra.gmra.mxu0 %vm95_vm3, %v1782_v55  ;;  %v113_v2 = vsel %vm97_vm2, 1.0, %v1783_v56 }
  0x84   :  { %v295_v1 = vmul.f32 %v1989_v52, %v111_v0  ;;  %1507 = vmatprep.mubr.msk.f32.mxu0 %vm96_vm0, %v1782_v55  ;;  %1585 = vmatpush3.msra.mxu0 %v502_v49  ;;  %v297_v8 = vmul.f32 %v1989_v52, %v113_v2  ;;  %v490_v49 = vld [vmem:[%s2458_s1 + $0x18] sm:$0xff]  ;;  %vm1145_vm0 = vcmp.lt.s32.totalorder %v2138_v59, 18 }
  0x85   :  { %v63_v3 = vpop.permute.xlu1 %62  ;;  %v60_v4 = vpop.permute.xlu0 %59  ;;  %1586 = vmatprep.subr.mxu0 %v501_v62 }
  0x86   :  { %vm99_vm4 = vcmp.eq.s32.totalorder %v1984_v51, %v63_v3  ;;  %vm98_vm5 = vcmp.eq.s32.totalorder %v1984_v51, %v60_v4  ;;  %1561 = vmatmul.mubr.f32.vlgmr.msra.gmra.mxu1 %v295_v1  ;;  %1587 = vmatpush3.msra.mxu0 %v501_v62  ;;  %v1177_v3 = vsel %vm1145_vm0, 1.0, %v1783_v56 }
  0x87   :  { %v114_v6 = vsel %vm98_vm5, 1.0, %v1783_v56  ;;  %1508 = vmatmul.mubr.msk.f32.gmra.mxu0 %vm97_vm2, %v1782_v55  ;;  %1563 = vmatprep.mubr.f32.mxu1 %v296_v63  ;;  %v115_v10 = vsel %vm99_vm4, 1.0, %v1783_v56 }
  0x88   :  { %v298_v9 = vmul.f32 %v1989_v52, %v114_v6  ;;  %1510 = vmatprep.mubr.msk.f32.mxu0 %vm98_vm5, %v1782_v55  ;;  %1588 = vmatprep.subr.mxu0 %v500_v5  ;;  %v299_v15 = vmul.f32 %v1989_v52, %v115_v10 }
  0x89   :  { %v69_v11 = vpop.permute.xlu1 %68  ;;  %v66_v12 = vpop.permute.xlu0 %65  ;;  %1589 = vmatpush3.msra.mxu0 %v500_v5 }
  0x8a   :  { %vm101_vm6 = vcmp.eq.s32.totalorder %v1984_v51, %v69_v11  ;;  %vm100_vm7 = vcmp.eq.s32.totalorder %v1984_v51, %v66_v12  ;;  %1564 = vmatmul.mubr.f32.gmra.mxu1 %v297_v8  ;;  %1590 = vmatprep.subr.mxu0 %v499_v7 }
  0x8b   :  { %v116_v14 = vsel %vm100_vm7, 1.0, %v1783_v56  ;;  %1511 = vmatmul.mubr.msk.f32.gmra.mxu0 %vm99_vm4, %v1782_v55  ;;  %1566 = vmatprep.mubr.f32.mxu1 %v298_v9  ;;  %v117_v17 = vsel %vm101_vm6, 1.0, %v1783_v56 }
  0x8c   :  { %v300_v16 = vmul.f32 %v1989_v52, %v116_v14  ;;  %1513 = vmatprep.mubr.msk.f32.mxu0 %vm100_vm7, %v1782_v55  ;;  %1591 = vmatpush3.msra.mxu0 %v499_v7  ;;  %v301_v23 = vmul.f32 %v1989_v52, %v117_v17 }
  0x8d   :  { %v75_v18 = vpop.permute.xlu1 %74  ;;  %v72_v19 = vpop.permute.xlu0 %71  ;;  %1592 = vmatprep.subr.mxu0 %v498_v13 }
  0x8e   :  { %vm103_vm8 = vcmp.eq.s32.totalorder %v1984_v51, %v75_v18  ;;  %vm102_vm9 = vcmp.eq.s32.totalorder %v1984_v51, %v72_v19  ;;  %1567 = vmatmul.mubr.f32.gmra.mxu1 %v299_v15  ;;  %1593 = vmatpush3.msra.mxu0 %v498_v13 }
  0x8f   :  { %v118_v21 = vsel %vm102_vm9, 1.0, %v1783_v56  ;;  %1514 = vmatmul.mubr.msk.f32.gmra.mxu0 %vm101_vm6, %v1782_v55  ;;  %1569 = vmatprep.mubr.f32.mxu1 %v300_v16  ;;  %v119_v25 = vsel %vm103_vm8, 1.0, %v1783_v56 }
  0x90   :  { %v302_v24 = vmul.f32 %v1989_v52, %v118_v21  ;;  %1516 = vmatprep.mubr.msk.f32.mxu0 %vm102_vm9, %v1782_v55  ;;  %1594 = vmatprep.subr.mxu0 %v497_v20  ;;  %v303_v30 = vmul.f32 %v1989_v52, %v119_v25 }
  0x91   :  { %v81_v26 = vpop.permute.xlu1 %80  ;;  %v78_v27 = vpop.permute.xlu0 %77  ;;  %1595 = vmatpush3.msra.mxu0 %v497_v20 }
  0x92   :  { %vm105_vm10 = vcmp.eq.s32.totalorder %v1984_v51, %v81_v26  ;;  %vm104_vm11 = vcmp.eq.s32.totalorder %v1984_v51, %v78_v27  ;;  %1570 = vmatmul.mubr.f32.gmra.mxu1 %v301_v23  ;;  %1596 = vmatprep.subr.mxu0 %v496_v22 }
  0x93   :  { %v120_v29 = vsel %vm104_vm11, 1.0, %v1783_v56  ;;  %1517 = vmatmul.mubr.msk.f32.gmra.mxu0 %vm103_vm8, %v1782_v55  ;;  %1572 = vmatprep.mubr.f32.mxu1 %v302_v24  ;;  %v121_v32 = vsel %vm105_vm10, 1.0, %v1783_v56 }
  0x94   :  { %v304_v31 = vmul.f32 %v1989_v52, %v120_v29  ;;  %1519 = vmatprep.mubr.msk.f32.mxu0 %vm104_vm11, %v1782_v55  ;;  %1597 = vmatpush3.msra.mxu0 %v496_v22  ;;  %v305_v38 = vmul.f32 %v1989_v52, %v121_v32 }
  0x95   :  { %v87_v33 = vpop.permute.xlu1 %86  ;;  %v84_v34 = vpop.permute.xlu0 %83  ;;  %1598 = vmatprep.subr.mxu0 %v495_v28 }
  0x96   :  { %vm107_vm12 = vcmp.eq.s32.totalorder %v1984_v51, %v87_v33  ;;  %vm106_vm13 = vcmp.eq.s32.totalorder %v1984_v51, %v84_v34  ;;  %1573 = vmatmul.mubr.f32.gmra.mxu1 %v303_v30  ;;  %1599 = vmatpush3.msra.mxu0 %v495_v28 }
  0x97   :  { %v122_v36 = vsel %vm106_vm13, 1.0, %v1783_v56  ;;  %1520 = vmatmul.mubr.msk.f32.gmra.mxu0 %vm105_vm10, %v1782_v55  ;;  %1575 = vmatprep.mubr.f32.mxu1 %v304_v31  ;;  %v123_v40 = vsel %vm107_vm12, 1.0, %v1783_v56 }
  0x98   :  { %v306_v39 = vmul.f32 %v1989_v52, %v122_v36  ;;  %1522 = vmatprep.mubr.msk.f32.mxu0 %vm106_vm13, %v1782_v55  ;;  %1600 = vmatprep.subr.mxu0 %v494_v35  ;;  %v307_v45 = vmul.f32 %v1989_v52, %v123_v40 }
  0x99   :  { %v93_v41 = vpop.permute.xlu1 %92  ;;  %v90_v42 = vpop.permute.xlu0 %89  ;;  %1601 = vmatpush3.msra.mxu0 %v494_v35 }
  0x9a   :  { %vm109_vm14 = vcmp.eq.s32.totalorder %v1984_v51, %v93_v41  ;;  %vm108_vm15 = vcmp.eq.s32.totalorder %v1984_v51, %v90_v42  ;;  %1576 = vmatmul.mubr.f32.gmra.mxu1 %v305_v38  ;;  %1602 = vmatprep.subr.mxu0 %v493_v37 }
  0x9b   :  { %v124_v44 = vsel %vm108_vm15, 1.0, %v1783_v56  ;;  %1523 = vmatmul.mubr.msk.f32.gmra.mxu0 %vm107_vm12, %v1782_v55  ;;  %1578 = vmatprep.mubr.f32.mxu1 %v306_v39  ;;  %v125_v47 = vsel %vm109_vm14, 1.0, %v1783_v56 }
  0x9c   :  { %v308_v46 = vmul.f32 %v1989_v52, %v124_v44  ;;  %1525 = vmatprep.mubr.msk.f32.mxu0 %vm108_vm15, %v1782_v55  ;;  %1603 = vmatpush3.msra.mxu0 %v493_v37  ;;  %v309_v53 = vmul.f32 %v1989_v52, %v125_v47  ;;  %v487_v52 = vld [vmem:[%s2458_s1] sm:$0xff] }
  0x9d   :  { %1604 = vmatprep.subr.mxu0 %v492_v43 }
  0x9e   :  { %1579 = vmatmul.mubr.f32.gmra.mxu1 %v307_v45  ;;  %1605 = vmatpush3.msra.mxu0 %v492_v43 }
  0x9f   :  { %1526 = vmatmul.mubr.msk.f32.gmra.mxu0 %vm109_vm14, %v1782_v55  ;;  %1581 = vmatprep.mubr.f32.mxu1 %v308_v46  ;;  %v488_v55 = vld [vmem:[%s2458_s1 + $0x8] sm:$0xff] }
  0xa0   :  { %1606 = vmatprep.subr.mxu0 %v491_v48 }
  0xa1   :  { %1607 = vmatpush3.msra.mxu0 %v491_v48 }
  0xa2   :  { %1582 = vmatmul.mubr.f32.gmra.mxu1 %v309_v53  ;;  %1608 = vmatprep.subr.mxu0 %v490_v49 }
  0xa3   :  { %1609 = vmatpush3.msra.mxu0 %v490_v49 }
  0xa4   :  { %1610 = vmatprep.subr.mxu0 %v489_v54 }
  0xa5   :  { %1611 = vmatpush3.msra.mxu0 %v489_v54 }
  0xa6   :  { %1612 = vmatprep.subr.mxu0 %v488_v55 }
  0xa7   :  { %1613 = vmatpush3.msra.mxu0 %v488_v55 }
  0xa8   :  { %1614 = vmatprep.subr.mxu0 %v487_v52 }
  0xa9   :  { %1615 = vmatpush3.msra.mxu0 %v487_v52 }
 0x143   :  { %v2135_v58 = vpop.f32.mrf.mxu0 }
 0x145   :  { %v2140_v60 = vpop.f32.mrf.mxu0 }
 0x146   :  { %v2142_v61 = vpop.f32.mrf.mxu1  ;;  %1616 = vmatprep.mubr.f32.mxu0 %v2140_v60  ;;  %1672 = vmatprep.mubr.f32.mxu1 %v2140_v60 }
 0x147   :  { %472 = vst [vmem:[%s2463_s6 + $0x8] sm:$0xff] %v2142_v61  ;;  %v2150_v50 = vpop.f32.mrf.mxu0  ;;  %1617 = vmatmul.mubr.f32.vlgmr.msra.gmra.mxu0 %v2135_v58  ;;  %v2157_v63 = vmul.f32 0.0, %v2142_v61 }
 0x148   :  { %v2154_v62 = vpop.f32.mrf.mxu1 }
 0x149   :  { %471 = vst [vmem:[%s2463_s6] sm:$0xff] %v2154_v62  ;;  %v2164_v0 = vmul.f32 0.0, %v2154_v62  ;;  %v2166_v1 = vpop.f32.mrf.mxu0  ;;  %v1083_v6 = vadd.f32 %v2157_v63, %v2154_v62 }
 0x14a   :  { %v1565_v2 = vpop.f32.mrf.mxu1  ;;  %1619 = vmatprep.mubr.f32.mxu0 %v2166_v1 }
 0x14b   :  { %474 = vst [vmem:[%s2463_s6 + $0x18] sm:$0xff] %v1565_v2  ;;  %v2173_v4 = vpop.f32.mrf.mxu0  ;;  %1620 = vmatmul.mubr.f32.gmra.mxu0 %v2150_v50  ;;  %v1207_v56 = vadd.f32 %v2142_v61, %v2164_v0  ;;  %v2190_v11 = vmul.f32 0.0, %v1565_v2 }
 0x14c   :  { %v402_v5 = vpop.f32.mrf.mxu1 }
 0x14d   :  { %473 = vst [vmem:[%s2463_s6 + $0x10] sm:$0xff] %v402_v5  ;;  %v2181_v7 = vmul.f32 0.0, %v402_v5  ;;  %v2183_v8 = vmul.f32 %v1177_v3, %v402_v5  ;;  %v2187_v9 = vpop.f32.mrf.mxu0 }
 0x14e   :  { %v1568_v10 = vpop.f32.mrf.mxu1  ;;  %1622 = vmatprep.mubr.f32.mxu0 %v2187_v9 }
 0x14f   :  { %v1084_v12 = vadd.f32 %v1083_v6, %v2181_v7  ;;  %v1208_v13 = vadd.f32 %v1207_v56, %v2183_v8  ;;  %476 = vst [vmem:[%s2463_s6 + $0x28] sm:$0xff] %v1568_v10  ;;  %v2197_v14 = vpop.f32.mrf.mxu0  ;;  %1623 = vmatmul.mubr.f32.gmra.mxu0 %v2173_v4  ;;  %v2216_v22 = vmul.f32 0.0, %v1568_v10 }
 0x150   :  { %v412_v15 = vpop.f32.mrf.mxu1 }
 0x151   :  { %v1085_v16 = vadd.f32 %v1084_v12, %v2190_v11  ;;  %v1209_v17 = vadd.f32 %v1208_v13, %v2190_v11  ;;  %475 = vst [vmem:[%s2463_s6 + $0x20] sm:$0xff] %v412_v15  ;;  %v2205_v18 = vpop.f32.mrf.mxu0  ;;  %v2207_v19 = vmul.f32 0.0, %v412_v15  ;;  %v1107_v54 = vmax.f32 %v2157_v63, %v2216_v22 }
 0x152   :  { %v1571_v20 = vpop.f32.mrf.mxu1  ;;  %1625 = vmatprep.mubr.f32.mxu0 %v2205_v18  ;;  %v1231_v55 = vmax.f32 %v2142_v61, %v2216_v22 }
 0x153   :  { %478 = vst [vmem:[%s2463_s6 + $0x38] sm:$0xff] %v1571_v20  ;;  %v2213_v21 = vpop.f32.mrf.mxu0  ;;  %1626 = vmatmul.mubr.f32.gmra.mxu0 %v2197_v14  ;;  %v1086_v23 = vadd.f32 %v1085_v16, %v2207_v19  ;;  %v1210_v24 = vadd.f32 %v1209_v17, %v2207_v19  ;;  %v1074_v32 = vmul.f32 0.0, %v1571_v20  ;;  %v1106_v52 = vmax.f32 %v2154_v62, %v2207_v19 }
 0x154   :  { %v422_v25 = vpop.f32.mrf.mxu1  ;;  %v1230_v3 = vmax.f32 %v2164_v0, %v2207_v19 }
 0x155   :  { %477 = vst [vmem:[%s2463_s6 + $0x30] sm:$0xff] %v422_v25  ;;  %v2223_v26 = vmul.f32 0.0, %v422_v25  ;;  %v2225_v27 = vpop.f32.mrf.mxu0  ;;  %v1087_v28 = vadd.f32 %v1086_v23, %v2216_v22  ;;  %v1211_v29 = vadd.f32 %v1210_v24, %v2216_v22  ;;  %v1109_v61 = vmax.f32 %v2190_v11, %v1074_v32 }
 0x156   :  { %v1574_v30 = vpop.f32.mrf.mxu1  ;;  %1628 = vmatprep.mubr.f32.mxu0 %v2225_v27 }
 0x157   :  { %480 = vst [vmem:[%s2463_s6 + $0x48] sm:$0xff] %v1574_v30  ;;  %v2233_v31 = vpop.f32.mrf.mxu0  ;;  %1629 = vmatmul.mubr.f32.gmra.mxu0 %v2213_v21  ;;  %v1088_v33 = vadd.f32 %v1087_v28, %v2223_v26  ;;  %v1212_v34 = vadd.f32 %v1211_v29, %v2223_v26  ;;  %v1076_v42 = vmul.f32 0.0, %v1574_v30  ;;  %v1108_v62 = vmax.f32 %v2181_v7, %v2223_v26 }
 0x158   :  { %v432_v35 = vpop.f32.mrf.mxu1  ;;  %v1232_v10 = vmax.f32 %v2183_v8, %v2223_v26 }
 0x159   :  { %479 = vst [vmem:[%s2463_s6 + $0x40] sm:$0xff] %v432_v35  ;;  %v1075_v36 = vmul.f32 0.0, %v432_v35  ;;  %v2241_v37 = vpop.f32.mrf.mxu0  ;;  %v1089_v38 = vadd.f32 %v1088_v33, %v1074_v32  ;;  %v1213_v39 = vadd.f32 %v1212_v34, %v1074_v32  ;;  %v1111_v7 = vmax.f32 %v1107_v54, %v1076_v42 }
 0x15a   :  { %v1577_v40 = vpop.f32.mrf.mxu1  ;;  %1631 = vmatprep.mubr.f32.mxu0 %v2241_v37  ;;  %v1235_v8 = vmax.f32 %v1231_v55, %v1076_v42 }
 0x15b   :  { %482 = vst [vmem:[%s2463_s6 + $0x58] sm:$0xff] %v1577_v40  ;;  %v2247_v41 = vpop.f32.mrf.mxu0  ;;  %1632 = vmatmul.mubr.f32.gmra.mxu0 %v2233_v31  ;;  %v1090_v43 = vadd.f32 %v1089_v38, %v1075_v36  ;;  %v1214_v44 = vadd.f32 %v1213_v39, %v1075_v36  ;;  %v1078_v5 = vmul.f32 0.0, %v1577_v40  ;;  %v1110_v13 = vmax.f32 %v1106_v52, %v1075_v36 }
 0x15c   :  { %v442_v45 = vpop.f32.mrf.mxu1  ;;  %v1234_v19 = vmax.f32 %v1230_v3, %v1075_v36 }
 0x15d   :  { %481 = vst [vmem:[%s2463_s6 + $0x50] sm:$0xff] %v442_v45  ;;  %v1077_v46 = vmul.f32 0.0, %v442_v45  ;;  %v2253_v47 = vpop.f32.mrf.mxu0  ;;  %v1091_v48 = vadd.f32 %v1090_v43, %v1076_v42  ;;  %v1215_v49 = vadd.f32 %v1214_v44, %v1076_v42  ;;  %v1113_v22 = vmax.f32 %v1109_v61, %v1078_v5 }
 0x15e   :  { %v1580_v53 = vpop.f32.mrf.mxu1  ;;  %1634 = vmatprep.mubr.f32.mxu0 %v2253_v47 }
 0x15f   :  { %484 = vst [vmem:[%s2463_s6 + $0x68] sm:$0xff] %v1580_v53  ;;  %v2265_v2 = vpop.f32.mrf.mxu0  ;;  %1635 = vmatmul.mubr.f32.gmra.mxu0 %v2247_v41  ;;  %v1092_v6 = vadd.f32 %v1091_v48, %v1077_v46  ;;  %v1216_v63 = vadd.f32 %v1215_v49, %v1077_v46  ;;  %v1080_v15 = vmul.f32 0.0, %v1580_v53  ;;  %v1112_v28 = vmax.f32 %v1108_v62, %v1077_v46 }
 0x160   :  { %v452_v56 = vpop.f32.mrf.mxu1  ;;  %1640 = vmatprep.subr.mxu1 %v2265_v2  ;;  %1696 = vmatprep.subr.mxu0 %v2265_v2  ;;  %v1236_v29 = vmax.f32 %v1232_v10, %v1077_v46 }
 0x161   :  { %483 = vst [vmem:[%s2463_s6 + $0x60] sm:$0xff] %v452_v56  ;;  %v1079_v0 = vmul.f32 0.0, %v452_v56  ;;  %v2280_v12 = vpop.f32.mrf.mxu0  ;;  %1641 = vmatpush3.xpose.msra.mxu1 %v2265_v2  ;;  %1697 = vmatpush3.xpose.msra.mxu0 %v2265_v2  ;;  %v1093_v11 = vadd.f32 %v1092_v6, %v1078_v5  ;;  %v1217_v16 = vadd.f32 %v1216_v63, %v1078_v5 }
 0x162   :  { %v1583_v17 = vpop.f32.mrf.mxu1  ;;  %1637 = vmatprep.mubr.f32.mxu0 %v2280_v12  ;;  %1642 = vmatprep.subr.mxu1 %v2280_v12  ;;  %v1115_v33 = vmax.f32 %v1111_v7, %v1080_v15  ;;  %v1239_v36 = vmax.f32 %v1235_v8, %v1080_v15 }
 0x163   :  { %486 = vst [vmem:[%s2463_s6 + $0x78] sm:$0xff] %v1583_v17  ;;  %v1082_v20 = vmul.f32 0.0, %v1583_v17  ;;  %1698 = vmatprep.subr.mxu0 %v2280_v12  ;;  %1638 = vmatmul.mubr.f32.gmra.mxu0 %v2265_v2  ;;  %v1094_v23 = vadd.f32 %v1093_v11, %v1079_v0  ;;  %v1114_v24 = vmax.f32 %v1110_v13, %v1079_v0  ;;  %v1784_v11 = vmov 1983009808  }
 0x164   :  { %v1218_v25 = vadd.f32 %v1217_v16, %v1079_v0  ;;  %v462_v26 = vpop.f32.mrf.mxu1  ;;  %v1238_v30 = vmax.f32 %v1234_v19, %v1079_v0  ;;  %v1260_v16 = vunpack.c.l.s4 %v1784_v11 }
 0x165   :  { %485 = vst [vmem:[%s2463_s6 + $0x70] sm:$0xff] %v462_v26  ;;  %v1081_v32 = vmul.f32 0.0, %v462_v26  ;;  %1643 = vmatpush3.xpose.msra.mxu1 %v2280_v12  ;;  %1699 = vmatpush3.xpose.msra.mxu0 %v2280_v12  ;;  %v1095_v34 = vadd.f32 %v1094_v23, %v1080_v15  ;;  %v1117_v38 = vmax.f32 %v1113_v22, %v1082_v20 }
 0x166   :  { %v1219_v35 = vadd.f32 %v1218_v25, %v1080_v15  ;;  %1644 = vmatprep.subr.mxu1 %v2247_v41  ;;  %1700 = vmatprep.subr.mxu0 %v2247_v41  ;;  %v1118_v42 = vmax.f32 %v1114_v24, %v1115_v33  ;;  %v1242_v45 = vmax.f32 %v1238_v30, %v1239_v36  ;;  %v1261_v25 = vunpack.c.0.s8 %v1260_v16 }
 0x167   :  { %v1116_v39 = vmax.f32 %v1112_v28, %v1081_v32  ;;  %v1240_v40 = vmax.f32 %v1236_v29, %v1081_v32  ;;  %v1096_v43 = vadd.f32 %v1095_v34, %v1081_v32 }
 0x168   :  { %v1220_v44 = vadd.f32 %v1219_v35, %v1081_v32  ;;  %v1264_v35 = vsub.s32 %v1261_v25, %v2133_v57 }
 0x169   :  { %v1119_v46 = vmax.f32 %v1116_v39, %v1117_v38  ;;  %v1243_v48 = vmax.f32 %v1240_v40, %v1117_v38  ;;  %1645 = vmatpush3.xpose.msra.mxu1 %v2247_v41  ;;  %1701 = vmatpush3.xpose.msra.mxu0 %v2247_v41  ;;  %v1097_v49 = vadd.f32 %v1096_v43, %v1082_v20  ;;  %v1255_v39 = vld [vmem:[%s2462_s5] sm:$0xf]  ;;  %s1785_s5 = smov [#allocation2]  }
 0x16a   :  { %v1221_v53 = vadd.f32 %v1220_v44, %v1082_v20  ;;  %1646 = vmatprep.subr.mxu1 %v2253_v47  ;;  %1702 = vmatprep.subr.mxu0 %v2253_v47 }
 0x16b   :  { %v1120_v54 = vmax.f32 %v1118_v42, %v1119_v46  ;;  %v1244_v55 = vmax.f32 %v1242_v45, %v1243_v48  ;;  %v1098_v52 = vrot.slane %v1097_v49, 4 }
 0x16c   :  { %v1222_v3 = vrot.slane %v1221_v53, 4 }
 0x16d   :  { %1647 = vmatpush3.xpose.msra.mxu1 %v2253_v47  ;;  %1703 = vmatpush3.xpose.msra.mxu0 %v2253_v47  ;;  %v1121_v5 = vrot.slane %v1120_v54, 4  ;;  %v1245_v6 = vrot.slane %v1244_v55, 4  ;;  %v1099_v63 = vadd.f32 %v1098_v52, %v1097_v49 }
 0x16e   :  { %1648 = vmatprep.subr.mxu1 %v2233_v31  ;;  %1704 = vmatprep.subr.mxu0 %v2233_v31  ;;  %v1223_v56 = vadd.f32 %v1222_v3, %v1221_v53 }
 0x16f   :  { %v1122_v61 = vmax.f32 %v1120_v54, %v1121_v5  ;;  %v1246_v62 = vmax.f32 %v1244_v55, %v1245_v6  ;;  %v1100_v10 = vrot.slane %v1099_v63, 2 }
 0x170   :  { %v1224_v0 = vrot.slane %v1223_v56, 2 }
 0x171   :  { %1649 = vmatpush3.xpose.msra.mxu1 %v2233_v31  ;;  %1705 = vmatpush3.xpose.msra.mxu0 %v2233_v31  ;;  %v1123_v13 = vrot.slane %v1122_v61, 2  ;;  %v1247_v15 = vrot.slane %v1246_v62, 2  ;;  %v1101_v17 = vadd.f32 %v1100_v10, %v1099_v63 }
 0x172   :  { %1650 = vmatprep.subr.mxu1 %v2241_v37  ;;  %1706 = vmatprep.subr.mxu0 %v2241_v37  ;;  %v1225_v7 = vadd.f32 %v1224_v0, %v1223_v56 }
 0x173   :  { %v1124_v8 = vmax.f32 %v1122_v61, %v1123_v13  ;;  %v1248_v19 = vmax.f32 %v1246_v62, %v1247_v15  ;;  %v1102_v20 = vrot.slane %v1101_v17, 1 }
 0x174   :  { %v1226_v22 = vrot.slane %v1225_v7, 1 }
 0x175   :  { %1651 = vmatpush3.xpose.msra.mxu1 %v2241_v37  ;;  %1707 = vmatpush3.xpose.msra.mxu0 %v2241_v37  ;;  %v1125_v23 = vrot.slane %v1124_v8, 1  ;;  %v1249_v24 = vrot.slane %v1248_v19, 1  ;;  %v1103_v26 = vadd.f32 %v1102_v20, %v1101_v17 }
 0x176   :  { %1652 = vmatprep.subr.mxu1 %v2213_v21  ;;  %1708 = vmatprep.subr.mxu0 %v2213_v21  ;;  %v1227_v28 = vadd.f32 %v1226_v22, %v1225_v7 }
 0x177   :  { %v1126_v29 = vmax.f32 %v1124_v8, %v1125_v23  ;;  %v1250_v30 = vmax.f32 %v1248_v19, %v1249_v24  ;;  %v1105_v32 = vmul.f32 0.125, %v1103_v26 }
 0x178   :  { %v1229_v33 = vmul.f32 0.1, %v1227_v28 }
 0x179   :  { %1653 = vmatpush3.xpose.msra.mxu1 %v2213_v21  ;;  %1709 = vmatpush3.xpose.msra.mxu0 %v2213_v21  ;;  %v1253_v34 = vsel %vm1251_vm1, %v1126_v29, %v1250_v30 }
 0x17a   :  { %1654 = vmatprep.subr.mxu1 %v2225_v27  ;;  %1710 = vmatprep.subr.mxu0 %v2225_v27  ;;  %v1252_v36 = vsel %vm1251_vm1, %v1105_v32, %v1229_v33 }
 0x17b   :  { %1254 = vst [vmem:[#allocation2] sm:$0x3] %v1252_v36  ;;  %v1258_v38 = vcombine.low %v1252_v36, %v1253_v34 }
 0x17d   :  { %1655 = vmatpush3.xpose.msra.mxu1 %v2225_v27  ;;  %1711 = vmatpush3.xpose.msra.mxu0 %v2225_v27  ;;  %v1265_v40 = vrot.slane %v1258_v38, %v1264_v35 }
 0x17e   :  { %1656 = vmatprep.subr.mxu1 %v2197_v14  ;;  %1712 = vmatprep.subr.mxu0 %v2197_v14 }
 0x17f   :  { %v1267_v42 = vadd.f32 %v1265_v40, %v1255_v39 }
 0x181   :  { %1657 = vmatpush3.xpose.msra.mxu1 %v2197_v14  ;;  %1713 = vmatpush3.xpose.msra.mxu0 %v2197_v14  ;;  %1268 = vst [vmem:[%s2465_s8] sm:$0xf] %v1267_v42  ;;  %s1281_s8 = sshll.u32 %s1785_s5, 4  ;;  %s1282_s8 = int_to_ptr.vmem [resolvable:$true] %s1281_s8 }
 0x182   :  { %1658 = vmatprep.subr.mxu1 %v2205_v18  ;;  %1714 = vmatprep.subr.mxu0 %v2205_v18  ;;  %s1759_s12 = scalar_lea.vmem %s1282_s8, 32  ;;  %p1764_p1 = scmp.lt.s32.totalorder %s1282_s8, %s1282_s8 }
 0x183   :  { %p1760_p0 = scmp.ne.s32.totalorder %s1282_s8, %s1759_s12  ;;  %p1765_p2 = scmp.lt.s32.totalorder %s1759_s12, %s1759_s12 }
 0x185   :  { %1659 = vmatpush3.xpose.msra.mxu1 %v2205_v18  ;;  %1715 = vmatpush3.xpose.msra.mxu0 %v2205_v18  ;;  %p1766_p3 = por %p1765_p2, %p1764_p1 }
 0x186   :  { %1660 = vmatprep.subr.mxu1 %v2173_v4  ;;  %1716 = vmatprep.subr.mxu0 %v2173_v4 }
 0x187   :  { %p1767_p4 = pnand %p1766_p3, %p1760_p0 }
 0x189   :  { %1661 = vmatpush3.xpose.msra.mxu1 %v2173_v4  ;;  %1717 = vmatpush3.xpose.msra.mxu0 %v2173_v4 }
 0x18a   :  { %1662 = vmatprep.subr.mxu1 %v2187_v9  ;;  %1718 = vmatprep.subr.mxu0 %v2187_v9 }
 0x18d   :  { %1663 = vmatpush3.xpose.msra.mxu1 %v2187_v9  ;;  %1719 = vmatpush3.xpose.msra.mxu0 %v2187_v9 }
 0x18e   :  { %1664 = vmatprep.subr.mxu1 %v2150_v50  ;;  %1720 = vmatprep.subr.mxu0 %v2150_v50 }
 0x191   :  { %1665 = vmatpush3.xpose.msra.mxu1 %v2150_v50  ;;  %1721 = vmatpush3.xpose.msra.mxu0 %v2150_v50 }
 0x192   :  { %1666 = vmatprep.subr.mxu1 %v2166_v1  ;;  %1722 = vmatprep.subr.mxu0 %v2166_v1 }
 0x195   :  { %1667 = vmatpush3.xpose.msra.mxu1 %v2166_v1  ;;  %1723 = vmatpush3.xpose.msra.mxu0 %v2166_v1 }
 0x196   :  { %1668 = vmatprep.subr.mxu1 %v2135_v58  ;;  %1724 = vmatprep.subr.mxu0 %v2135_v58 }
 0x199   :  { %1669 = vmatpush3.xpose.msra.mxu1 %v2135_v58  ;;  %1725 = vmatpush3.xpose.msra.mxu0 %v2135_v58 }
 0x19a   :  { %1670 = vmatprep.subr.mxu1 %v2140_v60  ;;  %1726 = vmatprep.subr.mxu0 %v2140_v60 }
 0x19d   :  { %1671 = vmatpush3.xpose.msra.mxu1 %v2140_v60  ;;  %1727 = vmatpush3.xpose.msra.mxu0 %v2140_v60 }
 0x1a0   :  { %1673 = vmatmul.mubr.f32.vlgmr.msra.gmra.mxu1 %v2135_v58 }
 0x1a1   :  { %1675 = vmatprep.mubr.f32.mxu1 %v2166_v1 }
 0x1a4   :  { %1676 = vmatmul.mubr.f32.gmra.mxu1 %v2150_v50 }
 0x1a5   :  { %1678 = vmatprep.mubr.f32.mxu1 %v2187_v9 }
 0x1a8   :  { %1679 = vmatmul.mubr.f32.gmra.mxu1 %v2173_v4 }
 0x1a9   :  { %1681 = vmatprep.mubr.f32.mxu1 %v2205_v18 }
 0x1ac   :  { %1682 = vmatmul.mubr.f32.gmra.mxu1 %v2197_v14 }
 0x1ad   :  { %1684 = vmatprep.mubr.f32.mxu1 %v2225_v27 }
 0x1b0   :  { %1685 = vmatmul.mubr.f32.gmra.mxu1 %v2213_v21 }
 0x1b1   :  { %1687 = vmatprep.mubr.f32.mxu1 %v2241_v37 }
 0x1b4   :  { %1688 = vmatmul.mubr.f32.gmra.mxu1 %v2233_v31 }
 0x1b5   :  { %1690 = vmatprep.mubr.f32.mxu1 %v2253_v47 }
 0x1b8   :  { %1691 = vmatmul.mubr.f32.gmra.mxu1 %v2247_v41 }
 0x1b9   :  { %1693 = vmatprep.mubr.f32.mxu1 %v2280_v12 }
 0x1bc   :  { %1694 = vmatmul.mubr.f32.gmra.mxu1 %v2265_v2 }
 0x207   :  { %v1618_v58 = vpop.f32.mrf.mxu0 }
 0x209   :  { %v569_v60 = vpop.f32.mrf.mxu0 }
 0x20a   :  { %1728 = vmatprep.mubr.f32.mxu0 %v569_v60 }
 0x20b   :  { %v1621_v50 = vpop.f32.mrf.mxu0  ;;  %1729 = vmatmul.mubr.f32.vlgmr.msra.gmra.mxu0 %v1618_v58 }
 0x20d   :  { %v579_v1 = vpop.f32.mrf.mxu0 }
 0x20e   :  { %1731 = vmatprep.mubr.f32.mxu0 %v579_v1 }
 0x20f   :  { %v1624_v4 = vpop.f32.mrf.mxu0  ;;  %1732 = vmatmul.mubr.f32.gmra.mxu0 %v1621_v50 }
 0x211   :  { %v589_v9 = vpop.f32.mrf.mxu0 }
 0x212   :  { %1734 = vmatprep.mubr.f32.mxu0 %v589_v9 }
 0x213   :  { %v1627_v14 = vpop.f32.mrf.mxu0  ;;  %1735 = vmatmul.mubr.f32.gmra.mxu0 %v1624_v4 }
 0x215   :  { %v599_v18 = vpop.f32.mrf.mxu0 }
 0x216   :  { %1737 = vmatprep.mubr.f32.mxu0 %v599_v18 }
 0x217   :  { %v1630_v21 = vpop.f32.mrf.mxu0  ;;  %1738 = vmatmul.mubr.f32.gmra.mxu0 %v1627_v14 }
 0x219   :  { %v609_v27 = vpop.f32.mrf.mxu0 }
 0x21a   :  { %1740 = vmatprep.mubr.f32.mxu0 %v609_v27 }
 0x21b   :  { %v1633_v31 = vpop.f32.mrf.mxu0  ;;  %1741 = vmatmul.mubr.f32.gmra.mxu0 %v1630_v21 }
 0x21d   :  { %v619_v37 = vpop.f32.mrf.mxu0 }
 0x21e   :  { %1743 = vmatprep.mubr.f32.mxu0 %v619_v37 }
 0x21f   :  { %v1636_v41 = vpop.f32.mrf.mxu0  ;;  %1744 = vmatmul.mubr.f32.gmra.mxu0 %v1633_v31 }
 0x221   :  { %v629_v47 = vpop.f32.mrf.mxu0 }
 0x222   :  { %1746 = vmatprep.mubr.f32.mxu0 %v629_v47 }
 0x223   :  { %v1639_v2 = vpop.f32.mrf.mxu0  ;;  %1747 = vmatmul.mubr.f32.gmra.mxu0 %v1636_v41 }
 0x225   :  { %v639_v12 = vpop.f32.mrf.mxu0 }
 0x226   :  { %1749 = vmatprep.mubr.f32.mxu0 %v639_v12 }
 0x227   :  { %1750 = vmatmul.mubr.f32.gmra.mxu0 %v1639_v2 }
 0x228   :  { %1770 = shalt.err (!%p1767_p4)
}
 0x229   :  { %1284 = dma.vmem_to_hbm [thread:$0]  %s1282_s8, 32, %s2466_s9, [#allocation3]   ;;  %v940_v54 = vadd.s32 8, %v2133_v57  ;;  %v942_v3 = vadd.s32 24, %v2133_v57  ;;  %vm955_vm3 = vcmp.eq.s32.totalorder %v2133_v57, %v1984_v51  ;;  %v944_v10 = vadd.s32 40, %v2133_v57 }
 0x22a   :  { %vm957_vm5 = vcmp.eq.s32.totalorder %v2138_v59, %v1984_v51  ;;  %v943_v16 = vadd.s32 32, %v2133_v57  ;;  %v946_v19 = vadd.s32 56, %v2133_v57  ;;  %v945_v24 = vadd.s32 48, %v2133_v57 }
 0x22b   :  { %vm956_vm2 = vcmp.eq.s32.totalorder %v940_v54, %v1984_v51  ;;  %vm958_vm4 = vcmp.eq.s32.totalorder %v942_v3, %v1984_v51  ;;  %vm960_vm6 = vcmp.eq.s32.totalorder %v944_v10, %v1984_v51  ;;  %v948_v29 = vadd.s32 72, %v2133_v57 }
 0x22c   :  { %vm959_vm7 = vcmp.eq.s32.totalorder %v943_v16, %v1984_v51  ;;  %vm962_vm8 = vcmp.eq.s32.totalorder %v946_v19, %v1984_v51  ;;  %vm961_vm9 = vcmp.eq.s32.totalorder %v945_v24, %v1984_v51  ;;  %v947_v35 = vadd.s32 64, %v2133_v57 }
 0x22d   :  { %vm964_vm10 = vcmp.eq.s32.totalorder %v948_v29, %v1984_v51  ;;  %v950_v40 = vadd.s32 88, %v2133_v57  ;;  %v949_v1 = vadd.s32 80, %v2133_v57  ;;  %v952_v18 = vadd.s32 104, %v2133_v57 }
 0x22e   :  { %vm963_vm11 = vcmp.eq.s32.totalorder %v947_v35, %v1984_v51  ;;  %v951_v41 = vadd.s32 96, %v2133_v57 }
 0x22f   :  { %vm966_vm12 = vcmp.eq.s32.totalorder %v950_v40, %v1984_v51  ;;  %vm965_vm13 = vcmp.eq.s32.totalorder %v949_v1, %v1984_v51  ;;  %vm968_vm14 = vcmp.eq.s32.totalorder %v952_v18, %v1984_v51 }
 0x230   :  { %vm967_vm15 = vcmp.eq.s32.totalorder %v951_v41, %v1984_v51 }
 0x260   :  { %v1674_v43 = vpop.f32.mrf.mxu1 }
 0x262   :  { %v714_v44 = vpop.f32.mrf.mxu1 }
 0x264   :  { %v1677_v45 = vpop.f32.mrf.mxu1 }
 0x266   :  { %v724_v46 = vpop.f32.mrf.mxu1 }
 0x268   :  { %v1680_v48 = vpop.f32.mrf.mxu1 }
 0x26a   :  { %v734_v49 = vpop.f32.mrf.mxu1 }
 0x26c   :  { %v1683_v53 = vpop.f32.mrf.mxu1 }
 0x26e   :  { %v744_v55 = vpop.f32.mrf.mxu1 }
 0x270   :  { %v1686_v6 = vpop.f32.mrf.mxu1 }
 0x272   :  { %v754_v15 = vpop.f32.mrf.mxu1 }
 0x274   :  { %v1689_v23 = vpop.f32.mrf.mxu1 }
 0x276   :  { %v764_v33 = vpop.f32.mrf.mxu1 }
 0x278   :  { %v1692_v60 = vpop.f32.mrf.mxu1 }
 0x27a   :  { %v774_v31 = vpop.f32.mrf.mxu1 }
 0x2cb   :  { %v1730_v52 = vpop.f32.mrf.mxu0 }
 0x2cc   :  { %v865_v5 = vadd.f32 %v1730_v52, %v1674_v43  ;;  %v954_v43 = vadd.s32 120, %v2133_v57 }
 0x2cd   :  { %v859_v63 = vpop.f32.mrf.mxu0 }
 0x2ce   :  { %v972_v56 = vsel %vm956_vm2, 0.0, %v865_v5  ;;  %v860_v61 = vadd.f32 %v859_v63, %v714_v44  ;;  %vm970_vm0 = vcmp.eq.s32.totalorder %v954_v43, %v1984_v51 }
 0x2cf   :  { %988 = vst [vmem:[%s2464_s7 + $0x8] sm:$0xff] %v972_v56  ;;  %v1733_v62 = vpop.f32.mrf.mxu0 }
 0x2d0   :  { %v971_v0 = vsel %vm955_vm3, 0.0, %v860_v61  ;;  %v875_v13 = vadd.f32 %v1733_v62, %v1677_v45 }
 0x2d1   :  { %987 = vst [vmem:[%s2464_s7] sm:$0xff] %v971_v0  ;;  %v869_v11 = vpop.f32.mrf.mxu0 }
 0x2d2   :  { %v974_v17 = vsel %vm958_vm4, 0.0, %v875_v13  ;;  %v870_v7 = vadd.f32 %v869_v11, %v724_v46  ;;  %v1695_v46 = vpop.f32.mrf.mxu1 }
 0x2d3   :  { %990 = vst [vmem:[%s2464_s7 + $0x18] sm:$0xff] %v974_v17  ;;  %v1736_v8 = vpop.f32.mrf.mxu0 }
 0x2d4   :  { %v973_v20 = vsel %vm957_vm5, 0.0, %v870_v7  ;;  %v885_v22 = vadd.f32 %v1736_v8, %v1680_v48  ;;  %v784_v5 = vpop.f32.mrf.mxu1 }
 0x2d5   :  { %989 = vst [vmem:[%s2464_s7 + $0x10] sm:$0xff] %v973_v20  ;;  %v879_v59 = vpop.f32.mrf.mxu0 }
 0x2d6   :  { %v976_v25 = vsel %vm960_vm6, 0.0, %v885_v22  ;;  %v880_v26 = vadd.f32 %v879_v59, %v734_v49  ;;  %v953_v49 = vadd.s32 112, %v2133_v57 }
 0x2d7   :  { %992 = vst [vmem:[%s2464_s7 + $0x28] sm:$0xff] %v976_v25  ;;  %v1739_v28 = vpop.f32.mrf.mxu0 }
 0x2d8   :  { %v975_v30 = vsel %vm959_vm7, 0.0, %v880_v26  ;;  %v895_v32 = vadd.f32 %v1739_v28, %v1683_v53  ;;  %vm969_vm1 = vcmp.eq.s32.totalorder %v953_v49, %v1984_v51 }
 0x2d9   :  { %991 = vst [vmem:[%s2464_s7 + $0x20] sm:$0xff] %v975_v30  ;;  %v889_v34 = vpop.f32.mrf.mxu0 }
 0x2da   :  { %v978_v36 = vsel %vm962_vm8, 0.0, %v895_v32  ;;  %v890_v38 = vadd.f32 %v889_v34, %v744_v55 }
 0x2db   :  { %994 = vst [vmem:[%s2464_s7 + $0x38] sm:$0xff] %v978_v36  ;;  %v1742_v39 = vpop.f32.mrf.mxu0 }
 0x2dc   :  { %v977_v42 = vsel %vm961_vm9, 0.0, %v890_v38  ;;  %v905_v58 = vadd.f32 %v1742_v39, %v1686_v6 }
 0x2dd   :  { %993 = vst [vmem:[%s2464_s7 + $0x30] sm:$0xff] %v977_v42  ;;  %v899_v50 = vpop.f32.mrf.mxu0 }
 0x2de   :  { %v980_v4 = vsel %vm964_vm10, 0.0, %v905_v58  ;;  %v900_v9 = vadd.f32 %v899_v50, %v754_v15 }
 0x2df   :  { %996 = vst [vmem:[%s2464_s7 + $0x48] sm:$0xff] %v980_v4  ;;  %v1745_v14 = vpop.f32.mrf.mxu0 }
 0x2e0   :  { %v979_v21 = vsel %vm963_vm11, 0.0, %v900_v9  ;;  %v915_v27 = vadd.f32 %v1745_v14, %v1689_v23 }
 0x2e1   :  { %995 = vst [vmem:[%s2464_s7 + $0x40] sm:$0xff] %v979_v21  ;;  %v909_v37 = vpop.f32.mrf.mxu0 }
 0x2e2   :  { %v982_v47 = vsel %vm966_vm12, 0.0, %v915_v27  ;;  %v910_v2 = vadd.f32 %v909_v37, %v764_v33 }
 0x2e3   :  { %998 = vst [vmem:[%s2464_s7 + $0x58] sm:$0xff] %v982_v47  ;;  %v1748_v12 = vpop.f32.mrf.mxu0 }
 0x2e4   :  { %v981_v44 = vsel %vm965_vm13, 0.0, %v910_v2  ;;  %v925_v45 = vadd.f32 %v1748_v12, %v1692_v60 }
 0x2e5   :  { %997 = vst [vmem:[%s2464_s7 + $0x50] sm:$0xff] %v981_v44  ;;  %v919_v48 = vpop.f32.mrf.mxu0 }
 0x2e6   :  { %v984_v53 = vsel %vm968_vm14, 0.0, %v925_v45  ;;  %v920_v54 = vadd.f32 %v919_v48, %v774_v31 }
 0x2e7   :  { %1000 = vst [vmem:[%s2464_s7 + $0x68] sm:$0xff] %v984_v53  ;;  %v1751_v55 = vpop.f32.mrf.mxu0 }
 0x2e8   :  { %v983_v52 = vsel %vm967_vm15, 0.0, %v920_v54  ;;  %v935_v3 = vadd.f32 %v1751_v55, %v1695_v46 }
 0x2e9   :  { %999 = vst [vmem:[%s2464_s7 + $0x60] sm:$0xff] %v983_v52  ;;  %v929_v6 = vpop.f32.mrf.mxu0 }
 0x2ea   :  { %v986_v57 = vsel %vm970_vm0, 0.0, %v935_v3  ;;  %v930_v63 = vadd.f32 %v929_v6, %v784_v5 }
 0x2eb   :  { %1002 = vst [vmem:[%s2464_s7 + $0x78] sm:$0xff] %v986_v57 }
 0x2ec   :  { %v985_v56 = vsel %vm969_vm1, 0.0, %v930_v63 }
 0x2ed   :  { %1001 = vst [vmem:[%s2464_s7 + $0x70] sm:$0xff] %v985_v56 }
 0x2ee   :  { %1779 = dma.done.wait [#allocation3], 32  }
 0x2ef   :  { %1780 = vsyncadd [#allocation3], 4294967264 }
 0x2f0   :  { %1294 = vsyncpa [#allocation3], 1 }

// kernel: _lambda_.12
= control target key start
LH: loop header
LB: loop body
LE: loop exit
PB: predicated region body
PF: predicated region fallthrough
CT: control target
= control target key end

     0   :  { %v1781_v2 = vmov 0   ;;  %s2453_s0 = inlined_call_operand.vmem [shape: s32[128,1], index: 0, kind: input, shape index: {}]   ;;  %s2454_s1 = inlined_call_operand.vmem [shape: f32[128,128], index: 1, kind: input, shape index: {}]   ;;  %s2455_s2 = inlined_call_operand.vmem [shape: f32[128,128], index: 2, kind: input, shape index: {}]   ;;  %s2456_s3 = inlined_call_operand.vmem [shape: f32[128,128], index: 3, kind: input, shape index: {}]   ;;  %s2457_s4 = inlined_call_operand.vmem [shape: f32[1,128], index: 4, kind: input, shape index: {}]   ;;  %s2458_s5 = inlined_call_operand.vmem [shape: f32[2,256], index: 5, kind: input, shape index: {}, may-alias: {5,8}]   ;;  %s2459_s6 = inlined_call_operand.vmem [shape: f32[128,128], index: 6, kind: output, shape index: {0}]   ;;  %s2460_s7 = inlined_call_operand.vmem [shape: f32[128,128], index: 7, kind: output, shape index: {1}]   ;;  %s2461_s8 = inlined_call_operand.vmem [shape: f32[2,256], index: 8, kind: output, shape index: {2}, may-alias: {5,8}]   ;;  %s2462_s9 = inlined_call_operand.hbm [shape: f32[2,128], index: 9, kind: output, shape index: {3}]  }
   0x1   :  { %v32_v0 = vld [vmem:[%s2453_s0 + $0x10] sm:$0xff]  ;;  %v30_v1 = vld [vmem:[%s2453_s0] sm:$0xff]  ;;  %1758 = vset.pattern.permute.xlu1 %v1781_v2  ;;  %1757 = vset.pattern.permute.xlu0 %v1781_v2  ;;  %v33_v3 = vld [vmem:[%s2453_s0 + $0x18] sm:$0xff] }
   0x2   :  { %53 = vperm.xlu1 %1758, %v32_v0   ;;  %47 = vperm.xlu0 %1757, %v30_v1   ;;  %v31_v4 = vld [vmem:[%s2453_s0 + $0x8] sm:$0xff]  ;;  %v141_v5 = vld [vmem:[%s2455_s2 + $0x78] sm:$0xff]  ;;  %v140_v6 = vld [vmem:[%s2455_s2 + $0x70] sm:$0xff] }
   0x3   :  { %v325_v7 = vld [vmem:[%s2456_s3 + $0x78] sm:$0xff]  ;;  %v324_v8 = vld [vmem:[%s2456_s3 + $0x70] sm:$0xff]  ;;  %v35_v9 = vld [vmem:[%s2453_s0 + $0x28] sm:$0xff]  ;;  %1472 = vmatprep.subr.mxu0 %v141_v5 }
   0x4   :  { %v34_v10 = vld [vmem:[%s2453_s0 + $0x20] sm:$0xff]  ;;  %1528 = vmatprep.subr.mxu1 %v325_v7  ;;  %1473 = vmatpush3.msra.mxu0 %v141_v5  ;;  %v139_v11 = vld [vmem:[%s2455_s2 + $0x68] sm:$0xff]  ;;  %v37_v13 = vld [vmem:[%s2453_s0 + $0x38] sm:$0xff] }
   0x5   :  { %1529 = vmatpush3.msra.mxu1 %v325_v7  ;;  %1474 = vmatprep.subr.mxu0 %v140_v6  ;;  %v323_v12 = vld [vmem:[%s2456_s3 + $0x68] sm:$0xff]  ;;  %v36_v14 = vld [vmem:[%s2453_s0 + $0x30] sm:$0xff]  ;;  %v138_v15 = vld [vmem:[%s2455_s2 + $0x60] sm:$0xff] }
   0x6   :  { %56 = vperm.xlu1 %1758, %v33_v3   ;;  %50 = vperm.xlu0 %1757, %v31_v4   ;;  %v322_v16 = vld [vmem:[%s2456_s3 + $0x60] sm:$0xff]  ;;  %v137_v17 = vld [vmem:[%s2455_s2 + $0x58] sm:$0xff]  ;;  %v39_v19 = vld [vmem:[%s2453_s0 + $0x48] sm:$0xff] }
   0x7   :  { %1530 = vmatprep.subr.mxu1 %v324_v8  ;;  %1475 = vmatpush3.msra.mxu0 %v140_v6  ;;  %v321_v18 = vld [vmem:[%s2456_s3 + $0x58] sm:$0xff]  ;;  %v38_v20 = vld [vmem:[%s2453_s0 + $0x40] sm:$0xff] }
   0x8   :  { %1531 = vmatpush3.msra.mxu1 %v324_v8  ;;  %1476 = vmatprep.subr.mxu0 %v139_v11 }
   0x9   :  { %1532 = vmatprep.subr.mxu1 %v323_v12  ;;  %1477 = vmatpush3.msra.mxu0 %v139_v11 }
   0xa   :  { %62 = vperm.xlu1 %1758, %v35_v9   ;;  %59 = vperm.xlu0 %1757, %v34_v10  }
   0xb   :  { %1533 = vmatpush3.msra.mxu1 %v323_v12  ;;  %1478 = vmatprep.subr.mxu0 %v138_v15 }
   0xc   :  { %1534 = vmatprep.subr.mxu1 %v322_v16  ;;  %1479 = vmatpush3.msra.mxu0 %v138_v15 }
   0xd   :  { %1535 = vmatpush3.msra.mxu1 %v322_v16 }
   0xe   :  { %68 = vperm.xlu1 %1758, %v37_v13   ;;  %65 = vperm.xlu0 %1757, %v36_v14  }
   0xf   :  { %15 = vsyncpa [#allocation3], 0  ;;  %1480 = vmatprep.subr.mxu0 %v137_v17  ;;  %v136_v21 = vld [vmem:[%s2455_s2 + $0x50] sm:$0xff]  ;;  %1536 = vmatprep.subr.mxu1 %v321_v18  ;;  %v41_v23 = vld [vmem:[%s2453_s0 + $0x58] sm:$0xff]  ;;  %v28_v50 = vlaneseq  ;;  %v1782_v55 = vmov 1.0   ;;  %v1783_v56 = vmov 0.0  }
  0x10   :  { %v320_v22 = vld [vmem:[%s2456_s3 + $0x50] sm:$0xff]  ;;  %1481 = vmatpush3.msra.mxu0 %v137_v17  ;;  %1537 = vmatpush3.msra.mxu1 %v321_v18  ;;  %v135_v25 = vld [vmem:[%s2455_s2 + $0x48] sm:$0xff]  ;;  %v134_v27 = vld [vmem:[%s2455_s2 + $0x40] sm:$0xff] }
  0x11   :  { %v40_v24 = vld [vmem:[%s2453_s0 + $0x50] sm:$0xff]  ;;  %1482 = vmatprep.subr.mxu0 %v136_v21  ;;  %1538 = vmatprep.subr.mxu1 %v320_v22  ;;  %v319_v26 = vld [vmem:[%s2456_s3 + $0x48] sm:$0xff]  ;;  %v318_v28 = vld [vmem:[%s2456_s3 + $0x40] sm:$0xff]  ;;  %v1984_v51 = vand.u32 127, %v28_v50 }
  0x12   :  { %74 = vperm.xlu1 %1758, %v39_v19   ;;  %71 = vperm.xlu0 %1757, %v38_v20   ;;  %v43_v29 = vld [vmem:[%s2453_s0 + $0x68] sm:$0xff]  ;;  %v42_v30 = vld [vmem:[%s2453_s0 + $0x60] sm:$0xff]  ;;  %v133_v31 = vld [vmem:[%s2455_s2 + $0x38] sm:$0xff] }
  0x13   :  { %1483 = vmatpush3.msra.mxu0 %v136_v21  ;;  %1539 = vmatpush3.msra.mxu1 %v320_v22  ;;  %v317_v32 = vld [vmem:[%s2456_s3 + $0x38] sm:$0xff]  ;;  %v44_v34 = vld [vmem:[%s2453_s0 + $0x70] sm:$0xff]  ;;  %v131_v37 = vld [vmem:[%s2455_s2 + $0x28] sm:$0xff] }
  0x14   :  { %1484 = vmatprep.subr.mxu0 %v135_v25  ;;  %1540 = vmatprep.subr.mxu1 %v319_v26  ;;  %v45_v33 = vld [vmem:[%s2453_s0 + $0x78] sm:$0xff]  ;;  %v132_v35 = vld [vmem:[%s2455_s2 + $0x30] sm:$0xff]  ;;  %v315_v38 = vld [vmem:[%s2456_s3 + $0x28] sm:$0xff] }
  0x15   :  { %1485 = vmatpush3.msra.mxu0 %v135_v25  ;;  %1541 = vmatpush3.msra.mxu1 %v319_v26  ;;  %v316_v36 = vld [vmem:[%s2456_s3 + $0x30] sm:$0xff]  ;;  %v130_v39 = vld [vmem:[%s2455_s2 + $0x20] sm:$0xff]  ;;  %v129_v41 = vld [vmem:[%s2455_s2 + $0x18] sm:$0xff] }
  0x16   :  { %80 = vperm.xlu1 %1758, %v41_v23   ;;  %77 = vperm.xlu0 %1757, %v40_v24   ;;  %v314_v40 = vld [vmem:[%s2456_s3 + $0x20] sm:$0xff]  ;;  %v313_v42 = vld [vmem:[%s2456_s3 + $0x18] sm:$0xff]  ;;  %v128_v43 = vld [vmem:[%s2455_s2 + $0x10] sm:$0xff] }
  0x17   :  { %1486 = vmatprep.subr.mxu0 %v134_v27  ;;  %1542 = vmatprep.subr.mxu1 %v318_v28  ;;  %v312_v44 = vld [vmem:[%s2456_s3 + $0x10] sm:$0xff]  ;;  %v127_v45 = vld [vmem:[%s2455_s2 + $0x8] sm:$0xff]  ;;  %v126_v47 = vld [vmem:[%s2455_s2] sm:$0xff] }
  0x18   :  { %1487 = vmatpush3.msra.mxu0 %v134_v27  ;;  %1543 = vmatpush3.msra.mxu1 %v318_v28  ;;  %v311_v46 = vld [vmem:[%s2456_s3 + $0x8] sm:$0xff]  ;;  %v310_v48 = vld [vmem:[%s2456_s3] sm:$0xff]  ;;  %v502_v49 = vld [vmem:[%s2454_s1 + $0x78] sm:$0xff] }
  0x19   :  { %1488 = vmatprep.subr.mxu0 %v133_v31  ;;  %1544 = vmatprep.subr.mxu1 %v317_v32  ;;  %v1989_v52 = vld [vmem:[%s2457_s4] ss:$0 sm:$0xff]  ;;  %v501_v62 = vld [vmem:[%s2454_s1 + $0x70] sm:$0xff]  ;;  %v500_v5 = vld [vmem:[%s2454_s1 + $0x68] sm:$0xff] }
  0x1a   :  { %86 = vperm.xlu1 %1758, %v43_v29   ;;  %83 = vperm.xlu0 %1757, %v42_v30   ;;  %v499_v7 = vld [vmem:[%s2454_s1 + $0x60] sm:$0xff]  ;;  %v498_v13 = vld [vmem:[%s2454_s1 + $0x58] sm:$0xff]  ;;  %v497_v20 = vld [vmem:[%s2454_s1 + $0x50] sm:$0xff] }
  0x1b   :  { %1489 = vmatpush3.msra.mxu0 %v133_v31  ;;  %1545 = vmatpush3.msra.mxu1 %v317_v32  ;;  %v496_v22 = vld [vmem:[%s2454_s1 + $0x48] sm:$0xff]  ;;  %v495_v28 = vld [vmem:[%s2454_s1 + $0x40] sm:$0xff] }
  0x1c   :  { %1490 = vmatprep.subr.mxu0 %v132_v35  ;;  %1546 = vmatprep.subr.mxu1 %v316_v36 }
  0x1d   :  { %1491 = vmatpush3.msra.mxu0 %v132_v35  ;;  %1547 = vmatpush3.msra.mxu1 %v316_v36  ;;  %v494_v35 = vld [vmem:[%s2454_s1 + $0x38] sm:$0xff] }
  0x1e   :  { %92 = vperm.xlu1 %1758, %v45_v33   ;;  %89 = vperm.xlu0 %1757, %v44_v34  }
  0x1f   :  { %1492 = vmatprep.subr.mxu0 %v131_v37  ;;  %1548 = vmatprep.subr.mxu1 %v315_v38 }
  0x20   :  { %1493 = vmatpush3.msra.mxu0 %v131_v37  ;;  %1549 = vmatpush3.msra.mxu1 %v315_v38  ;;  %v493_v37 = vld [vmem:[%s2454_s1 + $0x30] sm:$0xff] }
  0x21   :  { %1494 = vmatprep.subr.mxu0 %v130_v39  ;;  %1550 = vmatprep.subr.mxu1 %v314_v40 }
  0x22   :  { %1495 = vmatpush3.msra.mxu0 %v130_v39  ;;  %1551 = vmatpush3.msra.mxu1 %v314_v40 }
  0x23   :  { %1496 = vmatprep.subr.mxu0 %v129_v41  ;;  %1552 = vmatprep.subr.mxu1 %v313_v42 }
  0x24   :  { %1497 = vmatpush3.msra.mxu0 %v129_v41  ;;  %1553 = vmatpush3.msra.mxu1 %v313_v42 }
  0x25   :  { %1498 = vmatprep.subr.mxu0 %v128_v43  ;;  %1554 = vmatprep.subr.mxu1 %v312_v44 }
  0x26   :  { %1499 = vmatpush3.msra.mxu0 %v128_v43  ;;  %1555 = vmatpush3.msra.mxu1 %v312_v44  ;;  %v492_v43 = vld [vmem:[%s2454_s1 + $0x28] sm:$0xff] }
  0x27   :  { %1500 = vmatprep.subr.mxu0 %v127_v45  ;;  %1556 = vmatprep.subr.mxu1 %v311_v46 }
  0x28   :  { %1501 = vmatpush3.msra.mxu0 %v127_v45  ;;  %1557 = vmatpush3.msra.mxu1 %v311_v46 }
  0x29   :  { %1502 = vmatprep.subr.mxu0 %v126_v47  ;;  %1558 = vmatprep.subr.mxu1 %v310_v48 }
  0x2a   :  { %1503 = vmatpush3.msra.mxu0 %v126_v47  ;;  %1559 = vmatpush3.msra.mxu1 %v310_v48  ;;  %v491_v48 = vld [vmem:[%s2454_s1 + $0x20] sm:$0xff] }
  0x2b   :  { %1584 = vmatprep.subr.mxu0 %v502_v49 }
  0x7d   :  { %v54_v53 = vpop.permute.xlu1 %53  ;;  %v48_v54 = vpop.permute.xlu0 %47 }
  0x7e   :  { %vm96_vm0 = vcmp.eq.s32.totalorder %v1984_v51, %v54_v53  ;;  %vm94_vm1 = vcmp.eq.s32.totalorder %v1984_v51, %v48_v54  ;;  %v489_v54 = vld [vmem:[%s2454_s1 + $0x10] sm:$0xff] }
  0x7f   :  { %1504 = vmatprep.mubr.msk.f32.mxu0 %vm94_vm1, %v1782_v55  ;;  %v110_v57 = vsel %vm94_vm1, 1.0, %v1783_v56  ;;  %v112_v58 = vsel %vm96_vm0, 1.0, %v1783_v56 }
  0x80   :  { %v294_v59 = vmul.f32 %v1989_v52, %v110_v57  ;;  %v296_v63 = vmul.f32 %v1989_v52, %v112_v58  ;;  %v2133_v57 = vshrl.u32 %v28_v50, 7 }
  0x81   :  { %v57_v60 = vpop.permute.xlu1 %56  ;;  %v51_v61 = vpop.permute.xlu0 %50 }
  0x82   :  { %vm97_vm2 = vcmp.eq.s32.totalorder %v1984_v51, %v57_v60  ;;  %vm95_vm3 = vcmp.eq.s32.totalorder %v1984_v51, %v51_v61  ;;  %1560 = vmatprep.mubr.f32.mxu1 %v294_v59  ;;  %v2136_v58 = vadd.s32 8, %v2133_v57  ;;  %vm1127_vm1 = vcmp.ge.s32.totalorder %v2133_v57, 6 }
  0x83   :  { %v111_v0 = vsel %vm95_vm3, 1.0, %v1783_v56  ;;  %1505 = vmatmul.mubr.msk.f32.vlgmr.msra.gmra.mxu0 %vm95_vm3, %v1782_v55  ;;  %v113_v2 = vsel %vm97_vm2, 1.0, %v1783_v56  ;;  %vm1251_vm3 = vcmask 1040384  }
  0x84   :  { %v295_v1 = vmul.f32 %v1989_v52, %v111_v0  ;;  %1507 = vmatprep.mubr.msk.f32.mxu0 %vm96_vm0, %v1782_v55  ;;  %1585 = vmatpush3.msra.mxu0 %v502_v49  ;;  %v297_v8 = vmul.f32 %v1989_v52, %v113_v2  ;;  %v490_v49 = vld [vmem:[%s2454_s1 + $0x18] sm:$0xff]  ;;  %vm1019_vm0 = vcmp.lt.s32.totalorder %v2133_v57, 6 }
  0x85   :  { %v63_v3 = vpop.permute.xlu1 %62  ;;  %v60_v4 = vpop.permute.xlu0 %59  ;;  %1586 = vmatprep.subr.mxu0 %v501_v62  ;;  %v1051_v50 = vsel %vm1019_vm0, 1.0, %v1783_v56 }
  0x86   :  { %vm99_vm4 = vcmp.eq.s32.totalorder %v1984_v51, %v63_v3  ;;  %vm98_vm5 = vcmp.eq.s32.totalorder %v1984_v51, %v60_v4  ;;  %1561 = vmatmul.mubr.f32.vlgmr.msra.gmra.mxu1 %v295_v1  ;;  %1587 = vmatpush3.msra.mxu0 %v501_v62  ;;  %v1175_v62 = vsel %vm1127_vm1, 1.0, %v1783_v56 }
  0x87   :  { %v114_v6 = vsel %vm98_vm5, 1.0, %v1783_v56  ;;  %1508 = vmatmul.mubr.msk.f32.gmra.mxu0 %vm97_vm2, %v1782_v55  ;;  %1563 = vmatprep.mubr.f32.mxu1 %v296_v63  ;;  %v115_v10 = vsel %vm99_vm4, 1.0, %v1783_v56  ;;  %vm1144_vm2 = vcmp.lt.s32.totalorder %v2136_v58, 13 }
  0x88   :  { %v298_v9 = vmul.f32 %v1989_v52, %v114_v6  ;;  %1510 = vmatprep.mubr.msk.f32.mxu0 %vm98_vm5, %v1782_v55  ;;  %1588 = vmatprep.subr.mxu0 %v500_v5  ;;  %v299_v15 = vmul.f32 %v1989_v52, %v115_v10  ;;  %v1176_v0 = vsel %vm1144_vm2, 1.0, %v1783_v56 }
  0x89   :  { %v69_v11 = vpop.permute.xlu1 %68  ;;  %v66_v12 = vpop.permute.xlu0 %65  ;;  %1589 = vmatpush3.msra.mxu0 %v500_v5 }
  0x8a   :  { %vm101_vm6 = vcmp.eq.s32.totalorder %v1984_v51, %v69_v11  ;;  %vm100_vm7 = vcmp.eq.s32.totalorder %v1984_v51, %v66_v12  ;;  %1564 = vmatmul.mubr.f32.gmra.mxu1 %v297_v8  ;;  %1590 = vmatprep.subr.mxu0 %v499_v7 }
  0x8b   :  { %v116_v14 = vsel %vm100_vm7, 1.0, %v1783_v56  ;;  %1511 = vmatmul.mubr.msk.f32.gmra.mxu0 %vm99_vm4, %v1782_v55  ;;  %1566 = vmatprep.mubr.f32.mxu1 %v298_v9  ;;  %v117_v17 = vsel %vm101_vm6, 1.0, %v1783_v56 }
  0x8c   :  { %v300_v16 = vmul.f32 %v1989_v52, %v116_v14  ;;  %1513 = vmatprep.mubr.msk.f32.mxu0 %vm100_vm7, %v1782_v55  ;;  %1591 = vmatpush3.msra.mxu0 %v499_v7  ;;  %v301_v23 = vmul.f32 %v1989_v52, %v117_v17 }
  0x8d   :  { %v75_v18 = vpop.permute.xlu1 %74  ;;  %v72_v19 = vpop.permute.xlu0 %71  ;;  %1592 = vmatprep.subr.mxu0 %v498_v13 }
  0x8e   :  { %vm103_vm8 = vcmp.eq.s32.totalorder %v1984_v51, %v75_v18  ;;  %vm102_vm9 = vcmp.eq.s32.totalorder %v1984_v51, %v72_v19  ;;  %1567 = vmatmul.mubr.f32.gmra.mxu1 %v299_v15  ;;  %1593 = vmatpush3.msra.mxu0 %v498_v13 }
  0x8f   :  { %v118_v21 = vsel %vm102_vm9, 1.0, %v1783_v56  ;;  %1514 = vmatmul.mubr.msk.f32.gmra.mxu0 %vm101_vm6, %v1782_v55  ;;  %1569 = vmatprep.mubr.f32.mxu1 %v300_v16  ;;  %v119_v25 = vsel %vm103_vm8, 1.0, %v1783_v56 }
  0x90   :  { %v302_v24 = vmul.f32 %v1989_v52, %v118_v21  ;;  %1516 = vmatprep.mubr.msk.f32.mxu0 %vm102_vm9, %v1782_v55  ;;  %1594 = vmatprep.subr.mxu0 %v497_v20  ;;  %v303_v30 = vmul.f32 %v1989_v52, %v119_v25 }
  0x91   :  { %v81_v26 = vpop.permute.xlu1 %80  ;;  %v78_v27 = vpop.permute.xlu0 %77  ;;  %1595 = vmatpush3.msra.mxu0 %v497_v20 }
  0x92   :  { %vm105_vm10 = vcmp.eq.s32.totalorder %v1984_v51, %v81_v26  ;;  %vm104_vm11 = vcmp.eq.s32.totalorder %v1984_v51, %v78_v27  ;;  %1570 = vmatmul.mubr.f32.gmra.mxu1 %v301_v23  ;;  %1596 = vmatprep.subr.mxu0 %v496_v22 }
  0x93   :  { %v120_v29 = vsel %vm104_vm11, 1.0, %v1783_v56  ;;  %1517 = vmatmul.mubr.msk.f32.gmra.mxu0 %vm103_vm8, %v1782_v55  ;;  %1572 = vmatprep.mubr.f32.mxu1 %v302_v24  ;;  %v121_v32 = vsel %vm105_vm10, 1.0, %v1783_v56 }
  0x94   :  { %v304_v31 = vmul.f32 %v1989_v52, %v120_v29  ;;  %1519 = vmatprep.mubr.msk.f32.mxu0 %vm104_vm11, %v1782_v55  ;;  %1597 = vmatpush3.msra.mxu0 %v496_v22  ;;  %v305_v38 = vmul.f32 %v1989_v52, %v121_v32 }
  0x95   :  { %v87_v33 = vpop.permute.xlu1 %86  ;;  %v84_v34 = vpop.permute.xlu0 %83  ;;  %1598 = vmatprep.subr.mxu0 %v495_v28 }
  0x96   :  { %vm107_vm12 = vcmp.eq.s32.totalorder %v1984_v51, %v87_v33  ;;  %vm106_vm13 = vcmp.eq.s32.totalorder %v1984_v51, %v84_v34  ;;  %1573 = vmatmul.mubr.f32.gmra.mxu1 %v303_v30  ;;  %1599 = vmatpush3.msra.mxu0 %v495_v28 }
  0x97   :  { %v122_v36 = vsel %vm106_vm13, 1.0, %v1783_v56  ;;  %1520 = vmatmul.mubr.msk.f32.gmra.mxu0 %vm105_vm10, %v1782_v55  ;;  %1575 = vmatprep.mubr.f32.mxu1 %v304_v31  ;;  %v123_v40 = vsel %vm107_vm12, 1.0, %v1783_v56 }
  0x98   :  { %v306_v39 = vmul.f32 %v1989_v52, %v122_v36  ;;  %1522 = vmatprep.mubr.msk.f32.mxu0 %vm106_vm13, %v1782_v55  ;;  %1600 = vmatprep.subr.mxu0 %v494_v35  ;;  %v307_v45 = vmul.f32 %v1989_v52, %v123_v40 }
  0x99   :  { %v93_v41 = vpop.permute.xlu1 %92  ;;  %v90_v42 = vpop.permute.xlu0 %89  ;;  %1601 = vmatpush3.msra.mxu0 %v494_v35 }
  0x9a   :  { %vm109_vm14 = vcmp.eq.s32.totalorder %v1984_v51, %v93_v41  ;;  %vm108_vm15 = vcmp.eq.s32.totalorder %v1984_v51, %v90_v42  ;;  %1576 = vmatmul.mubr.f32.gmra.mxu1 %v305_v38  ;;  %1602 = vmatprep.subr.mxu0 %v493_v37 }
  0x9b   :  { %v124_v44 = vsel %vm108_vm15, 1.0, %v1783_v56  ;;  %1523 = vmatmul.mubr.msk.f32.gmra.mxu0 %vm107_vm12, %v1782_v55  ;;  %1578 = vmatprep.mubr.f32.mxu1 %v306_v39  ;;  %v125_v47 = vsel %vm109_vm14, 1.0, %v1783_v56 }
  0x9c   :  { %v308_v46 = vmul.f32 %v1989_v52, %v124_v44  ;;  %1525 = vmatprep.mubr.msk.f32.mxu0 %vm108_vm15, %v1782_v55  ;;  %1603 = vmatpush3.msra.mxu0 %v493_v37  ;;  %v309_v53 = vmul.f32 %v1989_v52, %v125_v47  ;;  %v487_v52 = vld [vmem:[%s2454_s1] sm:$0xff] }
  0x9d   :  { %1604 = vmatprep.subr.mxu0 %v492_v43 }
  0x9e   :  { %1579 = vmatmul.mubr.f32.gmra.mxu1 %v307_v45  ;;  %1605 = vmatpush3.msra.mxu0 %v492_v43 }
  0x9f   :  { %1526 = vmatmul.mubr.msk.f32.gmra.mxu0 %vm109_vm14, %v1782_v55  ;;  %1581 = vmatprep.mubr.f32.mxu1 %v308_v46  ;;  %v488_v55 = vld [vmem:[%s2454_s1 + $0x8] sm:$0xff] }
  0xa0   :  { %1606 = vmatprep.subr.mxu0 %v491_v48 }
  0xa1   :  { %1607 = vmatpush3.msra.mxu0 %v491_v48 }
  0xa2   :  { %1582 = vmatmul.mubr.f32.gmra.mxu1 %v309_v53  ;;  %1608 = vmatprep.subr.mxu0 %v490_v49 }
  0xa3   :  { %1609 = vmatpush3.msra.mxu0 %v490_v49 }
  0xa4   :  { %1610 = vmatprep.subr.mxu0 %v489_v54 }
  0xa5   :  { %1611 = vmatpush3.msra.mxu0 %v489_v54 }
  0xa6   :  { %1612 = vmatprep.subr.mxu0 %v488_v55 }
  0xa7   :  { %1613 = vmatpush3.msra.mxu0 %v488_v55 }
  0xa8   :  { %1614 = vmatprep.subr.mxu0 %v487_v52 }
  0xa9   :  { %1615 = vmatpush3.msra.mxu0 %v487_v52 }
 0x143   :  { %v2138_v59 = vpop.f32.mrf.mxu0 }
 0x145   :  { %v2142_v60 = vpop.f32.mrf.mxu0 }
 0x146   :  { %v1562_v61 = vpop.f32.mrf.mxu1  ;;  %1616 = vmatprep.mubr.f32.mxu0 %v2142_v60  ;;  %1672 = vmatprep.mubr.f32.mxu1 %v2142_v60 }
 0x147   :  { %472 = vst [vmem:[%s2459_s6 + $0x8] sm:$0xff] %v1562_v61  ;;  %v2152_v63 = vpop.f32.mrf.mxu0  ;;  %1617 = vmatmul.mubr.f32.vlgmr.msra.gmra.mxu0 %v2138_v59  ;;  %v2166_v6 = vmul.f32 0.0, %v1562_v61  ;;  %v2168_v7 = vmul.f32 %v1562_v61, %v1176_v0 }
 0x148   :  { %v392_v1 = vpop.f32.mrf.mxu1 }
 0x149   :  { %471 = vst [vmem:[%s2459_s6] sm:$0xff] %v392_v1  ;;  %v2159_v2 = vmul.f32 %v1051_v50, %v392_v1  ;;  %v2161_v3 = vmul.f32 %v1175_v62, %v392_v1  ;;  %v2163_v4 = vpop.f32.mrf.mxu0 }
 0x14a   :  { %v1565_v5 = vpop.f32.mrf.mxu1  ;;  %1619 = vmatprep.mubr.f32.mxu0 %v2163_v4 }
 0x14b   :  { %474 = vst [vmem:[%s2459_s6 + $0x18] sm:$0xff] %v1565_v5  ;;  %v2173_v56 = vpop.f32.mrf.mxu0  ;;  %1620 = vmatmul.mubr.f32.gmra.mxu0 %v2152_v63  ;;  %v1083_v9 = vadd.f32 %v2166_v6, %v2159_v2  ;;  %v1207_v10 = vadd.f32 %v2168_v7, %v2161_v3  ;;  %v2188_v14 = vmul.f32 0.0, %v1565_v5 }
 0x14c   :  { %v402_v8 = vpop.f32.mrf.mxu1 }
 0x14d   :  { %473 = vst [vmem:[%s2459_s6 + $0x10] sm:$0xff] %v402_v8  ;;  %v2183_v11 = vmul.f32 0.0, %v402_v8  ;;  %v2185_v12 = vpop.f32.mrf.mxu0 }
 0x14e   :  { %v1568_v13 = vpop.f32.mrf.mxu1  ;;  %1622 = vmatprep.mubr.f32.mxu0 %v2185_v12 }
 0x14f   :  { %v1084_v15 = vadd.f32 %v1083_v9, %v2183_v11  ;;  %v1208_v16 = vadd.f32 %v1207_v10, %v2183_v11  ;;  %476 = vst [vmem:[%s2459_s6 + $0x28] sm:$0xff] %v1568_v13  ;;  %v2195_v17 = vpop.f32.mrf.mxu0  ;;  %1623 = vmatmul.mubr.f32.gmra.mxu0 %v2173_v56  ;;  %v2214_v25 = vmul.f32 0.0, %v1568_v13 }
 0x150   :  { %v412_v18 = vpop.f32.mrf.mxu1 }
 0x151   :  { %v1085_v19 = vadd.f32 %v1084_v15, %v2188_v14  ;;  %v1209_v20 = vadd.f32 %v1208_v16, %v2188_v14  ;;  %475 = vst [vmem:[%s2459_s6 + $0x20] sm:$0xff] %v412_v18  ;;  %v2203_v21 = vpop.f32.mrf.mxu0  ;;  %v2205_v22 = vmul.f32 0.0, %v412_v18  ;;  %v1107_v61 = vmax.f32 %v2166_v6, %v2214_v25 }
 0x152   :  { %v1571_v23 = vpop.f32.mrf.mxu1  ;;  %1625 = vmatprep.mubr.f32.mxu0 %v2203_v21  ;;  %v1231_v50 = vmax.f32 %v2168_v7, %v2214_v25 }
 0x153   :  { %478 = vst [vmem:[%s2459_s6 + $0x38] sm:$0xff] %v1571_v23  ;;  %v2211_v24 = vpop.f32.mrf.mxu0  ;;  %1626 = vmatmul.mubr.f32.gmra.mxu0 %v2195_v17  ;;  %v1086_v26 = vadd.f32 %v1085_v19, %v2205_v22  ;;  %v1210_v27 = vadd.f32 %v1209_v20, %v2205_v22  ;;  %v1074_v35 = vmul.f32 0.0, %v1571_v23  ;;  %v1106_v0 = vmax.f32 %v2159_v2, %v2205_v22 }
 0x154   :  { %v422_v28 = vpop.f32.mrf.mxu1  ;;  %v1230_v6 = vmax.f32 %v2161_v3, %v2205_v22 }
 0x155   :  { %477 = vst [vmem:[%s2459_s6 + $0x30] sm:$0xff] %v422_v28  ;;  %v2221_v29 = vmul.f32 0.0, %v422_v28  ;;  %v2223_v30 = vpop.f32.mrf.mxu0  ;;  %v1087_v31 = vadd.f32 %v1086_v26, %v2214_v25  ;;  %v1211_v32 = vadd.f32 %v1210_v27, %v2214_v25  ;;  %v1109_v7 = vmax.f32 %v2188_v14, %v1074_v35 }
 0x156   :  { %v1574_v33 = vpop.f32.mrf.mxu1  ;;  %1628 = vmatprep.mubr.f32.mxu0 %v2223_v30 }
 0x157   :  { %480 = vst [vmem:[%s2459_s6 + $0x48] sm:$0xff] %v1574_v33  ;;  %v2231_v34 = vpop.f32.mrf.mxu0  ;;  %1629 = vmatmul.mubr.f32.gmra.mxu0 %v2211_v24  ;;  %v1088_v36 = vadd.f32 %v1087_v31, %v2221_v29  ;;  %v1212_v37 = vadd.f32 %v1211_v32, %v2221_v29  ;;  %v1076_v45 = vmul.f32 0.0, %v1574_v33  ;;  %v1108_v10 = vmax.f32 %v2183_v11, %v2221_v29 }
 0x158   :  { %v432_v38 = vpop.f32.mrf.mxu1 }
 0x159   :  { %479 = vst [vmem:[%s2459_s6 + $0x40] sm:$0xff] %v432_v38  ;;  %v1075_v39 = vmul.f32 0.0, %v432_v38  ;;  %v2239_v40 = vpop.f32.mrf.mxu0  ;;  %v1089_v41 = vadd.f32 %v1088_v36, %v1074_v35  ;;  %v1213_v42 = vadd.f32 %v1212_v37, %v1074_v35  ;;  %v1111_v15 = vmax.f32 %v1107_v61, %v1076_v45 }
 0x15a   :  { %v1577_v43 = vpop.f32.mrf.mxu1  ;;  %1631 = vmatprep.mubr.f32.mxu0 %v2239_v40  ;;  %v1235_v22 = vmax.f32 %v1231_v50, %v1076_v45 }
 0x15b   :  { %482 = vst [vmem:[%s2459_s6 + $0x58] sm:$0xff] %v1577_v43  ;;  %v2245_v44 = vpop.f32.mrf.mxu0  ;;  %1632 = vmatmul.mubr.f32.gmra.mxu0 %v2231_v34  ;;  %v1090_v46 = vadd.f32 %v1089_v41, %v1075_v39  ;;  %v1214_v47 = vadd.f32 %v1213_v42, %v1075_v39  ;;  %v1078_v1 = vmul.f32 0.0, %v1577_v43  ;;  %v1110_v11 = vmax.f32 %v1106_v0, %v1075_v39 }
 0x15c   :  { %v442_v48 = vpop.f32.mrf.mxu1  ;;  %v1234_v14 = vmax.f32 %v1230_v6, %v1075_v39 }
 0x15d   :  { %481 = vst [vmem:[%s2459_s6 + $0x50] sm:$0xff] %v442_v48  ;;  %v1077_v49 = vmul.f32 0.0, %v442_v48  ;;  %v2251_v53 = vpop.f32.mrf.mxu0  ;;  %v1091_v54 = vadd.f32 %v1090_v46, %v1076_v45  ;;  %v1215_v55 = vadd.f32 %v1214_v47, %v1076_v45  ;;  %v1113_v23 = vmax.f32 %v1109_v7, %v1078_v1 }
 0x15e   :  { %v1580_v52 = vpop.f32.mrf.mxu1  ;;  %1634 = vmatprep.mubr.f32.mxu0 %v2251_v53 }
 0x15f   :  { %484 = vst [vmem:[%s2459_s6 + $0x68] sm:$0xff] %v1580_v52  ;;  %v2261_v62 = vpop.f32.mrf.mxu0  ;;  %1635 = vmatmul.mubr.f32.gmra.mxu0 %v2245_v44  ;;  %v1092_v5 = vadd.f32 %v1091_v54, %v1077_v49  ;;  %v1216_v8 = vadd.f32 %v1215_v55, %v1077_v49  ;;  %v1080_v19 = vmul.f32 0.0, %v1580_v52  ;;  %v1112_v28 = vmax.f32 %v1108_v10, %v1077_v49 }
 0x160   :  { %v452_v9 = vpop.f32.mrf.mxu1  ;;  %1640 = vmatprep.subr.mxu1 %v2261_v62  ;;  %1696 = vmatprep.subr.mxu0 %v2261_v62 }
 0x161   :  { %483 = vst [vmem:[%s2459_s6 + $0x60] sm:$0xff] %v452_v9  ;;  %v1079_v2 = vmul.f32 0.0, %v452_v9  ;;  %v2276_v13 = vpop.f32.mrf.mxu0  ;;  %1641 = vmatpush3.xpose.msra.mxu1 %v2261_v62  ;;  %1697 = vmatpush3.xpose.msra.mxu0 %v2261_v62  ;;  %v1093_v16 = vadd.f32 %v1092_v5, %v1078_v1  ;;  %v1217_v18 = vadd.f32 %v1216_v8, %v1078_v1 }
 0x162   :  { %v1583_v3 = vpop.f32.mrf.mxu1  ;;  %1637 = vmatprep.mubr.f32.mxu0 %v2276_v13  ;;  %1642 = vmatprep.subr.mxu1 %v2276_v13  ;;  %v1115_v36 = vmax.f32 %v1111_v15, %v1080_v19  ;;  %v1239_v37 = vmax.f32 %v1235_v22, %v1080_v19 }
 0x163   :  { %486 = vst [vmem:[%s2459_s6 + $0x78] sm:$0xff] %v1583_v3  ;;  %v1082_v20 = vmul.f32 0.0, %v1583_v3  ;;  %1698 = vmatprep.subr.mxu0 %v2276_v13  ;;  %1638 = vmatmul.mubr.f32.gmra.mxu0 %v2261_v62  ;;  %v1094_v25 = vadd.f32 %v1093_v16, %v1079_v2  ;;  %v1218_v26 = vadd.f32 %v1217_v18, %v1079_v2 }
 0x164   :  { %v462_v27 = vpop.f32.mrf.mxu1  ;;  %v1114_v29 = vmax.f32 %v1110_v11, %v1079_v2  ;;  %v1238_v31 = vmax.f32 %v1234_v14, %v1079_v2  ;;  %v1784_v2 = vmov 1983009808  }
 0x165   :  { %485 = vst [vmem:[%s2459_s6 + $0x70] sm:$0xff] %v462_v27  ;;  %v1081_v32 = vmul.f32 0.0, %v462_v27  ;;  %1643 = vmatpush3.xpose.msra.mxu1 %v2276_v13  ;;  %1699 = vmatpush3.xpose.msra.mxu0 %v2276_v13  ;;  %v1095_v33 = vadd.f32 %v1094_v25, %v1080_v19  ;;  %v1219_v35 = vadd.f32 %v1218_v26, %v1080_v19  ;;  %v1260_v15 = vunpack.c.l.s4 %v1784_v2 }
 0x166   :  { %1644 = vmatprep.subr.mxu1 %v2245_v44  ;;  %1700 = vmatprep.subr.mxu0 %v2245_v44  ;;  %v1117_v38 = vmax.f32 %v1113_v23, %v1082_v20  ;;  %v1118_v43 = vmax.f32 %v1114_v29, %v1115_v36  ;;  %v1242_v45 = vmax.f32 %v1238_v31, %v1239_v37  ;;  %v1255_v37 = vld [vmem:[%s2458_s5] sm:$0xf]  ;;  %s1785_s5 = smov [#allocation2]  }
 0x167   :  { %v1116_v39 = vmax.f32 %v1112_v28, %v1081_v32  ;;  %v1096_v41 = vadd.f32 %v1095_v33, %v1081_v32  ;;  %v1220_v42 = vadd.f32 %v1219_v35, %v1081_v32  ;;  %v1261_v23 = vunpack.c.0.s8 %v1260_v15 }
 0x169   :  { %v1119_v46 = vmax.f32 %v1116_v39, %v1117_v38  ;;  %1645 = vmatpush3.xpose.msra.mxu1 %v2245_v44  ;;  %1701 = vmatpush3.xpose.msra.mxu0 %v2245_v44  ;;  %v1097_v47 = vadd.f32 %v1096_v41, %v1082_v20  ;;  %v1221_v48 = vadd.f32 %v1220_v42, %v1082_v20 }
 0x16a   :  { %1646 = vmatprep.subr.mxu1 %v2251_v53  ;;  %1702 = vmatprep.subr.mxu0 %v2251_v53  ;;  %v1264_v33 = vsub.s32 %v1261_v23, %v2133_v57 }
 0x16b   :  { %v1120_v49 = vmax.f32 %v1118_v43, %v1119_v46  ;;  %v1244_v54 = vmax.f32 %v1242_v45, %v1119_v46  ;;  %v1098_v55 = vrot.slane %v1097_v47, 4  ;;  %v1222_v52 = vrot.slane %v1221_v48, 4 }
 0x16d   :  { %v1121_v61 = vrot.slane %v1120_v49, 4  ;;  %v1245_v50 = vrot.slane %v1244_v54, 4  ;;  %1647 = vmatpush3.xpose.msra.mxu1 %v2251_v53  ;;  %1703 = vmatpush3.xpose.msra.mxu0 %v2251_v53  ;;  %v1099_v0 = vadd.f32 %v1098_v55, %v1097_v47  ;;  %v1223_v1 = vadd.f32 %v1222_v52, %v1221_v48 }
 0x16e   :  { %1648 = vmatprep.subr.mxu1 %v2231_v34  ;;  %1704 = vmatprep.subr.mxu0 %v2231_v34 }
 0x16f   :  { %v1122_v5 = vmax.f32 %v1120_v49, %v1121_v61  ;;  %v1246_v8 = vmax.f32 %v1244_v54, %v1245_v50  ;;  %v1100_v9 = vrot.slane %v1099_v0, 2  ;;  %v1224_v6 = vrot.slane %v1223_v1, 2 }
 0x171   :  { %1649 = vmatpush3.xpose.msra.mxu1 %v2231_v34  ;;  %1705 = vmatpush3.xpose.msra.mxu0 %v2231_v34  ;;  %v1123_v7 = vrot.slane %v1122_v5, 2  ;;  %v1247_v10 = vrot.slane %v1246_v8, 2  ;;  %v1101_v16 = vadd.f32 %v1100_v9, %v1099_v0  ;;  %v1225_v18 = vadd.f32 %v1224_v6, %v1223_v1 }
 0x172   :  { %1650 = vmatprep.subr.mxu1 %v2239_v40  ;;  %1706 = vmatprep.subr.mxu0 %v2239_v40 }
 0x173   :  { %v1124_v3 = vmax.f32 %v1122_v5, %v1123_v7  ;;  %v1248_v11 = vmax.f32 %v1246_v8, %v1247_v10  ;;  %v1102_v14 = vrot.slane %v1101_v16, 1  ;;  %v1226_v19 = vrot.slane %v1225_v18, 1 }
 0x175   :  { %1651 = vmatpush3.xpose.msra.mxu1 %v2239_v40  ;;  %1707 = vmatpush3.xpose.msra.mxu0 %v2239_v40  ;;  %v1125_v20 = vrot.slane %v1124_v3, 1  ;;  %v1249_v22 = vrot.slane %v1248_v11, 1  ;;  %v1103_v25 = vadd.f32 %v1102_v14, %v1101_v16  ;;  %v1227_v26 = vadd.f32 %v1226_v19, %v1225_v18 }
 0x176   :  { %1652 = vmatprep.subr.mxu1 %v2211_v24  ;;  %1708 = vmatprep.subr.mxu0 %v2211_v24 }
 0x177   :  { %v1126_v27 = vmax.f32 %v1124_v3, %v1125_v20  ;;  %v1250_v28 = vmax.f32 %v1248_v11, %v1249_v22  ;;  %v1105_v29 = vmul.f32 0.16666667, %v1103_v25  ;;  %v1229_v31 = vmul.f32 0.14285715, %v1227_v26 }
 0x179   :  { %1653 = vmatpush3.xpose.msra.mxu1 %v2211_v24  ;;  %1709 = vmatpush3.xpose.msra.mxu0 %v2211_v24  ;;  %v1253_v32 = vsel %vm1251_vm3, %v1126_v27, %v1250_v28  ;;  %v1252_v35 = vsel %vm1251_vm3, %v1105_v29, %v1229_v31 }
 0x17a   :  { %1654 = vmatprep.subr.mxu1 %v2223_v30  ;;  %1710 = vmatprep.subr.mxu0 %v2223_v30  ;;  %1254 = vst [vmem:[#allocation2] sm:$0x3] %v1252_v35  ;;  %v1258_v36 = vcombine.low %v1252_v35, %v1253_v32 }
 0x17c   :  { %v1265_v38 = vrot.slane %v1258_v36, %v1264_v33 }
 0x17d   :  { %1655 = vmatpush3.xpose.msra.mxu1 %v2223_v30  ;;  %1711 = vmatpush3.xpose.msra.mxu0 %v2223_v30 }
 0x17e   :  { %1656 = vmatprep.subr.mxu1 %v2195_v17  ;;  %1712 = vmatprep.subr.mxu0 %v2195_v17  ;;  %v1267_v39 = vadd.f32 %v1265_v38, %v1255_v37 }
 0x180   :  { %1268 = vst [vmem:[%s2461_s8] sm:$0xf] %v1267_v39  ;;  %s1281_s8 = sshll.u32 %s1785_s5, 4  ;;  %s1282_s8 = int_to_ptr.vmem [resolvable:$true] %s1281_s8 }
 0x181   :  { %1657 = vmatpush3.xpose.msra.mxu1 %v2195_v17  ;;  %1713 = vmatpush3.xpose.msra.mxu0 %v2195_v17  ;;  %s1759_s12 = scalar_lea.vmem %s1282_s8, 32  ;;  %p1764_p1 = scmp.lt.s32.totalorder %s1282_s8, %s1282_s8 }
 0x182   :  { %1658 = vmatprep.subr.mxu1 %v2203_v21  ;;  %1714 = vmatprep.subr.mxu0 %v2203_v21  ;;  %p1760_p0 = scmp.ne.s32.totalorder %s1282_s8, %s1759_s12  ;;  %p1765_p2 = scmp.lt.s32.totalorder %s1759_s12, %s1759_s12 }
 0x184   :  { %p1766_p3 = por %p1765_p2, %p1764_p1 }
 0x185   :  { %1659 = vmatpush3.xpose.msra.mxu1 %v2203_v21  ;;  %1715 = vmatpush3.xpose.msra.mxu0 %v2203_v21 }
 0x186   :  { %1660 = vmatprep.subr.mxu1 %v2173_v56  ;;  %1716 = vmatprep.subr.mxu0 %v2173_v56  ;;  %p1767_p4 = pnand %p1766_p3, %p1760_p0 }
 0x189   :  { %1661 = vmatpush3.xpose.msra.mxu1 %v2173_v56  ;;  %1717 = vmatpush3.xpose.msra.mxu0 %v2173_v56 }
 0x18a   :  { %1662 = vmatprep.subr.mxu1 %v2185_v12  ;;  %1718 = vmatprep.subr.mxu0 %v2185_v12 }
 0x18d   :  { %1663 = vmatpush3.xpose.msra.mxu1 %v2185_v12  ;;  %1719 = vmatpush3.xpose.msra.mxu0 %v2185_v12 }
 0x18e   :  { %1664 = vmatprep.subr.mxu1 %v2152_v63  ;;  %1720 = vmatprep.subr.mxu0 %v2152_v63 }
 0x191   :  { %1665 = vmatpush3.xpose.msra.mxu1 %v2152_v63  ;;  %1721 = vmatpush3.xpose.msra.mxu0 %v2152_v63 }
 0x192   :  { %1666 = vmatprep.subr.mxu1 %v2163_v4  ;;  %1722 = vmatprep.subr.mxu0 %v2163_v4 }
 0x195   :  { %1667 = vmatpush3.xpose.msra.mxu1 %v2163_v4  ;;  %1723 = vmatpush3.xpose.msra.mxu0 %v2163_v4 }
 0x196   :  { %1668 = vmatprep.subr.mxu1 %v2138_v59  ;;  %1724 = vmatprep.subr.mxu0 %v2138_v59 }
 0x199   :  { %1669 = vmatpush3.xpose.msra.mxu1 %v2138_v59  ;;  %1725 = vmatpush3.xpose.msra.mxu0 %v2138_v59 }
 0x19a   :  { %1670 = vmatprep.subr.mxu1 %v2142_v60  ;;  %1726 = vmatprep.subr.mxu0 %v2142_v60 }
 0x19d   :  { %1671 = vmatpush3.xpose.msra.mxu1 %v2142_v60  ;;  %1727 = vmatpush3.xpose.msra.mxu0 %v2142_v60 }
 0x1a0   :  { %1673 = vmatmul.mubr.f32.vlgmr.msra.gmra.mxu1 %v2138_v59 }
 0x1a1   :  { %1675 = vmatprep.mubr.f32.mxu1 %v2163_v4 }
 0x1a4   :  { %1676 = vmatmul.mubr.f32.gmra.mxu1 %v2152_v63 }
 0x1a5   :  { %1678 = vmatprep.mubr.f32.mxu1 %v2185_v12 }
 0x1a8   :  { %1679 = vmatmul.mubr.f32.gmra.mxu1 %v2173_v56 }
 0x1a9   :  { %1681 = vmatprep.mubr.f32.mxu1 %v2203_v21 }
 0x1ac   :  { %1682 = vmatmul.mubr.f32.gmra.mxu1 %v2195_v17 }
 0x1ad   :  { %1684 = vmatprep.mubr.f32.mxu1 %v2223_v30 }
 0x1b0   :  { %1685 = vmatmul.mubr.f32.gmra.mxu1 %v2211_v24 }
 0x1b1   :  { %1687 = vmatprep.mubr.f32.mxu1 %v2239_v40 }
 0x1b4   :  { %1688 = vmatmul.mubr.f32.gmra.mxu1 %v2231_v34 }
 0x1b5   :  { %1690 = vmatprep.mubr.f32.mxu1 %v2251_v53 }
 0x1b8   :  { %1691 = vmatmul.mubr.f32.gmra.mxu1 %v2245_v44 }
 0x1b9   :  { %1693 = vmatprep.mubr.f32.mxu1 %v2276_v13 }
 0x1bc   :  { %1694 = vmatmul.mubr.f32.gmra.mxu1 %v2261_v62 }
 0x207   :  { %v1618_v59 = vpop.f32.mrf.mxu0 }
 0x209   :  { %v569_v60 = vpop.f32.mrf.mxu0 }
 0x20a   :  { %1728 = vmatprep.mubr.f32.mxu0 %v569_v60 }
 0x20b   :  { %v1621_v63 = vpop.f32.mrf.mxu0  ;;  %1729 = vmatmul.mubr.f32.vlgmr.msra.gmra.mxu0 %v1618_v59 }
 0x20d   :  { %v579_v4 = vpop.f32.mrf.mxu0 }
 0x20e   :  { %1731 = vmatprep.mubr.f32.mxu0 %v579_v4 }
 0x20f   :  { %v1624_v56 = vpop.f32.mrf.mxu0  ;;  %1732 = vmatmul.mubr.f32.gmra.mxu0 %v1621_v63 }
 0x211   :  { %v589_v12 = vpop.f32.mrf.mxu0 }
 0x212   :  { %1734 = vmatprep.mubr.f32.mxu0 %v589_v12 }
 0x213   :  { %v1627_v17 = vpop.f32.mrf.mxu0  ;;  %1735 = vmatmul.mubr.f32.gmra.mxu0 %v1624_v56 }
 0x215   :  { %v599_v21 = vpop.f32.mrf.mxu0 }
 0x216   :  { %1737 = vmatprep.mubr.f32.mxu0 %v599_v21 }
 0x217   :  { %v1630_v24 = vpop.f32.mrf.mxu0  ;;  %1738 = vmatmul.mubr.f32.gmra.mxu0 %v1627_v17 }
 0x219   :  { %v609_v30 = vpop.f32.mrf.mxu0 }
 0x21a   :  { %1740 = vmatprep.mubr.f32.mxu0 %v609_v30 }
 0x21b   :  { %v1633_v34 = vpop.f32.mrf.mxu0  ;;  %1741 = vmatmul.mubr.f32.gmra.mxu0 %v1630_v24 }
 0x21d   :  { %v619_v40 = vpop.f32.mrf.mxu0 }
 0x21e   :  { %1743 = vmatprep.mubr.f32.mxu0 %v619_v40 }
 0x21f   :  { %v1636_v44 = vpop.f32.mrf.mxu0  ;;  %1744 = vmatmul.mubr.f32.gmra.mxu0 %v1633_v34 }
 0x221   :  { %v629_v53 = vpop.f32.mrf.mxu0 }
 0x222   :  { %1746 = vmatprep.mubr.f32.mxu0 %v629_v53 }
 0x223   :  { %v1639_v62 = vpop.f32.mrf.mxu0  ;;  %1747 = vmatmul.mubr.f32.gmra.mxu0 %v1636_v44 }
 0x225   :  { %v639_v13 = vpop.f32.mrf.mxu0 }
 0x226   :  { %1749 = vmatprep.mubr.f32.mxu0 %v639_v13 }
 0x227   :  { %1750 = vmatmul.mubr.f32.gmra.mxu0 %v1639_v62 }
 0x228   :  { %1770 = shalt.err (!%p1767_p4)
}
 0x229   :  { %1284 = dma.vmem_to_hbm [thread:$0]  %s1282_s8, 32, %s2462_s9, [#allocation3]   ;;  %vm956_vm4 = vcmp.eq.s32.totalorder %v2136_v58, %v1984_v51  ;;  %v942_v55 = vadd.s32 24, %v2133_v57  ;;  %vm955_vm5 = vcmp.eq.s32.totalorder %v2133_v57, %v1984_v51  ;;  %v941_v0 = vadd.s32 16, %v2133_v57 }
 0x22a   :  { %v944_v58 = vadd.s32 40, %v2133_v57  ;;  %v943_v2 = vadd.s32 32, %v2133_v57  ;;  %v946_v3 = vadd.s32 56, %v2133_v57  ;;  %v945_v22 = vadd.s32 48, %v2133_v57 }
 0x22b   :  { %vm958_vm6 = vcmp.eq.s32.totalorder %v942_v55, %v1984_v51  ;;  %vm957_vm7 = vcmp.eq.s32.totalorder %v941_v0, %v1984_v51  ;;  %v948_v27 = vadd.s32 72, %v2133_v57  ;;  %v947_v33 = vadd.s32 64, %v2133_v57 }
 0x22c   :  { %vm960_vm8 = vcmp.eq.s32.totalorder %v944_v58, %v1984_v51  ;;  %vm959_vm9 = vcmp.eq.s32.totalorder %v943_v2, %v1984_v51  ;;  %vm962_vm10 = vcmp.eq.s32.totalorder %v946_v3, %v1984_v51  ;;  %vm961_vm11 = vcmp.eq.s32.totalorder %v945_v22, %v1984_v51 }
 0x22d   :  { %vm964_vm12 = vcmp.eq.s32.totalorder %v948_v27, %v1984_v51  ;;  %v950_v38 = vadd.s32 88, %v2133_v57  ;;  %vm963_vm13 = vcmp.eq.s32.totalorder %v947_v33, %v1984_v51  ;;  %v949_v4 = vadd.s32 80, %v2133_v57 }
 0x22e   :  { %v952_v21 = vadd.s32 104, %v2133_v57  ;;  %v951_v44 = vadd.s32 96, %v2133_v57 }
 0x22f   :  { %vm966_vm14 = vcmp.eq.s32.totalorder %v950_v38, %v1984_v51  ;;  %vm965_vm15 = vcmp.eq.s32.totalorder %v949_v4, %v1984_v51 }
 0x230   :  { %vm968_vm0 = vcmp.eq.s32.totalorder %v952_v21, %v1984_v51  ;;  %vm967_vm1 = vcmp.eq.s32.totalorder %v951_v44, %v1984_v51 }
 0x260   :  { %v1674_v41 = vpop.f32.mrf.mxu1 }
 0x262   :  { %v714_v42 = vpop.f32.mrf.mxu1 }
 0x264   :  { %v1677_v43 = vpop.f32.mrf.mxu1 }
 0x266   :  { %v724_v45 = vpop.f32.mrf.mxu1 }
 0x268   :  { %v1680_v46 = vpop.f32.mrf.mxu1 }
 0x26a   :  { %v734_v47 = vpop.f32.mrf.mxu1 }
 0x26c   :  { %v1683_v48 = vpop.f32.mrf.mxu1 }
 0x26e   :  { %v744_v49 = vpop.f32.mrf.mxu1 }
 0x270   :  { %v1686_v61 = vpop.f32.mrf.mxu1 }
 0x272   :  { %v754_v7 = vpop.f32.mrf.mxu1 }
 0x274   :  { %v1689_v19 = vpop.f32.mrf.mxu1 }
 0x276   :  { %v764_v31 = vpop.f32.mrf.mxu1 }
 0x278   :  { %v1692_v60 = vpop.f32.mrf.mxu1 }
 0x27a   :  { %v774_v34 = vpop.f32.mrf.mxu1 }
 0x2cb   :  { %v1730_v54 = vpop.f32.mrf.mxu0 }
 0x2cc   :  { %v865_v52 = vadd.f32 %v1730_v54, %v1674_v41  ;;  %v954_v41 = vadd.s32 120, %v2133_v57 }
 0x2cd   :  { %v859_v50 = vpop.f32.mrf.mxu0 }
 0x2ce   :  { %v972_v1 = vsel %vm956_vm4, 0.0, %v865_v52  ;;  %v860_v5 = vadd.f32 %v859_v50, %v714_v42  ;;  %vm970_vm2 = vcmp.eq.s32.totalorder %v954_v41, %v1984_v51 }
 0x2cf   :  { %988 = vst [vmem:[%s2460_s7 + $0x8] sm:$0xff] %v972_v1  ;;  %v1733_v8 = vpop.f32.mrf.mxu0 }
 0x2d0   :  { %v971_v9 = vsel %vm955_vm5, 0.0, %v860_v5  ;;  %v875_v6 = vadd.f32 %v1733_v8, %v1677_v43 }
 0x2d1   :  { %987 = vst [vmem:[%s2460_s7] sm:$0xff] %v971_v9  ;;  %v869_v10 = vpop.f32.mrf.mxu0 }
 0x2d2   :  { %v974_v15 = vsel %vm958_vm6, 0.0, %v875_v6  ;;  %v870_v16 = vadd.f32 %v869_v10, %v724_v45  ;;  %v1695_v45 = vpop.f32.mrf.mxu1 }
 0x2d3   :  { %990 = vst [vmem:[%s2460_s7 + $0x18] sm:$0xff] %v974_v15  ;;  %v1736_v18 = vpop.f32.mrf.mxu0 }
 0x2d4   :  { %v973_v11 = vsel %vm957_vm7, 0.0, %v870_v16  ;;  %v885_v14 = vadd.f32 %v1736_v18, %v1680_v46 }
 0x2d5   :  { %989 = vst [vmem:[%s2460_s7 + $0x10] sm:$0xff] %v973_v11  ;;  %v879_v20 = vpop.f32.mrf.mxu0 }
 0x2d6   :  { %v976_v23 = vsel %vm960_vm8, 0.0, %v885_v14  ;;  %v880_v25 = vadd.f32 %v879_v20, %v734_v47  ;;  %v953_v47 = vadd.s32 112, %v2133_v57 }
 0x2d7   :  { %992 = vst [vmem:[%s2460_s7 + $0x28] sm:$0xff] %v976_v23  ;;  %v1739_v26 = vpop.f32.mrf.mxu0 }
 0x2d8   :  { %v975_v28 = vsel %vm959_vm9, 0.0, %v880_v25  ;;  %v895_v29 = vadd.f32 %v1739_v26, %v1683_v48  ;;  %vm969_vm3 = vcmp.eq.s32.totalorder %v953_v47, %v1984_v51 }
 0x2d9   :  { %991 = vst [vmem:[%s2460_s7 + $0x20] sm:$0xff] %v975_v28  ;;  %v889_v32 = vpop.f32.mrf.mxu0 }
 0x2da   :  { %v978_v35 = vsel %vm962_vm10, 0.0, %v895_v29  ;;  %v890_v36 = vadd.f32 %v889_v32, %v744_v49 }
 0x2db   :  { %994 = vst [vmem:[%s2460_s7 + $0x38] sm:$0xff] %v978_v35  ;;  %v1742_v37 = vpop.f32.mrf.mxu0 }
 0x2dc   :  { %v977_v39 = vsel %vm961_vm11, 0.0, %v890_v36  ;;  %v905_v59 = vadd.f32 %v1742_v37, %v1686_v61  ;;  %v784_v61 = vpop.f32.mrf.mxu1 }
 0x2dd   :  { %993 = vst [vmem:[%s2460_s7 + $0x30] sm:$0xff] %v977_v39  ;;  %v899_v63 = vpop.f32.mrf.mxu0 }
 0x2de   :  { %v980_v56 = vsel %vm964_vm12, 0.0, %v905_v59  ;;  %v900_v12 = vadd.f32 %v899_v63, %v754_v7 }
 0x2df   :  { %996 = vst [vmem:[%s2460_s7 + $0x48] sm:$0xff] %v980_v56  ;;  %v1745_v17 = vpop.f32.mrf.mxu0 }
 0x2e0   :  { %v979_v24 = vsel %vm963_vm13, 0.0, %v900_v12  ;;  %v915_v30 = vadd.f32 %v1745_v17, %v1689_v19 }
 0x2e1   :  { %995 = vst [vmem:[%s2460_s7 + $0x40] sm:$0xff] %v979_v24  ;;  %v909_v40 = vpop.f32.mrf.mxu0 }
 0x2e2   :  { %v982_v53 = vsel %vm966_vm14, 0.0, %v915_v30  ;;  %v910_v62 = vadd.f32 %v909_v40, %v764_v31 }
 0x2e3   :  { %998 = vst [vmem:[%s2460_s7 + $0x58] sm:$0xff] %v982_v53  ;;  %v1748_v13 = vpop.f32.mrf.mxu0 }
 0x2e4   :  { %v981_v42 = vsel %vm965_vm15, 0.0, %v910_v62  ;;  %v925_v43 = vadd.f32 %v1748_v13, %v1692_v60 }
 0x2e5   :  { %997 = vst [vmem:[%s2460_s7 + $0x50] sm:$0xff] %v981_v42  ;;  %v919_v46 = vpop.f32.mrf.mxu0 }
 0x2e6   :  { %v984_v48 = vsel %vm968_vm0, 0.0, %v925_v43  ;;  %v920_v49 = vadd.f32 %v919_v46, %v774_v34 }
 0x2e7   :  { %1000 = vst [vmem:[%s2460_s7 + $0x68] sm:$0xff] %v984_v48  ;;  %v1751_v54 = vpop.f32.mrf.mxu0 }
 0x2e8   :  { %v983_v55 = vsel %vm967_vm1, 0.0, %v920_v49  ;;  %v935_v52 = vadd.f32 %v1751_v54, %v1695_v45 }
 0x2e9   :  { %999 = vst [vmem:[%s2460_s7 + $0x60] sm:$0xff] %v983_v55  ;;  %v929_v50 = vpop.f32.mrf.mxu0 }
 0x2ea   :  { %v986_v57 = vsel %vm970_vm2, 0.0, %v935_v52  ;;  %v930_v0 = vadd.f32 %v929_v50, %v784_v61 }
 0x2eb   :  { %1002 = vst [vmem:[%s2460_s7 + $0x78] sm:$0xff] %v986_v57 }
 0x2ec   :  { %v985_v1 = vsel %vm969_vm3, 0.0, %v930_v0 }
 0x2ed   :  { %1001 = vst [vmem:[%s2460_s7 + $0x70] sm:$0xff] %v985_v1 }
 0x2ee   :  { %1779 = dma.done.wait [#allocation3], 32  }
 0x2ef   :  { %1780 = vsyncadd [#allocation3], 4294967264 }
 0x2f0   :  { %1294 = vsyncpa [#allocation3], 1 }

// kernel: _lambda_.7
= control target key start
LH: loop header
LB: loop body
LE: loop exit
PB: predicated region body
PF: predicated region fallthrough
CT: control target
= control target key end

     0   :  { %v44_v0 = vlaneseq  ;;  %v9411_v24 = vmov 0  ;;  %v9263_v26 = vmov 0.0   ;;  %v9415_v28 = vmov 0  ;;  %s9244_s2 = inlined_call_operand.vmem [shape: f32[128,128], index: 2, kind: input, shape index: {}]   ;;  %s9245_s5 = inlined_call_operand.vmem [shape: f32[1,128], index: 5, kind: input, shape index: {}]   ;;  %s9246_s6 = inlined_call_operand.<no memory space> [shape: f32[1,1], index: 6, kind: input, shape index: {}]   ;;  %s9247_s7 = inlined_call_operand.vmem [shape: f32[8,128], index: 7, kind: input, shape index: {}]   ;;  %s9248_s8 = inlined_call_operand.<no memory space> [shape: f32[1,1], index: 8, kind: input, shape index: {}]   ;;  %s9249_s9 = inlined_call_operand.<no memory space> [shape: f32[1,1], index: 9, kind: input, shape index: {}]   ;;  %s9250_s10 = inlined_call_operand.vmem [shape: f32[128,128], index: 10, kind: output, shape index: {0}]   ;;  %s9251_s11 = inlined_call_operand.vmem [shape: f32[128,128], index: 11, kind: output, shape index: {1}]   ;;  %s9252_s12 = inlined_call_operand.vmem [shape: f32[1,128], index: 12, kind: output, shape index: {2}]   ;;  %s9253_s1 = inlined_call_operand.vmem [shape: f32[128,128], index: 1, kind: input, shape index: {}]   ;;  %s9254_s0 = inlined_call_operand.vmem [shape: f32[128,128], index: 0, kind: input, shape index: {}]   ;;  %s9255_s4 = inlined_call_operand.vmem [shape: f32[128,1], index: 4, kind: input, shape index: {}]   ;;  %s9256_s3 = inlined_call_operand.vmem [shape: f32[1,128], index: 3, kind: input, shape index: {}]  }
   0x1   :  { %v18_v1 = vstv %s9246_s6  ;;  %v20_v2 = vstv %s9248_s8  ;;  %v22_v3 = vstv %s9249_s9  ;;  %v254_v4 = vld [vmem:[%s9244_s2 + $0x78] sm:$0xff]  ;;  %v9419_v33 = vmov 0 }
   0x2   :  { %19 = vst [vmem:[#allocation4] sm:$0x1] %v18_v1  ;;  %21 = vst [vmem:[#allocation5] sm:$0x1] %v20_v2  ;;  %5156 = vmatprep.subr.mxu0 %v254_v4  ;;  %v253_v5 = vld [vmem:[%s9244_s2 + $0x70] sm:$0xff]  ;;  %v5738_v6 = vshrl.u32 %v44_v0, 7 }
   0x3   :  { %23 = vst [vmem:[#allocation6] sm:$0x1] %v22_v3  ;;  %5157 = vmatpush3.msra.mxu0 %v254_v4  ;;  %v252_v7 = vld [vmem:[%s9244_s2 + $0x68] sm:$0xff]  ;;  %v5744_v9 = vand.u32 127, %v44_v0  ;;  %v251_v10 = vld [vmem:[%s9244_s2 + $0x60] sm:$0xff]  ;;  %v250_v13 = vld [vmem:[%s9244_s2 + $0x58] sm:$0xff] }
   0x4   :  { %9410 = vst [vmem:[#allocation7_spill] sm:$0xff] %v5738_v6  ;;  %5158 = vmatprep.subr.mxu0 %v253_v5  ;;  %v60_v8 = vadd.s32 120, %v5738_v6  ;;  %v58_v11 = vadd.s32 104, %v5738_v6  ;;  %v59_v12 = vadd.s32 112, %v5738_v6  ;;  %v223_v14 = vld [vmem:[%s9253_s1] sm:$0xff]  ;;  %v57_v15 = vadd.s32 96, %v5738_v6 }
   0x5   :  { %5159 = vmatpush3.msra.mxu0 %v253_v5  ;;  %v56_v16 = vadd.s32 88, %v5738_v6  ;;  %5188 = vmatprep.mubr.f32.mxu0 %v223_v14  ;;  %v55_v17 = vadd.s32 80, %v5738_v6  ;;  %v249_v18 = vld [vmem:[%s9244_s2 + $0x50] sm:$0xff]  ;;  %v94_v19 = vld [vmem:[%s9254_s0 + $0x78] sm:$0xff]  ;;  %v92_v20 = vld [vmem:[%s9254_s0 + $0x68] sm:$0xff]  ;;  %v54_v21 = vadd.s32 72, %v5738_v6 }
   0x6   :  { %5160 = vmatprep.subr.mxu0 %v252_v7  ;;  %vm78_vm0 = vcmp.eq.s32.totalorder %v60_v8, %v5744_v9  ;;  %vm76_vm1 = vcmp.eq.s32.totalorder %v58_v11, %v5744_v9  ;;  %vm110_vm2 = vcmp.gt.f32.partialorder %v94_v19, 0.0  ;;  %vm77_vm3 = vcmp.eq.s32.totalorder %v59_v12, %v5744_v9  ;;  %v248_v23 = vld [vmem:[%s9244_s2 + $0x48] sm:$0xff]  ;;  %v93_v25 = vld [vmem:[%s9254_s0 + $0x70] sm:$0xff]  ;;  %v91_v29 = vld [vmem:[%s9254_s0 + $0x60] sm:$0xff] }
   0x7   :  { %5161 = vmatpush3.msra.mxu0 %v252_v7  ;;  %v5774_v22 = vadd.s32 64, %v5738_v6  ;;  %vm5779_vm4 = vmor %vm78_vm0, %vm110_vm2  ;;  %vm108_vm5 = vcmp.gt.f32.partialorder %v92_v20, 0.0  ;;  %vm75_vm6 = vcmp.eq.s32.totalorder %v57_v15, %v5744_v9  ;;  %vm74_vm7 = vcmp.eq.s32.totalorder %v56_v16, %v5744_v9  ;;  %v247_v31 = vld [vmem:[%s9244_s2 + $0x40] sm:$0xff]  ;;  %v90_v34 = vld [vmem:[%s9254_s0 + $0x58] sm:$0xff] }
   0x8   :  { %5162 = vmatprep.subr.mxu0 %v251_v10  ;;  %v9412_v24 = vsel %vm5779_vm4, 4294967295, %v9411_v24  ;;  %v5791_v27 = vsel %vm5779_vm4, 1.0, %v9263_v26  ;;  %vm5795_vm8 = vmor %vm76_vm1, %vm108_vm5  ;;  %vm109_vm9 = vcmp.gt.f32.partialorder %v93_v25, 0.0  ;;  %vm73_vm10 = vcmp.eq.s32.totalorder %v55_v17, %v5744_v9  ;;  %v89_v39 = vld [vmem:[%s9254_s0 + $0x50] sm:$0xff]  ;;  %v246_v40 = vld [vmem:[%s9244_s2 + $0x38] sm:$0xff] }
   0x9   :  { %5163 = vmatpush3.msra.mxu0 %v251_v10  ;;  %9413 = vst [vmem:[#allocation8_spill] sm:$0xff] %v9412_v24  ;;  %9414 = vst [vmem:[#allocation9_spill] sm:$0xff] %v5791_v27  ;;  %v9416_v28 = vsel %vm5795_vm8, 4294967295, %v9415_v28  ;;  %v52_v30 = vadd.s32 56, %v5738_v6  ;;  %205 = vadd.xlane.f32.xlu0 %v5791_v27  ;;  %v5812_v32 = vsel %vm5795_vm8, 1.0, %v9263_v26  ;;  %vm107_vm12 = vcmp.gt.f32.partialorder %v91_v29, 0.0 }
   0xa   :  { %5164 = vmatprep.subr.mxu0 %v250_v13  ;;  %9417 = vst [vmem:[#allocation10_spill] sm:$0xff] %v9416_v28  ;;  %158 = vst [vmem:[#allocation2 + $0x78] sm:$0xff] %v5791_v27  ;;  %v51_v35 = vadd.s32 48, %v5738_v6  ;;  %v5825_v36 = vadd.s32 40, %v5738_v6  ;;  %201 = vadd.xlane.f32.xlu1 %v5812_v32  ;;  %v9423_v38 = vmov 0  ;;  %vm106_vm14 = vcmp.gt.f32.partialorder %v90_v34, 0.0 }
   0xb   :  { %5165 = vmatpush3.msra.mxu0 %v250_v13  ;;  %9418 = vst [vmem:[#allocation11_spill] sm:$0xff] %v5812_v32  ;;  %vm5816_vm11 = vmor %vm77_vm3, %vm109_vm9  ;;  %vm72_vm15 = vcmp.eq.s32.totalorder %v54_v21, %v5744_v9  ;;  %vm71_vm0 = vcmp.eq.s32.totalorder %v5774_v22, %v5744_v9  ;;  %v9427_v42 = vmov 0  ;;  %vm105_vm2 = vcmp.gt.f32.partialorder %v89_v39, 0.0  ;;  %v88_v43 = vld [vmem:[%s9254_s0 + $0x48] sm:$0xff]  ;;  %v245_v46 = vld [vmem:[%s9244_s2 + $0x30] sm:$0xff] }
   0xc   :  { %5166 = vmatprep.subr.mxu0 %v249_v18  ;;  %v9420_v33 = vsel %vm5816_vm11, 4294967295, %v9419_v33  ;;  %156 = vst [vmem:[#allocation2 + $0x68] sm:$0xff] %v5812_v32  ;;  %v5832_v37 = vsel %vm5816_vm11, 1.0, %v9263_v26  ;;  %vm5836_vm13 = vmor %vm75_vm6, %vm107_vm12  ;;  %v49_v44 = vadd.s32 32, %v5738_v6  ;;  %v5866_v45 = vadd.s32 24, %v5738_v6  ;;  %v87_v49 = vld [vmem:[%s9254_s0 + $0x40] sm:$0xff] }
   0xd   :  { %5167 = vmatpush3.msra.mxu0 %v249_v18  ;;  %9421 = vst [vmem:[#allocation12_spill] sm:$0xff] %v9420_v33  ;;  %9422 = vst [vmem:[#allocation13_spill] sm:$0xff] %v5832_v37  ;;  %v9424_v38 = vsel %vm5836_vm13, 4294967295, %v9423_v38  ;;  %v5853_v41 = vsel %vm5836_vm13, 1.0, %v9263_v26  ;;  %v9431_v48 = vmov 0  ;;  %vm104_vm5 = vcmp.gt.f32.partialorder %v88_v43, 0.0  ;;  %203 = vadd.xlane.f32.xlu0 %v5832_v37 }
   0xe   :  { %5168 = vmatprep.subr.mxu0 %v248_v23  ;;  %9425 = vst [vmem:[#allocation14_spill] sm:$0xff] %v9424_v38  ;;  %157 = vst [vmem:[#allocation2 + $0x70] sm:$0xff] %v5832_v37  ;;  %vm70_vm6 = vcmp.eq.s32.totalorder %v52_v30, %v5744_v9  ;;  %v5888_v50 = vadd.s32 16, %v5738_v6  ;;  %v244_v51 = vld [vmem:[%s9244_s2 + $0x28] sm:$0xff]  ;;  %v9435_v53 = vmov 0  ;;  %vm103_vm9 = vcmp.gt.f32.partialorder %v87_v49, 0.0  ;;  %199 = vadd.xlane.f32.xlu1 %v5853_v41 }
   0xf   :  { %5169 = vmatpush3.msra.mxu0 %v248_v23  ;;  %9426 = vst [vmem:[#allocation15_spill] sm:$0xff] %v5853_v41  ;;  %vm5857_vm1 = vmor %vm74_vm7, %vm106_vm14  ;;  %v86_v54 = vld [vmem:[%s9254_s0 + $0x38] sm:$0xff]  ;;  %v85_v55 = vld [vmem:[%s9254_s0 + $0x30] sm:$0xff]  ;;  %v9439_v57 = vmov 0  ;;  %v46_v60 = vadd.s32 8, %v5738_v6  ;;  %v9443_v62 = vmov 0 }
  0x10   :  { %v9428_v42 = vsel %vm5857_vm1, 4294967295, %v9427_v42  ;;  %5170 = vmatprep.subr.mxu0 %v247_v31  ;;  %155 = vst [vmem:[#allocation2 + $0x60] sm:$0xff] %v5853_v41  ;;  %v5875_v47 = vsel %vm5857_vm1, 1.0, %v9263_v26  ;;  %vm5879_vm3 = vmor %vm73_vm10, %vm105_vm2  ;;  %vm69_vm10 = vcmp.eq.s32.totalorder %v51_v35, %v5744_v9  ;;  %vm101_vm2 = vcmp.gt.f32.partialorder %v85_v55, 0.0  ;;  %v84_v58 = vld [vmem:[%s9254_s0 + $0x28] sm:$0xff]  ;;  %v83_v59 = vld [vmem:[%s9254_s0 + $0x20] sm:$0xff] }
  0x11   :  { %9429 = vst [vmem:[#allocation16_spill] sm:$0xff] %v9428_v42  ;;  %9430 = vst [vmem:[#allocation17_spill] sm:$0xff] %v5875_v47  ;;  %v9432_v48 = vsel %vm5879_vm3, 4294967295, %v9431_v48  ;;  %5171 = vmatpush3.msra.mxu0 %v247_v31  ;;  %v5898_v52 = vsel %vm5879_vm3, 1.0, %v9263_v26  ;;  %vm99_vm12 = vcmp.gt.f32.partialorder %v83_v59, 0.0  ;;  %v82_v63 = vld [vmem:[%s9254_s0 + $0x18] sm:$0xff]  ;;  %197 = vadd.xlane.f32.xlu0 %v5875_v47  ;;  %vm9468_vm8 = vcmp.eq.s32.totalorder %v5888_v50, %v5744_v9 }
  0x12   :  { %9433 = vst [vmem:[#allocation18_spill] sm:$0xff] %v9432_v48  ;;  %154 = vst [vmem:[#allocation2 + $0x58] sm:$0xff] %v5875_v47  ;;  %5172 = vmatprep.subr.mxu0 %v246_v40  ;;  %v81_v0 = vld [vmem:[%s9254_s0 + $0x10] sm:$0xff]  ;;  %v9447_v2 = vmov 0  ;;  %v80_v3 = vld [vmem:[%s9254_s0 + $0x8] sm:$0xff]  ;;  %v9452_v8 = vmov 0  ;;  %195 = vadd.xlane.f32.xlu1 %v5898_v52 }
  0x13   :  { %9434 = vst [vmem:[#allocation19_spill] sm:$0xff] %v5898_v52  ;;  %vm5902_vm7 = vmor %vm72_vm15, %vm104_vm5  ;;  %vm102_vm15 = vcmp.gt.f32.partialorder %v86_v54, 0.0  ;;  %5173 = vmatpush3.msra.mxu0 %v246_v40  ;;  %vm100_vm5 = vcmp.gt.f32.partialorder %v84_v58, 0.0  ;;  %v79_v4 = vld [vmem:[%s9254_s0] sm:$0xff]  ;;  %v9457_v11 = vmov 0  ;;  %v242_v12 = vld [vmem:[%s9244_s2 + $0x18] sm:$0xff] }
  0x14   :  { %v9436_v53 = vsel %vm5902_vm7, 4294967295, %v9435_v53  ;;  %153 = vst [vmem:[#allocation2 + $0x50] sm:$0xff] %v5898_v52  ;;  %v5920_v56 = vsel %vm5902_vm7, 1.0, %v9263_v26  ;;  %vm5925_vm14 = vmor %vm71_vm0, %vm103_vm9  ;;  %5174 = vmatprep.subr.mxu0 %v245_v46  ;;  %v243_v5 = vld [vmem:[%s9244_s2 + $0x20] sm:$0xff]  ;;  %vm9461_vm4 = vcmp.gt.f32.partialorder %v82_v63, 0.0  ;;  %v9463_v14 = vmov 0 }
  0x15   :  { %9437 = vst [vmem:[#allocation20_spill] sm:$0xff] %v9436_v53  ;;  %9438 = vst [vmem:[#allocation21_spill] sm:$0xff] %v5920_v56  ;;  %v9440_v57 = vsel %vm5925_vm14, 4294967295, %v9439_v57  ;;  %v5940_v61 = vsel %vm5925_vm14, 1.0, %v9263_v26  ;;  %5175 = vmatpush3.msra.mxu0 %v245_v46  ;;  %vm95_vm9 = vcmp.gt.f32.partialorder %v79_v4, 0.0  ;;  %vm9467_vm11 = vcmp.gt.f32.partialorder %v81_v0, 0.0  ;;  %193 = vadd.xlane.f32.xlu0 %v5920_v56 }
  0x16   :  { %9441 = vst [vmem:[#allocation22_spill] sm:$0xff] %v9440_v57  ;;  %152 = vst [vmem:[#allocation2 + $0x48] sm:$0xff] %v5920_v56  ;;  %5176 = vmatprep.subr.mxu0 %v244_v51  ;;  %v9469_v16 = vmov 0  ;;  %v241_v17 = vld [vmem:[%s9244_s2 + $0x10] sm:$0xff]  ;;  %v9475_v19 = vmov 0  ;;  %191 = vadd.xlane.f32.xlu1 %v5940_v61  ;;  %v9479_v21 = vmov 0 }
  0x17   :  { %9442 = vst [vmem:[#allocation23_spill] sm:$0xff] %v5940_v61  ;;  %vm5944_vm0 = vmor %vm70_vm6, %vm102_vm15  ;;  %5177 = vmatpush3.msra.mxu0 %v244_v51  ;;  %vm63_vm15 = vcmp.eq.s32.totalorder %v5738_v6, %v5744_v9  ;;  %v240_v22 = vld [vmem:[%s9244_s2 + $0x8] sm:$0xff]  ;;  %v239_v25 = vld [vmem:[%s9244_s2] sm:$0xff] }
  0x18   :  { %v9444_v62 = vsel %vm5944_vm0, 4294967295, %v9443_v62  ;;  %151 = vst [vmem:[#allocation2 + $0x40] sm:$0xff] %v5940_v61  ;;  %v5959_v1 = vsel %vm5944_vm0, 1.0, %v9263_v26  ;;  %vm5964_vm6 = vmor %vm69_vm10, %vm101_vm2  ;;  %vm9451_vm10 = vcmp.eq.s32.totalorder %v5825_v36, %v5744_v9  ;;  %5178 = vmatprep.subr.mxu0 %v243_v5  ;;  %v224_v29 = vld [vmem:[%s9253_s1 + $0x8] sm:$0xff]  ;;  %v225_v30 = vld [vmem:[%s9253_s1 + $0x10] sm:$0xff] }
  0x19   :  { %9445 = vst [vmem:[#allocation24_spill] sm:$0xff] %v9444_v62  ;;  %9446 = vst [vmem:[#allocation25_spill] sm:$0xff] %v5959_v1  ;;  %v9448_v2 = vsel %vm5964_vm6, 4294967295, %v9447_v2  ;;  %v5984_v7 = vsel %vm5964_vm6, 1.0, %v9263_v26  ;;  %5179 = vmatpush3.msra.mxu0 %v243_v5  ;;  %189 = vadd.xlane.f32.xlu0 %v5959_v1  ;;  %v226_v31 = vld [vmem:[%s9253_s1 + $0x18] sm:$0xff]  ;;  %v227_v34 = vld [vmem:[%s9253_s1 + $0x20] sm:$0xff] }
  0x1a   :  { %9449 = vst [vmem:[#allocation26_spill] sm:$0xff] %v9448_v2  ;;  %150 = vst [vmem:[#allocation2 + $0x38] sm:$0xff] %v5959_v1  ;;  %5180 = vmatprep.subr.mxu0 %v242_v12  ;;  %187 = vadd.xlane.f32.xlu1 %v5984_v7  ;;  %v228_v35 = vld [vmem:[%s9253_s1 + $0x28] sm:$0xff]  ;;  %v229_v36 = vld [vmem:[%s9253_s1 + $0x30] sm:$0xff] }
  0x1b   :  { %9450 = vst [vmem:[#allocation27_spill] sm:$0xff] %v5984_v7  ;;  %vm5990_vm2 = vmor %vm9451_vm10, %vm100_vm5  ;;  %vm9456_vm5 = vcmp.eq.s32.totalorder %v49_v44, %v5744_v9  ;;  %5181 = vmatpush3.msra.mxu0 %v242_v12  ;;  %v230_v39 = vld [vmem:[%s9253_s1 + $0x38] sm:$0xff]  ;;  %v231_v40 = vld [vmem:[%s9253_s1 + $0x40] sm:$0xff] }
  0x1c   :  { %v9453_v8 = vsel %vm5990_vm2, 4294967295, %v9452_v8  ;;  %149 = vst [vmem:[#allocation2 + $0x30] sm:$0xff] %v5984_v7  ;;  %v6001_v10 = vsel %vm5990_vm2, 1.0, %v9263_v26  ;;  %vm6006_vm10 = vmor %vm9456_vm5, %vm99_vm12  ;;  %vm9462_vm12 = vcmp.eq.s32.totalorder %v5866_v45, %v5744_v9  ;;  %5182 = vmatprep.subr.mxu0 %v241_v17  ;;  %v232_v43 = vld [vmem:[%s9253_s1 + $0x48] sm:$0xff]  ;;  %v233_v44 = vld [vmem:[%s9253_s1 + $0x50] sm:$0xff] }
  0x1d   :  { %9454 = vst [vmem:[#allocation28_spill] sm:$0xff] %v9453_v8  ;;  %9455 = vst [vmem:[#allocation29_spill] sm:$0xff] %v6001_v10  ;;  %v9458_v11 = vsel %vm6006_vm10, 4294967295, %v9457_v11  ;;  %v6018_v13 = vsel %vm6006_vm10, 1.0, %v9263_v26  ;;  %5183 = vmatpush3.msra.mxu0 %v241_v17  ;;  %185 = vadd.xlane.f32.xlu0 %v6001_v10  ;;  %v234_v45 = vld [vmem:[%s9253_s1 + $0x58] sm:$0xff]  ;;  %v235_v46 = vld [vmem:[%s9253_s1 + $0x60] sm:$0xff] }
  0x1e   :  { %9459 = vst [vmem:[#allocation30_spill] sm:$0xff] %v9458_v11  ;;  %148 = vst [vmem:[#allocation2 + $0x28] sm:$0xff] %v6001_v10  ;;  %5184 = vmatprep.subr.mxu0 %v240_v22  ;;  %183 = vadd.xlane.f32.xlu1 %v6018_v13  ;;  %v236_v49 = vld [vmem:[%s9253_s1 + $0x68] sm:$0xff]  ;;  %v237_v50 = vld [vmem:[%s9253_s1 + $0x70] sm:$0xff] }
  0x1f   :  { %9460 = vst [vmem:[#allocation31_spill] sm:$0xff] %v6018_v13  ;;  %vm6024_vm5 = vmor %vm9462_vm12, %vm9461_vm4  ;;  %vm9473_vm12 = vcmp.gt.f32.partialorder %v80_v3, 0.0  ;;  %5185 = vmatpush3.msra.mxu0 %v240_v22  ;;  %v238_v51 = vld [vmem:[%s9253_s1 + $0x78] sm:$0xff]  ;;  %v4985_v32 = vld [vmem:[%s9256_s3] ss:$0 sm:$0xff]  ;;  %s6385_s3 = smov 0  }
  0x20   :  { %v9464_v14 = vsel %vm6024_vm5, 4294967295, %v9463_v14  ;;  %147 = vst [vmem:[#allocation2 + $0x20] sm:$0xff] %v6018_v13  ;;  %v6034_v15 = vsel %vm6024_vm5, 1.0, %v9263_v26  ;;  %vm6040_vm4 = vmor %vm9468_vm8, %vm9467_vm11  ;;  %vm9474_vm8 = vcmp.eq.s32.totalorder %v46_v60, %v5744_v9  ;;  %v9261_v9 = vmov 1.0   ;;  %5186 = vmatprep.subr.mxu0 %v239_v25  ;;  %v6334_v27 = vld [vmem:[%s9255_s4 + $0x78] sm:$0xff] }
  0x21   :  { %9465 = vst [vmem:[#allocation32_spill] sm:$0xff] %v9464_v14  ;;  %9466 = vst [vmem:[#allocation33_spill] sm:$0xff] %v6034_v15  ;;  %v9470_v16 = vsel %vm6040_vm4, 4294967295, %v9469_v16  ;;  %v6052_v18 = vsel %vm6040_vm4, 1.0, %v9263_v26  ;;  %5187 = vmatpush3.msra.mxu0 %v239_v25  ;;  %181 = vadd.xlane.f32.xlu0 %v6034_v15 }
  0x22   :  { %9471 = vst [vmem:[#allocation34_spill] sm:$0xff] %v9470_v16  ;;  %146 = vst [vmem:[#allocation2 + $0x18] sm:$0xff] %v6034_v15  ;;  %5189 = vmatmul.mubr.f32.vlgmr.msra.gmra.mxu0 %v224_v29  ;;  %179 = vadd.xlane.f32.xlu1 %v6052_v18 }
  0x23   :  { %9472 = vst [vmem:[#allocation35_spill] sm:$0xff] %v6052_v18  ;;  %vm6057_vm11 = vmor %vm9474_vm8, %vm9473_vm12  ;;  %5191 = vmatprep.mubr.f32.mxu0 %v225_v30  ;;  %vm9485_vm12 = vnez %v9420_v33  ;;  %vm9486_vm8 = vnez %v9412_v24 }
  0x24   :  { %v9476_v19 = vsel %vm6057_vm11, 4294967295, %v9475_v19  ;;  %145 = vst [vmem:[#allocation2 + $0x10] sm:$0xff] %v6052_v18  ;;  %v6066_v20 = vsel %vm6057_vm11, 1.0, %v9263_v26  ;;  %vm6072_vm13 = vmor %vm63_vm15, %vm95_vm9  ;;  %vm9483_vm9 = vnez %v9424_v38  ;;  %vm9484_vm15 = vnez %v9416_v28 }
  0x25   :  { %9477 = vst [vmem:[#allocation36_spill] sm:$0xff] %v9476_v19  ;;  %9478 = vst [vmem:[#allocation37_spill] sm:$0xff] %v6066_v20  ;;  %v9480_v21 = vsel %vm6072_vm13, 4294967295, %v9479_v21  ;;  %v6083_v23 = vsel %vm6072_vm13, 1.0, %v9263_v26  ;;  %5614 = vmatprep.mubr.msk.f32.mxu1 %vm6072_vm13, %v9261_v9  ;;  %177 = vadd.xlane.f32.xlu0 %v6066_v20  ;;  %v6329_v26 = vld [vmem:[%s9255_s4 + $0x70] sm:$0xff] }
  0x26   :  { %9481 = vst [vmem:[#allocation38_spill] sm:$0xff] %v9480_v21  ;;  %144 = vst [vmem:[#allocation2 + $0x8] sm:$0xff] %v6066_v20  ;;  %5192 = vmatmul.mubr.f32.gmra.mxu0 %v226_v31  ;;  %175 = vadd.xlane.f32.xlu1 %v6083_v23 }
  0x27   :  { %9482 = vst [vmem:[#allocation39_spill] sm:$0xff] %v6083_v23  ;;  %143 = vst [vmem:[#allocation2] sm:$0xff] %v6083_v23  ;;  %5194 = vmatprep.mubr.f32.mxu0 %v227_v34 }
  0x28   :  { %9501 = vst [vmem:[#allocation54_spill] sm:$0xff] %v6329_v26  ;;  %9502 = vst [vmem:[#allocation55_spill] sm:$0xff] %v6334_v27 }
  0x2a   :  { %5195 = vmatmul.mubr.f32.gmra.mxu0 %v228_v35 }
  0x2b   :  { %5197 = vmatprep.mubr.f32.mxu0 %v229_v36 }
  0x2e   :  { %5198 = vmatmul.mubr.f32.gmra.mxu0 %v230_v39 }
  0x2f   :  { %5200 = vmatprep.mubr.f32.mxu0 %v231_v40 }
  0x32   :  { %5201 = vmatmul.mubr.f32.gmra.mxu0 %v232_v43 }
  0x33   :  { %5203 = vmatprep.mubr.f32.mxu0 %v233_v44 }
  0x36   :  { %5204 = vmatmul.mubr.f32.gmra.mxu0 %v234_v45 }
  0x37   :  { %5206 = vmatprep.mubr.f32.mxu0 %v235_v46 }
  0x3a   :  { %5207 = vmatmul.mubr.f32.gmra.mxu0 %v236_v49 }
  0x3b   :  { %5209 = vmatprep.mubr.f32.mxu0 %v237_v50 }
  0x3e   :  { %5210 = vmatmul.mubr.f32.gmra.mxu0 %v238_v51 }
  0x92   :  { %v206_v54 = vpop.xlane.xlu0 %205 }
  0x93   :  { %v202_v55 = vpop.xlane.xlu1 %201  ;;  %5510 = vrsqrt.f32 %v206_v54 }
  0x96   :  { %v204_v59 = vpop.xlane.xlu0 %203 }
  0x97   :  { %v200_v63 = vpop.xlane.xlu1 %199  ;;  %5512 = vrsqrt.f32 %v204_v59 }
  0x98   :  { %5514 = vrsqrt.f32 %v202_v55 }
  0x99   :  { %5516 = vrsqrt.f32 %v200_v63 }
  0x9a   :  { %v198_v4 = vpop.xlane.xlu0 %197 }
  0x9b   :  { %v196_v12 = vpop.xlane.xlu1 %195  ;;  %5518 = vrsqrt.f32 %v198_v4 }
  0x9c   :  { %5520 = vrsqrt.f32 %v196_v12 }
  0x9e   :  { %v194_v25 = vpop.xlane.xlu0 %193 }
  0x9f   :  { %v192_v30 = vpop.xlane.xlu1 %191  ;;  %5522 = vrsqrt.f32 %v194_v25 }
  0xa0   :  { %v6161_v46 = vpop.eup %5510  ;;  %5524 = vrsqrt.f32 %v192_v30 }
  0xa2   :  { %v190_v35 = vpop.xlane.xlu0 %189 }
  0xa3   :  { %v188_v39 = vpop.xlane.xlu1 %187  ;;  %5526 = vrsqrt.f32 %v190_v35 }
  0xa4   :  { %v6163_v49 = vpop.eup %5512  ;;  %5528 = vrsqrt.f32 %v188_v39 }
  0xa5   :  { %v6166_v55 = vpop.eup %5514 }
  0xa6   :  { %v186_v44 = vpop.xlane.xlu0 %185  ;;  %v6169_v4 = vpop.eup %5516 }
  0xa7   :  { %v184_v50 = vpop.xlane.xlu1 %183  ;;  %5530 = vrsqrt.f32 %v186_v44 }
  0xa8   :  { %v6172_v30 = vpop.eup %5518  ;;  %5532 = vrsqrt.f32 %v184_v50 }
  0xa9   :  { %v6175_v39 = vpop.eup %5520 }
  0xaa   :  { %v182_v12 = vpop.xlane.xlu0 %181 }
  0xab   :  { %v180_v35 = vpop.xlane.xlu1 %179  ;;  %5534 = vrsqrt.f32 %v182_v12 }
  0xac   :  { %5536 = vrsqrt.f32 %v180_v35 }
  0xae   :  { %v178_v44 = vpop.xlane.xlu0 %177 }
  0xaf   :  { %v176_v50 = vpop.xlane.xlu1 %175  ;;  %5538 = vrsqrt.f32 %v178_v44 }
  0xb0   :  { %5540 = vrsqrt.f32 %v176_v50 }
  0xe2   :  { %v6145_v58 = vpop.f32.mrf.mxu0 }
  0xe4   :  { %v6147_v60 = vpop.f32.mrf.mxu0 }
  0xe6   :  { %v6149_v0 = vpop.f32.mrf.mxu0 }
  0xe8   :  { %v6151_v3 = vpop.f32.mrf.mxu0 }
  0xea   :  { %v6153_v5 = vpop.f32.mrf.mxu0 }
  0xec   :  { %v6155_v17 = vpop.f32.mrf.mxu0 }
  0xee   :  { %v6157_v22 = vpop.f32.mrf.mxu0 }
  0xf0   :  { %v6159_v29 = vpop.f32.mrf.mxu0 }
  0xf2   :  { %v5202_v31 = vpop.f32.mrf.mxu0 }
  0xf4   :  { %v361_v34 = vpop.f32.mrf.mxu0 }
  0xf6   :  { %v5205_v36 = vpop.f32.mrf.mxu0 }
  0xf8   :  { %v371_v40 = vpop.f32.mrf.mxu0 }
  0xfa   :  { %v5208_v43 = vpop.f32.mrf.mxu0 }
  0xfb   :  { %v413_v25 = vmul.f32 %v6166_v55, %v5208_v43  ;;  %v410_v43 = vmul.f32 %v6175_v39, %v371_v40 }
  0xfc   :  { %v381_v45 = vpop.f32.mrf.mxu0 }
  0xfe   :  { %v5211_v51 = vpop.f32.mrf.mxu0 }
  0xff   :  { %v415_v54 = vmul.f32 %v6161_v46, %v5211_v51  ;;  %v412_v51 = vmul.f32 %v6169_v4, %v381_v45 }
 0x100   :  { %v391_v59 = vpop.f32.mrf.mxu0 }
 0x101   :  { %v414_v63 = vmul.f32 %v6163_v49, %v391_v59  ;;  %5212 = vmatprep.subr.mxu1 %v415_v54  ;;  %v411_v59 = vmul.f32 %v6172_v30, %v5205_v36 }
 0x102   :  { %5213 = vmatpush3.msra.mxu1 %v415_v54  ;;  %v6178_v54 = vpop.eup %5522 }
 0x103   :  { %5214 = vmatprep.subr.mxu1 %v414_v63  ;;  %v409_v45 = vmul.f32 %v6178_v54, %v5202_v31 }
 0x104   :  { %5215 = vmatpush3.msra.mxu1 %v414_v63  ;;  %v6181_v63 = vpop.eup %5524 }
 0x105   :  { %5216 = vmatprep.subr.mxu1 %v413_v25  ;;  %v6184_v12 = vpop.eup %5526  ;;  %v408_v36 = vmul.f32 %v6181_v63, %v361_v34 }
 0x106   :  { %5217 = vmatpush3.msra.mxu1 %v413_v25  ;;  %v6187_v25 = vpop.eup %5528  ;;  %v407_v40 = vmul.f32 %v6184_v12, %v6157_v22 }
 0x107   :  { %5218 = vmatprep.subr.mxu1 %v412_v51  ;;  %v6191_v35 = vpop.eup %5530  ;;  %v406_v31 = vmul.f32 %v6187_v25, %v6159_v29 }
 0x108   :  { %5219 = vmatpush3.msra.mxu1 %v412_v51  ;;  %v6195_v51 = vpop.eup %5532  ;;  %v405_v34 = vmul.f32 %v6191_v35, %v6153_v5 }
 0x109   :  { %5220 = vmatprep.subr.mxu1 %v411_v59  ;;  %v404_v22 = vmul.f32 %v6195_v51, %v6155_v17 }
 0x10a   :  { %5221 = vmatpush3.msra.mxu1 %v411_v59  ;;  %v6199_v59 = vpop.eup %5534 }
 0x10b   :  { %5222 = vmatprep.subr.mxu1 %v410_v43  ;;  %v6203_v44 = vpop.eup %5536  ;;  %v403_v29 = vmul.f32 %v6199_v59, %v6149_v0  ;;  %v6269_v0 = vld [vmem:[%s9255_s4 + $0x10] sm:$0xff] }
 0x10c   :  { %5223 = vmatpush3.msra.mxu1 %v410_v43  ;;  %v5539_v43 = vpop.eup %5538  ;;  %v402_v5 = vmul.f32 %v6203_v44, %v6151_v3  ;;  %9489 = vst [vmem:[#allocation42_spill] sm:$0xff] %v6269_v0  ;;  %v6274_v3 = vld [vmem:[%s9255_s4 + $0x18] sm:$0xff] }
 0x10d   :  { %5224 = vmatprep.subr.mxu1 %v409_v45  ;;  %v5541_v50 = vpop.eup %5540  ;;  %9490 = vst [vmem:[#allocation43_spill] sm:$0xff] %v6274_v3 }
 0x10e   :  { %5225 = vmatpush3.msra.mxu1 %v409_v45  ;;  %v401_v45 = vmul.f32 %v5539_v43, %v6145_v58  ;;  %v400_v17 = vmul.f32 %v5541_v50, %v6147_v60  ;;  %v6259_v58 = vld [vmem:[%s9255_s4] sm:$0xff]  ;;  %v6264_v60 = vld [vmem:[%s9255_s4 + $0x8] sm:$0xff] }
 0x10f   :  { %5226 = vmatprep.subr.mxu1 %v408_v36  ;;  %9487 = vst [vmem:[#allocation40_spill] sm:$0xff] %v6259_v58  ;;  %9488 = vst [vmem:[#allocation41_spill] sm:$0xff] %v6264_v60 }
 0x110   :  { %5227 = vmatpush3.msra.mxu1 %v408_v36  ;;  %v6279_v36 = vld [vmem:[%s9255_s4 + $0x20] sm:$0xff] }
 0x111   :  { %5228 = vmatprep.subr.mxu1 %v407_v40  ;;  %9491 = vst [vmem:[#allocation44_spill] sm:$0xff] %v6279_v36 }
 0x112   :  { %5229 = vmatpush3.msra.mxu1 %v407_v40  ;;  %v6284_v40 = vld [vmem:[%s9255_s4 + $0x28] sm:$0xff] }
 0x113   :  { %5230 = vmatprep.subr.mxu1 %v406_v31  ;;  %9492 = vst [vmem:[#allocation45_spill] sm:$0xff] %v6284_v40 }
 0x114   :  { %5231 = vmatpush3.msra.mxu1 %v406_v31  ;;  %v6289_v31 = vld [vmem:[%s9255_s4 + $0x30] sm:$0xff] }
 0x115   :  { %5232 = vmatprep.subr.mxu1 %v405_v34  ;;  %9493 = vst [vmem:[#allocation46_spill] sm:$0xff] %v6289_v31 }
 0x116   :  { %5233 = vmatpush3.msra.mxu1 %v405_v34  ;;  %v6294_v34 = vld [vmem:[%s9255_s4 + $0x38] sm:$0xff] }
 0x117   :  { %5234 = vmatprep.subr.mxu1 %v404_v22  ;;  %9494 = vst [vmem:[#allocation47_spill] sm:$0xff] %v6294_v34 }
 0x118   :  { %5235 = vmatpush3.msra.mxu1 %v404_v22  ;;  %v6299_v22 = vld [vmem:[%s9255_s4 + $0x40] sm:$0xff] }
 0x119   :  { %5236 = vmatprep.subr.mxu1 %v403_v29  ;;  %9495 = vst [vmem:[#allocation48_spill] sm:$0xff] %v6299_v22 }
 0x11a   :  { %5237 = vmatpush3.msra.mxu1 %v403_v29  ;;  %v6304_v29 = vld [vmem:[%s9255_s4 + $0x48] sm:$0xff] }
 0x11b   :  { %5238 = vmatprep.subr.mxu1 %v402_v5  ;;  %9496 = vst [vmem:[#allocation49_spill] sm:$0xff] %v6304_v29 }
 0x11c   :  { %5239 = vmatpush3.msra.mxu1 %v402_v5  ;;  %v6309_v5 = vld [vmem:[%s9255_s4 + $0x50] sm:$0xff] }
 0x11d   :  { %5240 = vmatprep.subr.mxu1 %v401_v45  ;;  %9497 = vst [vmem:[#allocation50_spill] sm:$0xff] %v6309_v5 }
 0x11e   :  { %5241 = vmatpush3.msra.mxu1 %v401_v45  ;;  %v6314_v45 = vld [vmem:[%s9255_s4 + $0x58] sm:$0xff] }
 0x11f   :  { %5242 = vmatprep.subr.mxu1 %v400_v17  ;;  %9498 = vst [vmem:[#allocation51_spill] sm:$0xff] %v6314_v45 }
 0x120   :  { %5243 = vmatpush3.msra.mxu1 %v400_v17  ;;  %v6319_v17 = vld [vmem:[%s9255_s4 + $0x60] sm:$0xff] }
 0x121   :  { %5615 = vmatmul.mubr.msk.f32.vlgmr.msra.gmra.mxu1 %vm6057_vm11, %v9261_v9  ;;  %9499 = vst [vmem:[#allocation52_spill] sm:$0xff] %v6319_v17 }
 0x122   :  { %5616 = vmatprep.mubr.msk.f32.mxu1 %vm6040_vm4, %v9261_v9 }
 0x125   :  { %5617 = vmatmul.mubr.msk.f32.gmra.mxu1 %vm6024_vm5, %v9261_v9 }
 0x126   :  { %5618 = vmatprep.mubr.msk.f32.mxu1 %vm6006_vm10, %v9261_v9 }
 0x129   :  { %5619 = vmatmul.mubr.msk.f32.gmra.mxu1 %vm5990_vm2, %v9261_v9 }
 0x12a   :  { %5620 = vmatprep.mubr.msk.f32.mxu1 %vm5964_vm6, %v9261_v9 }
 0x12d   :  { %5621 = vmatmul.mubr.msk.f32.gmra.mxu1 %vm5944_vm0, %v9261_v9 }
 0x12e   :  { %5622 = vmatprep.mubr.msk.f32.mxu1 %vm5925_vm14, %v9261_v9 }
 0x131   :  { %5623 = vmatmul.mubr.msk.f32.gmra.mxu1 %vm5902_vm7, %v9261_v9 }
 0x132   :  { %5624 = vmatprep.mubr.msk.f32.mxu1 %vm5879_vm3, %v9261_v9 }
 0x135   :  { %5625 = vmatmul.mubr.msk.f32.gmra.mxu1 %vm5857_vm1, %v9261_v9 }
 0x136   :  { %5626 = vmatprep.mubr.msk.f32.mxu1 %vm9483_vm9, %v9261_v9 }
 0x139   :  { %5627 = vmatmul.mubr.msk.f32.gmra.mxu1 %vm9484_vm15, %v9261_v9 }
 0x13a   :  { %5628 = vmatprep.mubr.msk.f32.mxu1 %vm9485_vm12, %v9261_v9 }
 0x13d   :  { %5629 = vmatmul.mubr.msk.f32.gmra.mxu1 %vm9486_vm8, %v9261_v9  ;;  %v6324_v9 = vld [vmem:[%s9255_s4 + $0x68] sm:$0xff] }
 0x13e   :  { %9500 = vst [vmem:[#allocation53_spill] sm:$0xff] %v6324_v9 }
 0x1e1   :  { %v5246_v37 = vpop.f32.mrf.mxu1 }
 0x1e2   :  { %v562_v41 = vmul.f32 %v5539_v43, %v5246_v37 }
 0x1e3   :  { %v482_v47 = vpop.f32.mrf.mxu1 }
 0x1e4   :  { %v585_v52 = vadd.f32 %v4985_v32, %v562_v41  ;;  %v561_v56 = vmul.f32 %v5541_v50, %v482_v47 }
 0x1e5   :  { %v5249_v61 = vpop.f32.mrf.mxu1 }
 0x1e6   :  { %v6339_v1 = vmax.f32 %v585_v52, 0.0  ;;  %v584_v7 = vadd.f32 %v4985_v32, %v561_v56  ;;  %v564_v10 = vmul.f32 %v6199_v59, %v5249_v61 }
 0x1e7   :  { %v492_v13 = vpop.f32.mrf.mxu1 }
 0x1e8   :  { %9503 = vst [vmem:[#allocation56_spill] sm:$0xff] %v6339_v1  ;;  %v6342_v15 = vmax.f32 %v584_v7, 0.0  ;;  %v587_v18 = vadd.f32 %v4985_v32, %v564_v10  ;;  %v563_v23 = vmul.f32 %v6203_v44, %v492_v13 }
 0x1e9   :  { %v5252_v20 = vpop.f32.mrf.mxu1 }
 0x1ea   :  { %9504 = vst [vmem:[#allocation57_spill] sm:$0xff] %v6342_v15  ;;  %v6345_v21 = vmax.f32 %v587_v18, 0.0  ;;  %v586_v19 = vadd.f32 %v4985_v32, %v563_v23  ;;  %v566_v37 = vmul.f32 %v6191_v35, %v5252_v20 }
 0x1eb   :  { %v502_v41 = vpop.f32.mrf.mxu1 }
 0x1ec   :  { %9505 = vst [vmem:[#allocation58_spill] sm:$0xff] %v6345_v21  ;;  %v6348_v47 = vmax.f32 %v586_v19, 0.0  ;;  %v589_v52 = vadd.f32 %v4985_v32, %v566_v37  ;;  %v565_v56 = vmul.f32 %v6195_v51, %v502_v41 }
 0x1ed   :  { %v5255_v43 = vpop.f32.mrf.mxu1 }
 0x1ee   :  { %9506 = vst [vmem:[#allocation59_spill] sm:$0xff] %v6348_v47  ;;  %v6351_v61 = vmax.f32 %v589_v52, 0.0  ;;  %v588_v7 = vadd.f32 %v4985_v32, %v565_v56  ;;  %v568_v10 = vmul.f32 %v6184_v12, %v5255_v43 }
 0x1ef   :  { %v512_v59 = vpop.f32.mrf.mxu1 }
 0x1f0   :  { %9507 = vst [vmem:[#allocation60_spill] sm:$0xff] %v6351_v61  ;;  %v6354_v13 = vmax.f32 %v588_v7, 0.0  ;;  %v591_v18 = vadd.f32 %v4985_v32, %v568_v10  ;;  %v567_v23 = vmul.f32 %v6187_v25, %v512_v59 }
 0x1f1   :  { %v5258_v44 = vpop.f32.mrf.mxu1 }
 0x1f2   :  { %9508 = vst [vmem:[#allocation61_spill] sm:$0xff] %v6354_v13  ;;  %v6357_v20 = vmax.f32 %v591_v18, 0.0  ;;  %v590_v19 = vadd.f32 %v4985_v32, %v567_v23  ;;  %v570_v35 = vmul.f32 %v6178_v54, %v5258_v44 }
 0x1f3   :  { %v522_v50 = vpop.f32.mrf.mxu1 }
 0x1f4   :  { %9509 = vst [vmem:[#allocation62_spill] sm:$0xff] %v6357_v20  ;;  %v6360_v51 = vmax.f32 %v590_v19, 0.0  ;;  %v593_v37 = vadd.f32 %v4985_v32, %v570_v35  ;;  %v569_v41 = vmul.f32 %v6181_v63, %v522_v50 }
 0x1f5   :  { %v5261_v52 = vpop.f32.mrf.mxu1 }
 0x1f6   :  { %9510 = vst [vmem:[#allocation63_spill] sm:$0xff] %v6360_v51  ;;  %v6363_v12 = vmax.f32 %v593_v37, 0.0  ;;  %v592_v56 = vadd.f32 %v4985_v32, %v569_v41  ;;  %v572_v43 = vmul.f32 %v6172_v30, %v5261_v52 }
 0x1f7   :  { %v532_v7 = vpop.f32.mrf.mxu1 }
 0x1f8   :  { %9511 = vst [vmem:[#allocation64_spill] sm:$0xff] %v6363_v12  ;;  %v6366_v25 = vmax.f32 %v592_v56, 0.0  ;;  %v595_v10 = vadd.f32 %v4985_v32, %v572_v43  ;;  %v571_v59 = vmul.f32 %v6175_v39, %v532_v7 }
 0x1f9   :  { %v5264_v18 = vpop.f32.mrf.mxu1 }
 0x1fa   :  { %9512 = vst [vmem:[#allocation65_spill] sm:$0xff] %v6366_v25  ;;  %v6369_v54 = vmax.f32 %v595_v10, 0.0  ;;  %v594_v23 = vadd.f32 %v4985_v32, %v571_v59  ;;  %v574_v44 = vmul.f32 %v6166_v55, %v5264_v18 }
 0x1fb   :  { %v542_v19 = vpop.f32.mrf.mxu1 }
 0x1fc   :  { %9513 = vst [vmem:[#allocation66_spill] sm:$0xff] %v6369_v54  ;;  %v6372_v63 = vmax.f32 %v594_v23, 0.0  ;;  %v597_v35 = vadd.f32 %v4985_v32, %v574_v44  ;;  %v573_v50 = vmul.f32 %v6169_v4, %v542_v19 }
 0x1fd   :  { %v5267_v37 = vpop.f32.mrf.mxu1 }
 0x1fe   :  { %9514 = vst [vmem:[#allocation67_spill] sm:$0xff] %v6372_v63  ;;  %v6375_v30 = vmax.f32 %v597_v35, 0.0  ;;  %v596_v41 = vadd.f32 %v4985_v32, %v573_v50  ;;  %v576_v52 = vmul.f32 %v6161_v46, %v5267_v37 }
 0x1ff   :  { %v552_v56 = vpop.f32.mrf.mxu1 }
 0x200   :  { %9515 = vst [vmem:[#allocation68_spill] sm:$0xff] %v6375_v30  ;;  %v6378_v39 = vmax.f32 %v596_v41, 0.0  ;;  %v599_v43 = vadd.f32 %v4985_v32, %v576_v52  ;;  %v575_v7 = vmul.f32 %v6163_v49, %v552_v56 }
 0x202   :  { %9516 = vst [vmem:[#allocation69_spill] sm:$0xff] %v6378_v39  ;;  %v6381_v10 = vmax.f32 %v599_v43, 0.0  ;;  %v598_v55 = vadd.f32 %v4985_v32, %v575_v7 }
 0x204   :  { %9517 = vst [vmem:[#allocation70_spill] sm:$0xff] %v6381_v10  ;;  %v6383_v59 = vmax.f32 %v598_v55, 0.0 }
 0x206   :  { %9518 = vst [vmem:[#allocation71_spill] sm:$0xff] %v6383_v59 }
 0x207 LB: > { %v9519_v51 = vld [vmem:[#allocation63_spill] sm:$0xff]  ;;  %v9520_v61 = vld [vmem:[#allocation60_spill] sm:$0xff]  ;;  %v9521_v13 = vld [vmem:[#allocation61_spill] sm:$0xff]  ;;  %s4986_s4 = sshll.u32 %s5652_s3, 5  ;;  %vm9366_vm9 = vcmask 1041409   ;;  %vm4006_vm15 = vcmask 1042434   ;;  %s5652_s3 = sphi %s6385_s3, %s637_s3  }
 0x208   : > { %v9522_v21 = vld [vmem:[#allocation58_spill] sm:$0xff]  ;;  %v9523_v47 = vld [vmem:[#allocation59_spill] sm:$0xff]  ;;  %v9524_v1 = vld [vmem:[#allocation56_spill] sm:$0xff]  ;;  %s6404_s22 = scalar_lea.vmem [#allocation2], %s4986_s4  ;;  %vm4008_vm12 = vcmask 1043459   ;;  %vm4010_vm8 = vcmask 1044484  }
 0x209   : > { %v9525_v15 = vld [vmem:[#allocation57_spill] sm:$0xff]  ;;  %v9526_v20 = vld [vmem:[#allocation62_spill] sm:$0xff]  ;;  %v9528_v6 = vld [vmem:[#allocation7_spill] sm:$0xff]  ;;  %vm4012_vm13 = vcmask 1045509   ;;  %vm4014_vm11 = vcmask 1046534   ;;  %s7828_s23 = scalar_lea.vmem [#allocation3], %s4986_s4 }
 0x20a   : > { %v9527_v25 = vld [vmem:[#allocation65_spill] sm:$0xff]  ;;  %v9530_v58 = vld [vmem:[#allocation40_spill] sm:$0xff]  ;;  %v9531_v45 = vld [vmem:[#allocation51_spill] sm:$0xff]  ;;  %v6393_v46 = vsub.s32 0, %v9528_v6  ;;  %v6453_v4 = vsub.s32 1, %v9528_v6  ;;  %v6473_v23 = vsub.s32 2, %v9528_v6 }
 0x20b   : > { %v9529_v60 = vld [vmem:[#allocation41_spill] sm:$0xff]  ;;  %v9533_v36 = vld [vmem:[#allocation44_spill] sm:$0xff]  ;;  %v9534_v34 = vld [vmem:[#allocation47_spill] sm:$0xff]  ;;  %v6478_v19 = vsub.s32 3, %v9528_v6  ;;  %v6491_v56 = vsub.s32 4, %v9528_v6  ;;  %v6565_v28 = vsub.s32 6, %v9528_v6 }
 0x20c   : > { %v9532_v40 = vld [vmem:[#allocation45_spill] sm:$0xff]  ;;  %v9535_v31 = vld [vmem:[#allocation46_spill] sm:$0xff]  ;;  %v9537_v27 = vld [vmem:[#allocation55_spill] sm:$0xff]  ;;  %9545 = vst [vmem:[#allocation72_spill] sm:$0xff] %v6393_v46  ;;  %s637_s3 = sadd.s32 1, %s5652_s3  }
 0x20d   : > { %v9536_v29 = vld [vmem:[#allocation49_spill] sm:$0xff]  ;;  %v9538_v26 = vld [vmem:[#allocation54_spill] sm:$0xff]  ;;  %v9539_v22 = vld [vmem:[#allocation48_spill] sm:$0xff]  ;;  %5268 = vmatprep.subr.mxu0 %v9537_v27  ;;  %5467 = vmatprep.subr.mxu1 %v9537_v27  ;;  %9546 = vst [vmem:[#allocation73_spill] sm:$0xff] %v6453_v4  ;;  %p634_p0 = scmp.ge.s32.totalorder %s637_s3, 4  }
 0x20e   : > { %v9540_v17 = vld [vmem:[#allocation52_spill] sm:$0xff]  ;;  %v9541_v9 = vld [vmem:[#allocation53_spill] sm:$0xff]  ;;  %v9542_v5 = vld [vmem:[#allocation50_spill] sm:$0xff]  ;;  %5269 = vmatpush3.msra.mxu0 %v9537_v27  ;;  %5483 = vmatpush3.msra.mxu1 %v9537_v27  ;;  %9547 = vst [vmem:[#allocation74_spill] sm:$0xff] %v6473_v23 }
 0x20f   : > { %v9543_v3 = vld [vmem:[#allocation43_spill] sm:$0xff]  ;;  %v9544_v0 = vld [vmem:[#allocation42_spill] sm:$0xff]  ;;  %5270 = vmatprep.subr.mxu0 %v9538_v26  ;;  %5468 = vmatprep.subr.mxu1 %v9538_v26  ;;  %9548 = vst [vmem:[#allocation75_spill] sm:$0xff] %v6478_v19  ;;  %9549 = vst [vmem:[#allocation76_spill] sm:$0xff] %v6491_v56 }
 0x210   : > { %5271 = vmatpush3.msra.mxu0 %v9538_v26  ;;  %5484 = vmatpush3.msra.mxu1 %v9538_v26  ;;  %v6407_v32 = vld [vmem:[%s6404_s22] sm:$0xff]  ;;  %9566 = vst [vmem:[#allocation93_spill] sm:$0xff] %v6565_v28 }
 0x211   : > { %5272 = vmatprep.subr.mxu0 %v9541_v9  ;;  %5469 = vmatprep.subr.mxu1 %v9541_v9  ;;  %v647_v49 = vrot.slane %v6407_v32, %v6393_v46  ;;  %v714_v18 = vrot.slane %v6407_v32, %v6453_v4  ;;  %v781_v44 = vrot.slane %v6407_v32, %v6473_v23 }
 0x212   : > { %5273 = vmatpush3.msra.mxu0 %v9541_v9  ;;  %5485 = vmatpush3.msra.mxu1 %v9541_v9  ;;  %v848_v35 = vrot.slane %v6407_v32, %v6478_v19  ;;  %v915_v55 = vrot.slane %v6407_v32, %v6491_v56 }
 0x213   : > { %5274 = vmatprep.subr.mxu0 %v9540_v17  ;;  %657 = vbcast.lane.b32.xlu1 %v647_v49, 272 }
 0x214   : > { %649 = vbcast.lane.b32.xlu0 %v647_v49, 256  ;;  %5275 = vmatpush3.msra.mxu0 %v9540_v17 }
 0x215   : > { %5470 = vmatprep.subr.mxu1 %v9540_v17  ;;  %5276 = vmatprep.subr.mxu0 %v9531_v45 }
 0x216   : > { %5486 = vmatpush3.msra.mxu1 %v9540_v17  ;;  %5277 = vmatpush3.msra.mxu0 %v9531_v45 }
 0x217   : > { %5471 = vmatprep.subr.mxu1 %v9531_v45  ;;  %661 = vbcast.lane.b32.xlu1 %v647_v49, 280 }
 0x218   : > { %653 = vbcast.lane.b32.xlu0 %v647_v49, 264  ;;  %5278 = vmatprep.subr.mxu0 %v9542_v5 }
 0x219   : > { %5487 = vmatpush3.msra.mxu1 %v9531_v45  ;;  %5279 = vmatpush3.msra.mxu0 %v9542_v5 }
 0x21a   : > { %5472 = vmatprep.subr.mxu1 %v9542_v5  ;;  %5280 = vmatprep.subr.mxu0 %v9536_v29 }
 0x21b   : > { %5488 = vmatpush3.msra.mxu1 %v9542_v5  ;;  %669 = vbcast.lane.b32.xlu1 %v647_v49, 296 }
 0x21c   : > { %665 = vbcast.lane.b32.xlu0 %v647_v49, 288  ;;  %5281 = vmatpush3.msra.mxu0 %v9536_v29 }
 0x21d   : > { %5473 = vmatprep.subr.mxu1 %v9536_v29  ;;  %5282 = vmatprep.subr.mxu0 %v9539_v22 }
 0x21e   : > { %5489 = vmatpush3.msra.mxu1 %v9536_v29  ;;  %5283 = vmatpush3.msra.mxu0 %v9539_v22 }
 0x21f   : > { %5474 = vmatprep.subr.mxu1 %v9539_v22  ;;  %677 = vbcast.lane.b32.xlu1 %v647_v49, 312 }
 0x220   : > { %673 = vbcast.lane.b32.xlu0 %v647_v49, 304  ;;  %5284 = vmatprep.subr.mxu0 %v9534_v34 }
 0x221   : > { %5490 = vmatpush3.msra.mxu1 %v9539_v22  ;;  %5285 = vmatpush3.msra.mxu0 %v9534_v34 }
 0x222   : > { %5475 = vmatprep.subr.mxu1 %v9534_v34  ;;  %5286 = vmatprep.subr.mxu0 %v9535_v31 }
 0x223   : > { %5491 = vmatpush3.msra.mxu1 %v9534_v34  ;;  %685 = vbcast.lane.b32.xlu1 %v647_v49, 328  ;;  %v6528_v34 = vsub.s32 5, %v9528_v6 }
 0x224   : > { %681 = vbcast.lane.b32.xlu0 %v647_v49, 320  ;;  %5287 = vmatpush3.msra.mxu0 %v9535_v31 }
 0x225   : > { %5476 = vmatprep.subr.mxu1 %v9535_v31  ;;  %5288 = vmatprep.subr.mxu0 %v9532_v40  ;;  %9557 = vst [vmem:[#allocation84_spill] sm:$0xff] %v6528_v34  ;;  %v982_v45 = vrot.slane %v6407_v32, %v6528_v34  ;;  %v1049_v34 = vrot.slane %v6407_v32, %v6565_v28 }
 0x226   : > { %5492 = vmatpush3.msra.mxu1 %v9535_v31  ;;  %5289 = vmatpush3.msra.mxu0 %v9532_v40 }
 0x227   : > { %5477 = vmatprep.subr.mxu1 %v9532_v40  ;;  %693 = vbcast.lane.b32.xlu1 %v647_v49, 344 }
 0x228   : > { %689 = vbcast.lane.b32.xlu0 %v647_v49, 336  ;;  %5290 = vmatprep.subr.mxu0 %v9533_v36 }
 0x229   : > { %5493 = vmatpush3.msra.mxu1 %v9532_v40  ;;  %5291 = vmatpush3.msra.mxu0 %v9533_v36 }
 0x22a   : > { %5478 = vmatprep.subr.mxu1 %v9533_v36  ;;  %5292 = vmatprep.subr.mxu0 %v9543_v3 }
 0x22b   : > { %5494 = vmatpush3.msra.mxu1 %v9533_v36  ;;  %701 = vbcast.lane.b32.xlu1 %v647_v49, 360 }
 0x22c   : > { %697 = vbcast.lane.b32.xlu0 %v647_v49, 352  ;;  %5293 = vmatpush3.msra.mxu0 %v9543_v3 }
 0x22d   : > { %5479 = vmatprep.subr.mxu1 %v9543_v3  ;;  %5294 = vmatprep.subr.mxu0 %v9544_v0 }
 0x22e   : > { %5495 = vmatpush3.msra.mxu1 %v9543_v3  ;;  %5295 = vmatpush3.msra.mxu0 %v9544_v0 }
 0x22f   : > { %5480 = vmatprep.subr.mxu1 %v9544_v0  ;;  %709 = vbcast.lane.b32.xlu1 %v647_v49, 376 }
 0x230   : > { %705 = vbcast.lane.b32.xlu0 %v647_v49, 368  ;;  %5296 = vmatprep.subr.mxu0 %v9529_v60 }
 0x231   : > { %5496 = vmatpush3.msra.mxu1 %v9544_v0  ;;  %5297 = vmatpush3.msra.mxu0 %v9529_v60 }
 0x232   : > { %5481 = vmatprep.subr.mxu1 %v9529_v60  ;;  %5298 = vmatprep.subr.mxu0 %v9530_v58 }
 0x233   : > { %5497 = vmatpush3.msra.mxu1 %v9529_v60  ;;  %720 = vbcast.lane.b32.xlu1 %v714_v18, 264 }
 0x234   : > { %716 = vbcast.lane.b32.xlu0 %v714_v18, 256  ;;  %5299 = vmatpush3.msra.mxu0 %v9530_v58 }
 0x235   : > { %5482 = vmatprep.subr.mxu1 %v9530_v58 }
 0x236   : > { %5498 = vmatpush3.msra.mxu1 %v9530_v58 }
 0x237   : > { %728 = vbcast.lane.b32.xlu1 %v714_v18, 280 }
 0x238   : > { %724 = vbcast.lane.b32.xlu0 %v714_v18, 272 }
 0x23b   : > { %736 = vbcast.lane.b32.xlu1 %v714_v18, 296 }
 0x23c   : > { %732 = vbcast.lane.b32.xlu0 %v714_v18, 288 }
 0x23f   : > { %744 = vbcast.lane.b32.xlu1 %v714_v18, 312 }
 0x240   : > { %740 = vbcast.lane.b32.xlu0 %v714_v18, 304 }
 0x243   : > { %752 = vbcast.lane.b32.xlu1 %v714_v18, 328 }
 0x244   : > { %748 = vbcast.lane.b32.xlu0 %v714_v18, 320 }
 0x247   : > { %760 = vbcast.lane.b32.xlu1 %v714_v18, 344 }
 0x248   : > { %756 = vbcast.lane.b32.xlu0 %v714_v18, 336 }
 0x24b   : > { %768 = vbcast.lane.b32.xlu1 %v714_v18, 360 }
 0x24c   : > { %764 = vbcast.lane.b32.xlu0 %v714_v18, 352 }
 0x24f   : > { %776 = vbcast.lane.b32.xlu1 %v714_v18, 376 }
 0x250   : > { %772 = vbcast.lane.b32.xlu0 %v714_v18, 368 }
 0x253   : > { %787 = vbcast.lane.b32.xlu1 %v781_v44, 264 }
 0x254   : > { %783 = vbcast.lane.b32.xlu0 %v781_v44, 256 }
 0x257   : > { %795 = vbcast.lane.b32.xlu1 %v781_v44, 280 }
 0x258   : > { %791 = vbcast.lane.b32.xlu0 %v781_v44, 272 }
 0x25b   : > { %803 = vbcast.lane.b32.xlu1 %v781_v44, 296 }
 0x25c   : > { %799 = vbcast.lane.b32.xlu0 %v781_v44, 288 }
 0x25f   : > { %811 = vbcast.lane.b32.xlu1 %v781_v44, 312 }
 0x260   : > { %807 = vbcast.lane.b32.xlu0 %v781_v44, 304 }
 0x263   : > { %819 = vbcast.lane.b32.xlu1 %v781_v44, 328 }
 0x264   : > { %815 = vbcast.lane.b32.xlu0 %v781_v44, 320 }
 0x267   : > { %827 = vbcast.lane.b32.xlu1 %v781_v44, 344 }
 0x268   : > { %823 = vbcast.lane.b32.xlu0 %v781_v44, 336 }
 0x26b   : > { %835 = vbcast.lane.b32.xlu1 %v781_v44, 360 }
 0x26c   : > { %831 = vbcast.lane.b32.xlu0 %v781_v44, 352 }
 0x26f   : > { %843 = vbcast.lane.b32.xlu1 %v781_v44, 376 }
 0x270   : > { %839 = vbcast.lane.b32.xlu0 %v781_v44, 368 }
 0x273   : > { %854 = vbcast.lane.b32.xlu1 %v848_v35, 264 }
 0x274   : > { %850 = vbcast.lane.b32.xlu0 %v848_v35, 256 }
 0x277   : > { %862 = vbcast.lane.b32.xlu1 %v848_v35, 280 }
 0x278   : > { %858 = vbcast.lane.b32.xlu0 %v848_v35, 272 }
 0x27b   : > { %870 = vbcast.lane.b32.xlu1 %v848_v35, 296 }
 0x27c   : > { %866 = vbcast.lane.b32.xlu0 %v848_v35, 288 }
 0x27f   : > { %878 = vbcast.lane.b32.xlu1 %v848_v35, 312 }
 0x280   : > { %874 = vbcast.lane.b32.xlu0 %v848_v35, 304 }
 0x283   : > { %886 = vbcast.lane.b32.xlu1 %v848_v35, 328 }
 0x284   : > { %882 = vbcast.lane.b32.xlu0 %v848_v35, 320 }
 0x285   : > { %v6482_v50 = vpop.permute.xlu1 %657 }
 0x286   : > { %v6484_v37 = vpop.permute.xlu0 %649 }
 0x287   : > { %894 = vbcast.lane.b32.xlu1 %v848_v35, 344 }
 0x288   : > { %890 = vbcast.lane.b32.xlu0 %v848_v35, 336 }
 0x289   : > { %v6486_v41 = vpop.permute.xlu1 %661 }
 0x28a   : > { %v6488_v52 = vpop.permute.xlu0 %653 }
 0x28b   : > { %902 = vbcast.lane.b32.xlu1 %v848_v35, 360 }
 0x28c   : > { %898 = vbcast.lane.b32.xlu0 %v848_v35, 352 }
 0x28d   : > { %v6493_v43 = vpop.permute.xlu1 %669 }
 0x28e   : > { %v6495_v7 = vpop.permute.xlu0 %665 }
 0x28f   : > { %910 = vbcast.lane.b32.xlu1 %v848_v35, 376 }
 0x290   : > { %906 = vbcast.lane.b32.xlu0 %v848_v35, 368 }
 0x291   : > { %v6499_v49 = vpop.permute.xlu1 %677 }
 0x292   : > { %v6501_v18 = vpop.permute.xlu0 %673 }
 0x293   : > { %921 = vbcast.lane.b32.xlu1 %v915_v55, 264 }
 0x294   : > { %917 = vbcast.lane.b32.xlu0 %v915_v55, 256 }
 0x295   : > { %v6503_v44 = vpop.permute.xlu1 %685 }
 0x296   : > { %9550 = vst [vmem:[#allocation77_spill] sm:$0xff] %v6503_v44  ;;  %v6505_v0 = vpop.permute.xlu0 %681 }
 0x297   : > { %929 = vbcast.lane.b32.xlu1 %v915_v55, 280 }
 0x298   : > { %925 = vbcast.lane.b32.xlu0 %v915_v55, 272 }
 0x299   : > { %v6507_v3 = vpop.permute.xlu1 %693 }
 0x29a   : > { %9551 = vst [vmem:[#allocation78_spill] sm:$0xff] %v6507_v3  ;;  %v6509_v5 = vpop.permute.xlu0 %689 }
 0x29b   : > { %9552 = vst [vmem:[#allocation79_spill] sm:$0xff] %v6509_v5  ;;  %937 = vbcast.lane.b32.xlu1 %v915_v55, 296 }
 0x29c   : > { %933 = vbcast.lane.b32.xlu0 %v915_v55, 288 }
 0x29d   : > { %v6511_v35 = vpop.permute.xlu1 %701 }
 0x29e   : > { %9553 = vst [vmem:[#allocation80_spill] sm:$0xff] %v6511_v35  ;;  %v6513_v9 = vpop.permute.xlu0 %697 }
 0x29f   : > { %9554 = vst [vmem:[#allocation81_spill] sm:$0xff] %v6513_v9  ;;  %945 = vbcast.lane.b32.xlu1 %v915_v55, 312 }
 0x2a0   : > { %941 = vbcast.lane.b32.xlu0 %v915_v55, 304 }
 0x2a1   : > { %v6515_v17 = vpop.permute.xlu1 %709 }
 0x2a2   : > { %9555 = vst [vmem:[#allocation82_spill] sm:$0xff] %v6515_v17  ;;  %v6517_v22 = vpop.permute.xlu0 %705 }
 0x2a3   : > { %9556 = vst [vmem:[#allocation83_spill] sm:$0xff] %v6517_v22  ;;  %953 = vbcast.lane.b32.xlu1 %v915_v55, 328 }
 0x2a4   : > { %949 = vbcast.lane.b32.xlu0 %v915_v55, 320 }
 0x2a5   : > { %v6519_v26 = vpop.permute.xlu1 %720 }
 0x2a6   : > { %v6521_v27 = vpop.permute.xlu0 %716 }
 0x2a7   : > { %961 = vbcast.lane.b32.xlu1 %v915_v55, 344 }
 0x2a8   : > { %957 = vbcast.lane.b32.xlu0 %v915_v55, 336 }
 0x2a9   : > { %v6523_v29 = vpop.permute.xlu1 %728 }
 0x2aa   : > { %v6525_v31 = vpop.permute.xlu0 %724 }
 0x2ab   : > { %969 = vbcast.lane.b32.xlu1 %v915_v55, 360 }
 0x2ac   : > { %965 = vbcast.lane.b32.xlu0 %v915_v55, 352 }
 0x2ad   : > { %v6530_v36 = vpop.permute.xlu1 %736 }
 0x2ae   : > { %v6532_v40 = vpop.permute.xlu0 %732 }
 0x2af   : > { %977 = vbcast.lane.b32.xlu1 %v915_v55, 376 }
 0x2b0   : > { %973 = vbcast.lane.b32.xlu0 %v915_v55, 368 }
 0x2b1   : > { %v6536_v58 = vpop.permute.xlu1 %744 }
 0x2b2   : > { %v6538_v60 = vpop.permute.xlu0 %740 }
 0x2b3   : > { %988 = vbcast.lane.b32.xlu1 %v982_v45, 264 }
 0x2b4   : > { %984 = vbcast.lane.b32.xlu0 %v982_v45, 256 }
 0x2b5   : > { %v6540_v16 = vpop.permute.xlu1 %752 }
 0x2b6   : > { %9558 = vst [vmem:[#allocation85_spill] sm:$0xff] %v6540_v16  ;;  %v6542_v14 = vpop.permute.xlu0 %748 }
 0x2b7   : > { %9559 = vst [vmem:[#allocation86_spill] sm:$0xff] %v6542_v14  ;;  %996 = vbcast.lane.b32.xlu1 %v982_v45, 280  ;;  %v2804_v14 = vmul.f32 %v6521_v27, %v9525_v15 }
 0x2b8   : > { %992 = vbcast.lane.b32.xlu0 %v982_v45, 272 }
 0x2b9   : > { %v6544_v11 = vpop.permute.xlu1 %760 }
 0x2ba   : > { %9560 = vst [vmem:[#allocation87_spill] sm:$0xff] %v6544_v11  ;;  %v6546_v8 = vpop.permute.xlu0 %756 }
 0x2bb   : > { %9561 = vst [vmem:[#allocation88_spill] sm:$0xff] %v6546_v8  ;;  %1004 = vbcast.lane.b32.xlu1 %v982_v45, 296 }
 0x2bc   : > { %1000 = vbcast.lane.b32.xlu0 %v982_v45, 288 }
 0x2bd   : > { %v6548_v55 = vpop.permute.xlu1 %768 }
 0x2be   : > { %9562 = vst [vmem:[#allocation89_spill] sm:$0xff] %v6548_v55  ;;  %v6550_v2 = vpop.permute.xlu0 %764 }
 0x2bf   : > { %9563 = vst [vmem:[#allocation90_spill] sm:$0xff] %v6550_v2  ;;  %1012 = vbcast.lane.b32.xlu1 %v982_v45, 312 }
 0x2c0   : > { %1008 = vbcast.lane.b32.xlu0 %v982_v45, 304 }
 0x2c1   : > { %v6552_v62 = vpop.permute.xlu1 %776 }
 0x2c2   : > { %9564 = vst [vmem:[#allocation91_spill] sm:$0xff] %v6552_v62  ;;  %v6554_v57 = vpop.permute.xlu0 %772 }
 0x2c3   : > { %9565 = vst [vmem:[#allocation92_spill] sm:$0xff] %v6554_v57  ;;  %1020 = vbcast.lane.b32.xlu1 %v982_v45, 328 }
 0x2c4   : > { %1016 = vbcast.lane.b32.xlu0 %v982_v45, 320 }
 0x2c5   : > { %v6556_v53 = vpop.permute.xlu1 %787 }
 0x2c6   : > { %v6558_v48 = vpop.permute.xlu0 %783 }
 0x2c7   : > { %1028 = vbcast.lane.b32.xlu1 %v982_v45, 344 }
 0x2c8   : > { %1024 = vbcast.lane.b32.xlu0 %v982_v45, 336 }
 0x2c9   : > { %v6560_v42 = vpop.permute.xlu1 %795 }
 0x2ca   : > { %v6562_v38 = vpop.permute.xlu0 %791 }
 0x2cb   : > { %1036 = vbcast.lane.b32.xlu1 %v982_v45, 360 }
 0x2cc   : > { %1032 = vbcast.lane.b32.xlu0 %v982_v45, 352 }
 0x2cd   : > { %v6567_v33 = vpop.permute.xlu1 %803 }
 0x2ce   : > { %v6569_v24 = vpop.permute.xlu0 %799 }
 0x2cf   : > { %1044 = vbcast.lane.b32.xlu1 %v982_v45, 376 }
 0x2d0   : > { %1040 = vbcast.lane.b32.xlu0 %v982_v45, 368 }
 0x2d1   : > { %v6573_v56 = vpop.permute.xlu1 %811 }
 0x2d2   : > { %v6575_v19 = vpop.permute.xlu0 %807 }
 0x2d3   : > { %1055 = vbcast.lane.b32.xlu1 %v1049_v34, 264 }
 0x2d4   : > { %1051 = vbcast.lane.b32.xlu0 %v1049_v34, 256 }
 0x2d5   : > { %v6577_v62 = vpop.permute.xlu1 %819 }
 0x2d6   : > { %9567 = vst [vmem:[#allocation94_spill] sm:$0xff] %v6577_v62  ;;  %v6579_v57 = vpop.permute.xlu0 %815 }
 0x2d7   : > { %9568 = vst [vmem:[#allocation95_spill] sm:$0xff] %v6579_v57  ;;  %1063 = vbcast.lane.b32.xlu1 %v1049_v34, 280 }
 0x2d8   : > { %1059 = vbcast.lane.b32.xlu0 %v1049_v34, 272 }
 0x2d9   : > { %v6581_v22 = vpop.permute.xlu1 %827 }
 0x2da   : > { %9569 = vst [vmem:[#allocation96_spill] sm:$0xff] %v6581_v22  ;;  %v6583_v59 = vpop.permute.xlu0 %823 }
 0x2db   : > { %9570 = vst [vmem:[#allocation97_spill] sm:$0xff] %v6583_v59  ;;  %1071 = vbcast.lane.b32.xlu1 %v1049_v34, 296 }
 0x2dc   : > { %1067 = vbcast.lane.b32.xlu0 %v1049_v34, 288 }
 0x2dd   : > { %v6585_v45 = vpop.permute.xlu1 %835 }
 0x2de   : > { %9571 = vst [vmem:[#allocation98_spill] sm:$0xff] %v6585_v45  ;;  %v6587_v28 = vpop.permute.xlu0 %831  ;;  %v6602_v45 = vsub.s32 7, %v9528_v6 }
 0x2df   : > { %9572 = vst [vmem:[#allocation99_spill] sm:$0xff] %v6587_v28  ;;  %1079 = vbcast.lane.b32.xlu1 %v1049_v34, 312 }
 0x2e0   : > { %1075 = vbcast.lane.b32.xlu0 %v1049_v34, 304  ;;  %9575 = vst [vmem:[#allocation102_spill] sm:$0xff] %v6602_v45  ;;  %v1116_v28 = vrot.slane %v6407_v32, %v6602_v45 }
 0x2e1   : > { %v6589_v55 = vpop.permute.xlu1 %843 }
 0x2e2   : > { %9573 = vst [vmem:[#allocation100_spill] sm:$0xff] %v6589_v55  ;;  %v6591_v17 = vpop.permute.xlu0 %839 }
 0x2e3   : > { %9574 = vst [vmem:[#allocation101_spill] sm:$0xff] %v6591_v17  ;;  %1087 = vbcast.lane.b32.xlu1 %v1049_v34, 328 }
 0x2e4   : > { %1083 = vbcast.lane.b32.xlu0 %v1049_v34, 320 }
 0x2e5   : > { %v6593_v10 = vpop.permute.xlu1 %854 }
 0x2e6   : > { %v6595_v9 = vpop.permute.xlu0 %850 }
 0x2e7   : > { %1095 = vbcast.lane.b32.xlu1 %v1049_v34, 344 }
 0x2e8   : > { %1091 = vbcast.lane.b32.xlu0 %v1049_v34, 336 }
 0x2e9   : > { %v6597_v2 = vpop.permute.xlu1 %862 }
 0x2ea   : > { %v6599_v39 = vpop.permute.xlu0 %858 }
 0x2eb   : > { %1103 = vbcast.lane.b32.xlu1 %v1049_v34, 360 }
 0x2ec   : > { %1099 = vbcast.lane.b32.xlu0 %v1049_v34, 352 }
 0x2ed   : > { %v6604_v55 = vpop.permute.xlu1 %870 }
 0x2ee   : > { %v6606_v17 = vpop.permute.xlu0 %866 }
 0x2ef   : > { %1111 = vbcast.lane.b32.xlu1 %v1049_v34, 376 }
 0x2f0   : > { %1107 = vbcast.lane.b32.xlu0 %v1049_v34, 368 }
 0x2f1   : > { %v6610_v35 = vpop.permute.xlu1 %878 }
 0x2f2   : > { %9576 = vst [vmem:[#allocation103_spill] sm:$0xff] %v6610_v35  ;;  %v6612_v30 = vpop.permute.xlu0 %874 }
 0x2f3   : > { %1122 = vbcast.lane.b32.xlu1 %v1116_v28, 264 }
 0x2f4   : > { %1118 = vbcast.lane.b32.xlu0 %v1116_v28, 256 }
 0x2f5   : > { %v6614_v22 = vpop.permute.xlu1 %886 }
 0x2f6   : > { %9577 = vst [vmem:[#allocation104_spill] sm:$0xff] %v6614_v22  ;;  %v6616_v3 = vpop.permute.xlu0 %882 }
 0x2f7   : > { %9578 = vst [vmem:[#allocation105_spill] sm:$0xff] %v6616_v3  ;;  %1130 = vbcast.lane.b32.xlu1 %v1116_v28, 280 }
 0x2f8   : > { %1126 = vbcast.lane.b32.xlu0 %v1116_v28, 272 }
 0x2f9   : > { %v6618_v6 = vpop.permute.xlu1 %894 }
 0x2fa   : > { %9579 = vst [vmem:[#allocation106_spill] sm:$0xff] %v6618_v6  ;;  %v6620_v11 = vpop.permute.xlu0 %890 }
 0x2fb   : > { %9580 = vst [vmem:[#allocation107_spill] sm:$0xff] %v6620_v11  ;;  %1138 = vbcast.lane.b32.xlu1 %v1116_v28, 296 }
 0x2fc   : > { %1134 = vbcast.lane.b32.xlu0 %v1116_v28, 288 }
 0x2fd   : > { %v6622_v34 = vpop.permute.xlu1 %902 }
 0x2fe   : > { %9581 = vst [vmem:[#allocation108_spill] sm:$0xff] %v6622_v34  ;;  %v6624_v32 = vpop.permute.xlu0 %898 }
 0x2ff   : > { %9582 = vst [vmem:[#allocation109_spill] sm:$0xff] %v6624_v32  ;;  %1146 = vbcast.lane.b32.xlu1 %v1116_v28, 312  ;;  %v6639_v32 = vld [vmem:[%s6404_s22 + $0x8] sm:$0xff] }
 0x300   : > { %1142 = vbcast.lane.b32.xlu0 %v1116_v28, 304  ;;  %9585 = vst [vmem:[#allocation112_spill] sm:$0xff] %v6639_v32 }
 0x301   : > { %v6626_v45 = vpop.permute.xlu1 %910 }
 0x302   : > { %9583 = vst [vmem:[#allocation110_spill] sm:$0xff] %v6626_v45  ;;  %v6628_v54 = vpop.permute.xlu0 %906 }
 0x303   : > { %9584 = vst [vmem:[#allocation111_spill] sm:$0xff] %v6628_v54  ;;  %1154 = vbcast.lane.b32.xlu1 %v1116_v28, 328  ;;  %v1183_v54 = vrot.slane %v6639_v32, %v6393_v46 }
 0x304   : > { %1150 = vbcast.lane.b32.xlu0 %v1116_v28, 320 }
 0x305   : > { %v6630_v22 = vpop.permute.xlu1 %921 }
 0x306   : > { %v6632_v6 = vpop.permute.xlu0 %917 }
 0x307   : > { %1162 = vbcast.lane.b32.xlu1 %v1116_v28, 344 }
 0x308   : > { %1158 = vbcast.lane.b32.xlu0 %v1116_v28, 336 }
 0x309   : > { %v6634_v11 = vpop.permute.xlu1 %929 }
 0x30a   : > { %v6636_v34 = vpop.permute.xlu0 %925 }
 0x30b   : > { %1170 = vbcast.lane.b32.xlu1 %v1116_v28, 360 }
 0x30c   : > { %1166 = vbcast.lane.b32.xlu0 %v1116_v28, 352 }
 0x30d   : > { %v6641_v59 = vpop.permute.xlu1 %937 }
 0x30e   : > { %v6643_v45 = vpop.permute.xlu0 %933 }
 0x30f   : > { %1178 = vbcast.lane.b32.xlu1 %v1116_v28, 376 }
 0x310   : > { %1174 = vbcast.lane.b32.xlu0 %v1116_v28, 368 }
 0x311   : > { %v6647_v5 = vpop.permute.xlu1 %945 }
 0x312   : > { %9586 = vst [vmem:[#allocation113_spill] sm:$0xff] %v6647_v5  ;;  %v6649_v8 = vpop.permute.xlu0 %941 }
 0x313   : > { %1189 = vbcast.lane.b32.xlu1 %v1183_v54, 264 }
 0x314   : > { %1185 = vbcast.lane.b32.xlu0 %v1183_v54, 256 }
 0x315   : > { %v6651_v63 = vpop.permute.xlu1 %953 }
 0x316   : > { %9587 = vst [vmem:[#allocation114_spill] sm:$0xff] %v6651_v63  ;;  %v6653_v3 = vpop.permute.xlu0 %949 }
 0x317   : > { %9588 = vst [vmem:[#allocation115_spill] sm:$0xff] %v6653_v3  ;;  %1197 = vbcast.lane.b32.xlu1 %v1183_v54, 280 }
 0x318   : > { %1193 = vbcast.lane.b32.xlu0 %v1183_v54, 272 }
 0x319   : > { %v6655_v62 = vpop.permute.xlu1 %961 }
 0x31a   : > { %9589 = vst [vmem:[#allocation116_spill] sm:$0xff] %v6655_v62  ;;  %v6657_v44 = vpop.permute.xlu0 %957 }
 0x31b   : > { %9590 = vst [vmem:[#allocation117_spill] sm:$0xff] %v6657_v44  ;;  %1205 = vbcast.lane.b32.xlu1 %v1183_v54, 296 }
 0x31c   : > { %1201 = vbcast.lane.b32.xlu0 %v1183_v54, 288 }
 0x31d   : > { %v6659_v28 = vpop.permute.xlu1 %969 }
 0x31e   : > { %9591 = vst [vmem:[#allocation118_spill] sm:$0xff] %v6659_v28  ;;  %v6661_v46 = vpop.permute.xlu0 %965  ;;  %v2789_v28 = vmul.f32 %v6488_v52, %v9524_v1  ;;  %v2805_v52 = vmul.f32 %v6519_v26, %v9524_v1 }
 0x31f   : > { %9592 = vst [vmem:[#allocation119_spill] sm:$0xff] %v6661_v46  ;;  %1213 = vbcast.lane.b32.xlu1 %v1183_v54, 312 }
 0x320   : > { %1209 = vbcast.lane.b32.xlu0 %v1183_v54, 304 }
 0x321   : > { %v6663_v16 = vpop.permute.xlu1 %977 }
 0x322   : > { %9593 = vst [vmem:[#allocation120_spill] sm:$0xff] %v6663_v16  ;;  %v6665_v12 = vpop.permute.xlu0 %973  ;;  %v2788_v16 = vmul.f32 %v6484_v37, %v9525_v15  ;;  %v2790_v37 = vmul.f32 %v6482_v50, %v9523_v47  ;;  %v2822_v50 = vmul.f32 %v6562_v38, %v9523_v47 }
 0x323   : > { %9594 = vst [vmem:[#allocation121_spill] sm:$0xff] %v6665_v12  ;;  %1221 = vbcast.lane.b32.xlu1 %v1183_v54, 328  ;;  %v6679_v12 = vrot.slane %v6639_v32, %v6453_v4  ;;  %v2791_v32 = vmul.f32 %v6486_v41, %v9522_v21  ;;  %v2837_v41 = vmul.f32 %v6593_v10, %v9524_v1 }
 0x324   : > { %1217 = vbcast.lane.b32.xlu0 %v1183_v54, 320  ;;  %v3300_v35 = vmax.f32 %v2788_v16, %v2789_v28  ;;  %v2806_v16 = vmul.f32 %v6525_v31, %v9523_v47  ;;  %v2820_v28 = vmul.f32 %v6558_v48, %v9525_v15  ;;  %v2792_v10 = vmul.f32 %v6495_v7, %v9521_v13 }
 0x325   : > { %v989_v63 = vpop.permute.xlu1 %988 }
 0x326   : > { %v985_v3 = vpop.permute.xlu0 %984  ;;  %v3301_v26 = vmax.f32 %v3300_v35, %v2790_v37  ;;  %v2823_v37 = vmul.f32 %v6560_v42, %v9522_v21 }
 0x327   : > { %1229 = vbcast.lane.b32.xlu1 %v1183_v54, 344  ;;  %v2868_v42 = vmul.f32 %v985_v3, %v9525_v15 }
 0x328   : > { %1225 = vbcast.lane.b32.xlu0 %v1183_v54, 336  ;;  %v3302_v35 = vmax.f32 %v3301_v26, %v2791_v32  ;;  %v2869_v32 = vmul.f32 %v989_v63, %v9524_v1 }
 0x329   : > { %v6667_v62 = vpop.permute.xlu1 %996 }
 0x32a   : > { %v993_v44 = vpop.permute.xlu0 %992  ;;  %v3303_v7 = vmax.f32 %v3302_v35, %v2792_v10 }
 0x32b   : > { %1237 = vbcast.lane.b32.xlu1 %v1183_v54, 360  ;;  %v2870_v63 = vmul.f32 %v993_v44, %v9523_v47  ;;  %v2809_v44 = vmul.f32 %v6530_v36, %v9520_v61  ;;  %v2794_v36 = vmul.f32 %v6501_v18, %v9519_v51  ;;  %v2856_v18 = vmul.f32 %v6643_v45, %v9521_v13 }
 0x32c   : > { %1233 = vbcast.lane.b32.xlu0 %v1183_v54, 352 }
 0x32d   : > { %v6671_v46 = vpop.permute.xlu1 %1004 }
 0x32e   : > { %v6673_v5 = vpop.permute.xlu0 %1000 }
 0x32f   : > { %1245 = vbcast.lane.b32.xlu1 %v1183_v54, 376 }
 0x330   : > { %1241 = vbcast.lane.b32.xlu0 %v1183_v54, 368  ;;  %v2821_v54 = vmul.f32 %v6556_v53, %v9524_v1  ;;  %v2807_v53 = vmul.f32 %v6523_v29, %v9522_v21  ;;  %v2853_v29 = vmul.f32 %v6630_v22, %v9524_v1  ;;  %v2838_v22 = vmul.f32 %v6599_v39, %v9523_v47 }
 0x331   : > { %v6681_v57 = vpop.permute.xlu1 %1012  ;;  %v3405_v39 = vmax.f32 %v2868_v42, %v2869_v32  ;;  %v2840_v32 = vmul.f32 %v6606_v17, %v9521_v13  ;;  %v2826_v17 = vmul.f32 %v6575_v19, %v9519_v51 }
 0x332   : > { %9595 = vst [vmem:[#allocation122_spill] sm:$0xff] %v6681_v57  ;;  %v6683_v23 = vpop.permute.xlu0 %1008  ;;  %v3321_v57 = vmax.f32 %v2804_v14, %v2805_v52  ;;  %v3342_v31 = vmax.f32 %v2820_v28, %v2821_v54  ;;  %v2793_v28 = vmul.f32 %v6493_v43, %v9520_v61 }
 0x333   : > { %1256 = vbcast.lane.b32.xlu1 %v6679_v12, 264  ;;  %v3406_v35 = vmax.f32 %v3405_v39, %v2870_v63 }
 0x334   : > { %1252 = vbcast.lane.b32.xlu0 %v6679_v12, 256  ;;  %v3322_v48 = vmax.f32 %v3321_v57, %v2806_v16  ;;  %v3343_v38 = vmax.f32 %v3342_v31, %v2822_v50  ;;  %v2852_v57 = vmul.f32 %v6632_v6, %v9525_v15  ;;  %v2854_v6 = vmul.f32 %v6636_v34, %v9523_v47 }
 0x335   : > { %v6699_v4 = vpop.permute.xlu1 %1020 }
 0x336   : > { %9596 = vst [vmem:[#allocation123_spill] sm:$0xff] %v6699_v4  ;;  %v6701_v27 = vpop.permute.xlu0 %1016  ;;  %v2836_v4 = vmul.f32 %v6595_v9, %v9525_v15  ;;  %v3323_v16 = vmax.f32 %v3322_v48, %v2807_v53  ;;  %v2808_v9 = vmul.f32 %v6532_v40, %v9521_v13  ;;  %v3344_v26 = vmax.f32 %v3343_v38, %v2823_v37 }
 0x337   : > { %1264 = vbcast.lane.b32.xlu1 %v6679_v12, 280  ;;  %v2824_v40 = vmul.f32 %v6569_v24, %v9521_v13  ;;  %v3384_v53 = vmax.f32 %v2852_v57, %v2853_v29  ;;  %v2839_v48 = vmul.f32 %v6597_v2, %v9522_v21  ;;  %v2871_v24 = vmul.f32 %v6667_v62, %v9522_v21 }
 0x338   : > { %1260 = vbcast.lane.b32.xlu0 %v6679_v12, 272  ;;  %v3363_v50 = vmax.f32 %v2836_v4, %v2837_v41  ;;  %v3324_v34 = vmax.f32 %v3323_v16, %v2808_v9  ;;  %v2855_v4 = vmul.f32 %v6634_v11, %v9522_v21  ;;  %v3304_v41 = vmax.f32 %v3303_v7, %v2793_v28 }
 0x339   : > { %v6713_v14 = vpop.permute.xlu1 %1028  ;;  %v3385_v31 = vmax.f32 %v3384_v53, %v2854_v6  ;;  %v2825_v2 = vmul.f32 %v6567_v33, %v9520_v61  ;;  %v3345_v29 = vmax.f32 %v3344_v26, %v2824_v40  ;;  %v2810_v62 = vmul.f32 %v6538_v60, %v9519_v51 }
 0x33a   : > { %v6715_v52 = vpop.permute.xlu0 %1024  ;;  %v3364_v43 = vmax.f32 %v3363_v50, %v2838_v22  ;;  %v3325_v11 = vmax.f32 %v3324_v34, %v2809_v44  ;;  %v3407_v10 = vmax.f32 %v3406_v35, %v2871_v24  ;;  %v2872_v33 = vmul.f32 %v6673_v5, %v9521_v13 }
 0x33b   : > { %1272 = vbcast.lane.b32.xlu1 %v6679_v12, 296  ;;  %v3386_v42 = vmax.f32 %v3385_v31, %v2855_v4  ;;  %v2795_v22 = vmul.f32 %v6499_v49, %v9526_v20  ;;  %v3305_v63 = vmax.f32 %v3304_v41, %v2794_v36  ;;  %v3346_v28 = vmax.f32 %v3345_v29, %v2825_v2  ;;  %v9597_v29 = vld [vmem:[#allocation86_spill] sm:$0xff] }
 0x33c   : > { %1268 = vbcast.lane.b32.xlu0 %v6679_v12, 288  ;;  %v3365_v57 = vmax.f32 %v3364_v43, %v2839_v48  ;;  %v2811_v5 = vmul.f32 %v6536_v58, %v9526_v20  ;;  %v3326_v45 = vmax.f32 %v3325_v11, %v2810_v62  ;;  %v2841_v49 = vmul.f32 %v6604_v55, %v9520_v61 }
 0x33d   : > { %v6738_v3 = vpop.permute.xlu1 %1036  ;;  %v2857_v26 = vmul.f32 %v6641_v59, %v9520_v61  ;;  %v3387_v50 = vmax.f32 %v3386_v42, %v2856_v18  ;;  %v2873_v40 = vmul.f32 %v6671_v46, %v9520_v61  ;;  %v3408_v19 = vmax.f32 %v3407_v10, %v2872_v33  ;;  %v9599_v18 = vld [vmem:[#allocation112_spill] sm:$0xff] }
 0x33e   : > { %v6740_v54 = vpop.permute.xlu0 %1032  ;;  %v3366_v7 = vmax.f32 %v3365_v57, %v2840_v32  ;;  %v2796_v44 = vmul.f32 %v6505_v0, %v9527_v25  ;;  %v3306_v55 = vmax.f32 %v3305_v63, %v2795_v22  ;;  %v2827_v43 = vmul.f32 %v6573_v56, %v9526_v20 }
 0x33f   : > { %1280 = vbcast.lane.b32.xlu1 %v6679_v12, 312  ;;  %v3347_v59 = vmax.f32 %v3346_v28, %v2826_v17  ;;  %v3327_v46 = vmax.f32 %v3326_v45, %v2811_v5  ;;  %v2842_v31 = vmul.f32 %v6612_v30, %v9519_v51  ;;  %v3388_v24 = vmax.f32 %v3387_v50, %v2857_v26  ;;  %v9603_v17 = vld [vmem:[#allocation122_spill] sm:$0xff]  ;;  %v9605_v26 = vld [vmem:[#allocation85_spill] sm:$0xff] }
 0x340   : > { %1276 = vbcast.lane.b32.xlu0 %v6679_v12, 304  ;;  %v3367_v4 = vmax.f32 %v3366_v7, %v2841_v49  ;;  %v2858_v35 = vmul.f32 %v6649_v8, %v9519_v51  ;;  %v3409_v36 = vmax.f32 %v3408_v19, %v2873_v40  ;;  %v2874_v41 = vmul.f32 %v6683_v23, %v9519_v51  ;;  %v9598_v8 = vld [vmem:[#allocation74_spill] sm:$0xff]  ;;  %v9600_v23 = vld [vmem:[#allocation95_spill] sm:$0xff]  ;;  %v9604_v7 = vld [vmem:[#allocation64_spill] sm:$0xff] }
 0x341   : > { %v6756_v37 = vpop.permute.xlu1 %1044  ;;  %v2812_v11 = vmul.f32 %v9597_v29, %v9527_v25  ;;  %v3307_v30 = vmax.f32 %v3306_v55, %v2796_v44  ;;  %v3348_v42 = vmax.f32 %v3347_v59, %v2827_v43  ;;  %v6812_v10 = vrot.slane %v9599_v18, %v9598_v8  ;;  %v9608_v59 = vld [vmem:[#allocation105_spill] sm:$0xff] }
 0x342   : > { %v6758_v38 = vpop.permute.xlu0 %1040  ;;  %v2828_v33 = vmul.f32 %v9600_v23, %v9527_v25  ;;  %v3368_v22 = vmax.f32 %v3367_v4, %v2842_v31  ;;  %v3389_v28 = vmax.f32 %v3388_v24, %v2858_v35  ;;  %v2875_v5 = vmul.f32 %v9603_v17, %v9526_v20  ;;  %v9616_v17 = vld [vmem:[#allocation123_spill] sm:$0xff] }
 0x343   : > { %1288 = vbcast.lane.b32.xlu1 %v6679_v12, 328  ;;  %v2813_v50 = vmul.f32 %v9605_v26, %v9604_v7  ;;  %v3328_v40 = vmax.f32 %v3327_v46, %v2812_v11  ;;  %v2844_v46 = vmul.f32 %v9608_v59, %v9527_v25  ;;  %v9610_v11 = vld [vmem:[#allocation67_spill] sm:$0xff] }
 0x344   : > { %1284 = vbcast.lane.b32.xlu0 %v6679_v12, 320  ;;  %v3349_v55 = vmax.f32 %v3348_v42, %v2828_v33 }
 0x345   : > { %v1056_v16 = vpop.permute.xlu1 %1055  ;;  %v3329_v29 = vmax.f32 %v3328_v40, %v2813_v50  ;;  %v9617_v50 = vld [vmem:[#allocation66_spill] sm:$0xff]  ;;  %v9618_v40 = vld [vmem:[#allocation87_spill] sm:$0xff] }
 0x346   : > { %v1052_v9 = vpop.permute.xlu0 %1051  ;;  %v2885_v6 = vmul.f32 %v1056_v16, %v9524_v1  ;;  %v9601_v16 = vld [vmem:[#allocation103_spill] sm:$0xff] }
 0x347   : > { %v2884_v60 = vmul.f32 %v1052_v9, %v9525_v15  ;;  %1296 = vbcast.lane.b32.xlu1 %v6679_v12, 344  ;;  %v2843_v9 = vmul.f32 %v9601_v16, %v9526_v20 }
 0x348   : > { %1292 = vbcast.lane.b32.xlu0 %v6679_v12, 336 }
 0x349   : > { %v1064_v53 = vpop.permute.xlu1 %1063  ;;  %v3426_v34 = vmax.f32 %v2884_v60, %v2885_v6  ;;  %v9602_v60 = vld [vmem:[#allocation113_spill] sm:$0xff]  ;;  %v3369_v43 = vmax.f32 %v3368_v22, %v2843_v9 }
 0x34a   : > { %v1060_v39 = vpop.permute.xlu0 %1059  ;;  %v2887_v58 = vmul.f32 %v1064_v53, %v9522_v21  ;;  %v2859_v63 = vmul.f32 %v9602_v60, %v9526_v20  ;;  %v9615_v60 = vld [vmem:[#allocation114_spill] sm:$0xff] }
 0x34b   : > { %v2886_v48 = vmul.f32 %v1060_v39, %v9523_v47  ;;  %1304 = vbcast.lane.b32.xlu1 %v6679_v12, 360  ;;  %v9606_v39 = vld [vmem:[#allocation77_spill] sm:$0xff] }
 0x34c   : > { %1300 = vbcast.lane.b32.xlu0 %v6679_v12, 352  ;;  %v2797_v44 = vmul.f32 %v9606_v39, %v9604_v7  ;;  %v3390_v31 = vmax.f32 %v3389_v28, %v2859_v63  ;;  %v2861_v63 = vmul.f32 %v9615_v60, %v9604_v7  ;;  %v9619_v39 = vld [vmem:[#allocation78_spill] sm:$0xff] }
 0x34d   : > { %v3427_v0 = vmax.f32 %v3426_v34, %v2886_v48  ;;  %v1072_v56 = vpop.permute.xlu1 %1071  ;;  %v9607_v34 = vld [vmem:[#allocation94_spill] sm:$0xff] }
 0x34e   : > { %v1068_v2 = vpop.permute.xlu0 %1067  ;;  %v2889_v62 = vmul.f32 %v1072_v56, %v9520_v61  ;;  %v9629_v60 = vld [vmem:[#allocation106_spill] sm:$0xff] }
 0x34f   : > { %v3428_v57 = vmax.f32 %v3427_v0, %v2887_v58  ;;  %v2888_v32 = vmul.f32 %v1068_v2, %v9521_v13  ;;  %1312 = vbcast.lane.b32.xlu1 %v6679_v12, 376  ;;  %v2829_v58 = vmul.f32 %v9607_v34, %v9604_v7  ;;  %v9609_v0 = vld [vmem:[#allocation115_spill] sm:$0xff]  ;;  %v3308_v2 = vmax.f32 %v3307_v30, %v2797_v44  ;;  %v9614_v30 = vld [vmem:[#allocation104_spill] sm:$0xff] }
 0x350   : > { %1308 = vbcast.lane.b32.xlu0 %v6679_v12, 368  ;;  %v3410_v12 = vmax.f32 %v3409_v36, %v2874_v41  ;;  %v2860_v24 = vmul.f32 %v9609_v0, %v9527_v25  ;;  %v2876_v36 = vmul.f32 %v6701_v27, %v9527_v25  ;;  %v9613_v27 = vld [vmem:[#allocation97_spill] sm:$0xff]  ;;  %v2845_v22 = vmul.f32 %v9614_v30, %v9604_v7 }
 0x351   : > { %v3429_v6 = vmax.f32 %v3428_v57, %v2888_v32  ;;  %v1080_v45 = vpop.permute.xlu1 %1079  ;;  %v9612_v32 = vld [vmem:[#allocation79_spill] sm:$0xff]  ;;  %v3350_v16 = vmax.f32 %v3349_v55, %v2829_v58  ;;  %v2830_v9 = vmul.f32 %v9613_v27, %v9610_v11  ;;  %v2799_v44 = vmul.f32 %v9619_v39, %v9617_v50  ;;  %v9622_v0 = vld [vmem:[#allocation117_spill] sm:$0xff]  ;;  %v9631_v39 = vld [vmem:[#allocation70_spill] sm:$0xff] }
 0x352   : > { %v1076_v49 = vpop.permute.xlu0 %1075  ;;  %v2891_v48 = vmul.f32 %v1080_v45, %v9526_v20  ;;  %v3411_v35 = vmax.f32 %v3410_v12, %v2875_v5  ;;  %v2798_v42 = vmul.f32 %v9612_v32, %v9610_v11  ;;  %v3391_v28 = vmax.f32 %v3390_v31, %v2860_v24 }
 0x353   : > { %v3430_v19 = vmax.f32 %v3429_v6, %v2889_v62  ;;  %v2890_v53 = vmul.f32 %v1076_v49, %v9519_v51  ;;  %1323 = vbcast.lane.b32.xlu1 %v6812_v10, 264  ;;  %v9611_v62 = vld [vmem:[#allocation88_spill] sm:$0xff]  ;;  %v3370_v6 = vmax.f32 %v3369_v43, %v2844_v46  ;;  %v2877_v5 = vmul.f32 %v9616_v17, %v9604_v7  ;;  %v9621_v46 = vld [vmem:[#allocation107_spill] sm:$0xff] }
 0x354   : > { %1319 = vbcast.lane.b32.xlu0 %v6812_v10, 256  ;;  %v2814_v57 = vmul.f32 %v9611_v62, %v9610_v11  ;;  %v3412_v12 = vmax.f32 %v3411_v35, %v2876_v36  ;;  %v3309_v26 = vmax.f32 %v3308_v2, %v2798_v42  ;;  %v3351_v43 = vmax.f32 %v3350_v16, %v2830_v9  ;;  %v9623_v2 = vld [vmem:[#allocation68_spill] sm:$0xff]  ;;  %v9625_v42 = vld [vmem:[#allocation69_spill] sm:$0xff] }
 0x355   : > { %v3431_v4 = vmax.f32 %v3430_v19, %v2890_v53  ;;  %v1088_v41 = vpop.permute.xlu1 %1087  ;;  %v2815_v19 = vmul.f32 %v9618_v40, %v9617_v50  ;;  %v3371_v59 = vmax.f32 %v3370_v6, %v2845_v22  ;;  %v3392_v31 = vmax.f32 %v3391_v28, %v2861_v63  ;;  %v9627_v16 = vld [vmem:[#allocation81_spill] sm:$0xff]  ;;  %v9628_v22 = vld [vmem:[#allocation99_spill] sm:$0xff]  ;;  %v9630_v17 = vld [vmem:[#allocation116_spill] sm:$0xff] }
 0x356   : > { %v1084_v56 = vpop.permute.xlu0 %1083  ;;  %v3330_v53 = vmax.f32 %v3329_v29, %v2814_v57  ;;  %v2893_v34 = vmul.f32 %v1088_v41, %v9604_v7  ;;  %v2862_v24 = vmul.f32 %v9622_v0, %v9610_v11  ;;  %v3413_v35 = vmax.f32 %v3412_v12, %v2877_v5  ;;  %v9624_v29 = vld [vmem:[#allocation80_spill] sm:$0xff] }
 0x357   : > { %v3432_v23 = vmax.f32 %v3431_v4, %v2891_v48  ;;  %v2892_v33 = vmul.f32 %v1084_v56, %v9527_v25  ;;  %1331 = vbcast.lane.b32.xlu1 %v6812_v10, 280  ;;  %v9620_v48 = vld [vmem:[#allocation96_spill] sm:$0xff]  ;;  %v2846_v4 = vmul.f32 %v9621_v46, %v9610_v11  ;;  %v2878_v36 = vmul.f32 %v6715_v52, %v9610_v11 }
 0x358   : > { %1327 = vbcast.lane.b32.xlu0 %v6812_v10, 272  ;;  %v2831_v55 = vmul.f32 %v9620_v48, %v9617_v50  ;;  %v6872_v62 = vmul.f32 %v9624_v29, %v9623_v2  ;;  %v3310_v57 = vmax.f32 %v3309_v26, %v2799_v44  ;;  %v3331_v32 = vmax.f32 %v3330_v53, %v2815_v19  ;;  %v9632_v44 = vld [vmem:[#allocation82_spill] sm:$0xff] }
 0x359   : > { %v1096_v45 = vpop.permute.xlu1 %1095  ;;  %v3433_v58 = vmax.f32 %v3432_v23, %v2892_v33  ;;  %v9626_v23 = vld [vmem:[#allocation90_spill] sm:$0xff]  ;;  %v2800_v27 = vmul.f32 %v9627_v16, %v9625_v42  ;;  %v2832_v6 = vmul.f32 %v9628_v22, %v9625_v42  ;;  %v2847_v63 = vmul.f32 %v9629_v60, %v9617_v50 }
 0x35a   : > { %v1092_v49 = vpop.permute.xlu0 %1091  ;;  %v2816_v33 = vmul.f32 %v9626_v23, %v9625_v42  ;;  %v3352_v52 = vmax.f32 %v3351_v43, %v2831_v55  ;;  %v3372_v28 = vmax.f32 %v3371_v59, %v2846_v4  ;;  %v2863_v5 = vmul.f32 %v9630_v17, %v9617_v50  ;;  %v9634_v43 = vld [vmem:[#allocation71_spill] sm:$0xff]  ;;  %v9640_v17 = vld [vmem:[#allocation101_spill] sm:$0xff] }
 0x35b   : > { %1339 = vbcast.lane.b32.xlu1 %v6812_v10, 296  ;;  %v3434_v9 = vmax.f32 %v3433_v58, %v2893_v34  ;;  %v2894_v30 = vmul.f32 %v1092_v49, %v9610_v11  ;;  %v3393_v12 = vmax.f32 %v3392_v31, %v2862_v24  ;;  %v2879_v26 = vmul.f32 %v6713_v14, %v9617_v50  ;;  %v9633_v58 = vld [vmem:[#allocation89_spill] sm:$0xff]  ;;  %v9635_v59 = vld [vmem:[#allocation83_spill] sm:$0xff]  ;;  %v9636_v31 = vld [vmem:[#allocation98_spill] sm:$0xff] }
 0x35c   : > { %1335 = vbcast.lane.b32.xlu0 %v6812_v10, 288  ;;  %v3414_v49 = vmax.f32 %v3413_v35, %v2878_v36  ;;  %v6893_v53 = vmax.f32 %v3310_v57, %v2800_v27  ;;  %v6897_v34 = vmul.f32 %v9632_v44, %v9631_v39  ;;  %v2817_v48 = vmul.f32 %v9633_v58, %v9623_v2  ;;  %v9637_v36 = vld [vmem:[#allocation109_spill] sm:$0xff] }
 0x35d   : > { %v6868_v41 = vpop.permute.xlu1 %1103  ;;  %v3332_v55 = vmax.f32 %v3331_v32, %v2816_v33  ;;  %v2802_v46 = vmul.f32 %v9635_v59, %v9634_v43  ;;  %v2895_v14 = vmul.f32 %v1096_v45, %v9617_v50  ;;  %v3435_v4 = vmax.f32 %v3434_v9, %v2894_v30  ;;  %v9638_v32 = vld [vmem:[#allocation119_spill] sm:$0xff] }
 0x35e   : > { %v1100_v56 = vpop.permute.xlu0 %1099  ;;  %v2833_v0 = vmul.f32 %v9636_v31, %v9623_v2  ;;  %v3353_v24 = vmax.f32 %v3352_v52, %v2832_v6  ;;  %v3373_v35 = vmax.f32 %v3372_v28, %v2847_v63  ;;  %v2848_v29 = vmul.f32 %v9637_v36, %v9625_v42  ;;  %v9639_v6 = vld [vmem:[#allocation92_spill] sm:$0xff]  ;;  %v9643_v59 = vld [vmem:[#allocation91_spill] sm:$0xff] }
 0x35f   : > { %1347 = vbcast.lane.b32.xlu1 %v6812_v10, 312  ;;  %v3394_v57 = vmax.f32 %v3393_v12, %v2863_v5  ;;  %v2864_v23 = vmul.f32 %v9638_v32, %v9625_v42  ;;  %v3415_v33 = vmax.f32 %v3414_v49, %v2879_v26  ;;  %v2880_v45 = vmul.f32 %v6740_v54, %v9625_v42  ;;  %v9642_v49 = vld [vmem:[#allocation118_spill] sm:$0xff]  ;;  %v9645_v32 = vld [vmem:[#allocation111_spill] sm:$0xff] }
 0x360   : > { %1343 = vbcast.lane.b32.xlu0 %v6812_v10, 304  ;;  %v3312_v9 = vmax.f32 %v6893_v53, %v6872_v62  ;;  %v3333_v30 = vmax.f32 %v3332_v55, %v2817_v48  ;;  %v2818_v60 = vmul.f32 %v9639_v6, %v9634_v43  ;;  %v3436_v63 = vmax.f32 %v3435_v4, %v2895_v14  ;;  %v9641_v62 = vld [vmem:[#allocation108_spill] sm:$0xff] }
 0x361   : > { %v6889_v40 = vpop.permute.xlu1 %1111  ;;  %v2896_v28 = vmul.f32 %v1100_v56, %v9625_v42  ;;  %v3354_v54 = vmax.f32 %v3353_v24, %v2833_v0  ;;  %v2834_v5 = vmul.f32 %v9640_v17, %v9634_v43  ;;  %v2849_v12 = vmul.f32 %v9641_v62, %v9623_v2 }
 0x362   : > { %v6891_v19 = vpop.permute.xlu0 %1107  ;;  %v3374_v26 = vmax.f32 %v3373_v35, %v2848_v29  ;;  %v2865_v53 = vmul.f32 %v9642_v49, %v9623_v2  ;;  %v3395_v44 = vmax.f32 %v3394_v57, %v2864_v23  ;;  %v2881_v58 = vmul.f32 %v6738_v3, %v9623_v2  ;;  %v9644_v3 = vld [vmem:[#allocation100_spill] sm:$0xff] }
 0x363   : > { %1355 = vbcast.lane.b32.xlu1 %v6812_v10, 328  ;;  %v3416_v56 = vmax.f32 %v3415_v33, %v2880_v45  ;;  %v2819_v14 = vmul.f32 %v9643_v59, %v9631_v39  ;;  %v3334_v24 = vmax.f32 %v3333_v30, %v2818_v60  ;;  %v2897_v35 = vmul.f32 %v6868_v41, %v9623_v2 }
 0x364   : > { %1351 = vbcast.lane.b32.xlu0 %v6812_v10, 320  ;;  %v3437_v36 = vmax.f32 %v3436_v63, %v2896_v28  ;;  %v2835_v29 = vmul.f32 %v9644_v3, %v9631_v39  ;;  %v3375_v57 = vmax.f32 %v3374_v26, %v2849_v12  ;;  %v2850_v23 = vmul.f32 %v9645_v32, %v9634_v43 }
 0x365   : > { %v1123_v16 = vpop.permute.xlu1 %1122  ;;  %v3355_v45 = vmax.f32 %v3354_v54, %v2834_v5  ;;  %v2882_v6 = vmul.f32 %v6758_v38, %v9634_v43  ;;  %v2898_v62 = vmul.f32 %v6891_v19, %v9634_v43  ;;  %v9647_v54 = vld [vmem:[#allocation75_spill] sm:$0xff]  ;;  %v3313_v12 = vmax.f32 %v3312_v9, %v2802_v46  ;;  %v9648_v38 = vld [vmem:[#allocation110_spill] sm:$0xff] }
 0x366   : > { %v1119_v27 = vpop.permute.xlu0 %1118  ;;  %v2901_v52 = vmul.f32 %v1123_v16, %v9524_v1  ;;  %v3396_v16 = vmax.f32 %v3395_v44, %v2865_v53  ;;  %v3438_v17 = vmax.f32 %v3437_v36, %v2897_v35  ;;  %v6955_v5 = vrot.slane %v9599_v18, %v9647_v54 }
 0x367   : > { %v2900_v22 = vmul.f32 %v1119_v27, %v9525_v15  ;;  %1363 = vbcast.lane.b32.xlu1 %v6812_v10, 344  ;;  %v9646_v27 = vld [vmem:[#allocation121_spill] sm:$0xff]  ;;  %v2851_v26 = vmul.f32 %v9648_v38, %v9631_v39  ;;  %v3376_v49 = vmax.f32 %v3375_v57, %v2850_v23  ;;  %v3335_v44 = vmax.f32 %v3334_v24, %v2819_v14 }
 0x368   : > { %1359 = vbcast.lane.b32.xlu0 %v6812_v10, 336  ;;  %v2866_v30 = vmul.f32 %v9646_v27, %v9634_v43  ;;  %v2883_v19 = vmul.f32 %v6756_v37, %v9631_v39  ;;  %v3356_v9 = vmax.f32 %v3355_v45, %v2835_v29  ;;  %v3439_v14 = vmax.f32 %v3438_v17, %v2898_v62 }
 0x369   : > { %v1131_v48 = vpop.permute.xlu1 %1130  ;;  %v3447_v4 = vmax.f32 %v2900_v22, %v2901_v52  ;;  %v3417_v52 = vmax.f32 %v3416_v56, %v2881_v58  ;;  %v9649_v58 = vld [vmem:[#allocation120_spill] sm:$0xff]  ;;  %v3314_v24 = vmax.f32 %v3313_v12, %v6897_v34  ;;  %v3377_v37 = vmax.f32 %v3376_v49, %v2851_v26 }
 0x36a   : > { %v1127_v55 = vpop.permute.xlu0 %1126  ;;  %v2903_v31 = vmul.f32 %v1131_v48, %v9522_v21  ;;  %v2867_v56 = vmul.f32 %v9649_v58, %v9631_v39  ;;  %v3397_v48 = vmax.f32 %v3396_v16, %v2866_v30  ;;  %v3336_v36 = vrot.slane %v3335_v44, 4 }
 0x36b   : > { %v2902_v0 = vmul.f32 %v1127_v55, %v9523_v47  ;;  %1371 = vbcast.lane.b32.xlu1 %v6812_v10, 360  ;;  %v3418_v59 = vmax.f32 %v3417_v52, %v2882_v6  ;;  %v3315_v27 = vrot.slane %v3314_v24, 4  ;;  %v3378_v34 = vrot.slane %v3377_v37, 4 }
 0x36c   : > { %1367 = vbcast.lane.b32.xlu0 %v6812_v10, 352  ;;  %v3398_v3 = vmax.f32 %v3397_v48, %v2867_v56  ;;  %v3337_v52 = vmax.f32 %v3335_v44, %v3336_v36 }
 0x36d   : > { %v3448_v33 = vmax.f32 %v3447_v4, %v2902_v0  ;;  %v1139_v41 = vpop.permute.xlu1 %1138  ;;  %v2899_v0 = vmul.f32 %v6889_v40, %v9631_v39  ;;  %v3419_v23 = vmax.f32 %v3418_v59, %v2883_v19  ;;  %v3357_v40 = vrot.slane %v3356_v9, 4 }
 0x36e   : > { %v1135_v22 = vpop.permute.xlu0 %1134  ;;  %v2905_v60 = vmul.f32 %v1139_v41, %v9520_v61  ;;  %v3399_v41 = vrot.slane %v3398_v3, 4  ;;  %v3316_v38 = vmax.f32 %v3314_v24, %v3315_v27  ;;  %v3379_v26 = vmax.f32 %v3377_v37, %v3378_v34 }
 0x36f   : > { %v3449_v63 = vmax.f32 %v3448_v33, %v2903_v31  ;;  %v2904_v28 = vmul.f32 %v1135_v22, %v9521_v13  ;;  %1379 = vbcast.lane.b32.xlu1 %v6812_v10, 376  ;;  %v3440_v16 = vmax.f32 %v3439_v14, %v2899_v0  ;;  %v3358_v62 = vmax.f32 %v3356_v9, %v3357_v40 }
 0x370   : > { %1375 = vbcast.lane.b32.xlu0 %v6812_v10, 368  ;;  %v3400_v44 = vmax.f32 %v3398_v3, %v3399_v41 }
 0x371   : > { %v3450_v53 = vmax.f32 %v3449_v63, %v2904_v28  ;;  %v1147_v55 = vpop.permute.xlu1 %1146  ;;  %v3441_v12 = vrot.slane %v3440_v16, 4  ;;  %v3359_v59 = vrot.slane %v3358_v62, 2 }
 0x372   : > { %v1143_v10 = vpop.permute.xlu0 %1142  ;;  %v2907_v4 = vmul.f32 %v1147_v55, %v9526_v20  ;;  %v3401_v14 = vrot.slane %v3400_v44, 2 }
 0x373   : > { %v3451_v31 = vmax.f32 %v3450_v53, %v2905_v60  ;;  %v2906_v46 = vmul.f32 %v1143_v10, %v9519_v51  ;;  %1390 = vbcast.lane.b32.xlu1 %v6955_v5, 264  ;;  %v3420_v60 = vrot.slane %v3419_v23, 4  ;;  %v3338_v53 = vrot.slane %v3337_v52, 2 }
 0x374   : > { %1386 = vbcast.lane.b32.xlu0 %v6955_v5, 256  ;;  %v3402_v40 = vmax.f32 %v3400_v44, %v3401_v14 }
 0x375   : > { %v3452_v35 = vmax.f32 %v3451_v31, %v2906_v46  ;;  %v1155_v57 = vpop.permute.xlu1 %1154  ;;  %v3421_v48 = vmax.f32 %v3419_v23, %v3420_v60  ;;  %v3317_v31 = vrot.slane %v3316_v38, 2  ;;  %v3380_v46 = vrot.slane %v3379_v26, 2 }
 0x376   : > { %v1151_v32 = vpop.permute.xlu0 %1150  ;;  %v2909_v33 = vmul.f32 %v1155_v57, %v9604_v7  ;;  %v3339_v0 = vmax.f32 %v3337_v52, %v3338_v53 }
 0x377   : > { %v3453_v29 = vmax.f32 %v3452_v35, %v2907_v4  ;;  %v2908_v45 = vmul.f32 %v1151_v32, %v9527_v25  ;;  %1398 = vbcast.lane.b32.xlu1 %v6955_v5, 280  ;;  %v3442_v4 = vmax.f32 %v3440_v16, %v3441_v12  ;;  %v3422_v35 = vrot.slane %v3421_v48, 2 }
 0x378   : > { %1394 = vbcast.lane.b32.xlu0 %v6955_v5, 272  ;;  %v3360_v32 = vmax.f32 %v3358_v62, %v3359_v59  ;;  %v3340_v34 = vrot.slane %v3339_v0, 1 }
 0x379   : > { %v3454_v30 = vmax.f32 %v3453_v29, %v2908_v45  ;;  %v1163_v22 = vpop.permute.xlu1 %1162  ;;  %v3443_v23 = vrot.slane %v3442_v4, 2  ;;  %v3381_v29 = vmax.f32 %v3379_v26, %v3380_v46 }
 0x37a   : > { %v1159_v6 = vpop.permute.xlu0 %1158  ;;  %v2911_v63 = vmul.f32 %v1163_v22, %v9617_v50  ;;  %v3361_v41 = vrot.slane %v3360_v32, 1  ;;  %v3341_v12 = vmax.f32 %v3339_v0, %v3340_v34 }
 0x37b   : > { %v3455_v28 = vmax.f32 %v3454_v30, %v2909_v33  ;;  %v2910_v17 = vmul.f32 %v1159_v6, %v9610_v11  ;;  %1406 = vbcast.lane.b32.xlu1 %v6955_v5, 296  ;;  %v3318_v33 = vmax.f32 %v3316_v38, %v3317_v31  ;;  %v3423_v30 = vmax.f32 %v3421_v48, %v3422_v35  ;;  %v9650_v31 = vld [vmem:[#allocation76_spill] sm:$0xff] }
 0x37c   : > { %1402 = vbcast.lane.b32.xlu0 %v6955_v5, 288  ;;  %v3444_v22 = vmax.f32 %v3442_v4, %v3443_v23  ;;  %v3382_v60 = vrot.slane %v3381_v29, 1  ;;  %v1451_v46 = vrot.slane %v9599_v18, %v9650_v31 }
 0x37d   : > { %v3456_v49 = vmax.f32 %v3455_v28, %v2910_v17  ;;  %v1171_v58 = vpop.permute.xlu1 %1170  ;;  %v3319_v6 = vrot.slane %v3318_v33, 1  ;;  %v3403_v28 = vrot.slane %v3402_v40, 1  ;;  %v3424_v26 = vrot.slane %v3423_v30, 1 }
 0x37e   : > { %v1167_v56 = vpop.permute.xlu0 %1166  ;;  %v2913_v19 = vmul.f32 %v1171_v58, %v9623_v2  ;;  %v3445_v53 = vrot.slane %v3444_v22, 1  ;;  %v3383_v58 = vmax.f32 %v3381_v29, %v3382_v60 }
 0x37f   : > { %v3457_v55 = vmax.f32 %v3456_v49, %v2911_v63  ;;  %v2912_v10 = vmul.f32 %v1167_v56, %v9625_v42  ;;  %1414 = vbcast.lane.b32.xlu1 %v6955_v5, 312  ;;  %v3362_v49 = vmax.f32 %v3360_v32, %v3361_v41  ;;  %v3320_v44 = vmax.f32 %v3318_v33, %v3319_v6 }
 0x380   : > { %1410 = vbcast.lane.b32.xlu0 %v6955_v5, 304 }
 0x381   : > { %v3458_v9 = vmax.f32 %v3457_v55, %v2912_v10  ;;  %v1179_v24 = vpop.permute.xlu1 %1178  ;;  %v3404_v55 = vmax.f32 %v3402_v40, %v3403_v28  ;;  %v3425_v10 = vmax.f32 %v3423_v30, %v3424_v26  ;;  %v4005_v4 = vsel %vm9366_vm9, %v3341_v12, %v3320_v44  ;;  %v9657_v12 = vld [vmem:[#allocation84_spill] sm:$0xff] }
 0x382   : > { %v1175_v37 = vpop.permute.xlu0 %1174  ;;  %v2915_v36 = vmul.f32 %v1179_v24, %v9631_v39  ;;  %v4007_v0 = vsel %vm4006_vm15, %v3362_v49, %v4005_v4  ;;  %vm9375_vm9 = vcmask 1047559  }
 0x383   : > { %v3459_v3 = vmax.f32 %v3458_v9, %v2913_v19  ;;  %v2914_v57 = vmul.f32 %v1175_v37, %v9634_v43  ;;  %1422 = vbcast.lane.b32.xlu1 %v6955_v5, 328  ;;  %v3446_v9 = vmax.f32 %v3444_v22, %v3445_v53  ;;  %v4009_v24 = vsel %vm4008_vm12, %v3383_v58, %v4007_v0 }
 0x384   : > { %1418 = vbcast.lane.b32.xlu0 %v6955_v5, 320 }
 0x385   : > { %v3460_v45 = vmax.f32 %v3459_v3, %v2914_v57  ;;  %v6986_v16 = vpop.permute.xlu1 %1189 }
 0x386   : > { %v6988_v27 = vpop.permute.xlu0 %1185 }
 0x387   : > { %v3461_v52 = vmax.f32 %v3460_v45, %v2915_v36  ;;  %1430 = vbcast.lane.b32.xlu1 %v6955_v5, 344  ;;  %v4011_v36 = vsel %vm4010_vm8, %v3404_v55, %v4009_v24 }
 0x388   : > { %1426 = vbcast.lane.b32.xlu0 %v6955_v5, 336 }
 0x389   : > { %v3462_v63 = vrot.slane %v3461_v52, 4  ;;  %v6992_v17 = vpop.permute.xlu1 %1197 }
 0x38a   : > { %v6994_v62 = vpop.permute.xlu0 %1193 }
 0x38b   : > { %v3463_v38 = vmax.f32 %v3461_v52, %v3462_v63  ;;  %1438 = vbcast.lane.b32.xlu1 %v6955_v5, 360 }
 0x38c   : > { %1434 = vbcast.lane.b32.xlu0 %v6955_v5, 352 }
 0x38d   : > { %v3464_v56 = vrot.slane %v3463_v38, 2  ;;  %v6998_v48 = vpop.permute.xlu1 %1205 }
 0x38e   : > { %v7000_v19 = vpop.permute.xlu0 %1201 }
 0x38f   : > { %v3465_v59 = vmax.f32 %v3463_v38, %v3464_v56  ;;  %1446 = vbcast.lane.b32.xlu1 %v6955_v5, 376  ;;  %v1518_v38 = vrot.slane %v9599_v18, %v9657_v12 }
 0x390   : > { %1442 = vbcast.lane.b32.xlu0 %v6955_v5, 368  ;;  %v4013_v5 = vsel %vm4012_vm13, %v3425_v10, %v4011_v36  ;;  %v5542_v36 = vld [vmem:[%s6404_s22 + $0x8] sm:$0xff] }
 0x391   : > { %v3466_v14 = vrot.slane %v3465_v59, 1  ;;  %v7009_v37 = vpop.permute.xlu1 %1213  ;;  %v4015_v57 = vsel %vm4014_vm11, %v3446_v9, %v4013_v5 }
 0x392   : > { %v7011_v35 = vpop.permute.xlu0 %1209 }
 0x393   : > { %v3467_v3 = vmax.f32 %v3465_v59, %v3466_v14  ;;  %1457 = vbcast.lane.b32.xlu1 %v1451_v46, 264 }
 0x394   : > { %1453 = vbcast.lane.b32.xlu0 %v1451_v46, 256 }
 0x395   : > { %v4017_v32 = vsel %vm9375_vm9, %v3467_v3, %v4015_v57  ;;  %v7017_v23 = vpop.permute.xlu1 %1221  ;;  %v9666_v3 = vld [vmem:[#allocation93_spill] sm:$0xff]  ;;  %vm9756_vm9 = vcmask 1041409  }
 0x396   : > { %5300 = vmatprep.mubr.f32.mxu0 %v4017_v32  ;;  %v7019_v33 = vpop.permute.xlu0 %1217  ;;  %v1585_v5 = vrot.slane %v5542_v36, %v9666_v3 }
 0x397   : > { %1465 = vbcast.lane.b32.xlu1 %v1451_v46, 280 }
 0x398   : > { %1461 = vbcast.lane.b32.xlu0 %v1451_v46, 272 }
 0x399   : > { %v7021_v29 = vpop.permute.xlu1 %1229 }
 0x39a   : > { %9651 = vst [vmem:[#allocation86_spill] sm:$0xff] %v7021_v29  ;;  %v7023_v45 = vpop.permute.xlu0 %1225 }
 0x39b   : > { %9652 = vst [vmem:[#allocation112_spill] sm:$0xff] %v7023_v45  ;;  %1473 = vbcast.lane.b32.xlu1 %v1451_v46, 296 }
 0x39c   : > { %1469 = vbcast.lane.b32.xlu0 %v1451_v46, 288 }
 0x39d   : > { %v7025_v40 = vpop.permute.xlu1 %1237 }
 0x39e   : > { %9653 = vst [vmem:[#allocation95_spill] sm:$0xff] %v7025_v40  ;;  %v7027_v34 = vpop.permute.xlu0 %1233 }
 0x39f   : > { %9654 = vst [vmem:[#allocation103_spill] sm:$0xff] %v7027_v34  ;;  %1481 = vbcast.lane.b32.xlu1 %v1451_v46, 312 }
 0x3a0   : > { %1477 = vbcast.lane.b32.xlu0 %v1451_v46, 304 }
 0x3a1   : > { %v7029_v30 = vpop.permute.xlu1 %1245 }
 0x3a2   : > { %9655 = vst [vmem:[#allocation113_spill] sm:$0xff] %v7029_v30  ;;  %v7031_v52 = vpop.permute.xlu0 %1241 }
 0x3a3   : > { %9656 = vst [vmem:[#allocation122_spill] sm:$0xff] %v7031_v52  ;;  %1489 = vbcast.lane.b32.xlu1 %v1451_v46, 328 }
 0x3a4   : > { %1485 = vbcast.lane.b32.xlu0 %v1451_v46, 320 }
 0x3a5   : > { %v7033_v41 = vpop.permute.xlu1 %1256 }
 0x3a6   : > { %v7035_v22 = vpop.permute.xlu0 %1252 }
 0x3a7   : > { %1497 = vbcast.lane.b32.xlu1 %v1451_v46, 344 }
 0x3a8   : > { %1493 = vbcast.lane.b32.xlu0 %v1451_v46, 336 }
 0x3a9   : > { %v7037_v6 = vpop.permute.xlu1 %1264 }
 0x3aa   : > { %v7039_v60 = vpop.permute.xlu0 %1260 }
 0x3ab   : > { %1505 = vbcast.lane.b32.xlu1 %v1451_v46, 360 }
 0x3ac   : > { %1501 = vbcast.lane.b32.xlu0 %v1451_v46, 352 }
 0x3ad   : > { %v7041_v63 = vpop.permute.xlu1 %1272 }
 0x3ae   : > { %v7043_v28 = vpop.permute.xlu0 %1268 }
 0x3af   : > { %1513 = vbcast.lane.b32.xlu1 %v1451_v46, 376 }
 0x3b0   : > { %1509 = vbcast.lane.b32.xlu0 %v1451_v46, 368 }
 0x3b1   : > { %v7047_v26 = vpop.permute.xlu1 %1280 }
 0x3b2   : > { %v7049_v49 = vpop.permute.xlu0 %1276 }
 0x3b3   : > { %1524 = vbcast.lane.b32.xlu1 %v1518_v38, 264 }
 0x3b4   : > { %1520 = vbcast.lane.b32.xlu0 %v1518_v38, 256 }
 0x3b5   : > { %v7051_v53 = vpop.permute.xlu1 %1288 }
 0x3b6   : > { %9658 = vst [vmem:[#allocation85_spill] sm:$0xff] %v7051_v53  ;;  %v7053_v44 = vpop.permute.xlu0 %1284 }
 0x3b7   : > { %9659 = vst [vmem:[#allocation77_spill] sm:$0xff] %v7053_v44  ;;  %1532 = vbcast.lane.b32.xlu1 %v1518_v38, 280 }
 0x3b8   : > { %1528 = vbcast.lane.b32.xlu0 %v1518_v38, 272 }
 0x3b9   : > { %v7055_v58 = vpop.permute.xlu1 %1296 }
 0x3ba   : > { %9660 = vst [vmem:[#allocation94_spill] sm:$0xff] %v7055_v58  ;;  %v7057_v56 = vpop.permute.xlu0 %1292 }
 0x3bb   : > { %9661 = vst [vmem:[#allocation105_spill] sm:$0xff] %v7057_v56  ;;  %1540 = vbcast.lane.b32.xlu1 %v1518_v38, 296 }
 0x3bc   : > { %1536 = vbcast.lane.b32.xlu0 %v1518_v38, 288 }
 0x3bd   : > { %v7059_v55 = vpop.permute.xlu1 %1304 }
 0x3be   : > { %9662 = vst [vmem:[#allocation115_spill] sm:$0xff] %v7059_v55  ;;  %v7061_v18 = vpop.permute.xlu0 %1300 }
 0x3bf   : > { %9663 = vst [vmem:[#allocation88_spill] sm:$0xff] %v7061_v18  ;;  %1548 = vbcast.lane.b32.xlu1 %v1518_v38, 312 }
 0x3c0   : > { %1544 = vbcast.lane.b32.xlu0 %v1518_v38, 304 }
 0x3c1   : > { %v7063_v10 = vpop.permute.xlu1 %1312 }
 0x3c2   : > { %9664 = vst [vmem:[#allocation79_spill] sm:$0xff] %v7063_v10  ;;  %v7065_v59 = vpop.permute.xlu0 %1308 }
 0x3c3   : > { %9665 = vst [vmem:[#allocation97_spill] sm:$0xff] %v7065_v59  ;;  %1556 = vbcast.lane.b32.xlu1 %v1518_v38, 328 }
 0x3c4   : > { %1552 = vbcast.lane.b32.xlu0 %v1518_v38, 320 }
 0x3c5   : > { %v7067_v4 = vpop.permute.xlu1 %1323 }
 0x3c6   : > { %v7069_v46 = vpop.permute.xlu0 %1319 }
 0x3c7   : > { %1564 = vbcast.lane.b32.xlu1 %v1518_v38, 344 }
 0x3c8   : > { %1560 = vbcast.lane.b32.xlu0 %v1518_v38, 336 }
 0x3c9   : > { %v7071_v9 = vpop.permute.xlu1 %1331 }
 0x3ca   : > { %v7073_v0 = vpop.permute.xlu0 %1327 }
 0x3cb   : > { %1572 = vbcast.lane.b32.xlu1 %v1518_v38, 360 }
 0x3cc   : > { %1568 = vbcast.lane.b32.xlu0 %v1518_v38, 352 }
 0x3cd   : > { %v7075_v14 = vpop.permute.xlu1 %1339 }
 0x3ce   : > { %v7077_v24 = vpop.permute.xlu0 %1335 }
 0x3cf   : > { %1580 = vbcast.lane.b32.xlu1 %v1518_v38, 376 }
 0x3d0   : > { %1576 = vbcast.lane.b32.xlu0 %v1518_v38, 368 }
 0x3d1   : > { %v7081_v57 = vpop.permute.xlu1 %1347 }
 0x3d2   : > { %v7083_v32 = vpop.permute.xlu0 %1343 }
 0x3d3   : > { %1591 = vbcast.lane.b32.xlu1 %v1585_v5, 264 }
 0x3d4   : > { %1587 = vbcast.lane.b32.xlu0 %v1585_v5, 256 }
 0x3d5   : > { %v7085_v12 = vpop.permute.xlu1 %1355 }
 0x3d6   : > { %9667 = vst [vmem:[#allocation104_spill] sm:$0xff] %v7085_v12  ;;  %v7087_v31 = vpop.permute.xlu0 %1351 }
 0x3d7   : > { %9668 = vst [vmem:[#allocation114_spill] sm:$0xff] %v7087_v31  ;;  %1599 = vbcast.lane.b32.xlu1 %v1585_v5, 280 }
 0x3d8   : > { %1595 = vbcast.lane.b32.xlu0 %v1585_v5, 272 }
 0x3d9   : > { %v7089_v54 = vpop.permute.xlu1 %1363 }
 0x3da   : > { %9669 = vst [vmem:[#allocation123_spill] sm:$0xff] %v7089_v54  ;;  %v7091_v10 = vpop.permute.xlu0 %1359 }
 0x3db   : > { %9670 = vst [vmem:[#allocation87_spill] sm:$0xff] %v7091_v10  ;;  %1607 = vbcast.lane.b32.xlu1 %v1585_v5, 296 }
 0x3dc   : > { %1603 = vbcast.lane.b32.xlu0 %v1585_v5, 288 }
 0x3dd   : > { %v7093_v38 = vpop.permute.xlu1 %1371 }
 0x3de   : > { %9671 = vst [vmem:[#allocation78_spill] sm:$0xff] %v7093_v38  ;;  %v7095_v3 = vpop.permute.xlu0 %1367 }
 0x3df   : > { %9672 = vst [vmem:[#allocation96_spill] sm:$0xff] %v7095_v3  ;;  %1615 = vbcast.lane.b32.xlu1 %v1585_v5, 312 }
 0x3e0   : > { %1611 = vbcast.lane.b32.xlu0 %v1585_v5, 304 }
 0x3e1   : > { %v7097_v59 = vpop.permute.xlu1 %1379 }
 0x3e2   : > { %9673 = vst [vmem:[#allocation107_spill] sm:$0xff] %v7097_v59  ;;  %v7099_v52 = vpop.permute.xlu0 %1375  ;;  %v9675_v59 = vld [vmem:[#allocation102_spill] sm:$0xff] }
 0x3e3   : > { %9674 = vst [vmem:[#allocation117_spill] sm:$0xff] %v7099_v52  ;;  %1623 = vbcast.lane.b32.xlu1 %v1585_v5, 328  ;;  %v1652_v52 = vrot.slane %v5542_v36, %v9675_v59 }
 0x3e4   : > { %1619 = vbcast.lane.b32.xlu0 %v1585_v5, 320 }
 0x3e5   : > { %v7101_v43 = vpop.permute.xlu1 %1390 }
 0x3e6   : > { %v7103_v55 = vpop.permute.xlu0 %1386 }
 0x3e7   : > { %1631 = vbcast.lane.b32.xlu1 %v1585_v5, 344 }
 0x3e8   : > { %1627 = vbcast.lane.b32.xlu0 %v1585_v5, 336 }
 0x3e9   : > { %v7105_v30 = vpop.permute.xlu1 %1398 }
 0x3ea   : > { %v7107_v39 = vpop.permute.xlu0 %1394 }
 0x3eb   : > { %1639 = vbcast.lane.b32.xlu1 %v1585_v5, 360 }
 0x3ec   : > { %1635 = vbcast.lane.b32.xlu0 %v1585_v5, 352 }
 0x3ed   : > { %v7109_v38 = vpop.permute.xlu1 %1406 }
 0x3ee   : > { %v7111_v3 = vpop.permute.xlu0 %1402 }
 0x3ef   : > { %1647 = vbcast.lane.b32.xlu1 %v1585_v5, 376 }
 0x3f0   : > { %1643 = vbcast.lane.b32.xlu0 %v1585_v5, 368 }
 0x3f1   : > { %v7114_v18 = vpop.permute.xlu1 %1414 }
 0x3f2   : > { %9676 = vst [vmem:[#allocation80_spill] sm:$0xff] %v7114_v18  ;;  %v7116_v40 = vpop.permute.xlu0 %1410 }
 0x3f3   : > { %1658 = vbcast.lane.b32.xlu1 %v1652_v52, 264 }
 0x3f4   : > { %1654 = vbcast.lane.b32.xlu0 %v1652_v52, 256 }
 0x3f5   : > { %v7118_v2 = vpop.permute.xlu1 %1422 }
 0x3f6   : > { %9677 = vst [vmem:[#allocation90_spill] sm:$0xff] %v7118_v2  ;;  %v7120_v54 = vpop.permute.xlu0 %1418 }
 0x3f7   : > { %9678 = vst [vmem:[#allocation81_spill] sm:$0xff] %v7120_v54  ;;  %1666 = vbcast.lane.b32.xlu1 %v1652_v52, 280 }
 0x3f8   : > { %1662 = vbcast.lane.b32.xlu0 %v1652_v52, 272 }
 0x3f9   : > { %v7122_v34 = vpop.permute.xlu1 %1430 }
 0x3fa   : > { %9679 = vst [vmem:[#allocation99_spill] sm:$0xff] %v7122_v34  ;;  %v7124_v42 = vpop.permute.xlu0 %1426 }
 0x3fb   : > { %9680 = vst [vmem:[#allocation106_spill] sm:$0xff] %v7124_v42  ;;  %1674 = vbcast.lane.b32.xlu1 %v1652_v52, 296 }
 0x3fc   : > { %1670 = vbcast.lane.b32.xlu0 %v1652_v52, 288 }
 0x3fd   : > { %v7126_v5 = vpop.permute.xlu1 %1438 }
 0x3fe   : > { %9681 = vst [vmem:[#allocation116_spill] sm:$0xff] %v7126_v5  ;;  %v7128_v36 = vpop.permute.xlu0 %1434 }
 0x3ff   : > { %9682 = vst [vmem:[#allocation82_spill] sm:$0xff] %v7128_v36  ;;  %1682 = vbcast.lane.b32.xlu1 %v1652_v52, 312  ;;  %v7143_v36 = vld [vmem:[%s6404_s22 + $0x10] sm:$0xff] }
 0x400   : > { %1678 = vbcast.lane.b32.xlu0 %v1652_v52, 304  ;;  %9685 = vst [vmem:[#allocation98_spill] sm:$0xff] %v7143_v36 }
 0x401   : > { %v7130_v59 = vpop.permute.xlu1 %1446 }
 0x402   : > { %9683 = vst [vmem:[#allocation89_spill] sm:$0xff] %v7130_v59  ;;  %v7132_v58 = vpop.permute.xlu0 %1442 }
 0x403   : > { %9684 = vst [vmem:[#allocation83_spill] sm:$0xff] %v7132_v58  ;;  %1690 = vbcast.lane.b32.xlu1 %v1652_v52, 328  ;;  %v9686_v58 = vld [vmem:[#allocation72_spill] sm:$0xff] }
 0x404   : > { %1686 = vbcast.lane.b32.xlu0 %v1652_v52, 320  ;;  %v1719_v56 = vrot.slane %v7143_v36, %v9686_v58 }
 0x405   : > { %v7134_v2 = vpop.permute.xlu1 %1457 }
 0x406   : > { %v7136_v34 = vpop.permute.xlu0 %1453 }
 0x407   : > { %1698 = vbcast.lane.b32.xlu1 %v1652_v52, 344 }
 0x408   : > { %1694 = vbcast.lane.b32.xlu0 %v1652_v52, 336 }
 0x409   : > { %v7138_v42 = vpop.permute.xlu1 %1465 }
 0x40a   : > { %v7140_v5 = vpop.permute.xlu0 %1461 }
 0x40b   : > { %1706 = vbcast.lane.b32.xlu1 %v1652_v52, 360 }
 0x40c   : > { %1702 = vbcast.lane.b32.xlu0 %v1652_v52, 352 }
 0x40d   : > { %v7145_v10 = vpop.permute.xlu1 %1473 }
 0x40e   : > { %v7147_v59 = vpop.permute.xlu0 %1469 }
 0x40f   : > { %1714 = vbcast.lane.b32.xlu1 %v1652_v52, 376 }
 0x410   : > { %1710 = vbcast.lane.b32.xlu0 %v1652_v52, 368 }
 0x411   : > { %v7151_v29 = vpop.permute.xlu1 %1481 }
 0x412   : > { %9687 = vst [vmem:[#allocation109_spill] sm:$0xff] %v7151_v29  ;;  %v7153_v50 = vpop.permute.xlu0 %1477 }
 0x413   : > { %9688 = vst [vmem:[#allocation119_spill] sm:$0xff] %v7153_v50  ;;  %1725 = vbcast.lane.b32.xlu1 %v1719_v56, 264 }
 0x414   : > { %1721 = vbcast.lane.b32.xlu0 %v1719_v56, 256 }
 0x415   : > { %v7155_v54 = vpop.permute.xlu1 %1489 }
 0x416   : > { %9689 = vst [vmem:[#allocation92_spill] sm:$0xff] %v7155_v54  ;;  %v7157_v12 = vpop.permute.xlu0 %1485 }
 0x417   : > { %9690 = vst [vmem:[#allocation101_spill] sm:$0xff] %v7157_v12  ;;  %1733 = vbcast.lane.b32.xlu1 %v1719_v56, 280 }
 0x418   : > { %1729 = vbcast.lane.b32.xlu0 %v1719_v56, 272 }
 0x419   : > { %v7159_v53 = vpop.permute.xlu1 %1497 }
 0x41a   : > { %9691 = vst [vmem:[#allocation108_spill] sm:$0xff] %v7159_v53  ;;  %v7161_v18 = vpop.permute.xlu0 %1493  ;;  %v2917_v53 = vmul.f32 %v6986_v16, %v9524_v1 }
 0x41b   : > { %9692 = vst [vmem:[#allocation118_spill] sm:$0xff] %v7161_v18  ;;  %1741 = vbcast.lane.b32.xlu1 %v1719_v56, 296  ;;  %v2916_v18 = vmul.f32 %v6988_v27, %v9525_v15  ;;  %v9697_v27 = vld [vmem:[#allocation73_spill] sm:$0xff] }
 0x41c   : > { %1737 = vbcast.lane.b32.xlu0 %v1719_v56, 288  ;;  %v7187_v44 = vrot.slane %v7143_v36, %v9697_v27 }
 0x41d   : > { %v7163_v52 = vpop.permute.xlu1 %1505  ;;  %v3468_v8 = vmax.f32 %v2916_v18, %v2917_v53  ;;  %v2920_v53 = vmul.f32 %v7000_v19, %v9521_v13  ;;  %v2949_v19 = vmul.f32 %v7067_v4, %v9524_v1 }
 0x41e   : > { %9693 = vst [vmem:[#allocation91_spill] sm:$0xff] %v7163_v52  ;;  %v7165_v58 = vpop.permute.xlu0 %1501  ;;  %v2918_v52 = vmul.f32 %v6994_v62, %v9523_v47 }
 0x41f   : > { %9694 = vst [vmem:[#allocation100_spill] sm:$0xff] %v7165_v58  ;;  %1749 = vbcast.lane.b32.xlu1 %v1719_v56, 312 }
 0x420   : > { %1745 = vbcast.lane.b32.xlu0 %v1719_v56, 304  ;;  %v3469_v45 = vmax.f32 %v3468_v8, %v2918_v52  ;;  %v2933_v8 = vmul.f32 %v7033_v41, %v9524_v1 }
 0x421   : > { %v7167_v29 = vpop.permute.xlu1 %1513 }
 0x422   : > { %9695 = vst [vmem:[#allocation111_spill] sm:$0xff] %v7167_v29  ;;  %v7169_v31 = vpop.permute.xlu0 %1509 }
 0x423   : > { %9696 = vst [vmem:[#allocation121_spill] sm:$0xff] %v7169_v31  ;;  %1757 = vbcast.lane.b32.xlu1 %v1719_v56, 328  ;;  %v2919_v31 = vmul.f32 %v6992_v17, %v9522_v21  ;;  %v2932_v17 = vmul.f32 %v7035_v22, %v9525_v15 }
 0x424   : > { %1753 = vbcast.lane.b32.xlu0 %v1719_v56, 320 }
 0x425   : > { %v1525_v54 = vpop.permute.xlu1 %1524  ;;  %v3470_v62 = vmax.f32 %v3469_v45, %v2919_v31  ;;  %v2934_v31 = vmul.f32 %v7039_v60, %v9523_v47  ;;  %v2948_v45 = vmul.f32 %v7069_v46, %v9525_v15  ;;  %v3489_v27 = vmax.f32 %v2932_v17, %v2933_v8 }
 0x426   : > { %v1521_v12 = vpop.permute.xlu0 %1520  ;;  %v2935_v60 = vmul.f32 %v7037_v6, %v9522_v21  ;;  %v2965_v17 = vmul.f32 %v7101_v43, %v9524_v1  ;;  %v2964_v6 = vmul.f32 %v7103_v55, %v9525_v15  ;;  %v2936_v43 = vmul.f32 %v7043_v28, %v9521_v13 }
 0x427   : > { %1765 = vbcast.lane.b32.xlu1 %v1719_v56, 344  ;;  %v3471_v41 = vmax.f32 %v3470_v62, %v2920_v53  ;;  %v3490_v4 = vmax.f32 %v3489_v27, %v2934_v31  ;;  %v3510_v46 = vmax.f32 %v2948_v45, %v2949_v19  ;;  %v2951_v62 = vmul.f32 %v7071_v9, %v9522_v21 }
 0x428   : > { %1761 = vbcast.lane.b32.xlu0 %v1719_v56, 336  ;;  %v2981_v27 = vmul.f32 %v7134_v2, %v9524_v1  ;;  %v2997_v31 = vmul.f32 %v1525_v54, %v9524_v1  ;;  %v2996_v9 = vmul.f32 %v1521_v12, %v9525_v15  ;;  %v2966_v55 = vmul.f32 %v7107_v39, %v9523_v47 }
 0x429   : > { %v7177_v58 = vpop.permute.xlu1 %1532  ;;  %v2982_v2 = vmul.f32 %v7140_v5, %v9523_v47  ;;  %v2923_v12 = vmul.f32 %v7009_v37, %v9526_v20  ;;  %v2952_v28 = vmul.f32 %v7077_v24, %v9521_v13 }
 0x42a   : > { %v1529_v29 = vpop.permute.xlu0 %1528  ;;  %v3573_v39 = vmax.f32 %v2996_v9, %v2997_v31  ;;  %v2999_v24 = vmul.f32 %v7177_v58, %v9522_v21  ;;  %v2938_v58 = vmul.f32 %v7049_v49, %v9519_v51 }
 0x42b   : > { %1773 = vbcast.lane.b32.xlu1 %v1719_v56, 360 }
 0x42c   : > { %1769 = vbcast.lane.b32.xlu0 %v1719_v56, 352 }
 0x42d   : > { %v7181_v11 = vpop.permute.xlu1 %1540 }
 0x42e   : > { %v7183_v16 = vpop.permute.xlu0 %1536 }
 0x42f   : > { %1781 = vbcast.lane.b32.xlu1 %v1719_v56, 376 }
 0x430   : > { %1777 = vbcast.lane.b32.xlu0 %v1719_v56, 368  ;;  %v2921_v56 = vmul.f32 %v6998_v48, %v9520_v61  ;;  %v2922_v48 = vmul.f32 %v7011_v35, %v9519_v51  ;;  %v2980_v35 = vmul.f32 %v7136_v34, %v9525_v15  ;;  %v2998_v34 = vmul.f32 %v1529_v29, %v9523_v47 }
 0x431   : > { %v7191_v18 = vpop.permute.xlu1 %1548  ;;  %v2937_v29 = vmul.f32 %v7041_v63, %v9520_v61  ;;  %v2924_v63 = vmul.f32 %v7019_v33, %v9527_v25  ;;  %v2984_v33 = vmul.f32 %v7147_v59, %v9521_v13  ;;  %v2954_v59 = vmul.f32 %v7083_v32, %v9519_v51 }
 0x432   : > { %9698 = vst [vmem:[#allocation110_spill] sm:$0xff] %v7191_v18  ;;  %v7193_v50 = vpop.permute.xlu0 %1544  ;;  %v2950_v18 = vmul.f32 %v7073_v0, %v9523_v47  ;;  %v3472_v36 = vmax.f32 %v3471_v41, %v2921_v56  ;;  %v3531_v41 = vmax.f32 %v2964_v6, %v2965_v17 }
 0x433   : > { %1792 = vbcast.lane.b32.xlu1 %v7187_v44, 264 }
 0x434   : > { %1788 = vbcast.lane.b32.xlu0 %v7187_v44, 256  ;;  %v3511_v0 = vmax.f32 %v3510_v46, %v2950_v18  ;;  %v3491_v18 = vmax.f32 %v3490_v4, %v2935_v60  ;;  %v3473_v45 = vmax.f32 %v3472_v36, %v2922_v48  ;;  %v3552_v60 = vmax.f32 %v2980_v35, %v2981_v27 }
 0x435   : > { %v7209_v52 = vpop.permute.xlu1 %1556  ;;  %v2967_v4 = vmul.f32 %v7105_v30, %v9522_v21  ;;  %v3532_v37 = vmax.f32 %v3531_v41, %v2966_v55  ;;  %v2983_v36 = vmul.f32 %v7138_v42, %v9522_v21  ;;  %v3574_v48 = vmax.f32 %v3573_v39, %v2998_v34 }
 0x436   : > { %v7211_v22 = vpop.permute.xlu0 %1552  ;;  %v3512_v56 = vmax.f32 %v3511_v0, %v2951_v62  ;;  %v3492_v5 = vmax.f32 %v3491_v18, %v2936_v43  ;;  %v3553_v46 = vmax.f32 %v3552_v60, %v2982_v2  ;;  %v3474_v17 = vmax.f32 %v3473_v45, %v2923_v12 }
 0x437   : > { %1800 = vbcast.lane.b32.xlu1 %v7187_v44, 280  ;;  %v2953_v30 = vmul.f32 %v7075_v14, %v9520_v61  ;;  %v3533_v27 = vmax.f32 %v3532_v37, %v2967_v4  ;;  %v2968_v35 = vmul.f32 %v7111_v3, %v9521_v13  ;;  %v3575_v9 = vmax.f32 %v3574_v48, %v2999_v24  ;;  %v9699_v48 = vld [vmem:[#allocation119_spill] sm:$0xff] }
 0x438   : > { %1796 = vbcast.lane.b32.xlu0 %v7187_v44, 272  ;;  %v3513_v6 = vmax.f32 %v3512_v56, %v2952_v28  ;;  %v3493_v42 = vmax.f32 %v3492_v5, %v2937_v29  ;;  %v3554_v31 = vmax.f32 %v3553_v46, %v2983_v36  ;;  %v3000_v14 = vmul.f32 %v7183_v16, %v9521_v13 }
 0x439   : > { %v7223_v53 = vpop.permute.xlu1 %1564  ;;  %v7284_v55 = vmul.f32 %v7017_v23, %v9604_v7  ;;  %v7288_v34 = vmax.f32 %v3474_v17, %v2924_v63  ;;  %v2939_v16 = vmul.f32 %v7047_v26, %v9526_v20  ;;  %v2969_v23 = vmul.f32 %v7109_v38, %v9520_v61 }
 0x43a   : > { %v7225_v8 = vpop.permute.xlu0 %1560  ;;  %v3514_v3 = vmax.f32 %v3513_v6, %v2953_v30  ;;  %v3494_v12 = vmax.f32 %v3493_v42, %v2938_v58  ;;  %v3534_v45 = vmax.f32 %v3533_v27, %v2968_v35  ;;  %v2985_v56 = vmul.f32 %v7145_v10, %v9520_v61  ;;  %v9700_v42 = vld [vmem:[#allocation77_spill] sm:$0xff] }
 0x43b   : > { %1808 = vbcast.lane.b32.xlu1 %v7187_v44, 296  ;;  %v3555_v41 = vmax.f32 %v3554_v31, %v2984_v33  ;;  %v3001_v28 = vmul.f32 %v7181_v11, %v9520_v61  ;;  %v3576_v32 = vmax.f32 %v3575_v9, %v3000_v14  ;;  %v3476_v4 = vmax.f32 %v7288_v34, %v7284_v55  ;;  %v9702_v33 = vld [vmem:[#allocation112_spill] sm:$0xff]  ;;  %v9705_v55 = vld [vmem:[#allocation114_spill] sm:$0xff] }
 0x43c   : > { %1804 = vbcast.lane.b32.xlu0 %v7187_v44, 288  ;;  %v2955_v38 = vmul.f32 %v7081_v57, %v9526_v20  ;;  %v3515_v37 = vmax.f32 %v3514_v3, %v2954_v59  ;;  %v3495_v11 = vmax.f32 %v3494_v12, %v2939_v16  ;;  %v3535_v10 = vmax.f32 %v3534_v45, %v2969_v23  ;;  %v9707_v16 = vld [vmem:[#allocation109_spill] sm:$0xff]  ;;  %v9708_v45 = vld [vmem:[#allocation110_spill] sm:$0xff] }
 0x43d   : > { %v7246_v19 = vpop.permute.xlu1 %1572  ;;  %v2970_v36 = vmul.f32 %v7116_v40, %v9519_v51  ;;  %v3556_v24 = vmax.f32 %v3555_v41, %v2985_v56  ;;  %v2986_v17 = vmul.f32 %v9699_v48, %v9519_v51  ;;  %v3577_v63 = vmax.f32 %v3576_v32, %v3001_v28  ;;  %v9701_v40 = vld [vmem:[#allocation67_spill] sm:$0xff]  ;;  %v9709_v32 = vld [vmem:[#allocation85_spill] sm:$0xff] }
 0x43e   : > { %v7248_v54 = vpop.permute.xlu0 %1568  ;;  %v3002_v30 = vmul.f32 %v7193_v50, %v9519_v51  ;;  %v2940_v58 = vmul.f32 %v9700_v42, %v9527_v25  ;;  %v2926_v9 = vmul.f32 %v9702_v33, %v9701_v40  ;;  %v3516_v14 = vmax.f32 %v3515_v37, %v2955_v38  ;;  %v9704_v50 = vld [vmem:[#allocation98_spill] sm:$0xff] }
 0x43f   : > { %1816 = vbcast.lane.b32.xlu1 %v7187_v44, 312  ;;  %v3536_v3 = vmax.f32 %v3535_v10, %v2970_v36  ;;  %v2987_v12 = vmul.f32 %v9707_v16, %v9526_v20  ;;  %v3557_v23 = vmax.f32 %v3556_v24, %v2986_v17  ;;  %v3003_v56 = vmul.f32 %v9708_v45, %v9526_v20 }
 0x440   : > { %1812 = vbcast.lane.b32.xlu0 %v7187_v44, 304  ;;  %v3005_v45 = vmul.f32 %v7209_v52, %v9604_v7  ;;  %v9722_v52 = vld [vmem:[#allocation123_spill] sm:$0xff] }
 0x441   : > { %v7264_v62 = vpop.permute.xlu1 %1580  ;;  %v3558_v17 = vmax.f32 %v3557_v23, %v2987_v12 }
 0x442   : > { %v7266_v0 = vpop.permute.xlu0 %1576 }
 0x443   : > { %1824 = vbcast.lane.b32.xlu1 %v7187_v44, 328 }
 0x444   : > { %1820 = vbcast.lane.b32.xlu0 %v7187_v44, 320 }
 0x445   : > { %v1592_v18 = vpop.permute.xlu1 %1591 }
 0x446   : > { %v1588_v43 = vpop.permute.xlu0 %1587  ;;  %v3013_v49 = vmul.f32 %v1592_v18, %v9524_v1  ;;  %v9703_v18 = vld [vmem:[#allocation74_spill] sm:$0xff] }
 0x447   : > { %v3012_v2 = vmul.f32 %v1588_v43, %v9525_v15  ;;  %1832 = vbcast.lane.b32.xlu1 %v7187_v44, 344  ;;  %v7326_v43 = vrot.slane %v9704_v50, %v9703_v18 }
 0x448   : > { %1828 = vbcast.lane.b32.xlu0 %v7187_v44, 336 }
 0x449   : > { %v1600_v60 = vpop.permute.xlu1 %1599  ;;  %v3594_v29 = vmax.f32 %v3012_v2, %v3013_v49  ;;  %v2956_v49 = vmul.f32 %v9705_v55, %v9527_v25  ;;  %v9706_v2 = vld [vmem:[#allocation80_spill] sm:$0xff] }
 0x44a   : > { %v1596_v39 = vpop.permute.xlu0 %1595  ;;  %v3015_v5 = vmul.f32 %v1600_v60, %v9522_v21  ;;  %v2971_v34 = vmul.f32 %v9706_v2, %v9526_v20  ;;  %v2941_v60 = vmul.f32 %v9709_v32, %v9604_v7  ;;  %v9719_v32 = vld [vmem:[#allocation94_spill] sm:$0xff] }
 0x44b   : > { %v3014_v26 = vmul.f32 %v1596_v39, %v9523_v47  ;;  %1840 = vbcast.lane.b32.xlu1 %v7187_v44, 360  ;;  %v3496_v39 = vmax.f32 %v3495_v11, %v2940_v58  ;;  %v3517_v10 = vmax.f32 %v3516_v14, %v2956_v49  ;;  %v9712_v11 = vld [vmem:[#allocation101_spill] sm:$0xff]  ;;  %v9713_v58 = vld [vmem:[#allocation66_spill] sm:$0xff] }
 0x44c   : > { %1836 = vbcast.lane.b32.xlu0 %v7187_v44, 352  ;;  %v3537_v36 = vmax.f32 %v3536_v3, %v2971_v34  ;;  %v9715_v14 = vld [vmem:[#allocation105_spill] sm:$0xff] }
 0x44d   : > { %v3595_v46 = vmax.f32 %v3594_v29, %v3014_v26  ;;  %v1608_v57 = vpop.permute.xlu1 %1607  ;;  %v9710_v26 = vld [vmem:[#allocation104_spill] sm:$0xff]  ;;  %v3497_v33 = vmax.f32 %v3496_v39, %v2941_v60  ;;  %v2942_v55 = vmul.f32 %v9715_v14, %v9701_v40  ;;  %v2943_v60 = vmul.f32 %v9719_v32, %v9713_v58  ;;  %v9731_v32 = vld [vmem:[#allocation70_spill] sm:$0xff] }
 0x44e   : > { %v1604_v6 = vpop.permute.xlu0 %1603  ;;  %v3017_v27 = vmul.f32 %v1608_v57, %v9520_v61  ;;  %v2957_v38 = vmul.f32 %v9710_v26, %v9604_v7  ;;  %v3004_v57 = vmul.f32 %v7211_v22, %v9527_v25  ;;  %v9716_v22 = vld [vmem:[#allocation87_spill] sm:$0xff]  ;;  %v9727_v14 = vld [vmem:[#allocation88_spill] sm:$0xff] }
 0x44f   : > { %v3596_v35 = vmax.f32 %v3595_v46, %v3015_v5  ;;  %v3016_v31 = vmul.f32 %v1604_v6, %v9521_v13  ;;  %1848 = vbcast.lane.b32.xlu1 %v7187_v44, 376  ;;  %v9711_v46 = vld [vmem:[#allocation81_spill] sm:$0xff]  ;;  %v2958_v3 = vmul.f32 %v9716_v22, %v9701_v40  ;;  %v3498_v39 = vmax.f32 %v3497_v33, %v2942_v55  ;;  %v9728_v22 = vld [vmem:[#allocation96_spill] sm:$0xff] }
 0x450   : > { %1844 = vbcast.lane.b32.xlu0 %v7187_v44, 368  ;;  %v3578_v44 = vmax.f32 %v3577_v63, %v3002_v30  ;;  %v2972_v24 = vmul.f32 %v9711_v46, %v9527_v25  ;;  %v2988_v63 = vmul.f32 %v9712_v11, %v9527_v25  ;;  %v3518_v34 = vmax.f32 %v3517_v10, %v2957_v38  ;;  %v9724_v11 = vld [vmem:[#allocation118_spill] sm:$0xff] }
 0x451   : > { %v3597_v59 = vmax.f32 %v3596_v35, %v3016_v31  ;;  %v1616_v41 = vpop.permute.xlu1 %1615  ;;  %v3477_v31 = vmax.f32 %v3476_v4, %v2926_v9  ;;  %v9718_v4 = vld [vmem:[#allocation92_spill] sm:$0xff]  ;;  %v2959_v10 = vmul.f32 %v9722_v52, %v9713_v58  ;;  %v3499_v33 = vmax.f32 %v3498_v39, %v2943_v60  ;;  %v9732_v60 = vld [vmem:[#allocation113_spill] sm:$0xff] }
 0x452   : > { %v1612_v28 = vpop.permute.xlu0 %1611  ;;  %v3019_v37 = vmul.f32 %v1616_v41, %v9526_v20  ;;  %v3579_v30 = vmax.f32 %v3578_v44, %v3003_v56  ;;  %v3538_v12 = vmax.f32 %v3537_v36, %v2972_v24  ;;  %v2989_v9 = vmul.f32 %v9718_v4, %v9604_v7  ;;  %v9723_v24 = vld [vmem:[#allocation106_spill] sm:$0xff]  ;;  %v9730_v4 = vld [vmem:[#allocation108_spill] sm:$0xff] }
 0x453   : > { %v3598_v29 = vmax.f32 %v3597_v59, %v3017_v27  ;;  %v3018_v5 = vmul.f32 %v1612_v28, %v9519_v51  ;;  %1859 = vbcast.lane.b32.xlu1 %v7326_v43, 264  ;;  %v9714_v27 = vld [vmem:[#allocation86_spill] sm:$0xff]  ;;  %v3559_v23 = vmax.f32 %v3558_v17, %v2988_v63  ;;  %v3519_v36 = vmax.f32 %v3518_v34, %v2958_v3 }
 0x454   : > { %1855 = vbcast.lane.b32.xlu0 %v7326_v43, 256  ;;  %v2927_v35 = vmul.f32 %v9714_v27, %v9713_v58  ;;  %v9717_v59 = vld [vmem:[#allocation90_spill] sm:$0xff]  ;;  %v3580_v56 = vmax.f32 %v3579_v30, %v3004_v57  ;;  %v2990_v63 = vmul.f32 %v9724_v11, %v9701_v40  ;;  %v3006_v57 = vmul.f32 %v7225_v8, %v9701_v40  ;;  %v9725_v27 = vld [vmem:[#allocation68_spill] sm:$0xff] }
 0x455   : > { %v3599_v48 = vmax.f32 %v3598_v29, %v3018_v5  ;;  %v1624_v6 = vpop.permute.xlu1 %1623  ;;  %v2973_v16 = vmul.f32 %v9717_v59, %v9604_v7  ;;  %v9720_v29 = vld [vmem:[#allocation69_spill] sm:$0xff]  ;;  %v9721_v5 = vld [vmem:[#allocation103_spill] sm:$0xff]  ;;  %v3560_v17 = vmax.f32 %v3559_v23, %v2989_v9  ;;  %v3520_v8 = vmax.f32 %v3519_v36, %v2959_v10 }
 0x456   : > { %v1620_v42 = vpop.permute.xlu0 %1619  ;;  %v3478_v28 = vmax.f32 %v3477_v31, %v2927_v35  ;;  %v2928_v26 = vmul.f32 %v9721_v5, %v9720_v29  ;;  %v3021_v38 = vmul.f32 %v1624_v6, %v9604_v7  ;;  %v3581_v30 = vmax.f32 %v3580_v56, %v3005_v45  ;;  %v9726_v35 = vld [vmem:[#allocation95_spill] sm:$0xff] }
 0x457   : > { %v3600_v49 = vmax.f32 %v3599_v48, %v3019_v37  ;;  %v3020_v2 = vmul.f32 %v1620_v42, %v9527_v25  ;;  %1867 = vbcast.lane.b32.xlu1 %v7326_v43, 280  ;;  %v3539_v46 = vmax.f32 %v3538_v12, %v2973_v16  ;;  %v2974_v48 = vmul.f32 %v9723_v24, %v9701_v40  ;;  %v9729_v59 = vld [vmem:[#allocation99_spill] sm:$0xff] }
 0x458   : > { %1863 = vbcast.lane.b32.xlu0 %v7326_v43, 272  ;;  %v7382_v31 = vmul.f32 %v9726_v35, %v9725_v27  ;;  %v2944_v55 = vmul.f32 %v9727_v14, %v9720_v29  ;;  %v2960_v3 = vmul.f32 %v9728_v22, %v9720_v29  ;;  %v2975_v16 = vmul.f32 %v9729_v59, %v9713_v58  ;;  %v9733_v5 = vld [vmem:[#allocation115_spill] sm:$0xff]  ;;  %v9738_v14 = vld [vmem:[#allocation122_spill] sm:$0xff] }
 0x459   : > { %v1632_v44 = vpop.permute.xlu1 %1631  ;;  %v3601_v37 = vmax.f32 %v3600_v49, %v3020_v2  ;;  %v7386_v49 = vmax.f32 %v3478_v28, %v2928_v26  ;;  %v3540_v12 = vmax.f32 %v3539_v46, %v2974_v48  ;;  %v2991_v9 = vmul.f32 %v9730_v4, %v9713_v58  ;;  %v9735_v48 = vld [vmem:[#allocation82_spill] sm:$0xff]  ;;  %v9741_v4 = vld [vmem:[#allocation116_spill] sm:$0xff] }
 0x45a   : > { %v1628_v41 = vpop.permute.xlu0 %1627  ;;  %v3561_v23 = vmax.f32 %v3560_v17, %v2990_v63  ;;  %v3007_v45 = vmul.f32 %v7223_v53, %v9713_v58  ;;  %v3582_v56 = vmax.f32 %v3581_v30, %v3006_v57  ;;  %v7403_v39 = vmul.f32 %v9732_v60, %v9731_v32  ;;  %v9734_v53 = vld [vmem:[#allocation78_spill] sm:$0xff]  ;;  %v9736_v63 = vld [vmem:[#allocation100_spill] sm:$0xff] }
 0x45b   : > { %1875 = vbcast.lane.b32.xlu1 %v7326_v43, 296  ;;  %v3602_v2 = vmax.f32 %v3601_v37, %v3021_v38  ;;  %v3022_v34 = vmul.f32 %v1628_v41, %v9701_v40  ;;  %v2945_v26 = vmul.f32 %v9733_v5, %v9725_v27  ;;  %v3500_v38 = vmax.f32 %v3499_v33, %v2944_v55  ;;  %v9737_v33 = vld [vmem:[#allocation71_spill] sm:$0xff] }
 0x45c   : > { %1871 = vbcast.lane.b32.xlu0 %v7326_v43, 288  ;;  %v3480_v37 = vmax.f32 %v7386_v49, %v7382_v31  ;;  %v3023_v52 = vmul.f32 %v1632_v44, %v9713_v58  ;;  %v2961_v36 = vmul.f32 %v9734_v53, %v9725_v27  ;;  %v3521_v46 = vmax.f32 %v3520_v8, %v2960_v3  ;;  %v9739_v8 = vld [vmem:[#allocation97_spill] sm:$0xff] }
 0x45d   : > { %v1640_v6 = vpop.permute.xlu1 %1639  ;;  %v3603_v10 = vmax.f32 %v3602_v2, %v3022_v34  ;;  %v3541_v24 = vmax.f32 %v3540_v12, %v2975_v16  ;;  %v2976_v17 = vmul.f32 %v9735_v48, %v9720_v29  ;;  %v3562_v11 = vmax.f32 %v3561_v23, %v2991_v9  ;;  %v9740_v16 = vld [vmem:[#allocation117_spill] sm:$0xff] }
 0x45e   : > { %v1636_v42 = vpop.permute.xlu0 %1635  ;;  %v2992_v30 = vmul.f32 %v9736_v63, %v9720_v29  ;;  %v3583_v57 = vmax.f32 %v3582_v56, %v3007_v45  ;;  %v3008_v44 = vmul.f32 %v7248_v54, %v9720_v29  ;;  %v2930_v55 = vmul.f32 %v9738_v14, %v9737_v33  ;;  %v9742_v45 = vld [vmem:[#allocation91_spill] sm:$0xff]  ;;  %v9746_v14 = vld [vmem:[#allocation121_spill] sm:$0xff] }
 0x45f   : > { %1883 = vbcast.lane.b32.xlu1 %v7326_v43, 312  ;;  %v3501_v49 = vmax.f32 %v3500_v38, %v2945_v26  ;;  %v2946_v22 = vmul.f32 %v9739_v8, %v9737_v33  ;;  %v3604_v3 = vmax.f32 %v3603_v10, %v3023_v52  ;;  %v3024_v59 = vmul.f32 %v1636_v42, %v9720_v29  ;;  %v9743_v52 = vld [vmem:[#allocation79_spill] sm:$0xff] }
 0x460   : > { %1879 = vbcast.lane.b32.xlu0 %v7326_v43, 304  ;;  %v3522_v54 = vmax.f32 %v3521_v46, %v2961_v36  ;;  %v2962_v12 = vmul.f32 %v9740_v16, %v9737_v33  ;;  %v2977_v9 = vmul.f32 %v9741_v4, %v9725_v27  ;;  %v3542_v23 = vmax.f32 %v3541_v24, %v2976_v17 }
 0x461   : > { %v7399_v41 = vpop.permute.xlu1 %1647  ;;  %v2993_v56 = vmul.f32 %v9742_v45, %v9725_v27  ;;  %v3563_v60 = vmax.f32 %v3562_v11, %v2992_v30  ;;  %v3009_v5 = vmul.f32 %v7246_v19, %v9725_v27  ;;  %v3584_v42 = vmax.f32 %v3583_v57, %v3008_v44  ;;  %v9744_v19 = vld [vmem:[#allocation107_spill] sm:$0xff] }
 0x462   : > { %v1644_v28 = vpop.permute.xlu0 %1643  ;;  %v2947_v10 = vmul.f32 %v9743_v52, %v9731_v32  ;;  %v3502_v48 = vmax.f32 %v3501_v49, %v2946_v22  ;;  %v3025_v24 = vmul.f32 %v1640_v6, %v9725_v27  ;;  %v3605_v17 = vmax.f32 %v3604_v3, %v3024_v59  ;;  %v9745_v30 = vld [vmem:[#allocation83_spill] sm:$0xff] }
 0x463   : > { %1891 = vbcast.lane.b32.xlu1 %v7326_v43, 328  ;;  %v2963_v11 = vmul.f32 %v9744_v19, %v9731_v32  ;;  %v3543_v63 = vmax.f32 %v3542_v23, %v2977_v9  ;;  %v2978_v57 = vmul.f32 %v9745_v30, %v9737_v33  ;;  %v2994_v49 = vmul.f32 %v9746_v14, %v9737_v33  ;;  %v9748_v23 = vld [vmem:[#allocation89_spill] sm:$0xff] }
 0x464   : > { %1887 = vbcast.lane.b32.xlu0 %v7326_v43, 320  ;;  %v3010_v8 = vmul.f32 %v7266_v0, %v9737_v33  ;;  %v3606_v16 = vmax.f32 %v3605_v17, %v3025_v24  ;;  %v3026_v4 = vmul.f32 %v1644_v28, %v9737_v33  ;;  %v3481_v9 = vmax.f32 %v3480_v37, %v2930_v55 }
 0x465   : > { %v1659_v35 = vpop.permute.xlu1 %1658  ;;  %v2979_v0 = vmul.f32 %v9748_v23, %v9731_v32  ;;  %v3544_v45 = vmax.f32 %v3543_v63, %v2978_v57  ;;  %v3011_v28 = vmul.f32 %v7264_v62, %v9731_v32 }
 0x466   : > { %v1655_v31 = vpop.permute.xlu0 %1654  ;;  %v3029_v2 = vmul.f32 %v1659_v35, %v9524_v1  ;;  %v3523_v35 = vmax.f32 %v3522_v54, %v2962_v12  ;;  %v9747_v54 = vld [vmem:[#allocation75_spill] sm:$0xff] }
 0x467   : > { %v3028_v34 = vmul.f32 %v1655_v31, %v9525_v15  ;;  %1899 = vbcast.lane.b32.xlu1 %v7326_v43, 344  ;;  %v3564_v31 = vmax.f32 %v3563_v60, %v2993_v56  ;;  %v7459_v12 = vrot.slane %v9704_v50, %v9747_v54  ;;  %v3503_v60 = vmax.f32 %v3502_v48, %v2947_v10 }
 0x468   : > { %1895 = vbcast.lane.b32.xlu0 %v7326_v43, 336  ;;  %v3524_v55 = vmax.f32 %v3523_v35, %v2963_v11  ;;  %v3607_v10 = vmax.f32 %v3606_v16, %v3026_v4  ;;  %v3482_v48 = vmax.f32 %v3481_v9, %v7403_v39  ;;  %v3545_v62 = vmax.f32 %v3544_v45, %v2979_v0 }
 0x469   : > { %v1667_v26 = vpop.permute.xlu1 %1666  ;;  %v3615_v53 = vmax.f32 %v3028_v34, %v3029_v2  ;;  %v3585_v2 = vmax.f32 %v3584_v42, %v3009_v5  ;;  %v9749_v5 = vld [vmem:[#allocation111_spill] sm:$0xff]  ;;  %v3504_v17 = vrot.slane %v3503_v60, 4 }
 0x46a   : > { %v1663_v38 = vpop.permute.xlu0 %1662  ;;  %v3031_v36 = vmul.f32 %v1667_v26, %v9522_v21  ;;  %v2995_v42 = vmul.f32 %v9749_v5, %v9731_v32  ;;  %v3565_v26 = vmax.f32 %v3564_v31, %v2994_v49  ;;  %v3483_v14 = vrot.slane %v3482_v48, 4 }
 0x46b   : > { %v3030_v46 = vmul.f32 %v1663_v38, %v9523_v47  ;;  %1907 = vbcast.lane.b32.xlu1 %v7326_v43, 360  ;;  %v3586_v52 = vmax.f32 %v3585_v2, %v3010_v8  ;;  %v3546_v39 = vrot.slane %v3545_v62, 4  ;;  %v3505_v2 = vmax.f32 %v3503_v60, %v3504_v17 }
 0x46c   : > { %1903 = vbcast.lane.b32.xlu0 %v7326_v43, 352  ;;  %v3566_v19 = vmax.f32 %v3565_v26, %v2995_v42  ;;  %v3484_v23 = vmax.f32 %v3482_v48, %v3483_v14 }
 0x46d   : > { %v3616_v44 = vmax.f32 %v3615_v53, %v3030_v46  ;;  %v1675_v6 = vpop.permute.xlu1 %1674  ;;  %v3027_v46 = vmul.f32 %v7399_v41, %v9731_v32  ;;  %v3587_v57 = vmax.f32 %v3586_v52, %v3011_v28  ;;  %v3525_v41 = vrot.slane %v3524_v55, 4 }
 0x46e   : > { %v1671_v34 = vpop.permute.xlu0 %1670  ;;  %v3033_v22 = vmul.f32 %v1675_v6, %v9520_v61  ;;  %v3567_v6 = vrot.slane %v3566_v19, 4  ;;  %v3547_v0 = vmax.f32 %v3545_v62, %v3546_v39 }
 0x46f   : > { %v3617_v3 = vmax.f32 %v3616_v44, %v3031_v36  ;;  %v3032_v59 = vmul.f32 %v1671_v34, %v9521_v13  ;;  %1915 = vbcast.lane.b32.xlu1 %v7326_v43, 376  ;;  %v3608_v31 = vmax.f32 %v3607_v10, %v3027_v46  ;;  %v3526_v4 = vmax.f32 %v3524_v55, %v3525_v41 }
 0x470   : > { %1911 = vbcast.lane.b32.xlu0 %v7326_v43, 368  ;;  %v3568_v60 = vmax.f32 %v3566_v19, %v3567_v6 }
 0x471   : > { %v3618_v56 = vmax.f32 %v3617_v3, %v3032_v59  ;;  %v1683_v38 = vpop.permute.xlu1 %1682  ;;  %v3609_v9 = vrot.slane %v3608_v31, 4  ;;  %v3527_v52 = vrot.slane %v3526_v4, 2 }
 0x472   : > { %v1679_v43 = vpop.permute.xlu0 %1678  ;;  %v3035_v53 = vmul.f32 %v1683_v38, %v9526_v20  ;;  %v3569_v10 = vrot.slane %v3568_v60, 2 }
 0x473   : > { %v3619_v36 = vmax.f32 %v3618_v56, %v3033_v22  ;;  %v3034_v37 = vmul.f32 %v1679_v43, %v9519_v51  ;;  %1926 = vbcast.lane.b32.xlu1 %v7459_v12, 264  ;;  %v3588_v22 = vrot.slane %v3587_v57, 4  ;;  %v3506_v56 = vrot.slane %v3505_v2, 2 }
 0x474   : > { %1922 = vbcast.lane.b32.xlu0 %v7459_v12, 256  ;;  %v3570_v41 = vmax.f32 %v3568_v60, %v3569_v10 }
 0x475   : > { %v3620_v24 = vmax.f32 %v3619_v36, %v3034_v37  ;;  %v1691_v63 = vpop.permute.xlu1 %1690  ;;  %v3589_v26 = vmax.f32 %v3587_v57, %v3588_v22  ;;  %v3485_v36 = vrot.slane %v3484_v23, 2  ;;  %v3548_v37 = vrot.slane %v3547_v0, 2 }
 0x476   : > { %v1687_v30 = vpop.permute.xlu0 %1686  ;;  %v3037_v44 = vmul.f32 %v1691_v63, %v9604_v7  ;;  %v3507_v46 = vmax.f32 %v3505_v2, %v3506_v56 }
 0x477   : > { %v3621_v11 = vmax.f32 %v3620_v24, %v3035_v53  ;;  %v3036_v35 = vmul.f32 %v1687_v30, %v9527_v25  ;;  %1934 = vbcast.lane.b32.xlu1 %v7459_v12, 280  ;;  %v3610_v53 = vmax.f32 %v3608_v31, %v3609_v9  ;;  %v3590_v24 = vrot.slane %v3589_v26, 2 }
 0x478   : > { %1930 = vbcast.lane.b32.xlu0 %v7459_v12, 272  ;;  %v3528_v30 = vmax.f32 %v3526_v4, %v3527_v52  ;;  %v3508_v39 = vrot.slane %v3507_v46, 1 }
 0x479   : > { %v3622_v49 = vmax.f32 %v3621_v11, %v3036_v35  ;;  %v1699_v34 = vpop.permute.xlu1 %1698  ;;  %v3611_v57 = vrot.slane %v3610_v53, 2  ;;  %v3549_v11 = vmax.f32 %v3547_v0, %v3548_v37 }
 0x47a   : > { %v1695_v8 = vpop.permute.xlu0 %1694  ;;  %v3039_v3 = vmul.f32 %v1699_v34, %v9713_v58  ;;  %v3529_v6 = vrot.slane %v3528_v30, 1  ;;  %v3509_v9 = vmax.f32 %v3507_v46, %v3508_v39 }
 0x47b   : > { %v3623_v59 = vmax.f32 %v3622_v49, %v3037_v44  ;;  %v3038_v16 = vmul.f32 %v1695_v8, %v9701_v40  ;;  %1942 = vbcast.lane.b32.xlu1 %v7459_v12, 296  ;;  %v3486_v44 = vmax.f32 %v3484_v23, %v3485_v36  ;;  %v3591_v49 = vmax.f32 %v3589_v26, %v3590_v24  ;;  %v9757_v36 = vld [vmem:[#allocation76_spill] sm:$0xff] }
 0x47c   : > { %1938 = vbcast.lane.b32.xlu0 %v7459_v12, 288  ;;  %v3612_v34 = vmax.f32 %v3610_v53, %v3611_v57  ;;  %v3550_v22 = vrot.slane %v3549_v11, 1  ;;  %v1987_v37 = vrot.slane %v9704_v50, %v9757_v36 }
 0x47d   : > { %v3624_v45 = vmax.f32 %v3623_v59, %v3038_v16  ;;  %v1707_v5 = vpop.permute.xlu1 %1706  ;;  %v3487_v8 = vrot.slane %v3486_v44, 1  ;;  %v3571_v59 = vrot.slane %v3570_v41, 1  ;;  %v3592_v23 = vrot.slane %v3591_v49, 1 }
 0x47e   : > { %v1703_v42 = vpop.permute.xlu0 %1702  ;;  %v3041_v28 = vmul.f32 %v1707_v5, %v9725_v27  ;;  %v3613_v56 = vrot.slane %v3612_v34, 1  ;;  %v3551_v5 = vmax.f32 %v3549_v11, %v3550_v22 }
 0x47f   : > { %v3625_v38 = vmax.f32 %v3624_v45, %v3039_v3  ;;  %v3040_v43 = vmul.f32 %v1703_v42, %v9720_v29  ;;  %1950 = vbcast.lane.b32.xlu1 %v7459_v12, 312  ;;  %v3530_v45 = vmax.f32 %v3528_v30, %v3529_v6  ;;  %v3488_v60 = vmax.f32 %v3486_v44, %v3487_v8 }
 0x480   : > { %1946 = vbcast.lane.b32.xlu0 %v7459_v12, 304  ;;  %v3572_v26 = vmax.f32 %v3570_v41, %v3571_v59 }
 0x481   : > { %v3626_v55 = vmax.f32 %v3625_v38, %v3040_v43  ;;  %v1715_v48 = vpop.permute.xlu1 %1714  ;;  %v3593_v43 = vmax.f32 %v3591_v49, %v3592_v23  ;;  %v4018_v53 = vsel %vm9756_vm9, %v3509_v9, %v3488_v60  ;;  %vm9760_vm9 = vcmask 1047559   ;;  %v9775_v9 = vld [vmem:[#allocation84_spill] sm:$0xff] }
 0x482   : > { %v1711_v62 = vpop.permute.xlu0 %1710  ;;  %v3043_v17 = vmul.f32 %v1715_v48, %v9731_v32  ;;  %v4019_v46 = vsel %vm4006_vm15, %v3530_v45, %v4018_v53  ;;  %v2054_v23 = vrot.slane %v9704_v50, %v9775_v9  ;;  %v7606_v32 = vld [vmem:[%s6404_s22 + $0x18] sm:$0xff] }
 0x483   : > { %v3627_v19 = vmax.f32 %v3626_v55, %v3041_v28  ;;  %v3042_v63 = vmul.f32 %v1711_v62, %v9737_v33  ;;  %1958 = vbcast.lane.b32.xlu1 %v7459_v12, 328  ;;  %v3614_v55 = vmax.f32 %v3612_v34, %v3613_v56  ;;  %v4020_v48 = vsel %vm4008_vm12, %v3551_v5, %v4019_v46  ;;  %v9801_v33 = vld [vmem:[#allocation72_spill] sm:$0xff] }
 0x484   : > { %1954 = vbcast.lane.b32.xlu0 %v7459_v12, 320 }
 0x485   : > { %v3628_v35 = vmax.f32 %v3627_v19, %v3042_v63  ;;  %v7490_v31 = vpop.permute.xlu1 %1725 }
 0x486   : > { %9750 = vst [vmem:[#allocation120_spill] sm:$0xff] %v7490_v31  ;;  %v7492_v14 = vpop.permute.xlu0 %1721 }
 0x487   : > { %9751 = vst [vmem:[#allocation119_spill] sm:$0xff] %v7492_v14  ;;  %v3629_v2 = vmax.f32 %v3628_v35, %v3043_v17  ;;  %1966 = vbcast.lane.b32.xlu1 %v7459_v12, 344  ;;  %v4021_v17 = vsel %vm4010_vm8, %v3572_v26, %v4020_v48 }
 0x488   : > { %1962 = vbcast.lane.b32.xlu0 %v7459_v12, 336  ;;  %v4022_v63 = vsel %vm4012_vm13, %v3593_v43, %v4021_v17 }
 0x489   : > { %v3630_v3 = vrot.slane %v3629_v2, 4  ;;  %v7496_v16 = vpop.permute.xlu1 %1733 }
 0x48a   : > { %9752 = vst [vmem:[#allocation77_spill] sm:$0xff] %v7496_v16  ;;  %v7498_v4 = vpop.permute.xlu0 %1729 }
 0x48b   : > { %9753 = vst [vmem:[#allocation112_spill] sm:$0xff] %v7498_v4  ;;  %v3631_v0 = vmax.f32 %v3629_v2, %v3630_v3  ;;  %1974 = vbcast.lane.b32.xlu1 %v7459_v12, 360 }
 0x48c   : > { %1970 = vbcast.lane.b32.xlu0 %v7459_v12, 352 }
 0x48d   : > { %v3632_v42 = vrot.slane %v3631_v0, 2  ;;  %v7502_v28 = vpop.permute.xlu1 %1741 }
 0x48e   : > { %9754 = vst [vmem:[#allocation74_spill] sm:$0xff] %v7502_v28  ;;  %v7504_v38 = vpop.permute.xlu0 %1737 }
 0x48f   : > { %9755 = vst [vmem:[#allocation98_spill] sm:$0xff] %v7504_v38  ;;  %v3633_v52 = vmax.f32 %v3631_v0, %v3632_v42  ;;  %1982 = vbcast.lane.b32.xlu1 %v7459_v12, 376 }
 0x490   : > { %1978 = vbcast.lane.b32.xlu0 %v7459_v12, 368  ;;  %v4023_v12 = vsel %vm4014_vm11, %v3614_v55, %v4022_v63 }
 0x491   : > { %v3634_v10 = vrot.slane %v3633_v52, 1  ;;  %v7513_v62 = vpop.permute.xlu1 %1749 }
 0x492   : > { %9758 = vst [vmem:[#allocation114_spill] sm:$0xff] %v7513_v62  ;;  %v7515_v24 = vpop.permute.xlu0 %1745 }
 0x493   : > { %9759 = vst [vmem:[#allocation80_spill] sm:$0xff] %v7515_v24  ;;  %v3635_v19 = vmax.f32 %v3633_v52, %v3634_v10  ;;  %1993 = vbcast.lane.b32.xlu1 %v1987_v37, 264 }
 0x494   : > { %1989 = vbcast.lane.b32.xlu0 %v1987_v37, 256 }
 0x495   : > { %v4024_v30 = vsel %vm9760_vm9, %v3635_v19, %v4023_v12  ;;  %v7521_v57 = vpop.permute.xlu1 %1757  ;;  %v9792_v19 = vld [vmem:[#allocation93_spill] sm:$0xff]  ;;  %vm9406_vm9 = vcmask 7168  }
 0x496   : > { %9761 = vst [vmem:[#allocation109_spill] sm:$0xff] %v7521_v57  ;;  %5301 = vmatmul.mubr.f32.vlgmr.msra.gmra.mxu0 %v4024_v30  ;;  %v7523_v44 = vpop.permute.xlu0 %1753  ;;  %v7585_v63 = vrot.slane %v9704_v50, %v9792_v19 }
 0x497   : > { %9762 = vst [vmem:[#allocation110_spill] sm:$0xff] %v7523_v44  ;;  %2001 = vbcast.lane.b32.xlu1 %v1987_v37, 280 }
 0x498   : > { %1997 = vbcast.lane.b32.xlu0 %v1987_v37, 272 }
 0x499   : > { %v7525_v11 = vpop.permute.xlu1 %1765 }
 0x49a   : > { %9763 = vst [vmem:[#allocation85_spill] sm:$0xff] %v7525_v11  ;;  %v7527_v35 = vpop.permute.xlu0 %1761 }
 0x49b   : > { %9764 = vst [vmem:[#allocation104_spill] sm:$0xff] %v7527_v35  ;;  %2009 = vbcast.lane.b32.xlu1 %v1987_v37, 296 }
 0x49c   : > { %2005 = vbcast.lane.b32.xlu0 %v1987_v37, 288 }
 0x49d   : > { %v7529_v41 = vpop.permute.xlu1 %1773 }
 0x49e   : > { %9765 = vst [vmem:[#allocation81_spill] sm:$0xff] %v7529_v41  ;;  %v7531_v39 = vpop.permute.xlu0 %1769  ;;  %v7616_v41 = vrot.slane %v7606_v32, %v9801_v33  ;;  %v7636_v33 = vrot.slane %v7606_v32, %v9703_v18  ;;  %v7652_v18 = vrot.slane %v7606_v32, %v9747_v54 }
 0x49f   : > { %9766 = vst [vmem:[#allocation101_spill] sm:$0xff] %v7531_v39  ;;  %2017 = vbcast.lane.b32.xlu1 %v1987_v37, 312 }
 0x4a0   : > { %2013 = vbcast.lane.b32.xlu0 %v1987_v37, 304 }
 0x4a1   : > { %v7533_v49 = vpop.permute.xlu1 %1781 }
 0x4a2   : > { %9767 = vst [vmem:[#allocation86_spill] sm:$0xff] %v7533_v49  ;;  %v7535_v2 = vpop.permute.xlu0 %1777 }
 0x4a3   : > { %9768 = vst [vmem:[#allocation105_spill] sm:$0xff] %v7535_v2  ;;  %2025 = vbcast.lane.b32.xlu1 %v1987_v37, 328 }
 0x4a4   : > { %2021 = vbcast.lane.b32.xlu0 %v1987_v37, 320 }
 0x4a5   : > { %v7537_v6 = vpop.permute.xlu1 %1792 }
 0x4a6   : > { %9769 = vst [vmem:[#allocation87_spill] sm:$0xff] %v7537_v6  ;;  %v7539_v34 = vpop.permute.xlu0 %1788 }
 0x4a7   : > { %9770 = vst [vmem:[#allocation90_spill] sm:$0xff] %v7539_v34  ;;  %2033 = vbcast.lane.b32.xlu1 %v1987_v37, 344 }
 0x4a8   : > { %2029 = vbcast.lane.b32.xlu0 %v1987_v37, 336 }
 0x4a9   : > { %v7541_v8 = vpop.permute.xlu1 %1800 }
 0x4aa   : > { %9771 = vst [vmem:[#allocation92_spill] sm:$0xff] %v7541_v8  ;;  %v7543_v22 = vpop.permute.xlu0 %1796 }
 0x4ab   : > { %9772 = vst [vmem:[#allocation94_spill] sm:$0xff] %v7543_v22  ;;  %2041 = vbcast.lane.b32.xlu1 %v1987_v37, 360 }
 0x4ac   : > { %2037 = vbcast.lane.b32.xlu0 %v1987_v37, 352 }
 0x4ad   : > { %v7545_v3 = vpop.permute.xlu1 %1808 }
 0x4ae   : > { %9773 = vst [vmem:[#allocation103_spill] sm:$0xff] %v7545_v3  ;;  %v7547_v59 = vpop.permute.xlu0 %1804 }
 0x4af   : > { %9774 = vst [vmem:[#allocation123_spill] sm:$0xff] %v7547_v59  ;;  %2049 = vbcast.lane.b32.xlu1 %v1987_v37, 376 }
 0x4b0   : > { %2045 = vbcast.lane.b32.xlu0 %v1987_v37, 368 }
 0x4b1   : > { %v7551_v0 = vpop.permute.xlu1 %1816 }
 0x4b2   : > { %9776 = vst [vmem:[#allocation106_spill] sm:$0xff] %v7551_v0  ;;  %v7553_v45 = vpop.permute.xlu0 %1812 }
 0x4b3   : > { %9777 = vst [vmem:[#allocation118_spill] sm:$0xff] %v7553_v45  ;;  %2060 = vbcast.lane.b32.xlu1 %v2054_v23, 264 }
 0x4b4   : > { %2056 = vbcast.lane.b32.xlu0 %v2054_v23, 256 }
 0x4b5   : > { %v7555_v56 = vpop.permute.xlu1 %1824 }
 0x4b6   : > { %9778 = vst [vmem:[#allocation95_spill] sm:$0xff] %v7555_v56  ;;  %v7557_v60 = vpop.permute.xlu0 %1820 }
 0x4b7   : > { %9779 = vst [vmem:[#allocation88_spill] sm:$0xff] %v7557_v60  ;;  %2068 = vbcast.lane.b32.xlu1 %v2054_v23, 280 }
 0x4b8   : > { %2064 = vbcast.lane.b32.xlu0 %v2054_v23, 272 }
 0x4b9   : > { %v7559_v5 = vpop.permute.xlu1 %1832 }
 0x4ba   : > { %9780 = vst [vmem:[#allocation96_spill] sm:$0xff] %v7559_v5  ;;  %v7561_v42 = vpop.permute.xlu0 %1828  ;;  %v7662_v5 = vrot.slane %v7606_v32, %v9757_v36 }
 0x4bb   : > { %9781 = vst [vmem:[#allocation99_spill] sm:$0xff] %v7561_v42  ;;  %2076 = vbcast.lane.b32.xlu1 %v2054_v23, 296 }
 0x4bc   : > { %2072 = vbcast.lane.b32.xlu0 %v2054_v23, 288 }
 0x4bd   : > { %v7563_v26 = vpop.permute.xlu1 %1840 }
 0x4be   : > { %9782 = vst [vmem:[#allocation108_spill] sm:$0xff] %v7563_v26  ;;  %v7565_v43 = vpop.permute.xlu0 %1836 }
 0x4bf   : > { %9783 = vst [vmem:[#allocation113_spill] sm:$0xff] %v7565_v43  ;;  %2084 = vbcast.lane.b32.xlu1 %v2054_v23, 312 }
 0x4c0   : > { %2080 = vbcast.lane.b32.xlu0 %v2054_v23, 304 }
 0x4c1   : > { %v7567_v52 = vpop.permute.xlu1 %1848 }
 0x4c2   : > { %9784 = vst [vmem:[#allocation115_spill] sm:$0xff] %v7567_v52  ;;  %v7569_v53 = vpop.permute.xlu0 %1844 }
 0x4c3   : > { %9785 = vst [vmem:[#allocation78_spill] sm:$0xff] %v7569_v53  ;;  %2092 = vbcast.lane.b32.xlu1 %v2054_v23, 328 }
 0x4c4   : > { %2088 = vbcast.lane.b32.xlu0 %v2054_v23, 320 }
 0x4c5   : > { %v7571_v37 = vpop.permute.xlu1 %1859 }
 0x4c6   : > { %9786 = vst [vmem:[#allocation82_spill] sm:$0xff] %v7571_v37  ;;  %v7573_v55 = vpop.permute.xlu0 %1855 }
 0x4c7   : > { %9787 = vst [vmem:[#allocation100_spill] sm:$0xff] %v7573_v55  ;;  %2100 = vbcast.lane.b32.xlu1 %v2054_v23, 344 }
 0x4c8   : > { %2096 = vbcast.lane.b32.xlu0 %v2054_v23, 336 }
 0x4c9   : > { %v7575_v46 = vpop.permute.xlu1 %1867 }
 0x4ca   : > { %9788 = vst [vmem:[#allocation122_spill] sm:$0xff] %v7575_v46  ;;  %v7577_v10 = vpop.permute.xlu0 %1863 }
 0x4cb   : > { %9789 = vst [vmem:[#allocation97_spill] sm:$0xff] %v7577_v10  ;;  %2108 = vbcast.lane.b32.xlu1 %v2054_v23, 360 }
 0x4cc   : > { %2104 = vbcast.lane.b32.xlu0 %v2054_v23, 352 }
 0x4cd   : > { %v7579_v48 = vpop.permute.xlu1 %1875 }
 0x4ce   : > { %9790 = vst [vmem:[#allocation117_spill] sm:$0xff] %v7579_v48  ;;  %v7581_v17 = vpop.permute.xlu0 %1871 }
 0x4cf   : > { %9791 = vst [vmem:[#allocation116_spill] sm:$0xff] %v7581_v17  ;;  %2116 = vbcast.lane.b32.xlu1 %v2054_v23, 376 }
 0x4d0   : > { %2112 = vbcast.lane.b32.xlu0 %v2054_v23, 368 }
 0x4d1   : > { %v7587_v12 = vpop.permute.xlu1 %1883 }
 0x4d2   : > { %9793 = vst [vmem:[#allocation91_spill] sm:$0xff] %v7587_v12  ;;  %v7589_v30 = vpop.permute.xlu0 %1879 }
 0x4d3   : > { %9794 = vst [vmem:[#allocation79_spill] sm:$0xff] %v7589_v30  ;;  %2127 = vbcast.lane.b32.xlu1 %v7585_v63, 264 }
 0x4d4   : > { %2123 = vbcast.lane.b32.xlu0 %v7585_v63, 256 }
 0x4d5   : > { %v7593_v49 = vpop.permute.xlu1 %1891 }
 0x4d6   : > { %9795 = vst [vmem:[#allocation107_spill] sm:$0xff] %v7593_v49  ;;  %v7595_v52 = vpop.permute.xlu0 %1887 }
 0x4d7   : > { %9796 = vst [vmem:[#allocation83_spill] sm:$0xff] %v7595_v52  ;;  %2135 = vbcast.lane.b32.xlu1 %v7585_v63, 280 }
 0x4d8   : > { %2131 = vbcast.lane.b32.xlu0 %v7585_v63, 272 }
 0x4d9   : > { %v7599_v23 = vpop.permute.xlu1 %1899 }
 0x4da   : > { %9797 = vst [vmem:[#allocation121_spill] sm:$0xff] %v7599_v23  ;;  %v7601_v50 = vpop.permute.xlu0 %1895 }
 0x4db   : > { %9798 = vst [vmem:[#allocation75_spill] sm:$0xff] %v7601_v50  ;;  %2143 = vbcast.lane.b32.xlu1 %v7585_v63, 296  ;;  %v9804_v50 = vld [vmem:[#allocation73_spill] sm:$0xff] }
 0x4dc   : > { %2139 = vbcast.lane.b32.xlu0 %v7585_v63, 288 }
 0x4dd   : > { %v7608_v2 = vpop.permute.xlu1 %1907 }
 0x4de   : > { %9799 = vst [vmem:[#allocation89_spill] sm:$0xff] %v7608_v2  ;;  %v7610_v53 = vpop.permute.xlu0 %1903  ;;  %v7626_v2 = vrot.slane %v7606_v32, %v9804_v50 }
 0x4df   : > { %9800 = vst [vmem:[#allocation111_spill] sm:$0xff] %v7610_v53  ;;  %2151 = vbcast.lane.b32.xlu1 %v7585_v63, 312 }
 0x4e0   : > { %2147 = vbcast.lane.b32.xlu0 %v7585_v63, 304 }
 0x4e1   : > { %v7618_v23 = vpop.permute.xlu1 %1915 }
 0x4e2   : > { %9802 = vst [vmem:[#allocation76_spill] sm:$0xff] %v7618_v23  ;;  %v7620_v26 = vpop.permute.xlu0 %1911 }
 0x4e3   : > { %9803 = vst [vmem:[#allocation84_spill] sm:$0xff] %v7620_v26  ;;  %2261 = vbcast.lane.b32.xlu1 %v7616_v41, 264 }
 0x4e4   : > { %2257 = vbcast.lane.b32.xlu0 %v7616_v41, 256 }
 0x4e5   : > { %v7628_v53 = vpop.permute.xlu1 %1926 }
 0x4e6   : > { %9805 = vst [vmem:[#allocation93_spill] sm:$0xff] %v7628_v53  ;;  %v7630_v39 = vpop.permute.xlu0 %1922 }
 0x4e7   : > { %9806 = vst [vmem:[#allocation73_spill] sm:$0xff] %v7630_v39  ;;  %2328 = vbcast.lane.b32.xlu1 %v7626_v2, 264 }
 0x4e8   : > { %2324 = vbcast.lane.b32.xlu0 %v7626_v2, 256 }
 0x4e9   : > { %v7638_v23 = vpop.permute.xlu1 %1934 }
 0x4ea   : > { %9807 = vst [vmem:[#allocation124_spill] sm:$0xff] %v7638_v23  ;;  %v7640_v26 = vpop.permute.xlu0 %1930 }
 0x4eb   : > { %9808 = vst [vmem:[#allocation125_spill] sm:$0xff] %v7640_v26  ;;  %2395 = vbcast.lane.b32.xlu1 %v7636_v33, 264 }
 0x4ec   : > { %2391 = vbcast.lane.b32.xlu0 %v7636_v33, 256 }
 0x4ed   : > { %v7644_v50 = vpop.permute.xlu1 %1942 }
 0x4ee   : > { %9809 = vst [vmem:[#allocation126_spill] sm:$0xff] %v7644_v50  ;;  %v7646_v43 = vpop.permute.xlu0 %1938 }
 0x4ef   : > { %9810 = vst [vmem:[#allocation127_spill] sm:$0xff] %v7646_v43  ;;  %2332 = vbcast.lane.b32.xlu1 %v7626_v2, 272 }
 0x4f0   : > { %2265 = vbcast.lane.b32.xlu0 %v7616_v41, 272 }
 0x4f1   : > { %v7654_v49 = vpop.permute.xlu1 %1950 }
 0x4f2   : > { %9811 = vst [vmem:[#allocation128_spill] sm:$0xff] %v7654_v49  ;;  %v7656_v11 = vpop.permute.xlu0 %1946 }
 0x4f3   : > { %9812 = vst [vmem:[#allocation129_spill] sm:$0xff] %v7656_v11  ;;  %2462 = vbcast.lane.b32.xlu1 %v7652_v18, 264 }
 0x4f4   : > { %2458 = vbcast.lane.b32.xlu0 %v7652_v18, 256 }
 0x4f5   : > { %v7664_v52 = vpop.permute.xlu1 %1958 }
 0x4f6   : > { %9813 = vst [vmem:[#allocation130_spill] sm:$0xff] %v7664_v52  ;;  %v7666_v35 = vpop.permute.xlu0 %1954  ;;  %v7684_v52 = vrot.slane %v7606_v32, %v9775_v9 }
 0x4f7   : > { %9814 = vst [vmem:[#allocation131_spill] sm:$0xff] %v7666_v35  ;;  %2525 = vbcast.lane.b32.xlu1 %v7662_v5, 256 }
 0x4f8   : > { %2399 = vbcast.lane.b32.xlu0 %v7636_v33, 272 }
 0x4f9   : > { %v7670_v54 = vpop.permute.xlu1 %1966 }
 0x4fa   : > { %9815 = vst [vmem:[#allocation132_spill] sm:$0xff] %v7670_v54  ;;  %v7672_v42 = vpop.permute.xlu0 %1962 }
 0x4fb   : > { %9816 = vst [vmem:[#allocation133_spill] sm:$0xff] %v7672_v42  ;;  %2269 = vbcast.lane.b32.xlu1 %v7616_v41, 280  ;;  %v5543_v42 = vld [vmem:[%s6404_s22 + $0x10] sm:$0xff] }
 0x4fc   : > { %2529 = vbcast.lane.b32.xlu0 %v7662_v5, 264 }
 0x4fd   : > { %v7676_v49 = vpop.permute.xlu1 %1974 }
 0x4fe   : > { %9817 = vst [vmem:[#allocation134_spill] sm:$0xff] %v7676_v49  ;;  %v7678_v36 = vpop.permute.xlu0 %1970  ;;  %v9821_v49 = vld [vmem:[#allocation102_spill] sm:$0xff] }
 0x4ff   : > { %9818 = vst [vmem:[#allocation135_spill] sm:$0xff] %v7678_v36  ;;  %2466 = vbcast.lane.b32.xlu1 %v7652_v18, 272  ;;  %v7694_v12 = vrot.slane %v5543_v42, %v9821_v49  ;;  %v7710_v42 = vrot.slane %v7606_v32, %v9792_v19 }
 0x500   : > { %2336 = vbcast.lane.b32.xlu0 %v7626_v2, 280 }
 0x501   : > { %v7686_v35 = vpop.permute.xlu1 %1982  ;;  %9826 = vst [vmem:[#allocation141_spill] sm:$0xff] %v7710_v42 }
 0x502   : > { %9819 = vst [vmem:[#allocation136_spill] sm:$0xff] %v7686_v35  ;;  %v7688_v54 = vpop.permute.xlu0 %1978 }
 0x503   : > { %9820 = vst [vmem:[#allocation137_spill] sm:$0xff] %v7688_v54  ;;  %2596 = vbcast.lane.b32.xlu1 %v7684_v52, 264 }
 0x504   : > { %2592 = vbcast.lane.b32.xlu0 %v7684_v52, 256 }
 0x505   : > { %v7696_v36 = vpop.permute.xlu1 %1993 }
 0x506   : > { %9822 = vst [vmem:[#allocation102_spill] sm:$0xff] %v7696_v36  ;;  %v7698_v56 = vpop.permute.xlu0 %1989 }
 0x507   : > { %9823 = vst [vmem:[#allocation138_spill] sm:$0xff] %v7698_v56  ;;  %2194 = vbcast.lane.b32.xlu1 %v7694_v12, 264 }
 0x508   : > { %2190 = vbcast.lane.b32.xlu0 %v7694_v12, 256 }
 0x509   : > { %v7702_v9 = vpop.permute.xlu1 %2001 }
 0x50a   : > { %9824 = vst [vmem:[#allocation139_spill] sm:$0xff] %v7702_v9  ;;  %v7704_v35 = vpop.permute.xlu0 %1997 }
 0x50b   : > { %9825 = vst [vmem:[#allocation140_spill] sm:$0xff] %v7704_v35  ;;  %2533 = vbcast.lane.b32.xlu1 %v7662_v5, 272 }
 0x50c   : > { %2403 = vbcast.lane.b32.xlu0 %v7636_v33, 280 }
 0x50d   : > { %v7712_v54 = vpop.permute.xlu1 %2009 }
 0x50e   : > { %9827 = vst [vmem:[#allocation142_spill] sm:$0xff] %v7712_v54  ;;  %v7714_v57 = vpop.permute.xlu0 %2005  ;;  %v7732_v54 = vrot.slane %v7606_v32, %v9821_v49 }
 0x50f   : > { %9828 = vst [vmem:[#allocation143_spill] sm:$0xff] %v7714_v57  ;;  %2663 = vbcast.lane.b32.xlu1 %v7710_v42, 264 }
 0x510   : > { %2659 = vbcast.lane.b32.xlu0 %v7710_v42, 256 }
 0x511   : > { %v7718_v11 = vpop.permute.xlu1 %2017 }
 0x512   : > { %9829 = vst [vmem:[#allocation144_spill] sm:$0xff] %v7718_v11  ;;  %v7720_v30 = vpop.permute.xlu0 %2013 }
 0x513   : > { %9830 = vst [vmem:[#allocation145_spill] sm:$0xff] %v7720_v30  ;;  %2340 = vbcast.lane.b32.xlu1 %v7626_v2, 288 }
 0x514   : > { %2273 = vbcast.lane.b32.xlu0 %v7616_v41, 288 }
 0x515   : > { %v7724_v27 = vpop.permute.xlu1 %2025 }
 0x516   : > { %9831 = vst [vmem:[#allocation146_spill] sm:$0xff] %v7724_v27  ;;  %v7726_v19 = vpop.permute.xlu0 %2021 }
 0x517   : > { %9832 = vst [vmem:[#allocation147_spill] sm:$0xff] %v7726_v19  ;;  %2600 = vbcast.lane.b32.xlu1 %v7684_v52, 272 }
 0x518   : > { %2470 = vbcast.lane.b32.xlu0 %v7652_v18, 280 }
 0x519   : > { %v7734_v60 = vpop.permute.xlu1 %2033 }
 0x51a   : > { %9833 = vst [vmem:[#allocation148_spill] sm:$0xff] %v7734_v60  ;;  %v7736_v11 = vpop.permute.xlu0 %2029 }
 0x51b   : > { %9834 = vst [vmem:[#allocation149_spill] sm:$0xff] %v7736_v11  ;;  %2730 = vbcast.lane.b32.xlu1 %v7732_v54, 264 }
 0x51c   : > { %2726 = vbcast.lane.b32.xlu0 %v7732_v54, 256 }
 0x51d   : > { %v7740_v30 = vpop.permute.xlu1 %2041 }
 0x51e   : > { %9835 = vst [vmem:[#allocation150_spill] sm:$0xff] %v7740_v30  ;;  %v7742_v27 = vpop.permute.xlu0 %2037 }
 0x51f   : > { %9836 = vst [vmem:[#allocation151_spill] sm:$0xff] %v7742_v27  ;;  %2407 = vbcast.lane.b32.xlu1 %v7636_v33, 288 }
 0x520   : > { %2198 = vbcast.lane.b32.xlu0 %v7694_v12, 272 }
 0x521   : > { %v7746_v19 = vpop.permute.xlu1 %2049 }
 0x522   : > { %9837 = vst [vmem:[#allocation152_spill] sm:$0xff] %v7746_v19  ;;  %v7748_v32 = vpop.permute.xlu0 %2045 }
 0x523   : > { %9838 = vst [vmem:[#allocation153_spill] sm:$0xff] %v7748_v32  ;;  %2667 = vbcast.lane.b32.xlu1 %v7710_v42, 272 }
 0x524   : > { %2537 = vbcast.lane.b32.xlu0 %v7662_v5, 280 }
 0x525   : > { %v7752_v49 = vpop.permute.xlu1 %2060 }
 0x526   : > { %9839 = vst [vmem:[#allocation154_spill] sm:$0xff] %v7752_v49  ;;  %v7754_v60 = vpop.permute.xlu0 %2056 }
 0x527   : > { %9840 = vst [vmem:[#allocation155_spill] sm:$0xff] %v7754_v60  ;;  %2344 = vbcast.lane.b32.xlu1 %v7626_v2, 296 }
 0x528   : > { %2277 = vbcast.lane.b32.xlu0 %v7616_v41, 296 }
 0x529   : > { %v7758_v30 = vpop.permute.xlu1 %2068 }
 0x52a   : > { %9841 = vst [vmem:[#allocation156_spill] sm:$0xff] %v7758_v30  ;;  %v7760_v27 = vpop.permute.xlu0 %2064 }
 0x52b   : > { %9842 = vst [vmem:[#allocation157_spill] sm:$0xff] %v7760_v27  ;;  %2604 = vbcast.lane.b32.xlu1 %v7684_v52, 280 }
 0x52c   : > { %2474 = vbcast.lane.b32.xlu0 %v7652_v18, 288 }
 0x52d   : > { %v7764_v19 = vpop.permute.xlu1 %2076 }
 0x52e   : > { %9843 = vst [vmem:[#allocation158_spill] sm:$0xff] %v7764_v19  ;;  %v7766_v32 = vpop.permute.xlu0 %2072 }
 0x52f   : > { %9844 = vst [vmem:[#allocation159_spill] sm:$0xff] %v7766_v32  ;;  %2202 = vbcast.lane.b32.xlu1 %v7694_v12, 280 }
 0x530   : > { %2734 = vbcast.lane.b32.xlu0 %v7732_v54, 272 }
 0x531   : > { %v7770_v11 = vpop.permute.xlu1 %2084 }
 0x532   : > { %9845 = vst [vmem:[#allocation160_spill] sm:$0xff] %v7770_v11  ;;  %v7772_v44 = vpop.permute.xlu0 %2080 }
 0x533   : > { %9846 = vst [vmem:[#allocation161_spill] sm:$0xff] %v7772_v44  ;;  %2541 = vbcast.lane.b32.xlu1 %v7662_v5, 288 }
 0x534   : > { %2411 = vbcast.lane.b32.xlu0 %v7636_v33, 296 }
 0x535   : > { %v7776_v30 = vpop.permute.xlu1 %2092 }
 0x536   : > { %9847 = vst [vmem:[#allocation162_spill] sm:$0xff] %v7776_v30  ;;  %v7778_v57 = vpop.permute.xlu0 %2088 }
 0x537   : > { %9848 = vst [vmem:[#allocation163_spill] sm:$0xff] %v7778_v57  ;;  %2281 = vbcast.lane.b32.xlu1 %v7616_v41, 304 }
 0x538   : > { %2671 = vbcast.lane.b32.xlu0 %v7710_v42, 280 }
 0x539   : > { %v7782_v19 = vpop.permute.xlu1 %2100 }
 0x53a   : > { %9849 = vst [vmem:[#allocation164_spill] sm:$0xff] %v7782_v19  ;;  %v7784_v32 = vpop.permute.xlu0 %2096 }
 0x53b   : > { %9850 = vst [vmem:[#allocation165_spill] sm:$0xff] %v7784_v32  ;;  %2478 = vbcast.lane.b32.xlu1 %v7652_v18, 296 }
 0x53c   : > { %2348 = vbcast.lane.b32.xlu0 %v7626_v2, 304 }
 0x53d   : > { %v7788_v11 = vpop.permute.xlu1 %2108 }
 0x53e   : > { %9851 = vst [vmem:[#allocation166_spill] sm:$0xff] %v7788_v11  ;;  %v7790_v44 = vpop.permute.xlu0 %2104 }
 0x53f   : > { %9852 = vst [vmem:[#allocation167_spill] sm:$0xff] %v7790_v44  ;;  %2738 = vbcast.lane.b32.xlu1 %v7732_v54, 280 }
 0x540   : > { %2608 = vbcast.lane.b32.xlu0 %v7684_v52, 288 }
 0x541   : > { %v7794_v30 = vpop.permute.xlu1 %2116 }
 0x542   : > { %9853 = vst [vmem:[#allocation168_spill] sm:$0xff] %v7794_v30  ;;  %v7796_v57 = vpop.permute.xlu0 %2112 }
 0x543   : > { %9854 = vst [vmem:[#allocation169_spill] sm:$0xff] %v7796_v57  ;;  %2415 = vbcast.lane.b32.xlu1 %v7636_v33, 304 }
 0x544   : > { %2206 = vbcast.lane.b32.xlu0 %v7694_v12, 288 }
 0x545   : > { %v7800_v19 = vpop.permute.xlu1 %2127 }
 0x546   : > { %9855 = vst [vmem:[#allocation170_spill] sm:$0xff] %v7800_v19  ;;  %v7802_v32 = vpop.permute.xlu0 %2123 }
 0x547   : > { %9856 = vst [vmem:[#allocation171_spill] sm:$0xff] %v7802_v32  ;;  %2675 = vbcast.lane.b32.xlu1 %v7710_v42, 288 }
 0x548   : > { %2545 = vbcast.lane.b32.xlu0 %v7662_v5, 296 }
 0x549   : > { %v7806_v11 = vpop.permute.xlu1 %2135 }
 0x54a   : > { %9857 = vst [vmem:[#allocation172_spill] sm:$0xff] %v7806_v11  ;;  %v7808_v44 = vpop.permute.xlu0 %2131 }
 0x54b   : > { %9858 = vst [vmem:[#allocation173_spill] sm:$0xff] %v7808_v44  ;;  %2352 = vbcast.lane.b32.xlu1 %v7626_v2, 312 }
 0x54c   : > { %2285 = vbcast.lane.b32.xlu0 %v7616_v41, 312 }
 0x54d   : > { %v7812_v30 = vpop.permute.xlu1 %2143 }
 0x54e   : > { %9859 = vst [vmem:[#allocation174_spill] sm:$0xff] %v7812_v30  ;;  %v7814_v57 = vpop.permute.xlu0 %2139 }
 0x54f   : > { %9860 = vst [vmem:[#allocation175_spill] sm:$0xff] %v7814_v57  ;;  %2612 = vbcast.lane.b32.xlu1 %v7684_v52, 296 }
 0x550   : > { %2482 = vbcast.lane.b32.xlu0 %v7652_v18, 304 }
 0x551   : > { %v7818_v50 = vpop.permute.xlu1 %2151 }
 0x552   : > { %9861 = vst [vmem:[#allocation176_spill] sm:$0xff] %v7818_v50  ;;  %v7820_v48 = vpop.permute.xlu0 %2147 }
 0x553   : > { %9862 = vst [vmem:[#allocation177_spill] sm:$0xff] %v7820_v48  ;;  %2210 = vbcast.lane.b32.xlu1 %v7694_v12, 296 }
 0x554   : > { %2742 = vbcast.lane.b32.xlu0 %v7732_v54, 288 }
 0x555   : > { %v7824_v27 = vpop.permute.xlu1 %2261 }
 0x556   : > { %v5302_v0 = vpop.f32.mrf.mxu0  ;;  %v7832_v9 = vpop.permute.xlu0 %2257 }
 0x557   : > { %4131 = vst.msk [vmem:[%s7828_s23 + $0x8] sm:$0xff] %vm9406_vm9, %v5302_v0  ;;  %2549 = vbcast.lane.b32.xlu1 %v7662_v5, 304 }
 0x558   : > { %v4109_v62 = vpop.f32.mrf.mxu0  ;;  %2419 = vbcast.lane.b32.xlu0 %v7636_v33, 312 }
 0x559   : > { %4130 = vst.msk [vmem:[%s7828_s23] sm:$0xff] %vm9406_vm9, %v4109_v62  ;;  %v7838_v60 = vpop.permute.xlu1 %2328  ;;  %vm10012_vm9 = vcmask 1041409  }
 0x55a   : > { %v7840_v49 = vpop.permute.xlu0 %2324 }
 0x55b   : > { %2289 = vbcast.lane.b32.xlu1 %v7616_v41, 320 }
 0x55c   : > { %2679 = vbcast.lane.b32.xlu0 %v7710_v42, 296 }
 0x55d   : > { %v7844_v43 = vpop.permute.xlu1 %2395 }
 0x55e   : > { %v7846_v0 = vpop.permute.xlu0 %2391 }
 0x55f   : > { %2486 = vbcast.lane.b32.xlu1 %v7652_v18, 312 }
 0x560   : > { %2356 = vbcast.lane.b32.xlu0 %v7626_v2, 320 }
 0x561   : > { %v7850_v17 = vpop.permute.xlu1 %2332 }
 0x562   : > { %v7852_v45 = vpop.permute.xlu0 %2265 }
 0x563   : > { %2746 = vbcast.lane.b32.xlu1 %v7732_v54, 296 }
 0x564   : > { %2616 = vbcast.lane.b32.xlu0 %v7684_v52, 304 }
 0x565   : > { %v7856_v62 = vpop.permute.xlu1 %2462 }
 0x566   : > { %v7858_v35 = vpop.permute.xlu0 %2458 }
 0x567   : > { %2423 = vbcast.lane.b32.xlu1 %v7636_v33, 320 }
 0x568   : > { %2214 = vbcast.lane.b32.xlu0 %v7694_v12, 304 }
 0x569   : > { %v7862_v24 = vpop.permute.xlu1 %2525 }
 0x56a   : > { %v7864_v56 = vpop.permute.xlu0 %2399 }
 0x56b   : > { %2683 = vbcast.lane.b32.xlu1 %v7710_v42, 304 }
 0x56c   : > { %2553 = vbcast.lane.b32.xlu0 %v7662_v5, 312 }
 0x56d   : > { %v7868_v36 = vpop.permute.xlu1 %2269 }
 0x56e   : > { %v7870_v23 = vpop.permute.xlu0 %2529 }
 0x56f   : > { %2360 = vbcast.lane.b32.xlu1 %v7626_v2, 328 }
 0x570   : > { %2293 = vbcast.lane.b32.xlu0 %v7616_v41, 328 }
 0x571   : > { %v7874_v46 = vpop.permute.xlu1 %2466 }
 0x572   : > { %v7876_v3 = vpop.permute.xlu0 %2336 }
 0x573   : > { %2620 = vbcast.lane.b32.xlu1 %v7684_v52, 312 }
 0x574   : > { %2490 = vbcast.lane.b32.xlu0 %v7652_v18, 320 }
 0x575   : > { %v7880_v28 = vpop.permute.xlu1 %2596 }
 0x576   : > { %v7882_v26 = vpop.permute.xlu0 %2592 }
 0x577   : > { %2218 = vbcast.lane.b32.xlu1 %v7694_v12, 312 }
 0x578   : > { %2750 = vbcast.lane.b32.xlu0 %v7732_v54, 304 }
 0x579   : > { %v7886_v10 = vpop.permute.xlu1 %2194 }
 0x57a   : > { %v7888_v39 = vpop.permute.xlu0 %2190 }
 0x57b   : > { %2557 = vbcast.lane.b32.xlu1 %v7662_v5, 320 }
 0x57c   : > { %2427 = vbcast.lane.b32.xlu0 %v7636_v33, 328 }
 0x57d   : > { %v7892_v53 = vpop.permute.xlu1 %2533 }
 0x57e   : > { %v7894_v59 = vpop.permute.xlu0 %2403 }
 0x57f   : > { %2155 = vbcast.lane.b32.xlu1 %v7585_v63, 320 }
 0x580   : > { %2687 = vbcast.lane.b32.xlu0 %v7710_v42, 312 }
 0x581   : > { %v7898_v55 = vpop.permute.xlu1 %2663 }
 0x582   : > { %v7900_v37 = vpop.permute.xlu0 %2659 }
 0x583   : > { %2364 = vbcast.lane.b32.xlu1 %v7626_v2, 336 }
 0x584   : > { %2297 = vbcast.lane.b32.xlu0 %v7616_v41, 336 }
 0x585   : > { %v7904_v29 = vpop.permute.xlu1 %2340 }
 0x586   : > { %v7906_v38 = vpop.permute.xlu0 %2273 }
 0x587   : > { %2624 = vbcast.lane.b32.xlu1 %v7684_v52, 320 }
 0x588   : > { %2494 = vbcast.lane.b32.xlu0 %v7652_v18, 328 }
 0x589   : > { %v7910_v8 = vpop.permute.xlu1 %2600 }
 0x58a   : > { %v7912_v16 = vpop.permute.xlu0 %2470 }
 0x58b   : > { %2222 = vbcast.lane.b32.xlu1 %v7694_v12, 320 }
 0x58c   : > { %2754 = vbcast.lane.b32.xlu0 %v7732_v54, 312 }
 0x58d   : > { %v7916_v22 = vpop.permute.xlu1 %2730 }
 0x58e   : > { %v7918_v4 = vpop.permute.xlu0 %2726 }
 0x58f   : > { %2561 = vbcast.lane.b32.xlu1 %v7662_v5, 328 }
 0x590   : > { %2431 = vbcast.lane.b32.xlu0 %v7636_v33, 336 }
 0x591   : > { %v7922_v34 = vpop.permute.xlu1 %2407 }
 0x592   : > { %v7924_v6 = vpop.permute.xlu0 %2198 }
 0x593   : > { %2159 = vbcast.lane.b32.xlu1 %v7585_v63, 328 }
 0x594   : > { %2691 = vbcast.lane.b32.xlu0 %v7710_v42, 320 }
 0x595   : > { %v7928_v14 = vpop.permute.xlu1 %2667 }
 0x596   : > { %v7930_v31 = vpop.permute.xlu0 %2537 }
 0x597   : > { %2368 = vbcast.lane.b32.xlu1 %v7626_v2, 344 }
 0x598   : > { %2301 = vbcast.lane.b32.xlu0 %v7616_v41, 344 }
 0x599   : > { %v7934_v58 = vpop.permute.xlu1 %2344 }
 0x59a   : > { %9863 = vst [vmem:[#allocation178_spill] sm:$0xff] %v7934_v58  ;;  %v7936_v50 = vpop.permute.xlu0 %2277  ;;  %v3172_v58 = vmul.f32 %v7832_v9, %v9525_v15  ;;  %v3220_v9 = vmul.f32 %v7858_v35, %v9525_v15  ;;  %v3222_v35 = vmul.f32 %v7874_v46, %v9523_v47  ;;  %v3157_v46 = vmul.f32 %v7886_v10, %v9524_v1 }
 0x59b   : > { %2628 = vbcast.lane.b32.xlu1 %v7684_v52, 328  ;;  %v3269_v10 = vmul.f32 %v7898_v55, %v9524_v1  ;;  %v3254_v55 = vmul.f32 %v7910_v8, %v9523_v47 }
 0x59c   : > { %2498 = vbcast.lane.b32.xlu0 %v7652_v18, 336 }
 0x59d   : > { %v7940_v48 = vpop.permute.xlu1 %2604 }
 0x59e   : > { %v7942_v30 = vpop.permute.xlu0 %2474 }
 0x59f   : > { %2226 = vbcast.lane.b32.xlu1 %v7694_v12, 328 }
 0x5a0   : > { %2758 = vbcast.lane.b32.xlu0 %v7732_v54, 320 }
 0x5a1   : > { %v7946_v40 = vpop.permute.xlu1 %2202 }
 0x5a2   : > { %9864 = vst [vmem:[#allocation179_spill] sm:$0xff] %v7946_v40  ;;  %v7948_v57 = vpop.permute.xlu0 %2734 }
 0x5a3   : > { %2565 = vbcast.lane.b32.xlu1 %v7662_v5, 336 }
 0x5a4   : > { %2435 = vbcast.lane.b32.xlu0 %v7636_v33, 344 }
 0x5a5   : > { %v7952_v11 = vpop.permute.xlu1 %2541 }
 0x5a6   : > { %9865 = vst [vmem:[#allocation180_spill] sm:$0xff] %v7952_v11  ;;  %v7954_v44 = vpop.permute.xlu0 %2411 }
 0x5a7   : > { %9866 = vst [vmem:[#allocation181_spill] sm:$0xff] %v7954_v44  ;;  %2163 = vbcast.lane.b32.xlu1 %v7585_v63, 336 }
 0x5a8   : > { %2695 = vbcast.lane.b32.xlu0 %v7710_v42, 328 }
 0x5a9   : > { %v7958_v32 = vpop.permute.xlu1 %2281 }
 0x5aa   : > { %9867 = vst [vmem:[#allocation182_spill] sm:$0xff] %v7958_v32  ;;  %v7960_v19 = vpop.permute.xlu0 %2671 }
 0x5ab   : > { %9868 = vst [vmem:[#allocation183_spill] sm:$0xff] %v7960_v19  ;;  %2372 = vbcast.lane.b32.xlu1 %v7626_v2, 352 }
 0x5ac   : > { %2305 = vbcast.lane.b32.xlu0 %v7616_v41, 352 }
 0x5ad   : > { %v7964_v7 = vpop.permute.xlu1 %2478 }
 0x5ae   : > { %v7966_v25 = vpop.permute.xlu0 %2348 }
 0x5af   : > { %9869 = vst [vmem:[#allocation184_spill] sm:$0xff] %v7966_v25  ;;  %2632 = vbcast.lane.b32.xlu1 %v7684_v52, 336 }
 0x5b0   : > { %2502 = vbcast.lane.b32.xlu0 %v7652_v18, 344 }
 0x5b1   : > { %v7970_v20 = vpop.permute.xlu1 %2738 }
 0x5b2   : > { %9870 = vst [vmem:[#allocation185_spill] sm:$0xff] %v7970_v20  ;;  %v7972_v44 = vpop.permute.xlu0 %2608 }
 0x5b3   : > { %9871 = vst [vmem:[#allocation186_spill] sm:$0xff] %v7972_v44  ;;  %2230 = vbcast.lane.b32.xlu1 %v7694_v12, 336  ;;  %v3189_v44 = vmul.f32 %v7838_v60, %v9524_v1  ;;  %v3190_v60 = vmul.f32 %v7850_v17, %v9523_v47  ;;  %v3206_v17 = vmul.f32 %v7864_v56, %v9523_v47 }
 0x5b4   : > { %2762 = vbcast.lane.b32.xlu0 %v7732_v54, 328  ;;  %v3236_v56 = vmul.f32 %v7862_v24, %v9525_v15 }
 0x5b5   : > { %v7976_v32 = vpop.permute.xlu1 %2415 }
 0x5b6   : > { %9872 = vst [vmem:[#allocation187_spill] sm:$0xff] %v7976_v32  ;;  %v7978_v19 = vpop.permute.xlu0 %2206  ;;  %v3188_v32 = vmul.f32 %v7840_v49, %v9525_v15  ;;  %v3174_v49 = vmul.f32 %v7852_v45, %v9523_v47 }
 0x5b7   : > { %9873 = vst [vmem:[#allocation188_spill] sm:$0xff] %v7978_v19  ;;  %2569 = vbcast.lane.b32.xlu1 %v7662_v5, 344  ;;  %v3173_v19 = vmul.f32 %v7824_v27, %v9524_v1  ;;  %v3221_v27 = vmul.f32 %v7856_v62, %v9524_v1  ;;  %v3237_v62 = vmul.f32 %v7870_v23, %v9524_v1 }
 0x5b8   : > { %2439 = vbcast.lane.b32.xlu0 %v7636_v33, 352  ;;  %v3252_v23 = vmul.f32 %v7882_v26, %v9525_v15  ;;  %v3207_v26 = vmul.f32 %v7894_v59, %v9522_v21  ;;  %v3176_v59 = vmul.f32 %v7906_v38, %v9521_v13  ;;  %v3224_v38 = vmul.f32 %v7942_v30, %v9521_v13 }
 0x5b9   : > { %v7982_v25 = vpop.permute.xlu1 %2675  ;;  %v3888_v24 = vmax.f32 %v3236_v56, %v3237_v62 }
 0x5ba   : > { %9874 = vst [vmem:[#allocation189_spill] sm:$0xff] %v7982_v25  ;;  %v7984_v11 = vpop.permute.xlu0 %2545  ;;  %v3205_v25 = vmul.f32 %v7844_v43, %v9524_v1  ;;  %v3825_v43 = vmax.f32 %v3188_v32, %v3189_v44  ;;  %v3191_v44 = vmul.f32 %v7876_v3, %v9522_v21  ;;  %v3156_v3 = vmul.f32 %v7888_v39, %v9525_v15 }
 0x5bb   : > { %9875 = vst [vmem:[#allocation190_spill] sm:$0xff] %v7984_v11  ;;  %2167 = vbcast.lane.b32.xlu1 %v7585_v63, 344  ;;  %v3204_v11 = vmul.f32 %v7846_v0, %v9525_v15  ;;  %v3804_v0 = vmax.f32 %v3172_v58, %v3173_v19  ;;  %v3268_v39 = vmul.f32 %v7900_v37, %v9525_v15 }
 0x5bc   : > { %2699 = vbcast.lane.b32.xlu0 %v7710_v42, 336  ;;  %v3826_v42 = vmax.f32 %v3825_v43, %v3190_v60  ;;  %v3285_v37 = vmul.f32 %v7916_v22, %v9524_v1  ;;  %v3284_v43 = vmul.f32 %v7918_v4, %v9525_v15  ;;  %v3270_v22 = vmul.f32 %v7928_v14, %v9523_v47 }
 0x5bd   : > { %v8000_v20 = vpop.permute.xlu1 %2352  ;;  %v3286_v14 = vmul.f32 %v7948_v57, %v9523_v47  ;;  %v9878_v57 = vld [vmem:[#allocation141_spill] sm:$0xff] }
 0x5be   : > { %9876 = vst [vmem:[#allocation191_spill] sm:$0xff] %v8000_v20  ;;  %v8004_v40 = vpop.permute.xlu0 %2285  ;;  %v3846_v20 = vmax.f32 %v3204_v11, %v3205_v25  ;;  %v3805_v25 = vmax.f32 %v3804_v0, %v3174_v49  ;;  %v3867_v11 = vmax.f32 %v3220_v9, %v3221_v27  ;;  %v3827_v27 = vmax.f32 %v3826_v42, %v3191_v44 }
 0x5bf   : > { %9877 = vst [vmem:[#allocation192_spill] sm:$0xff] %v8004_v40  ;;  %2376 = vbcast.lane.b32.xlu1 %v7626_v2, 360  ;;  %v3175_v40 = vmul.f32 %v7868_v36, %v9522_v21  ;;  %v3253_v36 = vmul.f32 %v7880_v28, %v9524_v1  ;;  %v3238_v9 = vmul.f32 %v7892_v53, %v9523_v47 }
 0x5c0   : > { %2309 = vbcast.lane.b32.xlu0 %v7616_v41, 360  ;;  %v3847_v19 = vmax.f32 %v3846_v20, %v3206_v17  ;;  %v3868_v49 = vmax.f32 %v3867_v11, %v3222_v35  ;;  %v3192_v42 = vmul.f32 %v7904_v29, %v9521_v13  ;;  %v3223_v53 = vmul.f32 %v7912_v16, %v9522_v21 }
 0x5c1   : > { %v8018_v45 = vpop.permute.xlu1 %2612  ;;  %v3806_v32 = vmax.f32 %v3805_v25, %v3175_v40  ;;  %v3909_v20 = vmax.f32 %v3252_v23, %v3253_v36  ;;  %v3783_v40 = vmax.f32 %v3156_v3, %v3157_v46  ;;  %v3889_v17 = vmax.f32 %v3888_v24, %v3238_v9 }
 0x5c2   : > { %v2483_v58 = vpop.permute.xlu0 %2482  ;;  %v3208_v29 = vmul.f32 %v7922_v34, %v9521_v13  ;;  %v3158_v16 = vmul.f32 %v7924_v6, %v9523_v47  ;;  %v3848_v8 = vmax.f32 %v3847_v19, %v3207_v26  ;;  %v3930_v35 = vmax.f32 %v3268_v39, %v3269_v10  ;;  %v9881_v10 = vld [vmem:[#allocation178_spill] sm:$0xff] }
 0x5c3   : > { %2636 = vbcast.lane.b32.xlu1 %v7684_v52, 344  ;;  %v8074_v4 = vmax.f32 %v3827_v27, %v3192_v42  ;;  %v3869_v44 = vmax.f32 %v3868_v49, %v3223_v53  ;;  %v3239_v34 = vmul.f32 %v7930_v31, %v9522_v21  ;;  %v3225_v6 = vmul.f32 %v7964_v7, %v9520_v61  ;;  %v9879_v49 = vld [vmem:[#allocation179_spill] sm:$0xff] }
 0x5c4   : > { %2506 = vbcast.lane.b32.xlu0 %v7652_v18, 352  ;;  %v8080_v30 = vmax.f32 %v3806_v32, %v3176_v59  ;;  %v3910_v25 = vmax.f32 %v3909_v20, %v3254_v55  ;;  %v3951_v11 = vmax.f32 %v3284_v43, %v3285_v37  ;;  %v3849_v36 = vmax.f32 %v3848_v8, %v3208_v29  ;;  %v9882_v20 = vld [vmem:[#allocation180_spill] sm:$0xff]  ;;  %v9884_v59 = vld [vmem:[#allocation181_spill] sm:$0xff] }
 0x5c5   : > { %v8038_v60 = vpop.permute.xlu1 %2210  ;;  %v3784_v23 = vmax.f32 %v3783_v40, %v3158_v16  ;;  %v3870_v46 = vmax.f32 %v3869_v44, %v3224_v38  ;;  %v3226_v3 = vmul.f32 %v2483_v58, %v9519_v51  ;;  %v8087_v24 = vmax.f32 %v3930_v35, %v3270_v22  ;;  %v9880_v58 = vld [vmem:[#allocation185_spill] sm:$0xff]  ;;  %v9883_v40 = vld [vmem:[#allocation186_spill] sm:$0xff] }
 0x5c6   : > { %v2743_v28 = vpop.permute.xlu0 %2742  ;;  %v8091_v7 = vmul.f32 %v7936_v50, %v9520_v61  ;;  %v3255_v31 = vmul.f32 %v7940_v48, %v9522_v21  ;;  %v3890_v32 = vmax.f32 %v3889_v17, %v3239_v34  ;;  %v3159_v27 = vmul.f32 %v9879_v49, %v9522_v21  ;;  %v9885_v17 = vld [vmem:[#allocation62_spill] sm:$0xff]  ;;  %v9886_v34 = vld [vmem:[#allocation187_spill] sm:$0xff] }
 0x5c7   : > { %2234 = vbcast.lane.b32.xlu1 %v7694_v12, 344  ;;  %v3871_v9 = vmax.f32 %v3870_v46, %v3225_v6  ;;  %v3287_v26 = vmul.f32 %v9880_v58, %v9522_v21  ;;  %v8103_v39 = vmul.f32 %v9881_v10, %v9520_v61  ;;  %v3952_v50 = vmax.f32 %v3951_v11, %v3286_v14  ;;  %v9887_v14 = vld [vmem:[#allocation183_spill] sm:$0xff]  ;;  %v9888_v46 = vld [vmem:[#allocation188_spill] sm:$0xff] }
 0x5c8   : > { %2766 = vbcast.lane.b32.xlu0 %v7732_v54, 336  ;;  %v3240_v48 = vmul.f32 %v9882_v20, %v9521_v13  ;;  %v3256_v42 = vmul.f32 %v9883_v40, %v9521_v13  ;;  %v3209_v55 = vmul.f32 %v9884_v59, %v9520_v61  ;;  %v3288_v43 = vmul.f32 %v2743_v28, %v9521_v13 }
 0x5c9   : > { %v8062_v0 = vpop.permute.xlu1 %2549  ;;  %v8111_v37 = vmax.f32 %v3871_v9, %v3226_v3  ;;  %v3808_v38 = vmax.f32 %v8080_v30, %v8091_v7  ;;  %v3911_v8 = vmax.f32 %v3910_v25, %v3255_v31  ;;  %v3257_v35 = vmul.f32 %v8018_v45, %v9520_v61 }
 0x5ca   : > { %v2420_v62 = vpop.permute.xlu0 %2419  ;;  %v3785_v22 = vmax.f32 %v3784_v23, %v3159_v27  ;;  %v3953_v44 = vmax.f32 %v3952_v50, %v3287_v26  ;;  %v3210_v28 = vmul.f32 %v9886_v34, %v9519_v51  ;;  %v3891_v11 = vmax.f32 %v3890_v32, %v3240_v48 }
 0x5cb   : > { %2573 = vbcast.lane.b32.xlu1 %v7662_v5, 352  ;;  %v3271_v30 = vmul.f32 %v9887_v14, %v9522_v21  ;;  %v3912_v25 = vmax.f32 %v3911_v8, %v3256_v42  ;;  %v3160_v45 = vmul.f32 %v9888_v46, %v9521_v13  ;;  %v3850_v7 = vmax.f32 %v3849_v36, %v3209_v55  ;;  %v9889_v36 = vld [vmem:[#allocation182_spill] sm:$0xff]  ;;  %v9892_v55 = vld [vmem:[#allocation184_spill] sm:$0xff]  ;;  %v9894_v46 = vld [vmem:[#allocation191_spill] sm:$0xff] }
 0x5cc   : > { %2443 = vbcast.lane.b32.xlu0 %v7636_v33, 360  ;;  %v8131_v31 = vmax.f32 %v3953_v44, %v3288_v43  ;;  %v3211_v23 = vmul.f32 %v2420_v62, %v9885_v17  ;;  %v3161_v32 = vmul.f32 %v8038_v60, %v9520_v61  ;;  %v3178_v26 = vmul.f32 %v9889_v36, %v9519_v51  ;;  %v9890_v62 = vld [vmem:[#allocation189_spill] sm:$0xff]  ;;  %v9891_v60 = vld [vmem:[#allocation190_spill] sm:$0xff] }
 0x5cd   : > { %v8084_v56 = vpop.permute.xlu1 %2289  ;;  %v3913_v9 = vmax.f32 %v3912_v25, %v3257_v35  ;;  %v3851_v10 = vmax.f32 %v3850_v7, %v3210_v28  ;;  %v3272_v50 = vmul.f32 %v9890_v62, %v9521_v13  ;;  %v3932_v48 = vmax.f32 %v8087_v24, %v3271_v30  ;;  %v9893_v44 = vld [vmem:[#allocation65_spill] sm:$0xff] }
 0x5ce   : > { %v2680_v19 = vpop.permute.xlu0 %2679  ;;  %v3786_v40 = vmax.f32 %v3785_v22, %v3160_v45  ;;  %v3241_v42 = vmul.f32 %v9891_v60, %v9520_v61  ;;  %v3194_v43 = vmul.f32 %v9892_v55, %v9519_v51  ;;  %v3242_v24 = vmul.f32 %v8062_v0, %v9519_v51  ;;  %v9896_v60 = vld [vmem:[#allocation64_spill] sm:$0xff] }
 0x5cf   : > { %2171 = vbcast.lane.b32.xlu1 %v7585_v63, 352  ;;  %v3852_v8 = vmax.f32 %v3851_v10, %v3211_v23  ;;  %v3273_v35 = vmul.f32 %v2680_v19, %v9520_v61  ;;  %v3829_v30 = vmax.f32 %v8074_v4, %v8103_v39  ;;  %v3933_v25 = vmax.f32 %v3932_v48, %v3272_v50  ;;  %v9895_v23 = vld [vmem:[#allocation192_spill] sm:$0xff] }
 0x5d0   : > { %2703 = vbcast.lane.b32.xlu0 %v9878_v57, 344  ;;  %v3787_v14 = vmax.f32 %v3786_v40, %v3161_v32  ;;  %v3195_v19 = vmul.f32 %v9894_v46, %v9885_v17  ;;  %v3892_v7 = vmax.f32 %v3891_v11, %v3241_v42  ;;  %v3179_v0 = vmul.f32 %v9895_v23, %v9885_v17 }
 0x5d1   : > { %v2487_v53 = vpop.permute.xlu1 %2486  ;;  %v3830_v32 = vmax.f32 %v3829_v30, %v3194_v43  ;;  %v3180_v62 = vmul.f32 %v8084_v56, %v9893_v44 }
 0x5d2   : > { %v8115_v29 = vmul.f32 %v2487_v53, %v9885_v17  ;;  %v2357_v16 = vpop.permute.xlu0 %2356  ;;  %v3893_v10 = vmax.f32 %v3892_v7, %v3242_v24 }
 0x5d3   : > { %2380 = vbcast.lane.b32.xlu1 %v7626_v2, 368  ;;  %v3196_v36 = vmul.f32 %v2357_v16, %v9893_v44  ;;  %v3831_v11 = vmax.f32 %v3830_v32, %v3195_v19  ;;  %v9898_v19 = vld [vmem:[#allocation171_spill] sm:$0xff] }
 0x5d4   : > { %2313 = vbcast.lane.b32.xlu0 %v7616_v41, 368  ;;  %v3873_v6 = vmax.f32 %v8111_v37, %v8115_v29 }
 0x5d5   : > { %v2747_v3 = vpop.permute.xlu1 %2746  ;;  %v3832_v16 = vmax.f32 %v3831_v11, %v3196_v36  ;;  %v9900_v36 = vld [vmem:[#allocation172_spill] sm:$0xff] }
 0x5d6   : > { %v8135_v49 = vmul.f32 %v2747_v3, %v9520_v61  ;;  %v2617_v27 = vpop.permute.xlu0 %2616  ;;  %v3809_v3 = vmax.f32 %v3808_v38, %v3178_v26 }
 0x5d7   : > { %v3258_v58 = vmul.f32 %v2617_v27, %v9519_v51  ;;  %2640 = vbcast.lane.b32.xlu1 %v7684_v52, 352 }
 0x5d8   : > { %2510 = vbcast.lane.b32.xlu0 %v7652_v18, 360  ;;  %v3955_v20 = vmax.f32 %v8131_v31, %v8135_v49  ;;  %v3810_v50 = vmax.f32 %v3809_v3, %v3179_v0  ;;  %v3140_v3 = vmul.f32 %v9898_v19, %v9525_v15 }
 0x5d9   : > { %v8151_v53 = vmax.f32 %v3913_v9, %v3258_v58  ;;  %v2424_v59 = vpop.permute.xlu1 %2423  ;;  %v3934_v58 = vmax.f32 %v3933_v25, %v3273_v35  ;;  %v9897_v25 = vld [vmem:[#allocation170_spill] sm:$0xff] }
 0x5da   : > { %v3212_v34 = vmul.f32 %v2424_v59, %v9893_v44  ;;  %v2215_v28 = vpop.permute.xlu0 %2214  ;;  %v3811_v55 = vmax.f32 %v3810_v50, %v3180_v62  ;;  %v3141_v46 = vmul.f32 %v9897_v25, %v9524_v1  ;;  %v9904_v25 = vld [vmem:[#allocation177_spill] sm:$0xff] }
 0x5db   : > { %v3162_v22 = vmul.f32 %v2215_v28, %v9519_v51  ;;  %2238 = vbcast.lane.b32.xlu1 %v7694_v12, 352 }
 0x5dc   : > { %2770 = vbcast.lane.b32.xlu0 %v7732_v54, 344  ;;  %v8166_v45 = vmax.f32 %v3852_v8, %v3212_v34  ;;  %v3762_v0 = vmax.f32 %v3140_v3, %v3141_v46  ;;  %v3146_v46 = vmul.f32 %v9904_v25, %v9519_v51 }
 0x5dd   : > { %v8170_v27 = vmax.f32 %v3787_v14, %v3162_v22  ;;  %v2684_v9 = vpop.permute.xlu1 %2683 }
 0x5de   : > { %v3274_v4 = vmul.f32 %v2684_v9, %v9519_v51  ;;  %v2554_v39 = vpop.permute.xlu0 %2553 }
 0x5df   : > { %v3243_v38 = vmul.f32 %v2554_v39, %v9885_v17  ;;  %2577 = vbcast.lane.b32.xlu1 %v7662_v5, 360 }
 0x5e0   : > { %2447 = vbcast.lane.b32.xlu0 %v7636_v33, 368  ;;  %v8179_v26 = vmax.f32 %v3934_v58, %v3274_v4  ;;  %v3143_v4 = vmul.f32 %v9900_v36, %v9522_v21 }
 0x5e1   : > { %v3894_v48 = vmax.f32 %v3893_v10, %v3243_v38  ;;  %v2361_v40 = vpop.permute.xlu1 %2360  ;;  %v9901_v38 = vld [vmem:[#allocation175_spill] sm:$0xff] }
 0x5e2   : > { %v3197_v42 = vmul.f32 %v2361_v40, %v9896_v60  ;;  %v2294_v59 = vpop.permute.xlu0 %2293  ;;  %v3144_v11 = vmul.f32 %v9901_v38, %v9521_v13  ;;  %v9906_v38 = vld [vmem:[#allocation66_spill] sm:$0xff] }
 0x5e3   : > { %v3181_v43 = vmul.f32 %v2294_v59, %v9896_v60  ;;  %2175 = vbcast.lane.b32.xlu1 %v7585_v63, 360  ;;  %v9903_v59 = vld [vmem:[#allocation174_spill] sm:$0xff] }
 0x5e4   : > { %2707 = vbcast.lane.b32.xlu0 %v9878_v57, 352  ;;  %v3833_v56 = vmax.f32 %v3832_v16, %v3197_v42  ;;  %v9902_v16 = vld [vmem:[#allocation67_spill] sm:$0xff] }
 0x5e5   : > { %v3812_v8 = vmax.f32 %v3811_v55, %v3181_v43  ;;  %v2621_v35 = vpop.permute.xlu1 %2620  ;;  %v3145_v55 = vmul.f32 %v9903_v59, %v9520_v61 }
 0x5e6   : > { %v3259_v34 = vmul.f32 %v2621_v35, %v9885_v17  ;;  %v2491_v28 = vpop.permute.xlu0 %2490 }
 0x5e7   : > { %v3228_v14 = vmul.f32 %v2491_v28, %v9893_v44  ;;  %2384 = vbcast.lane.b32.xlu1 %v7626_v2, 376 }
 0x5e8   : > { %2317 = vbcast.lane.b32.xlu0 %v7616_v41, 376  ;;  %v3915_v24 = vmax.f32 %v8151_v53, %v3259_v34  ;;  %v9899_v41 = vld [vmem:[#allocation173_spill] sm:$0xff] }
 0x5e9   : > { %v8193_v22 = vmax.f32 %v3873_v6, %v3228_v14  ;;  %v2219_v30 = vpop.permute.xlu1 %2218  ;;  %v3142_v37 = vmul.f32 %v9899_v41, %v9523_v47 }
 0x5ea   : > { %v3163_v7 = vmul.f32 %v2219_v30, %v9885_v17  ;;  %v2751_v23 = vpop.permute.xlu0 %2750 }
 0x5eb   : > { %v3290_v2 = vmul.f32 %v2751_v23, %v9519_v51  ;;  %2644 = vbcast.lane.b32.xlu1 %v7684_v52, 360 }
 0x5ec   : > { %2514 = vbcast.lane.b32.xlu0 %v7652_v18, 368  ;;  %v3789_v29 = vmax.f32 %v8170_v27, %v3163_v7  ;;  %v3763_v27 = vmax.f32 %v3762_v0, %v3142_v37 }
 0x5ed   : > { %v8209_v6 = vmax.f32 %v3955_v20, %v3290_v2  ;;  %v2558_v53 = vpop.permute.xlu1 %2557 }
 0x5ee   : > { %v3244_v9 = vmul.f32 %v2558_v53, %v9893_v44  ;;  %v2428_v32 = vpop.permute.xlu0 %2427  ;;  %v3764_v62 = vmax.f32 %v3763_v27, %v3143_v4 }
 0x5ef   : > { %v3213_v58 = vmul.f32 %v2428_v32, %v9896_v60  ;;  %2242 = vbcast.lane.b32.xlu1 %v7694_v12, 360 }
 0x5f0   : > { %2774 = vbcast.lane.b32.xlu0 %v7732_v54, 352  ;;  %v8217_v39 = vmax.f32 %v3894_v48, %v3244_v9 }
 0x5f1   : > { %v3854_v31 = vmax.f32 %v8166_v45, %v3213_v58  ;;  %v2156_v49 = vpop.permute.xlu1 %2155 }
 0x5f2   : > { %v2688_v20 = vpop.permute.xlu0 %2687 }
 0x5f3   : > { %v3275_v10 = vmul.f32 %v2688_v20, %v9885_v17  ;;  %2581 = vbcast.lane.b32.xlu1 %v7662_v5, 368 }
 0x5f4   : > { %2451 = vbcast.lane.b32.xlu0 %v7636_v33, 376  ;;  %v3765_v33 = vmax.f32 %v3764_v62, %v3144_v11 }
 0x5f5   : > { %v3936_v50 = vmax.f32 %v8179_v26, %v3275_v10  ;;  %v2365_v40 = vpop.permute.xlu1 %2364 }
 0x5f6   : > { %v3198_v48 = vmul.f32 %v2365_v40, %v9902_v16  ;;  %v2298_v42 = vpop.permute.xlu0 %2297  ;;  %v3766_v30 = vmax.f32 %v3765_v33, %v3145_v55 }
 0x5f7   : > { %v3182_v45 = vmul.f32 %v2298_v42, %v9902_v16  ;;  %2179 = vbcast.lane.b32.xlu1 %v7585_v63, 368 }
 0x5f8   : > { %2711 = vbcast.lane.b32.xlu0 %v9878_v57, 360  ;;  %v8232_v43 = vmax.f32 %v3833_v56, %v3198_v48  ;;  %v3767_v41 = vmax.f32 %v3766_v30, %v3146_v46  ;;  %v9910_v30 = vld [vmem:[#allocation90_spill] sm:$0xff] }
 0x5f9   : > { %v8234_v35 = vmax.f32 %v3812_v8, %v3182_v45  ;;  %v2625_v34 = vpop.permute.xlu1 %2624  ;;  %v3060_v25 = vmul.f32 %v9910_v30, %v9525_v15 }
 0x5fa   : > { %v3260_v26 = vmul.f32 %v2625_v34, %v9893_v44  ;;  %v2495_v28 = vpop.permute.xlu0 %2494 }
 0x5fb   : > { %v3229_v14 = vmul.f32 %v2495_v28, %v9896_v60  ;;  %2648 = vbcast.lane.b32.xlu1 %v7684_v52, 368  ;;  %v9909_v28 = vld [vmem:[#allocation87_spill] sm:$0xff] }
 0x5fc   : > { %2518 = vbcast.lane.b32.xlu0 %v7652_v18, 376  ;;  %v8242_v19 = vmax.f32 %v3915_v24, %v3260_v26  ;;  %v9905_v18 = vld [vmem:[#allocation176_spill] sm:$0xff]  ;;  %v9908_v26 = vld [vmem:[#allocation119_spill] sm:$0xff] }
 0x5fd   : > { %v3875_v56 = vmax.f32 %v8193_v22, %v3229_v14  ;;  %v2223_v8 = vpop.permute.xlu1 %2222  ;;  %v3147_v2 = vmul.f32 %v9905_v18, %v9885_v17  ;;  %v3148_v22 = vmul.f32 %v2156_v49, %v9893_v44  ;;  %v3061_v14 = vmul.f32 %v9909_v28, %v9524_v1 }
 0x5fe   : > { %v3164_v3 = vmul.f32 %v2223_v8, %v9893_v44  ;;  %v2755_v7 = vpop.permute.xlu0 %2754 }
 0x5ff   : > { %v3291_v23 = vmul.f32 %v2755_v7, %v9885_v17  ;;  %2246 = vbcast.lane.b32.xlu1 %v7694_v12, 368  ;;  %v3768_v58 = vmax.f32 %v3767_v41, %v3147_v2 }
 0x600   : > { %2778 = vbcast.lane.b32.xlu0 %v7732_v54, 360  ;;  %v8251_v37 = vmax.f32 %v3789_v29, %v3164_v3 }
 0x601   : > { %v3957_v24 = vmax.f32 %v8209_v6, %v3291_v23  ;;  %v2562_v53 = vpop.permute.xlu1 %2561  ;;  %v3769_v27 = vmax.f32 %v3768_v58, %v3148_v22  ;;  %v9912_v23 = vld [vmem:[#allocation94_spill] sm:$0xff]  ;;  %v3657_v22 = vmax.f32 %v3060_v25, %v3061_v14  ;;  %v9920_v14 = vld [vmem:[#allocation93_spill] sm:$0xff] }
 0x602   : > { %v3245_v0 = vmul.f32 %v2562_v53, %v9896_v60  ;;  %v2432_v9 = vpop.permute.xlu0 %2431  ;;  %v3062_v18 = vmul.f32 %v9912_v23, %v9523_v47  ;;  %v3093_v30 = vmul.f32 %v9920_v14, %v9524_v1  ;;  %v9921_v25 = vld [vmem:[#allocation73_spill] sm:$0xff] }
 0x603   : > { %v3214_v32 = vmul.f32 %v2432_v9, %v9902_v16  ;;  %2715 = vbcast.lane.b32.xlu1 %v9878_v57, 368  ;;  %v9913_v9 = vld [vmem:[#allocation77_spill] sm:$0xff] }
 0x604   : > { %2585 = vbcast.lane.b32.xlu0 %v7662_v5, 376  ;;  %v3896_v36 = vmax.f32 %v8217_v39, %v3245_v0 }
 0x605   : > { %v8260_v4 = vmax.f32 %v3854_v31, %v3214_v32  ;;  %v2160_v29 = vpop.permute.xlu1 %2159  ;;  %v3047_v32 = vmul.f32 %v9913_v9, %v9522_v21  ;;  %v9924_v9 = vld [vmem:[#allocation74_spill] sm:$0xff] }
 0x606   : > { %v3149_v6 = vmul.f32 %v2160_v29, %v9896_v60  ;;  %v2692_v20 = vpop.permute.xlu0 %2691 }
 0x607   : > { %v3276_v49 = vmul.f32 %v2692_v20, %v9893_v44  ;;  %2652 = vbcast.lane.b32.xlu1 %v7684_v52, 376 }
 0x608   : > { %2183 = vbcast.lane.b32.xlu0 %v7585_v63, 376  ;;  %v3770_v10 = vmax.f32 %v3769_v27, %v3149_v6  ;;  %v9914_v6 = vld [vmem:[#allocation92_spill] sm:$0xff] }
 0x609   : > { %v8266_v62 = vmax.f32 %v3936_v50, %v3276_v49  ;;  %v2369_v5 = vpop.permute.xlu1 %2368  ;;  %v3063_v20 = vmul.f32 %v9914_v6, %v9522_v21  ;;  %v3658_v49 = vmax.f32 %v3657_v22, %v3062_v18  ;;  %v9923_v18 = vld [vmem:[#allocation125_spill] sm:$0xff] }
 0x60a   : > { %v3199_v11 = vmul.f32 %v2369_v5, %v9906_v38  ;;  %v2302_v39 = vpop.permute.xlu0 %2301 }
 0x60b   : > { %v3183_v31 = vmul.f32 %v2302_v39, %v9906_v38  ;;  %2250 = vbcast.lane.b32.xlu1 %v7694_v12, 376 }
 0x60c   : > { %2782 = vbcast.lane.b32.xlu0 %v7732_v54, 368  ;;  %v3835_v40 = vmax.f32 %v8232_v43, %v3199_v11 }
 0x60d   : > { %v3814_v48 = vmax.f32 %v8234_v35, %v3183_v31  ;;  %v2629_v52 = vpop.permute.xlu1 %2628  ;;  %v9907_v35 = vld [vmem:[#allocation120_spill] sm:$0xff] }
 0x60e   : > { %v8275_v63 = vmul.f32 %v2629_v52, %v9896_v60  ;;  %v2499_v50 = vpop.permute.xlu0 %2498  ;;  %v3045_v34 = vmul.f32 %v9907_v35, %v9524_v1  ;;  %v9915_v52 = vld [vmem:[#allocation98_spill] sm:$0xff] }
 0x60f   : > { %v3230_v42 = vmul.f32 %v2499_v50, %v9902_v16  ;;  %2786 = vbcast.lane.b32.xlu1 %v7732_v54, 376  ;;  %v3044_v54 = vmul.f32 %v9908_v26, %v9525_v15  ;;  %v9916_v50 = vld [vmem:[#allocation69_spill] sm:$0xff] }
 0x610   : > { %2719 = vbcast.lane.b32.xlu0 %v9878_v57, 376  ;;  %v3917_v12 = vmax.f32 %v8242_v19, %v8275_v63  ;;  %v3048_v63 = vmul.f32 %v9915_v52, %v9521_v13 }
 0x611   : > { %v8282_v45 = vmax.f32 %v3875_v56, %v3230_v42  ;;  %v2227_v59 = vpop.permute.xlu1 %2226  ;;  %v9911_v56 = vld [vmem:[#allocation112_spill] sm:$0xff]  ;;  %v3636_v41 = vmax.f32 %v3044_v54, %v3045_v34  ;;  %v9919_v54 = vld [vmem:[#allocation123_spill] sm:$0xff] }
 0x612   : > { %v8285_v55 = vmul.f32 %v2227_v59, %v9896_v60  ;;  %v2759_v33 = vpop.permute.xlu0 %2758  ;;  %v3046_v8 = vmul.f32 %v9911_v56, %v9523_v47  ;;  %v9918_v34 = vld [vmem:[#allocation100_spill] sm:$0xff]  ;;  %v3064_v28 = vmul.f32 %v9919_v54, %v9521_v13 }
 0x613   : > { %v3292_v43 = vmul.f32 %v2759_v33, %v9893_v44  ;;  %v3659_v33 = vmax.f32 %v3658_v49, %v3063_v20  ;;  %v3076_v26 = vmul.f32 %v9918_v34, %v9525_v15  ;;  %v9928_v34 = vld [vmem:[#allocation102_spill] sm:$0xff] }
 0x614   : > { %v3791_v57 = vmax.f32 %v8251_v37, %v8285_v55  ;;  %v3637_v58 = vmax.f32 %v3636_v41, %v3046_v8  ;;  %v9922_v8 = vld [vmem:[#allocation97_spill] sm:$0xff]  ;;  %v3094_v41 = vmul.f32 %v9923_v18, %v9523_v47  ;;  %v9932_v18 = vld [vmem:[#allocation118_spill] sm:$0xff]  ;;  %v9934_v55 = vld [vmem:[#allocation127_spill] sm:$0xff] }
 0x615   : > { %v8298_v46 = vmax.f32 %v3957_v24, %v3292_v43  ;;  %v2566_v19 = vpop.permute.xlu1 %2565  ;;  %v9917_v43 = vld [vmem:[#allocation82_spill] sm:$0xff] }
 0x616   : > { %v3246_v3 = vmul.f32 %v2566_v19, %v9902_v16  ;;  %v2436_v7 = vpop.permute.xlu0 %2435  ;;  %v3638_v31 = vmax.f32 %v3637_v58, %v3047_v32  ;;  %v3077_v35 = vmul.f32 %v9917_v43, %v9524_v1  ;;  %v3092_v19 = vmul.f32 %v9921_v25, %v9525_v15 }
 0x617   : > { %v8306_v2 = vmul.f32 %v2436_v7, %v9906_v38  ;;  %v3049_v32 = vmul.f32 %v9924_v9, %v9520_v61 }
 0x618   : > { %v8308_v53 = vmax.f32 %v3896_v36, %v3246_v3  ;;  %v3078_v3 = vmul.f32 %v9922_v8, %v9523_v47  ;;  %v3639_v58 = vmax.f32 %v3638_v31, %v3048_v63  ;;  %v3699_v20 = vmax.f32 %v3092_v19, %v3093_v30  ;;  %v9930_v30 = vld [vmem:[#allocation80_spill] sm:$0xff] }
 0x619   : > { %v3856_v24 = vmax.f32 %v8260_v4, %v8306_v2  ;;  %v2164_v0 = vpop.permute.xlu1 %2163  ;;  %v3050_v25 = vmul.f32 %v9930_v30, %v9519_v51  ;;  %v9931_v19 = vld [vmem:[#allocation140_spill] sm:$0xff]  ;;  %v9943_v2 = vld [vmem:[#allocation143_spill] sm:$0xff] }
 0x61a   : > { %v3150_v29 = vmul.f32 %v2164_v0, %v9902_v16  ;;  %v2696_v27 = vpop.permute.xlu0 %2695  ;;  %v3640_v14 = vmax.f32 %v3639_v58, %v3049_v32  ;;  %v3110_v8 = vmul.f32 %v9931_v19, %v9523_v47  ;;  %v9933_v32 = vld [vmem:[#allocation116_spill] sm:$0xff] }
 0x61b   : > { %v8318_v5 = vmul.f32 %v2696_v27, %v9896_v60  ;;  %v9925_v27 = vld [vmem:[#allocation103_spill] sm:$0xff]  ;;  %v3080_v58 = vmul.f32 %v9933_v32, %v9521_v13  ;;  %v9941_v32 = vld [vmem:[#allocation117_spill] sm:$0xff] }
 0x61c   : > { %v8320_v36 = vmax.f32 %v3770_v10, %v3150_v29  ;;  %v3678_v29 = vmax.f32 %v3076_v26, %v3077_v35  ;;  %v3065_v6 = vmul.f32 %v9925_v27, %v9520_v61  ;;  %v3700_v35 = vmax.f32 %v3699_v20, %v3094_v41 }
 0x61d   : > { %v3938_v11 = vmax.f32 %v8266_v62, %v8318_v5  ;;  %v2373_v39 = vpop.permute.xlu1 %2372  ;;  %v3109_v26 = vmul.f32 %v9928_v34, %v9524_v1  ;;  %v3066_v41 = vmul.f32 %v9932_v18, %v9519_v51  ;;  %v9949_v5 = vld [vmem:[#allocation129_spill] sm:$0xff] }
 0x61e   : > { %v3200_v42 = vmul.f32 %v2373_v39, %v9916_v50  ;;  %v2306_v59 = vpop.permute.xlu0 %2305  ;;  %v9926_v39 = vld [vmem:[#allocation122_spill] sm:$0xff] }
 0x61f   : > { %v3184_v10 = vmul.f32 %v2306_v59, %v9916_v50  ;;  %v3079_v52 = vmul.f32 %v9926_v39, %v9522_v21  ;;  %v9927_v59 = vld [vmem:[#allocation124_spill] sm:$0xff]  ;;  %v9936_v39 = vld [vmem:[#allocation155_spill] sm:$0xff] }
 0x620   : > { %v8338_v56 = vmax.f32 %v3835_v40, %v3200_v42  ;;  %v3679_v42 = vmax.f32 %v3678_v29, %v3078_v3  ;;  %v3095_v43 = vmul.f32 %v9927_v59, %v9522_v21  ;;  %v9937_v59 = vld [vmem:[#allocation114_spill] sm:$0xff] }
 0x621   : > { %v8342_v7 = vmax.f32 %v3814_v48, %v3184_v10  ;;  %v2633_v23 = vpop.permute.xlu1 %2632  ;;  %v3660_v48 = vmax.f32 %v3659_v33, %v3064_v28  ;;  %v9929_v33 = vld [vmem:[#allocation138_spill] sm:$0xff] }
 0x622   : > { %v3262_v22 = vmul.f32 %v2633_v23, %v9902_v16  ;;  %v2503_v0 = vpop.permute.xlu0 %2502  ;;  %v3108_v10 = vmul.f32 %v9929_v33, %v9525_v15  ;;  %v3701_v29 = vmax.f32 %v3700_v35, %v3095_v43  ;;  %v9938_v43 = vld [vmem:[#allocation139_spill] sm:$0xff]  ;;  %v3641_v33 = vmax.f32 %v3640_v14, %v3050_v25  ;;  %v9942_v25 = vld [vmem:[#allocation126_spill] sm:$0xff] }
 0x623   : > { %v8350_v40 = vmul.f32 %v2503_v0, %v9906_v38  ;;  %v3661_v23 = vmax.f32 %v3660_v48, %v3065_v6  ;;  %v9935_v6 = vld [vmem:[#allocation154_spill] sm:$0xff]  ;;  %v3111_v35 = vmul.f32 %v9938_v43, %v9522_v21 }
 0x624   : > { %v8354_v49 = vmax.f32 %v3917_v12, %v3262_v22  ;;  %v3680_v22 = vmax.f32 %v3679_v42, %v3079_v52  ;;  %v3720_v27 = vmax.f32 %v3108_v10, %v3109_v26  ;;  %v3125_v48 = vmul.f32 %v9935_v6, %v9524_v1  ;;  %v9939_v10 = vld [vmem:[#allocation106_spill] sm:$0xff] }
 0x625   : > { %v3877_v31 = vmax.f32 %v8282_v45, %v8350_v40  ;;  %v2231_v63 = vpop.permute.xlu1 %2230  ;;  %v3124_v52 = vmul.f32 %v9936_v39, %v9525_v15  ;;  %v9962_v45 = vld [vmem:[#allocation131_spill] sm:$0xff] }
 0x626   : > { %v3166_v12 = vmul.f32 %v2231_v63, %v9902_v16  ;;  %v2763_v54 = vpop.permute.xlu0 %2762  ;;  %v3051_v63 = vmul.f32 %v9937_v59, %v9885_v17  ;;  %v3721_v34 = vmax.f32 %v3720_v27, %v3110_v8  ;;  %v3081_v8 = vmul.f32 %v9941_v32, %v9520_v61 }
 0x627   : > { %v8368_v28 = vmul.f32 %v2763_v54, %v9896_v60  ;;  %v9940_v54 = vld [vmem:[#allocation157_spill] sm:$0xff]  ;;  %v3681_v27 = vmax.f32 %v3680_v22, %v3080_v58  ;;  %v3741_v39 = vmax.f32 %v3124_v52, %v3125_v48  ;;  %v9944_v22 = vld [vmem:[#allocation156_spill] sm:$0xff]  ;;  %v3100_v40 = vmul.f32 %v9962_v45, %v9893_v44  ;;  %v9967_v45 = vld [vmem:[#allocation107_spill] sm:$0xff] }
 0x628   : > { %v8377_v3 = vmax.f32 %v3791_v57, %v3166_v12  ;;  %v3096_v57 = vmul.f32 %v9934_v55, %v9521_v13  ;;  %v3067_v12 = vmul.f32 %v9939_v10, %v9885_v17  ;;  %v3126_v30 = vmul.f32 %v9940_v54, %v9523_v47  ;;  %v9947_v10 = vld [vmem:[#allocation68_spill] sm:$0xff]  ;;  %v9995_v47 = vld [vmem:[#allocation151_spill] sm:$0xff] }
 0x629   : > { %v2570_v9 = vpop.permute.xlu1 %2569  ;;  %v3097_v55 = vmul.f32 %v9942_v25, %v9520_v61  ;;  %v3722_v4 = vmax.f32 %v3721_v34, %v3111_v35  ;;  %v3127_v58 = vmul.f32 %v9944_v22, %v9522_v21  ;;  %v9946_v35 = vld [vmem:[#allocation88_spill] sm:$0xff]  ;;  %v3120_v21 = vmul.f32 %v9995_v47, %v9916_v50 }
 0x62a   : > { %v8386_v20 = vmul.f32 %v2570_v9, %v9906_v38  ;;  %v2440_v37 = vpop.permute.xlu0 %2439  ;;  %v3662_v9 = vmax.f32 %v3661_v23, %v3066_v41  ;;  %v3702_v6 = vmax.f32 %v3701_v29, %v3096_v57  ;;  %v3642_v41 = vmax.f32 %v3641_v33, %v3051_v63  ;;  %v9945_v57 = vld [vmem:[#allocation110_spill] sm:$0xff]  ;;  %v9969_v23 = vld [vmem:[#allocation147_spill] sm:$0xff] }
 0x62b   : > { %v3216_v42 = vmul.f32 %v2440_v37, %v9916_v50  ;;  %v3052_v48 = vmul.f32 %v9945_v57, %v9893_v44  ;;  %v3068_v34 = vmul.f32 %v9946_v35, %v9893_v44  ;;  %v3682_v33 = vmax.f32 %v3681_v27, %v3081_v8 }
 0x62c   : > { %v3663_v52 = vmax.f32 %v3662_v9, %v3067_v12  ;;  %v3703_v32 = vmax.f32 %v3702_v6, %v3097_v55  ;;  %v9950_v12 = vld [vmem:[#allocation142_spill] sm:$0xff]  ;;  %v3116_v0 = vmul.f32 %v9969_v23, %v9893_v44 }
 0x62d   : > { %v8408_v19 = vmax.f32 %v3856_v24, %v3216_v42  ;;  %v2168_v18 = vpop.permute.xlu1 %2167  ;;  %v3112_v24 = vmul.f32 %v9943_v2, %v9521_v13  ;;  %v3742_v42 = vmax.f32 %v3741_v39, %v3126_v30  ;;  %v9948_v30 = vld [vmem:[#allocation79_spill] sm:$0xff]  ;;  %v3113_v9 = vmul.f32 %v9950_v12, %v9520_v61  ;;  %v9951_v39 = vld [vmem:[#allocation109_spill] sm:$0xff] }
 0x62e   : > { %v8413_v37 = vmul.f32 %v2168_v18, %v9906_v38  ;;  %v2700_v14 = vpop.permute.xlu0 %2699  ;;  %v3082_v18 = vmul.f32 %v9948_v30, %v9519_v51  ;;  %v3053_v8 = vmul.f32 %v9951_v39, %v9896_v60  ;;  %v3643_v22 = vmax.f32 %v3642_v41, %v3052_v48  ;;  %v9957_v41 = vld [vmem:[#allocation145_spill] sm:$0xff] }
 0x62f   : > { %v3278_v59 = vmul.f32 %v2700_v14, %v9902_v16  ;;  %v3723_v14 = vmax.f32 %v3722_v4, %v3112_v24  ;;  %v3743_v27 = vmax.f32 %v3742_v42, %v3127_v58  ;;  %v3664_v35 = vmax.f32 %v3663_v52, %v3068_v34  ;;  %v9956_v42 = vld [vmem:[#allocation128_spill] sm:$0xff]  ;;  %v9958_v34 = vld [vmem:[#allocation158_spill] sm:$0xff] }
 0x630   : > { %v3683_v58 = vmax.f32 %v3682_v33, %v3082_v18  ;;  %v3114_v48 = vmul.f32 %v9957_v41, %v9519_v51 }
 0x631   : > { %v8427_v43 = vmax.f32 %v3938_v11, %v3278_v59  ;;  %v2377_v29 = vpop.permute.xlu1 %2376  ;;  %v3098_v11 = vmul.f32 %v9949_v5, %v9519_v51  ;;  %v9952_v59 = vld [vmem:[#allocation159_spill] sm:$0xff]  ;;  %v3099_v5 = vmul.f32 %v9956_v42, %v9885_v17 }
 0x632   : > { %v8434_v54 = vmul.f32 %v2377_v29, %v9947_v10  ;;  %v2310_v63 = vpop.permute.xlu0 %2309  ;;  %v3128_v55 = vmul.f32 %v9952_v59, %v9521_v13  ;;  %v9953_v29 = vld [vmem:[#allocation95_spill] sm:$0xff]  ;;  %v3724_v59 = vmax.f32 %v3723_v14, %v3113_v9  ;;  %v3644_v14 = vmax.f32 %v3643_v22, %v3053_v8  ;;  %v9965_v22 = vld [vmem:[#allocation96_spill] sm:$0xff] }
 0x633   : > { %v8439_v62 = vmul.f32 %v2310_v63, %v9947_v10  ;;  %v3069_v57 = vmul.f32 %v9953_v29, %v9896_v60  ;;  %v9955_v63 = vld [vmem:[#allocation91_spill] sm:$0xff]  ;;  %v3704_v39 = vmax.f32 %v3703_v32, %v3098_v11 }
 0x634   : > { %v3083_v30 = vmul.f32 %v9955_v63, %v9885_v17  ;;  %v3744_v29 = vmax.f32 %v3743_v27, %v3128_v55  ;;  %v9959_v32 = vld [vmem:[#allocation99_spill] sm:$0xff]  ;;  %v9960_v63 = vld [vmem:[#allocation104_spill] sm:$0xff] }
 0x635   : > { %v2637_v2 = vpop.permute.xlu1 %2636  ;;  %v3070_v11 = vmul.f32 %v9959_v32, %v9902_v16  ;;  %v3054_v42 = vmul.f32 %v9960_v63, %v9902_v16  ;;  %v9961_v27 = vld [vmem:[#allocation83_spill] sm:$0xff]  ;;  %v9964_v32 = vld [vmem:[#allocation161_spill] sm:$0xff] }
 0x636   : > { %v8456_v4 = vmul.f32 %v2637_v2, %v9906_v38  ;;  %v2507_v24 = vpop.permute.xlu0 %2506  ;;  %v3129_v2 = vmul.f32 %v9958_v34, %v9520_v61  ;;  %v3684_v41 = vmax.f32 %v3683_v58, %v3083_v30  ;;  %v3084_v55 = vmul.f32 %v9961_v27, %v9893_v44 }
 0x637   : > { %v3232_v12 = vmul.f32 %v2507_v24, %v9916_v50  ;;  %v3665_v24 = vmax.f32 %v3664_v35, %v3069_v57  ;;  %v3705_v34 = vmax.f32 %v3704_v39, %v3099_v5  ;;  %v3725_v35 = vmax.f32 %v3724_v59, %v3114_v48  ;;  %v9966_v5 = vld [vmem:[#allocation85_spill] sm:$0xff]  ;;  %v9968_v48 = vld [vmem:[#allocation130_spill] sm:$0xff] }
 0x638   : > { %9954 = vst [vmem:[#allocation141_spill] sm:$0xff] %v8456_v4  ;;  %v3130_v52 = vmul.f32 %v9964_v32, %v9519_v51  ;;  %v3071_v30 = vmul.f32 %v9965_v22, %v9906_v38  ;;  %v3055_v39 = vmul.f32 %v9966_v5, %v9906_v38  ;;  %v3645_v27 = vmax.f32 %v3644_v14, %v3054_v42  ;;  %v9971_v14 = vld [vmem:[#allocation113_spill] sm:$0xff] }
 0x639   : > { %v8472_v33 = vmax.f32 %v3877_v31, %v3232_v12  ;;  %v8474_v18 = vpop.permute.xlu1 %2234  ;;  %v9963_v31 = vld [vmem:[#allocation144_spill] sm:$0xff]  ;;  %v3745_v12 = vmax.f32 %v3744_v29, %v3129_v2  ;;  %v3666_v58 = vmax.f32 %v3665_v24, %v3070_v11  ;;  %v3685_v59 = vmax.f32 %v3684_v41, %v3084_v55  ;;  %v9972_v55 = vld [vmem:[#allocation101_spill] sm:$0xff] }
 0x63a   : > { %v8478_v9 = vpop.permute.xlu0 %2766  ;;  %v3115_v57 = vmul.f32 %v9963_v31, %v9885_v17  ;;  %v3085_v31 = vmul.f32 %v9967_v45, %v9896_v60  ;;  %v3101_v2 = vmul.f32 %v9968_v48, %v9896_v60  ;;  %v3706_v29 = vmax.f32 %v3705_v34, %v3100_v40  ;;  %v9970_v24 = vld [vmem:[#allocation160_spill] sm:$0xff] }
 0x63b   : > { %v3131_v11 = vmul.f32 %v9970_v24, %v9885_v17  ;;  %v3746_v22 = vmax.f32 %v3745_v12, %v3130_v52  ;;  %v3667_v5 = vmax.f32 %v3666_v58, %v3071_v30  ;;  %v3072_v42 = vmul.f32 %v9971_v14, %v9916_v50  ;;  %v9974_v17 = vld [vmem:[#allocation133_spill] sm:$0xff]  ;;  %v9975_v12 = vld [vmem:[#allocation146_spill] sm:$0xff]  ;;  %v9976_v24 = vld [vmem:[#allocation163_spill] sm:$0xff] }
 0x63c   : > { %v3726_v32 = vmax.f32 %v3725_v35, %v3115_v57  ;;  %v3646_v41 = vmax.f32 %v3645_v27, %v3055_v39  ;;  %v3056_v34 = vmul.f32 %v9972_v55, %v9916_v50  ;;  %v3686_v40 = vmax.f32 %v3685_v59, %v3085_v31  ;;  %v9973_v57 = vld [vmem:[#allocation75_spill] sm:$0xff]  ;;  %v9977_v27 = vld [vmem:[#allocation108_spill] sm:$0xff] }
 0x63d   : > { %v8490_v8 = vpop.permute.xlu1 %2573  ;;  %v3086_v23 = vmul.f32 %v9973_v57, %v9902_v16  ;;  %v3707_v35 = vmax.f32 %v3706_v29, %v3101_v2  ;;  %v3102_v52 = vmul.f32 %v9974_v17, %v9902_v16  ;;  %v3117_v30 = vmul.f32 %v9975_v12, %v9896_v60  ;;  %v9978_v57 = vld [vmem:[#allocation81_spill] sm:$0xff] }
 0x63e   : > { %v8494_v63 = vpop.permute.xlu0 %2443  ;;  %v3727_v58 = vmax.f32 %v3726_v32, %v3116_v0  ;;  %v3747_v48 = vmax.f32 %v3746_v22, %v3131_v11  ;;  %v3132_v14 = vmul.f32 %v9976_v24, %v9893_v44  ;;  %v3073_v55 = vmul.f32 %v9977_v27, %v9947_v10  ;;  %v9979_v17 = vld [vmem:[#allocation121_spill] sm:$0xff]  ;;  %v9980_v0 = vld [vmem:[#allocation132_spill] sm:$0xff]  ;;  %v9982_v24 = vld [vmem:[#allocation162_spill] sm:$0xff] }
 0x63f   : > { %v3668_v31 = vmax.f32 %v3667_v5, %v3072_v42  ;;  %v3057_v2 = vmul.f32 %v9978_v57, %v9947_v10  ;;  %v3647_v29 = vmax.f32 %v3646_v41, %v3056_v34  ;;  %v3087_v6 = vmul.f32 %v9979_v17, %v9906_v38  ;;  %v9981_v44 = vld [vmem:[#allocation149_spill] sm:$0xff]  ;;  %v9983_v41 = vld [vmem:[#allocation71_spill] sm:$0xff]  ;;  %v9984_v34 = vld [vmem:[#allocation78_spill] sm:$0xff] }
 0x640   : > { %v3687_v25 = vmax.f32 %v3686_v40, %v3086_v23  ;;  %v3103_v32 = vmul.f32 %v9980_v0, %v9906_v38  ;;  %v3708_v11 = vmax.f32 %v3707_v35, %v3102_v52  ;;  %v3728_v22 = vmax.f32 %v3727_v58, %v3117_v30  ;;  %v9985_v23 = vld [vmem:[#allocation105_spill] sm:$0xff]  ;;  %v9986_v30 = vld [vmem:[#allocation111_spill] sm:$0xff] }
 0x641   : > { %v8506_v26 = vpop.permute.xlu1 %2171  ;;  %v3118_v12 = vmul.f32 %v9981_v44, %v9902_v16  ;;  %v3133_v5 = vmul.f32 %v9982_v24, %v9896_v60  ;;  %v3748_v42 = vmax.f32 %v3747_v48, %v3132_v14  ;;  %v3669_v57 = vmax.f32 %v3668_v31, %v3073_v55  ;;  %v9987_v60 = vld [vmem:[#allocation135_spill] sm:$0xff]  ;;  %v9988_v14 = vld [vmem:[#allocation148_spill] sm:$0xff]  ;;  %v9989_v24 = vld [vmem:[#allocation165_spill] sm:$0xff] }
 0x642   : > { %v8510_v45 = vpop.permute.xlu0 %2703  ;;  %v3074_v15 = vmul.f32 %v9984_v34, %v9983_v41  ;;  %v3648_v40 = vmax.f32 %v3647_v29, %v3057_v2  ;;  %v3058_v35 = vmul.f32 %v9985_v23, %v9983_v41  ;;  %v3688_v52 = vmax.f32 %v3687_v25, %v3087_v6  ;;  %v9990_v29 = vld [vmem:[#allocation70_spill] sm:$0xff]  ;;  %v9991_v23 = vld [vmem:[#allocation115_spill] sm:$0xff] }
 0x643   : > { %v3088_v58 = vmul.f32 %v9986_v30, %v9916_v50  ;;  %v3709_v0 = vmax.f32 %v3708_v11, %v3103_v32  ;;  %v3104_v48 = vmul.f32 %v9987_v60, %v9916_v50  ;;  %v3119_v55 = vmul.f32 %v9988_v14, %v9906_v38  ;;  %v9992_v32 = vld [vmem:[#allocation86_spill] sm:$0xff]  ;;  %v9993_v60 = vld [vmem:[#allocation89_spill] sm:$0xff] }
 0x644   : > { %v3729_v31 = vmax.f32 %v3728_v22, %v3118_v12  ;;  %v3749_v44 = vmax.f32 %v3748_v42, %v3133_v5  ;;  %v3134_v34 = vmul.f32 %v9989_v24, %v9902_v16  ;;  %v3075_v25 = vmul.f32 %v9991_v23, %v9990_v29  ;;  %v9994_v12 = vld [vmem:[#allocation134_spill] sm:$0xff] }
 0x645   : > { %v2381_v39 = vpop.permute.xlu1 %2380  ;;  %v3670_v6 = vmax.f32 %v3669_v57, %v3074_v15  ;;  %v3059_v11 = vmul.f32 %v9992_v32, %v9990_v29  ;;  %v3649_v30 = vmax.f32 %v3648_v40, %v3058_v35  ;;  %v3089_v14 = vmul.f32 %v9993_v60, %v9947_v10  ;;  %v9996_v15 = vld [vmem:[#allocation164_spill] sm:$0xff] }
 0x646   : > { %v2314_v59 = vpop.permute.xlu0 %2313  ;;  %v3689_v22 = vmax.f32 %v3688_v52, %v3088_v58  ;;  %v3105_v5 = vmul.f32 %v9994_v12, %v9947_v10  ;;  %v3710_v42 = vmax.f32 %v3709_v0, %v3104_v48  ;;  %v3730_v24 = vmax.f32 %v3729_v31, %v3119_v55  ;;  %v9997_v52 = vld [vmem:[#allocation84_spill] sm:$0xff]  ;;  %v9998_v0 = vld [vmem:[#allocation137_spill] sm:$0xff]  ;;  %v9999_v55 = vld [vmem:[#allocation150_spill] sm:$0xff] }
 0x647   : > { %v3135_v57 = vmul.f32 %v9996_v15, %v9906_v38  ;;  %v3750_v23 = vmax.f32 %v3749_v44, %v3134_v34  ;;  %v3671_v32 = vmax.f32 %v3670_v6, %v3075_v25  ;;  %v3650_v35 = vmax.f32 %v3649_v30, %v3059_v11  ;;  %v10000_v44 = vld [vmem:[#allocation167_spill] sm:$0xff] }
 0x648   : > { %v3690_v61 = vmax.f32 %v3689_v22, %v3089_v14  ;;  %v3090_v58 = vmul.f32 %v9997_v52, %v9983_v41  ;;  %v3711_v60 = vmax.f32 %v3710_v42, %v3105_v5  ;;  %v3106_v48 = vmul.f32 %v9998_v0, %v9983_v41  ;;  %v10002_v14 = vld [vmem:[#allocation76_spill] sm:$0xff]  ;;  %v10004_v52 = vld [vmem:[#allocation153_spill] sm:$0xff] }
 0x649   : > { %v8534_v27 = vpop.permute.xlu1 %2640  ;;  %v3121_v47 = vmul.f32 %v9999_v55, %v9947_v10  ;;  %v3731_v31 = vmax.f32 %v3730_v24, %v3120_v21  ;;  %v3751_v12 = vmax.f32 %v3750_v23, %v3135_v57  ;;  %v3136_v34 = vmul.f32 %v10000_v44, %v9916_v50  ;;  %v10003_v21 = vld [vmem:[#allocation136_spill] sm:$0xff]  ;;  %v10005_v55 = vld [vmem:[#allocation166_spill] sm:$0xff] }
 0x64a   : > { %v8538_v17 = vpop.permute.xlu0 %2510  ;;  %v3672_v25 = vrot.slane %v3671_v32, 4  ;;  %v3202_v6 = vmul.f32 %v2381_v39, %v9983_v41  ;;  %v3651_v30 = vrot.slane %v3650_v35, 4  ;;  %v3091_v22 = vmul.f32 %v10002_v14, %v9990_v29 }
 0x64b   : > { %v3691_v5 = vmax.f32 %v3690_v61, %v3090_v58  ;;  %v3186_v42 = vmul.f32 %v2314_v59, %v9983_v41  ;;  %v3107_v24 = vmul.f32 %v10003_v21, %v9990_v29  ;;  %v3712_v57 = vmax.f32 %v3711_v60, %v3106_v48 }
 0x64c   : > { %v3732_v23 = vmax.f32 %v3731_v31, %v3121_v47  ;;  %v3122_v0 = vmul.f32 %v10004_v52, %v9983_v41  ;;  %v3137_v39 = vmul.f32 %v10005_v55, %v9947_v10  ;;  %v3752_v44 = vmax.f32 %v3751_v12, %v3136_v34  ;;  %v10008_v12 = vld [vmem:[#allocation152_spill] sm:$0xff] }
 0x64d   : > { %v8550_v2 = vpop.permute.xlu1 %2238  ;;  %v10006_v14 = vmax.f32 %v8338_v56, %v8434_v54  ;;  %v3652_v4 = vmax.f32 %v3650_v35, %v3651_v30  ;;  %v3692_v21 = vmax.f32 %v3691_v5, %v3091_v22  ;;  %v10007_v60 = vmax.f32 %v8342_v7, %v8439_v62  ;;  %v10009_v56 = vld [vmem:[#allocation169_spill] sm:$0xff]  ;;  %v10010_v55 = vld [vmem:[#allocation168_spill] sm:$0xff] }
 0x64e   : > { %v8554_v1 = vpop.permute.xlu0 %2770  ;;  %v3713_v31 = vmax.f32 %v3712_v57, %v3107_v24  ;;  %v3123_v34 = vmul.f32 %v10008_v12, %v9990_v29  ;;  %v3753_v52 = vmax.f32 %v3752_v44, %v3137_v39  ;;  %v3138_v54 = vmul.f32 %v10009_v56, %v9983_v41 }
 0x64f   : > { %v3838_v61 = vmax.f32 %v10006_v14, %v3202_v6  ;;  %v3817_v48 = vmax.f32 %v10007_v60, %v3186_v42  ;;  %v3653_v7 = vrot.slane %v3652_v4, 2  ;;  %v3693_v5 = vrot.slane %v3692_v21, 4 }
 0x650   : > { %v3714_v42 = vrot.slane %v3713_v31, 4  ;;  %v3217_v39 = vmul.f32 %v8494_v63, %v9947_v10 }
 0x651   : > { %v8566_v13 = vpop.permute.xlu1 %2577  ;;  %v3654_v60 = vmax.f32 %v3652_v4, %v3653_v7  ;;  %v3694_v12 = vmax.f32 %v3692_v21, %v3693_v5  ;;  %v3233_v5 = vmul.f32 %v8538_v17, %v9947_v10 }
 0x652   : > { %v2448_v40 = vpop.permute.xlu0 %2447 }
 0x653   : > { %v3695_v7 = vrot.slane %v3694_v12, 2  ;;  %v3879_v17 = vmax.f32 %v8472_v33, %v3233_v5  ;;  %v10015_v5 = vmax.f32 %v8320_v36, %v8413_v37 }
 0x655   : > { %v8576_v15 = vpop.permute.xlu1 %2175 }
 0x656   : > { %v8579_v11 = vpop.permute.xlu0 %2707 }
 0x657   : > { %10001 = vst [vmem:[#allocation179_spill] sm:$0xff] %v8579_v11  ;;  %v3673_v11 = vmax.f32 %v3671_v32, %v3672_v25  ;;  %v3733_v32 = vmax.f32 %v3732_v23, %v3122_v0  ;;  %v3139_v23 = vmul.f32 %v10010_v55, %v9990_v29  ;;  %v3754_v0 = vmax.f32 %v3753_v52, %v3138_v54 }
 0x658   : > { %v3858_v52 = vmax.f32 %v8408_v19, %v3217_v39 }
 0x659   : > { %v2385_v51 = vpop.permute.xlu1 %2384  ;;  %v3674_v35 = vrot.slane %v3673_v11, 2  ;;  %v3734_v24 = vmax.f32 %v3733_v32, %v3123_v34  ;;  %v3715_v34 = vmax.f32 %v3713_v31, %v3714_v42  ;;  %v3755_v56 = vmax.f32 %v3754_v0, %v3139_v23 }
 0x65a   : > { %v3203_v59 = vmul.f32 %v2385_v51, %v9990_v29  ;;  %v2318_v58 = vpop.permute.xlu0 %2317 }
 0x65b   : > { %v3187_v47 = vmul.f32 %v2318_v58, %v9990_v29  ;;  %v3735_v32 = vrot.slane %v3734_v24, 4  ;;  %v3756_v31 = vrot.slane %v3755_v56, 4 }
 0x65c   : > { %v3839_v25 = vmax.f32 %v3838_v61, %v3203_v59  ;;  %v3675_v61 = vmax.f32 %v3673_v11, %v3674_v35  ;;  %v3655_v11 = vrot.slane %v3654_v60, 1 }
 0x65d   : > { %v3818_v51 = vmax.f32 %v3817_v48, %v3187_v47  ;;  %v8602_v6 = vpop.permute.xlu1 %2644  ;;  %v3218_v48 = vmul.f32 %v2448_v40, %v9983_v41  ;;  %v3716_v40 = vrot.slane %v3715_v34, 2 }
 0x65e   : > { %v3840_v30 = vrot.slane %v3839_v25, 4  ;;  %v2515_v22 = vpop.permute.xlu0 %2514 }
 0x65f   : > { %v3819_v62 = vrot.slane %v3818_v51, 4  ;;  %v3859_v35 = vmax.f32 %v3858_v52, %v3218_v48  ;;  %v3656_v48 = vmax.f32 %v3654_v60, %v3655_v11 }
 0x660   : > { %v3841_v57 = vmax.f32 %v3839_v25, %v3840_v30 }
 0x661   : > { %v3820_v44 = vmax.f32 %v3818_v51, %v3819_v62  ;;  %v8608_v14 = vpop.permute.xlu1 %2242  ;;  %v3676_v51 = vrot.slane %v3675_v61, 1 }
 0x662   : > { %v3842_v59 = vrot.slane %v3841_v57, 2  ;;  %v8610_v58 = vpop.permute.xlu0 %2774 }
 0x663   : > { %10011 = vst [vmem:[#allocation185_spill] sm:$0xff] %v8610_v58  ;;  %v3821_v47 = vrot.slane %v3820_v44, 2  ;;  %v3736_v58 = vmax.f32 %v3734_v24, %v3735_v32  ;;  %v3677_v23 = vmax.f32 %v3675_v61, %v3676_v51  ;;  %v8623_v24 = vmax.f32 %v3715_v34, %v3716_v40 }
 0x664   : > { %v3843_v25 = vmax.f32 %v3841_v57, %v3842_v59  ;;  %v3167_v61 = vmul.f32 %v8474_v18, %v9906_v38  ;;  %v3294_v51 = vmul.f32 %v8478_v9, %v9902_v16  ;;  %v3152_v34 = vmul.f32 %v8506_v26, %v9916_v50 }
 0x665   : > { %v3822_v54 = vmax.f32 %v3820_v44, %v3821_v47  ;;  %v2582_v63 = vpop.permute.xlu1 %2581  ;;  %v3234_v44 = vmul.f32 %v2515_v22, %v9983_v41  ;;  %v8621_v47 = vmax.f32 %v3694_v12, %v3695_v7  ;;  %v3737_v32 = vrot.slane %v3736_v58, 2 }
 0x666   : > { %v3844_v30 = vrot.slane %v3843_v25, 1  ;;  %v2452_v62 = vpop.permute.xlu0 %2451  ;;  %v3248_v22 = vmul.f32 %v8490_v8, %v9916_v50  ;;  %v8635_v12 = vsel %vm10012_vm9, %v3677_v23, %v3656_v48  ;;  %v3718_v18 = vrot.slane %v8623_v24, 1  ;;  %v10018_v48 = vld [vmem:[#allocation179_spill] sm:$0xff] }
 0x667   : > { %v3823_v55 = vrot.slane %v3822_v54, 1  ;;  %v3219_v4 = vmul.f32 %v2452_v62, %v9990_v29  ;;  %v3697_v62 = vrot.slane %v8621_v47, 1  ;;  %v3279_v16 = vmul.f32 %v8510_v45, %v9906_v38 }
 0x668   : > { %v3845_v21 = vmax.f32 %v3843_v25, %v3844_v30  ;;  %v8625_v25 = vmax.f32 %v3755_v56, %v3756_v31  ;;  %v3880_v56 = vmax.f32 %v3879_v17, %v3234_v44  ;;  %v3249_v9 = vmul.f32 %v8566_v13, %v9947_v10  ;;  %v10016_v44 = vld [vmem:[#allocation141_spill] sm:$0xff] }
 0x669   : > { %v3824_v42 = vmax.f32 %v3822_v54, %v3823_v55  ;;  %v3860_v19 = vmax.f32 %v3859_v35, %v3219_v4  ;;  %v2180_v57 = vpop.permute.xlu1 %2179  ;;  %v8646_v8 = vmax.f32 %v3736_v58, %v3737_v32  ;;  %v3793_v4 = vmax.f32 %v8377_v3, %v3167_v61 }
 0x66a   : > { %v8617_v0 = vpop.permute.xlu0 %2711  ;;  %v3758_v11 = vrot.slane %v8625_v25, 2  ;;  %v10013_v7 = vmax.f32 %v8308_v53, %v8386_v20  ;;  %v3250_v45 = vmul.f32 %v2582_v63, %v9983_v41  ;;  %v10014_v13 = vmax.f32 %v8298_v46, %v8368_v28 }
 0x66b   : > { %v4032_v39 = vsel %vm10012_vm9, %v3845_v21, %v3824_v42  ;;  %v3861_v59 = vrot.slane %v3860_v19, 4  ;;  %v3264_v21 = vmul.f32 %v8534_v27, %v9916_v50  ;;  %v3773_v42 = vmax.f32 %v10015_v5, %v3152_v34 }
 0x66c   : > { %v3899_v40 = vmax.f32 %v10013_v7, %v3248_v22  ;;  %v3960_v58 = vmax.f32 %v10014_v13, %v3294_v51  ;;  %v3940_v23 = vmax.f32 %v8427_v43, %v3279_v16  ;;  %v3168_v53 = vmul.f32 %v8550_v2, %v9916_v50  ;;  %v10019_v22 = vld [vmem:[#allocation185_spill] sm:$0xff] }
 0x66d   : > { %v3862_v52 = vmax.f32 %v3860_v19, %v3861_v59  ;;  %v2649_v54 = vpop.permute.xlu1 %2648  ;;  %v3265_v27 = vmul.f32 %v8602_v6, %v9947_v10  ;;  %v3295_v63 = vmul.f32 %v8554_v1, %v9906_v38  ;;  %v3153_v46 = vmul.f32 %v8576_v15, %v9947_v10 }
 0x66e   : > { %v2519_v60 = vpop.permute.xlu0 %2518  ;;  %v3900_v20 = vmax.f32 %v3899_v40, %v3249_v9  ;;  %v10017_v59 = vmax.f32 %v8354_v49, %v10016_v44  ;;  %v3280_v2 = vmul.f32 %v10018_v48, %v9916_v50  ;;  %v3266_v17 = vmul.f32 %v2649_v54, %v9983_v41 }
 0x66f   : > { %v3863_v33 = vrot.slane %v3862_v52, 2  ;;  %v3235_v30 = vmul.f32 %v2519_v60, %v9990_v29  ;;  %v3794_v61 = vmax.f32 %v3793_v4, %v3168_v53  ;;  %v3169_v49 = vmul.f32 %v8608_v14, %v9947_v10 }
 0x670   : > { %v3920_v43 = vmax.f32 %v10017_v59, %v3264_v21  ;;  %v3901_v32 = vmax.f32 %v3900_v20, %v3250_v45  ;;  %v3296_v60 = vmul.f32 %v10019_v22, %v9916_v50  ;;  %v3961_v34 = vmax.f32 %v3960_v58, %v3295_v63 }
 0x671   : > { %v3864_v35 = vmax.f32 %v3862_v52, %v3863_v33  ;;  %v3881_v26 = vmax.f32 %v3880_v56, %v3235_v30  ;;  %v2247_v55 = vpop.permute.xlu1 %2246  ;;  %v3154_v52 = vmul.f32 %v2180_v57, %v9983_v41  ;;  %v3774_v56 = vmax.f32 %v3773_v42, %v3153_v46 }
 0x672   : > { %v2779_v31 = vpop.permute.xlu0 %2778  ;;  %v3921_v51 = vmax.f32 %v3920_v43, %v3265_v27  ;;  %v3941_v16 = vmax.f32 %v3940_v23, %v3280_v2  ;;  %v3170_v9 = vmul.f32 %v2247_v55, %v9983_v41  ;;  %v3795_v40 = vmax.f32 %v3794_v61, %v3169_v49 }
 0x673   : > { %v3865_v19 = vrot.slane %v3864_v35, 1  ;;  %v3882_v3 = vrot.slane %v3881_v26, 4  ;;  %v3962_v21 = vmax.f32 %v3961_v34, %v3296_v60  ;;  %v3297_v50 = vmul.f32 %v2779_v31, %v9947_v10 }
 0x674   : > { %v3922_v57 = vmax.f32 %v3921_v51, %v3266_v17  ;;  %v3281_v13 = vmul.f32 %v8617_v0, %v9947_v10  ;;  %v3759_v10 = vmax.f32 %v8625_v25, %v3758_v11  ;;  %v3739_v44 = vrot.slane %v8646_v8, 1 }
 0x675   : > { %v3866_v28 = vmax.f32 %v3864_v35, %v3865_v19  ;;  %v3883_v36 = vmax.f32 %v3881_v26, %v3882_v3  ;;  %v2716_v37 = vpop.permute.xlu1 %2715  ;;  %v3775_v26 = vmax.f32 %v3774_v56, %v3154_v52  ;;  %v3796_v19 = vmax.f32 %v3795_v40, %v3170_v9 }
 0x676   : > { %v2586_v6 = vpop.permute.xlu0 %2585  ;;  %v3282_v3 = vmul.f32 %v2716_v37, %v9983_v41  ;;  %v3963_v0 = vmax.f32 %v3962_v21, %v3297_v50  ;;  %v3942_v37 = vmax.f32 %v3941_v16, %v3281_v13  ;;  %v3760_v51 = vrot.slane %v3759_v10, 1 }
 0x677   : > { %v3884_v1 = vrot.slane %v3883_v36, 2  ;;  %v3251_v38 = vmul.f32 %v2586_v6, %v9990_v29  ;;  %v4033_v15 = vsel %vm4006_vm15, %v3866_v28, %v4032_v39  ;;  %v3698_v49 = vmax.f32 %v8621_v47, %v3697_v62 }
 0x678   : > { %v3943_v52 = vmax.f32 %v3942_v37, %v3282_v3  ;;  %v3719_v56 = vmax.f32 %v8623_v24, %v3718_v18  ;;  %v10027_v37 = vld [vmem:[#allocation68_spill] sm:$0xff] (%p634_p0) }
 0x679   : > { %v3885_v33 = vmax.f32 %v3883_v36, %v3884_v1  ;;  %v3902_v54 = vmax.f32 %v3901_v32, %v3251_v38  ;;  %v2653_v30 = vpop.permute.xlu1 %2652 }
 0x67a   : > { %v3267_v35 = vmul.f32 %v2653_v30, %v9990_v29  ;;  %v2184_v39 = vpop.permute.xlu0 %2183 }
 0x67b   : > { %v3886_v4 = vrot.slane %v3885_v33, 1  ;;  %v3903_v7 = vrot.slane %v3902_v54, 4  ;;  %v3155_v14 = vmul.f32 %v2184_v39, %v9990_v29 }
 0x67c   : > { %v3923_v45 = vmax.f32 %v3922_v57, %v3267_v35 }
 0x67d   : > { %v3887_v58 = vmax.f32 %v3885_v33, %v3886_v4  ;;  %v3904_v5 = vmax.f32 %v3902_v54, %v3903_v7  ;;  %v3776_v42 = vmax.f32 %v3775_v26, %v3155_v14  ;;  %v2251_v55 = vpop.permute.xlu1 %2250  ;;  %v3761_v26 = vmax.f32 %v3759_v10, %v3760_v51  ;;  %v4987_v10 = vld [vmem:[#allocation4] ss:$0 sm:$0xff] (%p634_p0)  ;;  %v10035_v51 = vld [vmem:[#allocation60_spill] sm:$0xff] (%p634_p0) }
 0x67e   : > { %v3924_v23 = vrot.slane %v3923_v45, 4  ;;  %v3171_v53 = vmul.f32 %v2251_v55, %v9990_v29  ;;  %v2783_v20 = vpop.permute.xlu0 %2782  ;;  %v4026_v7 = vsel %vm4006_vm15, %v3698_v49, %v8635_v12  ;;  %vm10020_vm15 = vcmask 1047559  }
 0x67f   : > { %v3905_v27 = vrot.slane %v3904_v5, 2  ;;  %v3777_v63 = vrot.slane %v3776_v42, 4  ;;  %v3298_v46 = vmul.f32 %v2783_v20, %v9983_v41  ;;  %v4034_v31 = vsel %vm4008_vm12, %v3887_v58, %v4033_v15 }
 0x680   : > { %v3925_v28 = vmax.f32 %v3923_v45, %v3924_v23  ;;  %v3797_v36 = vmax.f32 %v3796_v19, %v3171_v53  ;;  %v4027_v18 = vsel %vm4008_vm12, %v3719_v56, %v4026_v7  ;;  %vm10021_vm12 = vmmov %vm10020_vm15 }
 0x681   : > { %v3906_v59 = vmax.f32 %v3904_v5, %v3905_v27  ;;  %v3778_v43 = vmax.f32 %v3776_v42, %v3777_v63  ;;  %v2787_v48 = vpop.permute.xlu1 %2786  ;;  %v3964_v17 = vmax.f32 %v3963_v0, %v3298_v46  ;;  %v10024_v63 = vmov (%p634_p0), 0.0  }
 0x682   : > { %v3926_v2 = vrot.slane %v3925_v28, 2  ;;  %v3798_v32 = vrot.slane %v3797_v36, 4  ;;  %v3299_v41 = vmul.f32 %v2787_v48, %v9990_v29  ;;  %v2720_v6 = vpop.permute.xlu0 %2719  ;;  %5306 = vmatprep.subr.mxu0 (%p634_p0), %v10024_v63  ;;  %v5657_v0 = vmov (%p634_p0), 0   ;;  %v10028_v48 = vld [vmem:[#allocation69_spill] sm:$0xff] (%p634_p0) }
 0x683   : > { %v3907_v1 = vrot.slane %v3906_v59, 1  ;;  %v3779_v38 = vrot.slane %v3778_v43, 2  ;;  %v3283_v25 = vmul.f32 %v2720_v6, %v9990_v29  ;;  %v3740_v29 = vmax.f32 %v8646_v8, %v3739_v44  ;;  %5544 = vset.pattern.permute.xlu0 (%p634_p0), %v5657_v0  ;;  %5545 = vset.pattern.permute.xlu1 (%p634_p0), %v5657_v0  ;;  %v10031_v6 = vld [vmem:[#allocation64_spill] sm:$0xff] (%p634_p0)  ;;  %v10065_v0 = vld [vmem:[#allocation37_spill] sm:$0xff] (%p634_p0) }
 0x684   : > { %v3927_v11 = vmax.f32 %v3925_v28, %v3926_v2  ;;  %v3799_v15 = vmax.f32 %v3797_v36, %v3798_v32  ;;  %v3965_v61 = vmax.f32 %v3964_v17, %v3299_v41  ;;  %4328 = vperm.xlu1 (%p634_p0), %5545, %v4987_v10   ;;  %v10026_v36 = vld [vmem:[#allocation71_spill] sm:$0xff] (%p634_p0)  ;;  %v10029_v2 = vld [vmem:[#allocation66_spill] sm:$0xff] (%p634_p0) }
 0x685   : > { %v3908_v22 = vmax.f32 %v3906_v59, %v3907_v1  ;;  %v3780_v60 = vmax.f32 %v3778_v43, %v3779_v38  ;;  %v3944_v34 = vmax.f32 %v3943_v52, %v3283_v25  ;;  %v4028_v8 = vsel %vm4010_vm8, %v3740_v29, %v4027_v18  ;;  %v10030_v41 = vld [vmem:[#allocation67_spill] sm:$0xff] (%p634_p0)  ;;  %v10032_v38 = vld [vmem:[#allocation65_spill] sm:$0xff] (%p634_p0)  ;;  %v10033_v25 = vld [vmem:[#allocation62_spill] sm:$0xff] (%p634_p0) }
 0x686   : > { %v3928_v33 = vrot.slane %v3927_v11, 1  ;;  %v3800_v54 = vrot.slane %v3799_v15, 2  ;;  %v3966_v30 = vrot.slane %v3965_v61, 4  ;;  %v4029_v13 = vsel %vm4012_vm13, %v3761_v26, %v4028_v8  ;;  %v10040_v29 = vld [vmem:[#allocation57_spill] sm:$0xff] (%p634_p0)  ;;  %v10046_v26 = vld [vmem:[#allocation10_spill] sm:$0xff] (%p634_p0) }
 0x687   : > { %v3945_v16 = vrot.slane %v3944_v34, 4  ;;  %v3781_v57 = vrot.slane %v3780_v60, 1  ;;  %v4035_v9 = vsel %vm4010_vm8, %v3908_v22, %v4034_v31  ;;  %vm10022_vm8 = vcmask 7168   ;;  %v10025_v31 = vld [vmem:[#allocation70_spill] sm:$0xff] (%p634_p0) }
 0x688   : > { %v3929_v35 = vmax.f32 %v3927_v11, %v3928_v33  ;;  %v3967_v39 = vmax.f32 %v3965_v61, %v3966_v30  ;;  %v3801_v47 = vmax.f32 %v3799_v15, %v3800_v54  ;;  %5341 = vmatprep.subr.mxu1 (%p634_p0), %v10025_v31  ;;  %5307 = vmatpush3.xpose.msra.mxu0 (%p634_p0), %v10025_v31  ;;  %v10034_v61 = vld [vmem:[#allocation63_spill] sm:$0xff] (%p634_p0)  ;;  %v10039_v30 = vld [vmem:[#allocation56_spill] sm:$0xff] (%p634_p0) }
 0x689   : > { %v3946_v62 = vmax.f32 %v3944_v34, %v3945_v16  ;;  %v3782_v4 = vmax.f32 %v3780_v60, %v3781_v57  ;;  %5308 = vmatprep.subr.mxu0 (%p634_p0), %v10024_v63  ;;  %v10036_v60 = vld [vmem:[#allocation61_spill] sm:$0xff] (%p634_p0)  ;;  %v10037_v34 = vld [vmem:[#allocation58_spill] sm:$0xff] (%p634_p0)  ;;  %v10038_v54 = vld [vmem:[#allocation59_spill] sm:$0xff] (%p634_p0) }
 0x68a   : > { %v3968_v14 = vrot.slane %v3967_v39, 2  ;;  %v3802_v24 = vrot.slane %v3801_v47, 1  ;;  %v4036_v40 = vsel %vm4012_vm13, %v3929_v35, %v4035_v9  ;;  %vm10023_vm13 = vmmov %vm10022_vm8  ;;  %v4134_v57 = vld [vmem:[%s9245_s5] sm:$0x1] (%p634_p0)  ;;  %v10041_v9 = vmov (%p634_p0), 1.0   ;;  %v10042_v35 = vld [vmem:[#allocation8_spill] sm:$0xff] (%p634_p0) }
 0x68b   : > { %v3947_v21 = vrot.slane %v3946_v62, 2  ;;  %v4030_v5 = vsel %vm4014_vm11, %v3782_v4, %v4029_v13  ;;  %vm10043_vm9 = vnez (%p634_p0), %v10042_v35  ;;  %v10062_v13 = vld [vmem:[#allocation38_spill] sm:$0xff] (%p634_p0) }
 0x68c   : > { %v3969_v50 = vmax.f32 %v3967_v39, %v3968_v14  ;;  %v3803_v45 = vmax.f32 %v3801_v47, %v3802_v24  ;;  %5309 = vmatpush3.xpose.msra.mxu0 (%p634_p0), %v10026_v36  ;;  %v10044_v39 = vld [vmem:[#allocation12_spill] sm:$0xff] (%p634_p0)  ;;  %v10048_v47 = vld [vmem:[#allocation14_spill] sm:$0xff] (%p634_p0) }
 0x68d   : > { %v3948_v58 = vmax.f32 %v3946_v62, %v3947_v21  ;;  %5310 = vmatprep.subr.mxu0 (%p634_p0), %v10024_v63 }
 0x68e   : > { %v3970_v42 = vrot.slane %v3969_v50, 1  ;;  %v4031_v12 = vsel %vm10020_vm15, %v3803_v45, %v4030_v5  ;;  %vm10045_vm15 = vnez (%p634_p0), %v10044_v39  ;;  %v10060_v45 = vld [vmem:[#allocation36_spill] sm:$0xff] (%p634_p0) }
 0x68f   : > { %v3949_v55 = vrot.slane %v3948_v58, 1  ;;  %5303 = vmatprep.mubr.f32.mxu1 %v4031_v12 }
 0x690   : > { %v3971_v19 = vmax.f32 %v3969_v50, %v3970_v42  ;;  %5311 = vmatpush3.xpose.msra.mxu0 (%p634_p0), %v10027_v37 }
 0x691   : > { %v3950_v3 = vmax.f32 %v3948_v58, %v3949_v55  ;;  %5312 = vmatprep.subr.mxu0 (%p634_p0), %v10024_v63 }
 0x693   : > { %v4037_v23 = vsel %vm4014_vm11, %v3950_v3, %v4036_v40  ;;  %vm9407_vm11 = vmmov (%p634_p0), 0  }
 0x694   : > { %v4038_v53 = vsel %vm10021_vm12, %v3971_v19, %v4037_v23  ;;  %5338 = vmatprep.mubr.msk.f32.mxu0 (%p634_p0), %vm9407_vm11, %v10024_v63  ;;  %5313 = vmatpush3.xpose.msra.mxu0 (%p634_p0), %v10028_v48  ;;  %vm10047_vm12 = vnez (%p634_p0), %v10046_v26 }
 0x695   : > { %5304 = vmatmul.mubr.f32.vlgmr.msra.gmra.mxu1 %v4038_v53  ;;  %5314 = vmatprep.subr.mxu0 (%p634_p0), %v10024_v63 }
 0x696   :  { %5342 = vmatpush3.msra.mxu1 (%p634_p0), %v10025_v31 }
 0x697   :  { %5343 = vmatprep.subr.mxu1 (%p634_p0), %v10026_v36 }
 0x698   :  { %5344 = vmatpush3.msra.mxu1 (%p634_p0), %v10026_v36  ;;  %5315 = vmatpush3.xpose.msra.mxu0 (%p634_p0), %v10029_v2 }
 0x699   :  { %5345 = vmatprep.subr.mxu1 (%p634_p0), %v10027_v37  ;;  %5316 = vmatprep.subr.mxu0 (%p634_p0), %v10024_v63 }
 0x69a   :  { %5346 = vmatpush3.msra.mxu1 (%p634_p0), %v10027_v37 }
 0x69b   :  { %5347 = vmatprep.subr.mxu1 (%p634_p0), %v10028_v48 }
 0x69c   :  { %5348 = vmatpush3.msra.mxu1 (%p634_p0), %v10028_v48  ;;  %5317 = vmatpush3.xpose.msra.mxu0 (%p634_p0), %v10030_v41 }
 0x69d   :  { %5349 = vmatprep.subr.mxu1 (%p634_p0), %v10029_v2  ;;  %5318 = vmatprep.subr.mxu0 (%p634_p0), %v10024_v63 }
 0x69e   :  { %5350 = vmatpush3.msra.mxu1 (%p634_p0), %v10029_v2 }
 0x69f   :  { %5351 = vmatprep.subr.mxu1 (%p634_p0), %v10030_v41 }
 0x6a0   :  { %5352 = vmatpush3.msra.mxu1 (%p634_p0), %v10030_v41  ;;  %5319 = vmatpush3.xpose.msra.mxu0 (%p634_p0), %v10031_v6 }
 0x6a1   :  { %5353 = vmatprep.subr.mxu1 (%p634_p0), %v10031_v6  ;;  %5320 = vmatprep.subr.mxu0 (%p634_p0), %v10024_v63 }
 0x6a2   :  { %5354 = vmatpush3.msra.mxu1 (%p634_p0), %v10031_v6 }
 0x6a3   :  { %5355 = vmatprep.subr.mxu1 (%p634_p0), %v10032_v38 }
 0x6a4   :  { %5356 = vmatpush3.msra.mxu1 (%p634_p0), %v10032_v38  ;;  %5321 = vmatpush3.xpose.msra.mxu0 (%p634_p0), %v10032_v38 }
 0x6a5   :  { %5357 = vmatprep.subr.mxu1 (%p634_p0), %v10033_v25  ;;  %5322 = vmatprep.subr.mxu0 (%p634_p0), %v10024_v63 }
 0x6a6   :  { %5358 = vmatpush3.msra.mxu1 (%p634_p0), %v10033_v25 }
 0x6a7   :  { %5359 = vmatprep.subr.mxu1 (%p634_p0), %v10034_v61 }
 0x6a8   :  { %5360 = vmatpush3.msra.mxu1 (%p634_p0), %v10034_v61  ;;  %5323 = vmatpush3.xpose.msra.mxu0 (%p634_p0), %v10033_v25  ;;  %v10068_v25 = vld [vmem:[#allocation33_spill] sm:$0xff] (%p634_p0) }
 0x6a9   :  { %5361 = vmatprep.subr.mxu1 (%p634_p0), %v10035_v51  ;;  %5324 = vmatprep.subr.mxu0 (%p634_p0), %v10024_v63 }
 0x6aa   :  { %5362 = vmatpush3.msra.mxu1 (%p634_p0), %v10035_v51 }
 0x6ab   :  { %5363 = vmatprep.subr.mxu1 (%p634_p0), %v10036_v60 }
 0x6ac   :  { %5364 = vmatpush3.msra.mxu1 (%p634_p0), %v10036_v60  ;;  %5325 = vmatpush3.xpose.msra.mxu0 (%p634_p0), %v10034_v61 }
 0x6ad   :  { %5365 = vmatprep.subr.mxu1 (%p634_p0), %v10037_v34  ;;  %5326 = vmatprep.subr.mxu0 (%p634_p0), %v10024_v63 }
 0x6ae   :  { %5366 = vmatpush3.msra.mxu1 (%p634_p0), %v10037_v34 }
 0x6af   :  { %5367 = vmatprep.subr.mxu1 (%p634_p0), %v10038_v54 }
 0x6b0   :  { %5368 = vmatpush3.msra.mxu1 (%p634_p0), %v10038_v54  ;;  %5327 = vmatpush3.xpose.msra.mxu0 (%p634_p0), %v10035_v51 }
 0x6b1   :  { %5369 = vmatprep.subr.mxu1 (%p634_p0), %v10039_v30  ;;  %5328 = vmatprep.subr.mxu0 (%p634_p0), %v10024_v63 }
 0x6b2   :  { %5370 = vmatpush3.msra.mxu1 (%p634_p0), %v10039_v30 }
 0x6b3   :  { %5371 = vmatprep.subr.mxu1 (%p634_p0), %v10040_v29 }
 0x6b4   :  { %5372 = vmatpush3.msra.mxu1 (%p634_p0), %v10040_v29  ;;  %5329 = vmatpush3.xpose.msra.mxu0 (%p634_p0), %v10036_v60 }
 0x6b5   :  { %5397 = vmatprep.subr.mxu1 (%p634_p0), %v10024_v63  ;;  %5330 = vmatprep.subr.mxu0 (%p634_p0), %v10024_v63 }
 0x6b8   :  { %5331 = vmatpush3.xpose.msra.mxu0 (%p634_p0), %v10037_v34 }
 0x6b9   :  { %5332 = vmatprep.subr.mxu0 (%p634_p0), %v10024_v63 }
 0x6bc   :  { %5333 = vmatpush3.xpose.msra.mxu0 (%p634_p0), %v10038_v54 }
 0x6bd   :  { %5334 = vmatprep.subr.mxu0 (%p634_p0), %v10024_v63 }
 0x6c0   :  { %5335 = vmatpush3.xpose.msra.mxu0 (%p634_p0), %v10039_v30 }
 0x6c1   :  { %5336 = vmatprep.subr.mxu0 (%p634_p0), %v10024_v63 }
 0x6c4   :  { %5337 = vmatpush3.xpose.msra.mxu0 (%p634_p0), %v10040_v29 }
 0x6c5   :  { %5432 = vmatprep.subr.mxu0 (%p634_p0), %v10024_v63 }
 0x6c7   :  { %5339 = vmatmul.mubr.f32.vlgmr.msra.gmra.mxu0 (%p634_p0), %v4134_v57 }
 0x6c8   :  { %5630 = vmatpush3.msk.msra.mxu0 (%p634_p0), %vm10043_vm9, %v10041_v9  ;;  %5464 = vmatprep.mubr.msk.f32.mxu0 (%p634_p0), %vm9407_vm11, %v10024_v63 }
 0x6c9   :  { %5434 = vmatprep.subr.mxu0 (%p634_p0), %v10024_v63 }
 0x6ca   :  { %5631 = vmatpush3.msk.msra.mxu0 (%p634_p0), %vm10045_vm15, %v10041_v9 }
 0x6cb   :  { %5436 = vmatprep.subr.mxu0 (%p634_p0), %v10024_v63 }
 0x6cc   :  { %5632 = vmatpush3.msk.msra.mxu0 (%p634_p0), %vm10047_vm12, %v10041_v9 }
 0x6cd   :  { %5438 = vmatprep.subr.mxu0 (%p634_p0), %v10024_v63 }
 0x6ff   :  { %v8861_v5 = vpop.permute.xlu1 (%p634_p0), %4328 }
 0x754   :  { %636 = sbr.rel (!%p634_p0) target bundleno = 519 (0x207), region = 85 }
 0x755   : > { %v5305_v20 = vpop.f32.mrf.mxu1 }
 0x756   : > { %4133 = vst.msk [vmem:[%s7828_s23 + $0x18] sm:$0xff] %vm10022_vm8, %v5305_v20  ;;  %vm10049_vm8 = vnez (%p634_p0), %v10048_v47  ;;  %v10070_v47 = vld [vmem:[#allocation29_spill] sm:$0xff] (%p634_p0) }
 0x757   : > { %v4119_v27 = vpop.f32.mrf.mxu1  ;;  %5633 = vmatpush3.msk.msra.mxu0 (%p634_p0), %vm10049_vm8, %v10041_v9  ;;  %vm4400_vm12 = vcmp.gt.f32.partialorder (%p634_p0), %v10070_v47, 0.0 }
 0x758   : > { %4132 = vst.msk [vmem:[%s7828_s23 + $0x10] sm:$0xff] %vm10023_vm13, %v4119_v27  ;;  %5440 = vmatprep.subr.mxu0 (%p634_p0), %v10024_v63 }
 0x759   :  { %5634 = vmatpush3.msk.msra.mxu0 %vm5857_vm1, %v10041_v9  ;;  %vm10061_vm1 = vnez %v10060_v45 }
 0x75a   :  { %5442 = vmatprep.subr.mxu0 %v10024_v63 }
 0x75b   :  { %5635 = vmatpush3.msk.msra.mxu0 %vm5879_vm3, %v10041_v9  ;;  %vm10063_vm3 = vnez %v10062_v13 }
 0x75c   :  { %5444 = vmatprep.subr.mxu0 %v10024_v63 }
 0x75d   :  { %5636 = vmatpush3.msk.msra.mxu0 %vm5902_vm7, %v10041_v9  ;;  %vm4396_vm7 = vcmp.gt.f32.partialorder %v10065_v0, 0.0 }
 0x75e   :  { %5446 = vmatprep.subr.mxu0 %v10024_v63 }
 0x75f   :  { %v4205_v46 = vld [vmem:[#allocation3] sm:$0xff]  ;;  %v4206_v28 = vld [vmem:[#allocation3 + $0x8] sm:$0xff]  ;;  %v4207_v44 = vld [vmem:[#allocation3 + $0x10] sm:$0xff]  ;;  %5637 = vmatpush3.msk.msra.mxu0 %vm5925_vm14, %v10041_v9 }
 0x760   :  { %4223 = vperm.xlu0 %5544, %v4205_v46   ;;  %v4208_v59 = vld [vmem:[#allocation3 + $0x18] sm:$0xff]  ;;  %4233 = vperm.xlu1 %5545, %v4207_v44   ;;  %v4209_v43 = vld [vmem:[#allocation3 + $0x20] sm:$0xff]  ;;  %v4210_v32 = vld [vmem:[#allocation3 + $0x28] sm:$0xff] }
 0x761   :  { %v4211_v17 = vld [vmem:[#allocation3 + $0x30] sm:$0xff]  ;;  %v4212_v52 = vld [vmem:[#allocation3 + $0x38] sm:$0xff]  ;;  %v4213_v1 = vld [vmem:[#allocation3 + $0x40] sm:$0xff]  ;;  %5448 = vmatprep.subr.mxu0 %v10024_v63 }
 0x762   :  { %v4214_v11 = vld [vmem:[#allocation3 + $0x48] sm:$0xff]  ;;  %v4215_v15 = vld [vmem:[#allocation3 + $0x50] sm:$0xff]  ;;  %v4216_v49 = vld [vmem:[#allocation3 + $0x58] sm:$0xff]  ;;  %5638 = vmatpush3.msk.msra.mxu0 %vm5944_vm0, %v10041_v9 }
 0x763   :  { %v4217_v22 = vld [vmem:[#allocation3 + $0x60] sm:$0xff]  ;;  %v4218_v56 = vld [vmem:[#allocation3 + $0x68] sm:$0xff]  ;;  %v4219_v33 = vld [vmem:[#allocation3 + $0x70] sm:$0xff]  ;;  %5450 = vmatprep.subr.mxu0 %v10024_v63 }
 0x764   :  { %4228 = vperm.xlu0 %5544, %v4206_v28   ;;  %4243 = vperm.xlu1 %5545, %v4209_v43   ;;  %v4220_v16 = vld [vmem:[#allocation3 + $0x78] sm:$0xff]  ;;  %v10064_v46 = vld [vmem:[#allocation72_spill] sm:$0xff]  ;;  %v10066_v44 = vld [vmem:[#allocation39_spill] sm:$0xff] }
 0x765   :  { %5639 = vmatpush3.msk.msra.mxu0 %vm5964_vm6, %v10041_v9  ;;  %vm4395_vm14 = vcmp.gt.f32.partialorder %v10066_v44, 0.0  ;;  %v10067_v43 = vld [vmem:[#allocation35_spill] sm:$0xff]  ;;  %vm4398_vm6 = vcmp.gt.f32.partialorder %v10068_v25, 0.0 }
 0x766   :  { %5452 = vmatprep.subr.mxu0 %v10024_v63  ;;  %vm4397_vm0 = vcmp.gt.f32.partialorder %v10067_v43, 0.0 }
 0x767   :  { %5640 = vmatpush3.msk.msra.mxu0 %vm5990_vm2, %v10041_v9 }
 0x768   :  { %4238 = vperm.xlu0 %5544, %v4208_v59   ;;  %4253 = vperm.xlu1 %5545, %v4211_v17  }
 0x769   :  { %5454 = vmatprep.subr.mxu0 %v10024_v63 }
 0x76a   :  { %5641 = vmatpush3.msk.msra.mxu0 %vm6006_vm10, %v10041_v9 }
 0x76b   :  { %5456 = vmatprep.subr.mxu0 %v10024_v63 }
 0x76c   :  { %4248 = vperm.xlu0 %5544, %v4210_v32   ;;  %4263 = vperm.xlu1 %5545, %v4213_v1  }
 0x76d   :  { %5642 = vmatpush3.msk.msra.mxu0 %vm6024_vm5, %v10041_v9 }
 0x76e   :  { %5458 = vmatprep.subr.mxu0 %v10024_v63 }
 0x76f   :  { %5643 = vmatpush3.msk.msra.mxu0 %vm6040_vm4, %v10041_v9 }
 0x770   :  { %4258 = vperm.xlu0 %5544, %v4212_v52   ;;  %4273 = vperm.xlu1 %5545, %v4215_v15  }
 0x771   :  { %5460 = vmatprep.subr.mxu0 %v10024_v63 }
 0x772   :  { %5644 = vmatpush3.msk.msra.mxu0 %vm10061_vm1, %v10041_v9 }
 0x773   :  { %5462 = vmatprep.subr.mxu0 %v10024_v63 }
 0x774   :  { %4268 = vperm.xlu0 %5544, %v4214_v11   ;;  %4283 = vperm.xlu1 %5545, %v4217_v22  }
 0x775   :  { %5645 = vmatpush3.msk.msra.mxu0 %vm10063_vm3, %v10041_v9  ;;  %v10069_v9 = vld [vmem:[#allocation31_spill] sm:$0xff] }
 0x776   :  { %vm4399_vm9 = vcmp.gt.f32.partialorder %v10069_v9, 0.0 }
 0x778   :  { %4278 = vperm.xlu0 %5544, %v4216_v49   ;;  %4293 = vperm.xlu1 %5545, %v4219_v33  }
 0x77c   :  { %4288 = vperm.xlu0 %5544, %v4218_v56  }
 0x780   :  { %4298 = vperm.xlu0 %5544, %v4220_v16  }
 0x787   :  { %v4201_v27 = vpop.f32.mrf.mxu0 }
 0x788   :  { %v8864_v31 = vrot.slane %v4201_v27, %v10064_v46 }
 0x789   :  { %v5340_v10 = vpop.f32.mrf.mxu0 }
 0x7db   :  { %v4224_v58 = vpop.permute.xlu0 %4223  ;;  %v4234_v12 = vpop.permute.xlu1 %4233 }
 0x7dc   :  { %v4305_v36 = vadd.f32 %v8864_v31, %v4224_v58  ;;  %v4307_v37 = vadd.f32 %v8864_v31, %v4234_v12 }
 0x7de   :  { %v4331_v41 = vadd.f32 %v8861_v5, %v4305_v36  ;;  %v4333_v6 = vadd.f32 %v8861_v5, %v4307_v37 }
 0x7df   :  { %v4229_v42 = vpop.permute.xlu0 %4228  ;;  %v4244_v19 = vpop.permute.xlu1 %4243 }
 0x7e0   :  { %v4306_v28 = vadd.f32 %v8864_v31, %v4229_v42  ;;  %v4309_v2 = vadd.f32 %v8864_v31, %v4244_v19  ;;  %vm4347_vm10 = vcmp.gt.f32.partialorder %v4331_v41, 0.0  ;;  %v4363_v51 = vmul.f32 0.2, %v4331_v41  ;;  %v10071_v42 = vld [vmem:[#allocation27_spill] sm:$0xff]  ;;  %v10072_v19 = vld [vmem:[#allocation25_spill] sm:$0xff] }
 0x7e1   :  { %vm4349_vm5 = vcmp.gt.f32.partialorder %v4333_v6, 0.0  ;;  %v4365_v49 = vmul.f32 0.2, %v4333_v6  ;;  %vm4401_vm1 = vcmp.gt.f32.partialorder %v10071_v42, 0.0 }
 0x7e2   :  { %v4332_v17 = vadd.f32 %v8861_v5, %v4306_v28  ;;  %v4335_v11 = vadd.f32 %v8861_v5, %v4309_v2  ;;  %v4379_v34 = vsel %vm4347_vm10, %v4331_v41, %v4363_v51 }
 0x7e3   :  { %v4239_v55 = vpop.permute.xlu0 %4238  ;;  %v4254_v23 = vpop.permute.xlu1 %4253  ;;  %v8890_v16 = vsel %vm4395_vm14, %v4379_v34, -1e+30  ;;  %v4381_v29 = vsel %vm4349_vm5, %v4333_v6, %v4365_v49  ;;  %v10075_v49 = vld [vmem:[#allocation19_spill] sm:$0xff] }
 0x7e4   :  { %v4308_v48 = vadd.f32 %v8864_v31, %v4239_v55  ;;  %v4311_v52 = vadd.f32 %v8864_v31, %v4254_v23  ;;  %vm4348_vm2 = vcmp.gt.f32.partialorder %v4332_v17, 0.0  ;;  %v4364_v61 = vmul.f32 0.2, %v4332_v17  ;;  %4427 = vmax.xlane.f32.xlu1 %v8890_v16 }
 0x7e5   :  { %v4367_v56 = vmul.f32 0.2, %v4335_v11  ;;  %vm4351_vm13 = vcmp.gt.f32.partialorder %v4335_v11, 0.0  ;;  %v8897_v39 = vsel %vm4397_vm0, %v4381_v29, -1e+30 }
 0x7e6   :  { %v4334_v38 = vadd.f32 %v8861_v5, %v4308_v48  ;;  %v4380_v60 = vsel %vm4348_vm2, %v4332_v17, %v4364_v61  ;;  %v4337_v33 = vadd.f32 %v8861_v5, %v4311_v52  ;;  %vm4402_vm2 = vcmp.gt.f32.partialorder %v10072_v19, 0.0  ;;  %v10074_v48 = vld [vmem:[#allocation21_spill] sm:$0xff] }
 0x7e7   :  { %v4249_v3 = vpop.permute.xlu0 %4248  ;;  %v4264_v20 = vpop.permute.xlu1 %4263  ;;  %v8886_v30 = vsel %vm4396_vm7, %v4380_v60, -1e+30  ;;  %v4383_v18 = vsel %vm4351_vm13, %v4335_v11, %v4367_v56  ;;  %vm9408_vm13 = vcmp.gt.f32.partialorder %v10074_v48, 0.0 }
 0x7e8   :  { %v4310_v32 = vadd.f32 %v8864_v31, %v4249_v3  ;;  %vm4350_vm4 = vcmp.gt.f32.partialorder %v4334_v38, 0.0  ;;  %v4366_v22 = vmul.f32 0.2, %v4334_v38  ;;  %4429 = vmax.xlane.f32.xlu0 %v8886_v30  ;;  %v4313_v7 = vadd.f32 %v8864_v31, %v4264_v20 }
 0x7e9   :  { %v4369_v21 = vmul.f32 0.2, %v4337_v33  ;;  %vm4353_vm8 = vcmp.gt.f32.partialorder %v4337_v33, 0.0  ;;  %v8917_v55 = vsel %vm4399_vm9, %v4383_v18, -1e+30 }
 0x7ea   :  { %v4336_v15 = vadd.f32 %v8861_v5, %v4310_v32  ;;  %v4382_v57 = vsel %vm4350_vm4, %v4334_v38, %v4366_v22  ;;  %v4339_v50 = vadd.f32 %v8861_v5, %v4313_v7  ;;  %v10076_v22 = vld [vmem:[#allocation17_spill] sm:$0xff]  ;;  %v10078_v7 = vld [vmem:[#allocation11_spill] sm:$0xff] }
 0x7eb   :  { %v4259_v53 = vpop.permute.xlu0 %4258  ;;  %v4274_v1 = vpop.permute.xlu1 %4273  ;;  %v8903_v4 = vsel %vm4398_vm6, %v4382_v57, -1e+30  ;;  %v4385_v27 = vsel %vm4353_vm8, %v4337_v33, %v4369_v21  ;;  %vm4406_vm11 = vcmp.gt.f32.partialorder %v10076_v22, 0.0 }
 0x7ec   :  { %vm4352_vm15 = vcmp.gt.f32.partialorder %v4336_v15, 0.0  ;;  %v4368_v26 = vmul.f32 0.2, %v4336_v15  ;;  %v4312_v62 = vadd.f32 %v8864_v31, %v4259_v53  ;;  %v4315_v24 = vadd.f32 %v8864_v31, %v4274_v1  ;;  %4431 = vmax.xlane.f32.xlu0 %v8897_v39  ;;  %4433 = vmax.xlane.f32.xlu1 %v8903_v4 }
 0x7ed   :  { %v4371_v10 = vmul.f32 0.2, %v4339_v50  ;;  %vm4355_vm10 = vcmp.gt.f32.partialorder %v4339_v50, 0.0  ;;  %v8934_v32 = vsel %vm4401_vm1, %v4385_v27, -1e+30 }
 0x7ee   :  { %v4384_v40 = vsel %vm4352_vm15, %v4336_v15, %v4368_v26  ;;  %v4338_v8 = vadd.f32 %v8861_v5, %v4312_v62  ;;  %v4341_v3 = vadd.f32 %v8861_v5, %v4315_v24  ;;  %v10077_v62 = vld [vmem:[#allocation15_spill] sm:$0xff] }
 0x7ef   :  { %v4269_v59 = vpop.permute.xlu0 %4268  ;;  %v4284_v35 = vpop.permute.xlu1 %4283  ;;  %v8924_v20 = vsel %vm4400_vm12, %v4384_v40, -1e+30  ;;  %v4387_v52 = vsel %vm4355_vm10, %v4339_v50, %v4371_v10  ;;  %v10079_v50 = vld [vmem:[#allocation13_spill] sm:$0xff] }
 0x7f0   :  { %v4314_v14 = vadd.f32 %v8864_v31, %v4269_v59  ;;  %vm4354_vm3 = vcmp.gt.f32.partialorder %v4338_v8, 0.0  ;;  %v4370_v12 = vmul.f32 0.2, %v4338_v8  ;;  %v4317_v23 = vadd.f32 %v8864_v31, %v4284_v35  ;;  %4435 = vmax.xlane.f32.xlu0 %v8917_v55  ;;  %4437 = vmax.xlane.f32.xlu1 %v8924_v20  ;;  %v10073_v59 = vld [vmem:[#allocation23_spill] sm:$0xff] }
 0x7f1   :  { %vm9409_vm4 = vcmp.gt.f32.partialorder %v10073_v59, 0.0  ;;  %vm4357_vm15 = vcmp.gt.f32.partialorder %v4341_v3, 0.0  ;;  %v4373_v38 = vmul.f32 0.2, %v4341_v3 }
 0x7f2   :  { %v4340_v45 = vadd.f32 %v8861_v5, %v4314_v14  ;;  %v4386_v36 = vsel %vm4354_vm3, %v4338_v8, %v4370_v12  ;;  %v4343_v15 = vadd.f32 %v8861_v5, %v4317_v23  ;;  %vm4405_vm3 = vcmp.gt.f32.partialorder %v10075_v49, 0.0 }
 0x7f3   :  { %v4279_v54 = vpop.permute.xlu0 %4278  ;;  %v4294_v53 = vpop.permute.xlu1 %4293  ;;  %v8939_v6 = vsel %vm4402_vm2, %v4386_v36, -1e+30  ;;  %v8951_v34 = vsel %vm9409_vm4, %v4387_v52, -1e+30  ;;  %v4389_v33 = vsel %vm4357_vm15, %v4341_v3, %v4373_v38  ;;  %vm4407_vm15 = vcmp.gt.f32.partialorder %v10077_v62, 0.0 }
 0x7f4   :  { %v4316_v13 = vadd.f32 %v8864_v31, %v4279_v54  ;;  %v4372_v28 = vmul.f32 0.2, %v4340_v45  ;;  %vm4356_vm5 = vcmp.gt.f32.partialorder %v4340_v45, 0.0  ;;  %v4319_v2 = vadd.f32 %v8864_v31, %v4294_v53  ;;  %4439 = vmax.xlane.f32.xlu0 %v8934_v32  ;;  %4441 = vmax.xlane.f32.xlu1 %v8939_v6 }
 0x7f5   :  { %v4375_v54 = vmul.f32 0.2, %v4343_v15  ;;  %vm4359_vm10 = vcmp.gt.f32.partialorder %v4343_v15, 0.0  ;;  %v8963_v35 = vsel %vm4405_vm3, %v4389_v33, -1e+30 }
 0x7f6   :  { %v4342_v37 = vadd.f32 %v8861_v5, %v4316_v13  ;;  %v4388_v1 = vsel %vm4356_vm5, %v4340_v45, %v4372_v28  ;;  %v4345_v60 = vadd.f32 %v8861_v5, %v4319_v2  ;;  %v10080_v13 = vld [vmem:[#allocation9_spill] sm:$0xff] }
 0x7f7   :  { %v4289_v58 = vpop.permute.xlu0 %4288  ;;  %v8955_v56 = vsel %vm9408_vm13, %v4388_v1, -1e+30  ;;  %vm4408_vm13 = vcmp.gt.f32.partialorder %v10078_v7, 0.0  ;;  %v4391_v14 = vsel %vm4359_vm10, %v4343_v15, %v4375_v54  ;;  %vm4409_vm10 = vcmp.gt.f32.partialorder %v10079_v50, 0.0 }
 0x7f8   :  { %v4318_v17 = vadd.f32 %v8864_v31, %v4289_v58  ;;  %v4374_v11 = vmul.f32 0.2, %v4342_v37  ;;  %vm4358_vm8 = vcmp.gt.f32.partialorder %v4342_v37, 0.0  ;;  %4443 = vmax.xlane.f32.xlu0 %v8951_v34  ;;  %4445 = vmax.xlane.f32.xlu1 %v8955_v56  ;;  %v4377_v24 = vmul.f32 0.2, %v4345_v60 }
 0x7f9   :  { %v8975_v40 = vsel %vm4407_vm15, %v4391_v14, -1e+30 }
 0x7fa   :  { %v4344_v61 = vadd.f32 %v8861_v5, %v4318_v17 }
 0x7fb   :  { %v4299_v41 = vpop.permute.xlu0 %4298 }
 0x7fc   :  { %v4320_v51 = vadd.f32 %v8864_v31, %v4299_v41  ;;  %v4390_v31 = vsel %vm4358_vm8, %v4342_v37, %v4374_v11  ;;  %v4376_v29 = vmul.f32 0.2, %v4344_v61  ;;  %vm4360_vm5 = vcmp.gt.f32.partialorder %v4344_v61, 0.0  ;;  %4447 = vmax.xlane.f32.xlu0 %v8963_v35 }
 0x7fd   :  { %v8967_v26 = vsel %vm4406_vm11, %v4390_v31, -1e+30  ;;  %vm4361_vm8 = vcmp.gt.f32.partialorder %v4345_v60, 0.0 }
 0x7fe   :  { %v4346_v57 = vadd.f32 %v8861_v5, %v4320_v51  ;;  %4449 = vmax.xlane.f32.xlu1 %v8967_v26  ;;  %v4392_v5 = vsel %vm4360_vm5, %v4344_v61, %v4376_v29  ;;  %v4393_v8 = vsel %vm4361_vm8, %v4345_v60, %v4377_v24  ;;  %vm4410_vm5 = vcmp.gt.f32.partialorder %v10080_v13, 0.0 }
 0x7ff   :  { %v8979_v21 = vsel %vm4408_vm13, %v4392_v5, -1e+30  ;;  %v8987_v58 = vsel %vm4409_vm10, %v4393_v8, -1e+30 }
 0x800   :  { %v4378_v18 = vmul.f32 0.2, %v4346_v57  ;;  %vm4362_vm4 = vcmp.gt.f32.partialorder %v4346_v57, 0.0  ;;  %4451 = vmax.xlane.f32.xlu0 %v8975_v40 }
 0x802   :  { %4453 = vmax.xlane.f32.xlu1 %v8979_v21  ;;  %v4394_v45 = vsel %vm4362_vm4, %v4346_v57, %v4378_v18 }
 0x803   :  { %v8991_v12 = vsel %vm4410_vm5, %v4394_v45, -1e+30 }
 0x804   :  { %4455 = vmax.xlane.f32.xlu0 %v8987_v58 }
 0x806   :  { %4457 = vmax.xlane.f32.xlu1 %v8991_v12 }
 0x86d   :  { %v4428_v23 = vpop.xlane.xlu1 %4427 }
 0x86e   :  { %v4459_v27 = vsub.f32 %v8890_v16, %v4428_v23 }
 0x870   :  { %v4475_v28 = vmul.f32 1.442695, %v4459_v27 }
 0x871   :  { %v4430_v3 = vpop.xlane.xlu0 %4429 }
 0x872   :  { %v4460_v53 = vsub.f32 %v8886_v30, %v4430_v3 }
 0x874   :  { %v4477_v10 = vmul.f32 1.442695, %v4460_v53 }
 0x875   :  { %v4432_v36 = vpop.xlane.xlu0 %4431  ;;  %v4434_v37 = vpop.xlane.xlu1 %4433 }
 0x876   :  { %5546 = vpow2.f32 %v4477_v10  ;;  %v4461_v2 = vsub.f32 %v8897_v39, %v4432_v36  ;;  %v4462_v17 = vsub.f32 %v8903_v4, %v4434_v37 }
 0x877   :  { %5548 = vpow2.f32 %v4475_v28 }
 0x878   :  { %v4479_v41 = vmul.f32 1.442695, %v4461_v2  ;;  %v4481_v52 = vmul.f32 1.442695, %v4462_v17 }
 0x879   :  { %v4436_v1 = vpop.xlane.xlu0 %4435  ;;  %v4438_v38 = vpop.xlane.xlu1 %4437 }
 0x87a   :  { %5550 = vpow2.f32 %v4479_v41  ;;  %v4463_v11 = vsub.f32 %v8917_v55, %v4436_v1  ;;  %v4464_v30 = vsub.f32 %v8924_v20, %v4438_v38 }
 0x87b   :  { %5552 = vpow2.f32 %v4481_v52 }
 0x87c   :  { %v4483_v16 = vmul.f32 1.442695, %v4463_v11  ;;  %v4485_v15 = vmul.f32 1.442695, %v4464_v30 }
 0x87d   :  { %v4440_v61 = vpop.xlane.xlu0 %4439  ;;  %v4442_v51 = vpop.xlane.xlu1 %4441 }
 0x87e   :  { %5554 = vpow2.f32 %v4483_v16  ;;  %v4465_v39 = vsub.f32 %v8934_v32, %v4440_v61  ;;  %v4466_v4 = vsub.f32 %v8939_v6, %v4442_v51 }
 0x87f   :  { %5556 = vpow2.f32 %v4485_v15 }
 0x880   :  { %v4487_v60 = vmul.f32 1.442695, %v4465_v39  ;;  %v4489_v33 = vmul.f32 1.442695, %v4466_v4 }
 0x881   :  { %v4444_v31 = vpop.xlane.xlu0 %4443  ;;  %v4446_v54 = vpop.xlane.xlu1 %4445 }
 0x882   :  { %5558 = vpow2.f32 %v4487_v60  ;;  %v4467_v55 = vsub.f32 %v8951_v34, %v4444_v31  ;;  %v4468_v20 = vsub.f32 %v8955_v56, %v4446_v54 }
 0x883   :  { %v5547_v29 = vpop.eup %5546  ;;  %5560 = vpow2.f32 %v4489_v33 }
 0x884   :  { %v5549_v57 = vpop.eup %5548  ;;  %v4491_v14 = vmul.f32 1.442695, %v4467_v55  ;;  %v4493_v5 = vmul.f32 1.442695, %v4468_v20  ;;  %v9007_v32 = vsel %vm4396_vm7, %v5547_v29, 0.0  ;;  %vm10081_vm7 = vcmp.gt.f32.partialorder %v10073_v59, 0.0 }
 0x885   :  { %v4448_v6 = vpop.xlane.xlu0 %4447  ;;  %4525 = vadd.xlane.f32.xlu1 %v9007_v32  ;;  %v9012_v24 = vsel %vm4395_vm14, %v5549_v57, 0.0  ;;  %vm10082_vm14 = vcmp.gt.f32.partialorder %v10074_v48, 0.0 }
 0x886   :  { %5562 = vpow2.f32 %v4491_v14  ;;  %v4469_v34 = vsub.f32 %v8963_v35, %v4448_v6  ;;  %4523 = vadd.xlane.f32.xlu0 %v9012_v24 }
 0x887   :  { %v4450_v18 = vpop.xlane.xlu1 %4449  ;;  %v5551_v8 = vpop.eup %5550  ;;  %5564 = vpow2.f32 %v4493_v5 }
 0x888   :  { %v4470_v56 = vsub.f32 %v8967_v26, %v4450_v18  ;;  %v5553_v45 = vpop.eup %5552  ;;  %v4495_v3 = vmul.f32 1.442695, %v4469_v34  ;;  %v9019_v53 = vsel %vm4397_vm0, %v5551_v8, 0.0  ;;  %v4946_v34 = vld [vmem:[#allocation6] sm:$0x1] }
 0x889   :  { %v4452_v27 = vpop.xlane.xlu0 %4451  ;;  %v9023_v10 = vsel %vm4398_vm6, %v5553_v45, 0.0 }
 0x88a   :  { %v4497_v23 = vmul.f32 1.442695, %v4470_v56  ;;  %5566 = vpow2.f32 %v4495_v3  ;;  %v4471_v35 = vsub.f32 %v8975_v40, %v4452_v27  ;;  %4527 = vadd.xlane.f32.xlu0 %v9019_v53  ;;  %4529 = vadd.xlane.f32.xlu1 %v9023_v10  ;;  %v4835_v56 = vld [vmem:[#allocation5] sm:$0x1] }
 0x88b   :  { %v4454_v28 = vpop.xlane.xlu1 %4453  ;;  %v5555_v36 = vpop.eup %5554 }
 0x88c   :  { %v4472_v26 = vsub.f32 %v8979_v21, %v4454_v28  ;;  %5568 = vpow2.f32 %v4497_v23  ;;  %v5557_v37 = vpop.eup %5556  ;;  %v4499_v2 = vmul.f32 1.442695, %v4471_v35  ;;  %v9031_v41 = vsel %vm4399_vm9, %v5555_v36, 0.0 }
 0x88d   :  { %v4456_v52 = vpop.xlane.xlu0 %4455  ;;  %v9035_v1 = vsel %vm4400_vm12, %v5557_v37, 0.0 }
 0x88e   :  { %v4501_v17 = vmul.f32 1.442695, %v4472_v26  ;;  %5570 = vpow2.f32 %v4499_v2  ;;  %v4473_v38 = vsub.f32 %v8987_v58, %v4456_v52  ;;  %4531 = vadd.xlane.f32.xlu0 %v9031_v41  ;;  %4533 = vadd.xlane.f32.xlu1 %v9035_v1 }
 0x88f   :  { %v4458_v40 = vpop.xlane.xlu1 %4457  ;;  %v5559_v11 = vpop.eup %5558 }
 0x890   :  { %v4474_v21 = vsub.f32 %v8991_v12, %v4458_v40  ;;  %5572 = vpow2.f32 %v4501_v17  ;;  %v5561_v30 = vpop.eup %5560  ;;  %v4503_v16 = vmul.f32 1.442695, %v4473_v38  ;;  %v9043_v61 = vsel %vm4401_vm1, %v5559_v11, 0.0 }
 0x891   :  { %v9047_v51 = vsel %vm4402_vm2, %v5561_v30, 0.0 }
 0x892   :  { %v4505_v15 = vmul.f32 1.442695, %v4474_v21  ;;  %5574 = vpow2.f32 %v4503_v16  ;;  %4535 = vadd.xlane.f32.xlu0 %v9043_v61  ;;  %4537 = vadd.xlane.f32.xlu1 %v9047_v51 }
 0x893   :  { %v5563_v58 = vpop.eup %5562 }
 0x894   :  { %5576 = vpow2.f32 %v4505_v15  ;;  %v5565_v12 = vpop.eup %5564  ;;  %v9053_v39 = vsel %vm10081_vm7, %v5563_v58, 0.0 }
 0x895   :  { %v9057_v4 = vsel %vm10082_vm14, %v5565_v12, 0.0 }
 0x896   :  { %4539 = vadd.xlane.f32.xlu0 %v9053_v39  ;;  %4541 = vadd.xlane.f32.xlu1 %v9057_v4 }
 0x897   :  { %v5567_v60 = vpop.eup %5566 }
 0x898   :  { %v9063_v31 = vsel %vm4405_vm3, %v5567_v60, 0.0 }
 0x899   :  { %v5569_v33 = vpop.eup %5568 }
 0x89a   :  { %v9067_v54 = vsel %vm4406_vm11, %v5569_v33, 0.0  ;;  %4543 = vadd.xlane.f32.xlu0 %v9063_v31  ;;  %vm10083_vm11 = vmmov 0  }
 0x89b   :  { %4545 = vadd.xlane.f32.xlu1 %v9067_v54  ;;  %v5571_v55 = vpop.eup %5570 }
 0x89c   :  { %v9073_v29 = vsel %vm4407_vm15, %v5571_v55, 0.0 }
 0x89d   :  { %v5573_v20 = vpop.eup %5572 }
 0x89e   :  { %v9077_v57 = vsel %vm4408_vm13, %v5573_v20, 0.0  ;;  %4547 = vadd.xlane.f32.xlu0 %v9073_v29 }
 0x89f   :  { %4549 = vadd.xlane.f32.xlu1 %v9077_v57  ;;  %v5575_v14 = vpop.eup %5574 }
 0x8a0   :  { %v9083_v6 = vsel %vm4409_vm10, %v5575_v14, 0.0 }
 0x8a1   :  { %v5577_v5 = vpop.eup %5576 }
 0x8a2   :  { %v9087_v18 = vsel %vm4410_vm5, %v5577_v5, 0.0  ;;  %4551 = vadd.xlane.f32.xlu0 %v9083_v6 }
 0x8a3   :  { %4553 = vadd.xlane.f32.xlu1 %v9087_v18 }
 0x8b4   :  { %4949 = vperm.xlu1 %5545, %v4946_v34  }
 0x8b8   :  { %4838 = vperm.xlu0 %5544, %v4835_v56  }
 0x90e   :  { %v4526_v8 = vpop.xlane.xlu1 %4525 }
 0x90f   :  { %v4524_v45 = vpop.xlane.xlu0 %4523  ;;  %5578 = vrcp.f32 %v4526_v8 }
 0x910   :  { %5580 = vrcp.f32 %v4524_v45 }
 0x913   :  { %v4528_v3 = vpop.xlane.xlu0 %4527  ;;  %v4530_v23 = vpop.xlane.xlu1 %4529 }
 0x914   :  { %5582 = vrcp.f32 %v4528_v3 }
 0x915   :  { %5584 = vrcp.f32 %v4530_v23 }
 0x917   :  { %v4532_v27 = vpop.xlane.xlu0 %4531  ;;  %v4534_v28 = vpop.xlane.xlu1 %4533 }
 0x918   :  { %5586 = vrcp.f32 %v4532_v27 }
 0x919   :  { %5588 = vrcp.f32 %v4534_v28 }
 0x91b   :  { %v4536_v35 = vpop.xlane.xlu0 %4535  ;;  %v4538_v26 = vpop.xlane.xlu1 %4537 }
 0x91c   :  { %v5579_v36 = vpop.eup %5578  ;;  %5590 = vrcp.f32 %v4536_v35 }
 0x91d   :  { %v5581_v37 = vpop.eup %5580  ;;  %5592 = vrcp.f32 %v4538_v26  ;;  %v4572_v2 = vmul.f32 %v5579_v36, %v9007_v32 }
 0x91e   :  { %v4571_v17 = vmul.f32 %v5581_v37, %v9012_v24 }
 0x91f   :  { %v4540_v52 = vpop.xlane.xlu0 %4539  ;;  %v4542_v40 = vpop.xlane.xlu1 %4541  ;;  %4588 = vst [vmem:[%s9250_s10 + $0x8] sm:$0xff] %v4572_v2 }
 0x920   :  { %5594 = vrcp.f32 %v4540_v52  ;;  %4587 = vst [vmem:[%s9250_s10] sm:$0xff] %v4571_v17  ;;  %5373 = vmatprep.mubr.f32.mxu1 %v4571_v17 }
 0x921   :  { %v5583_v38 = vpop.eup %5582  ;;  %5596 = vrcp.f32 %v4542_v40  ;;  %5374 = vmatmul.mubr.f32.vlgmr.msra.gmra.mxu1 %v4572_v2 }
 0x922   :  { %v5585_v21 = vpop.eup %5584  ;;  %v4573_v32 = vmul.f32 %v5583_v38, %v9019_v53 }
 0x923   :  { %v4544_v11 = vpop.xlane.xlu0 %4543  ;;  %v4574_v30 = vmul.f32 %v5585_v21, %v9023_v10 }
 0x924   :  { %v4546_v24 = vpop.xlane.xlu1 %4545  ;;  %5598 = vrcp.f32 %v4544_v11  ;;  %4589 = vst [vmem:[%s9250_s10 + $0x10] sm:$0xff] %v4573_v32  ;;  %5376 = vmatprep.mubr.f32.mxu1 %v4573_v32 }
 0x925   :  { %v5587_v16 = vpop.eup %5586  ;;  %5600 = vrcp.f32 %v4546_v24  ;;  %4590 = vst [vmem:[%s9250_s10 + $0x18] sm:$0xff] %v4574_v30  ;;  %5377 = vmatmul.mubr.f32.gmra.mxu1 %v4574_v30  ;;  %v4764_v24 = vld [vmem:[%s9247_s7] sm:$0xff] }
 0x926   :  { %v5589_v15 = vpop.eup %5588  ;;  %v4575_v53 = vmul.f32 %v5587_v16, %v9031_v41 }
 0x927   :  { %v4548_v58 = vpop.xlane.xlu0 %4547  ;;  %v4576_v10 = vmul.f32 %v5589_v15, %v9035_v1 }
 0x928   :  { %v4550_v12 = vpop.xlane.xlu1 %4549  ;;  %5602 = vrcp.f32 %v4548_v58  ;;  %4591 = vst [vmem:[%s9250_s10 + $0x20] sm:$0xff] %v4575_v53  ;;  %5379 = vmatprep.mubr.f32.mxu1 %v4575_v53 }
 0x929   :  { %v5591_v60 = vpop.eup %5590  ;;  %5604 = vrcp.f32 %v4550_v12  ;;  %4592 = vst [vmem:[%s9250_s10 + $0x28] sm:$0xff] %v4576_v10  ;;  %5380 = vmatmul.mubr.f32.gmra.mxu1 %v4576_v10  ;;  %v4916_v12 = vadd.f32 %v10065_v0, %v10066_v44 }
 0x92a   :  { %v5593_v33 = vpop.eup %5592  ;;  %v4577_v41 = vmul.f32 %v5591_v60, %v9043_v61 }
 0x92b   :  { %v4552_v55 = vpop.xlane.xlu0 %4551  ;;  %v4578_v1 = vmul.f32 %v5593_v33, %v9047_v51  ;;  %v4917_v10 = vadd.f32 %v4916_v12, %v10067_v43 }
 0x92c   :  { %v4554_v20 = vpop.xlane.xlu1 %4553  ;;  %5606 = vrcp.f32 %v4552_v55  ;;  %4593 = vst [vmem:[%s9250_s10 + $0x30] sm:$0xff] %v4577_v41  ;;  %5382 = vmatprep.mubr.f32.mxu1 %v4577_v41 }
 0x92d   :  { %v5595_v14 = vpop.eup %5594  ;;  %5608 = vrcp.f32 %v4554_v20  ;;  %4594 = vst [vmem:[%s9250_s10 + $0x38] sm:$0xff] %v4578_v1  ;;  %5383 = vmatmul.mubr.f32.gmra.mxu1 %v4578_v1 }
 0x92e   :  { %v5597_v5 = vpop.eup %5596  ;;  %v4579_v61 = vmul.f32 %v5595_v14, %v9053_v39 }
 0x92f   :  { %v4580_v34 = vmul.f32 %v5597_v5, %v9057_v4 }
 0x930   :  { %4595 = vst [vmem:[%s9250_s10 + $0x40] sm:$0xff] %v4579_v61  ;;  %5385 = vmatprep.mubr.f32.mxu1 %v4579_v61 }
 0x931   :  { %v5599_v51 = vpop.eup %5598  ;;  %4596 = vst [vmem:[%s9250_s10 + $0x48] sm:$0xff] %v4580_v34  ;;  %5386 = vmatmul.mubr.f32.gmra.mxu1 %v4580_v34 }
 0x932   :  { %v5601_v56 = vpop.eup %5600  ;;  %v4581_v8 = vmul.f32 %v5599_v51, %v9063_v31  ;;  %v4950_v51 = vpop.permute.xlu1 %4949 }
 0x933   :  { %v4582_v45 = vmul.f32 %v5601_v56, %v9067_v54  ;;  %v4839_v30 = vpop.permute.xlu0 %4838 }
 0x934   :  { %4597 = vst [vmem:[%s9250_s10 + $0x50] sm:$0xff] %v4581_v8  ;;  %5388 = vmatprep.mubr.f32.mxu1 %v4581_v8  ;;  %v4844_v16 = vrot.slane %v4839_v30, %v10064_v46 }
 0x935   :  { %v5603_v39 = vpop.eup %5602  ;;  %4598 = vst [vmem:[%s9250_s10 + $0x58] sm:$0xff] %v4582_v45  ;;  %5389 = vmatmul.mubr.f32.gmra.mxu1 %v4582_v45 }
 0x936   :  { %v5605_v4 = vpop.eup %5604  ;;  %v4583_v3 = vmul.f32 %v5603_v39, %v9073_v29 }
 0x937   :  { %v4584_v23 = vmul.f32 %v5605_v4, %v9077_v57 }
 0x938   :  { %4599 = vst [vmem:[%s9250_s10 + $0x60] sm:$0xff] %v4583_v3  ;;  %5391 = vmatprep.mubr.f32.mxu1 %v4583_v3 }
 0x939   :  { %v5607_v31 = vpop.eup %5606  ;;  %4600 = vst [vmem:[%s9250_s10 + $0x68] sm:$0xff] %v4584_v23  ;;  %5392 = vmatmul.mubr.f32.gmra.mxu1 %v4584_v23 }
 0x93a   :  { %v5609_v54 = vpop.eup %5608  ;;  %v4585_v27 = vmul.f32 %v5607_v31, %v9083_v6 }
 0x93b   :  { %v4586_v28 = vmul.f32 %v5609_v54, %v9087_v18 }
 0x93c   :  { %4601 = vst [vmem:[%s9250_s10 + $0x70] sm:$0xff] %v4585_v27  ;;  %5394 = vmatprep.mubr.f32.mxu1 %v4585_v27 }
 0x93d   :  { %4602 = vst [vmem:[%s9250_s10 + $0x78] sm:$0xff] %v4586_v28  ;;  %5395 = vmatmul.mubr.f32.gmra.mxu1 %v4586_v28 }
 0x93e   :  { %5429 = vmatprep.mubr.msk.f32.mxu1 %vm10083_vm11, %v10024_v63 }
 0x9e1   :  { %v5375_v29 = vpop.f32.mrf.mxu1 }
 0x9e2   :  { %4749 = vst [vmem:[%s9251_s11 + $0x8] sm:$0xff] %v5375_v29 }
 0x9e3   :  { %v4669_v57 = vpop.f32.mrf.mxu1 }
 0x9e4   :  { %4748 = vst [vmem:[%s9251_s11] sm:$0xff] %v4669_v57 }
 0x9e5   :  { %v5378_v6 = vpop.f32.mrf.mxu1 }
 0x9e6   :  { %4751 = vst [vmem:[%s9251_s11 + $0x18] sm:$0xff] %v5378_v6 }
 0x9e7   :  { %v4679_v18 = vpop.f32.mrf.mxu1 }
 0x9e8   :  { %4750 = vst [vmem:[%s9251_s11 + $0x10] sm:$0xff] %v4679_v18 }
 0x9e9   :  { %v5381_v35 = vpop.f32.mrf.mxu1 }
 0x9ea   :  { %4753 = vst [vmem:[%s9251_s11 + $0x28] sm:$0xff] %v5381_v35 }
 0x9eb   :  { %v4689_v26 = vpop.f32.mrf.mxu1 }
 0x9ec   :  { %4752 = vst [vmem:[%s9251_s11 + $0x20] sm:$0xff] %v4689_v26 }
 0x9ed   :  { %v5384_v36 = vpop.f32.mrf.mxu1 }
 0x9ee   :  { %4755 = vst [vmem:[%s9251_s11 + $0x38] sm:$0xff] %v5384_v36 }
 0x9ef   :  { %v4699_v37 = vpop.f32.mrf.mxu1 }
 0x9f0   :  { %4754 = vst [vmem:[%s9251_s11 + $0x30] sm:$0xff] %v4699_v37 }
 0x9f1   :  { %v5387_v2 = vpop.f32.mrf.mxu1 }
 0x9f2   :  { %4757 = vst [vmem:[%s9251_s11 + $0x48] sm:$0xff] %v5387_v2 }
 0x9f3   :  { %v4709_v17 = vpop.f32.mrf.mxu1 }
 0x9f4   :  { %4756 = vst [vmem:[%s9251_s11 + $0x40] sm:$0xff] %v4709_v17 }
 0x9f5   :  { %v5390_v52 = vpop.f32.mrf.mxu1 }
 0x9f6   :  { %4759 = vst [vmem:[%s9251_s11 + $0x58] sm:$0xff] %v5390_v52 }
 0x9f7   :  { %v4719_v40 = vpop.f32.mrf.mxu1 }
 0x9f8   :  { %4758 = vst [vmem:[%s9251_s11 + $0x50] sm:$0xff] %v4719_v40 }
 0x9f9   :  { %v5393_v38 = vpop.f32.mrf.mxu1 }
 0x9fa   :  { %4761 = vst [vmem:[%s9251_s11 + $0x68] sm:$0xff] %v5393_v38 }
 0x9fb   :  { %v4729_v21 = vpop.f32.mrf.mxu1 }
 0x9fc   :  { %4760 = vst [vmem:[%s9251_s11 + $0x60] sm:$0xff] %v4729_v21 }
 0x9fd   :  { %v5396_v32 = vpop.f32.mrf.mxu1 }
 0x9fe   :  { %4763 = vst [vmem:[%s9251_s11 + $0x78] sm:$0xff] %v5396_v32  ;;  %5398 = vmatpush3.xpose.msra.mxu1 %v5396_v32 }
 0x9ff   :  { %v4739_v11 = vpop.f32.mrf.mxu1  ;;  %5399 = vmatprep.subr.mxu1 %v10024_v63 }
 0xa00   :  { %4762 = vst [vmem:[%s9251_s11 + $0x70] sm:$0xff] %v4739_v11 }
 0xa02   :  { %5400 = vmatpush3.xpose.msra.mxu1 %v4739_v11 }
 0xa03   :  { %5401 = vmatprep.subr.mxu1 %v10024_v63 }
 0xa06   :  { %5402 = vmatpush3.xpose.msra.mxu1 %v5393_v38 }
 0xa07   :  { %5403 = vmatprep.subr.mxu1 %v10024_v63 }
 0xa0a   :  { %5404 = vmatpush3.xpose.msra.mxu1 %v4729_v21 }
 0xa0b   :  { %5405 = vmatprep.subr.mxu1 %v10024_v63 }
 0xa0e   :  { %5406 = vmatpush3.xpose.msra.mxu1 %v5390_v52 }
 0xa0f   :  { %5407 = vmatprep.subr.mxu1 %v10024_v63 }
 0xa12   :  { %5408 = vmatpush3.xpose.msra.mxu1 %v4719_v40 }
 0xa13   :  { %5409 = vmatprep.subr.mxu1 %v10024_v63 }
 0xa16   :  { %5410 = vmatpush3.xpose.msra.mxu1 %v5387_v2 }
 0xa17   :  { %5411 = vmatprep.subr.mxu1 %v10024_v63 }
 0xa1a   :  { %5412 = vmatpush3.xpose.msra.mxu1 %v4709_v17 }
 0xa1b   :  { %5413 = vmatprep.subr.mxu1 %v10024_v63 }
 0xa1e   :  { %5414 = vmatpush3.xpose.msra.mxu1 %v5384_v36 }
 0xa1f   :  { %5415 = vmatprep.subr.mxu1 %v10024_v63 }
 0xa22   :  { %5416 = vmatpush3.xpose.msra.mxu1 %v4699_v37 }
 0xa23   :  { %5417 = vmatprep.subr.mxu1 %v10024_v63 }
 0xa26   :  { %5418 = vmatpush3.xpose.msra.mxu1 %v5381_v35 }
 0xa27   :  { %5419 = vmatprep.subr.mxu1 %v10024_v63 }
 0xa2a   :  { %5420 = vmatpush3.xpose.msra.mxu1 %v4689_v26 }
 0xa2b   :  { %5421 = vmatprep.subr.mxu1 %v10024_v63 }
 0xa2e   :  { %5422 = vmatpush3.xpose.msra.mxu1 %v5378_v6 }
 0xa2f   :  { %5423 = vmatprep.subr.mxu1 %v10024_v63 }
 0xa32   :  { %5424 = vmatpush3.xpose.msra.mxu1 %v4679_v18 }
 0xa33   :  { %5425 = vmatprep.subr.mxu1 %v10024_v63 }
 0xa36   :  { %5426 = vmatpush3.xpose.msra.mxu1 %v5375_v29 }
 0xa37   :  { %5427 = vmatprep.subr.mxu1 %v10024_v63  ;;  %v4918_v63 = vadd.f32 %v4917_v10, %v10068_v25 }
 0xa39   :  { %v4919_v60 = vadd.f32 %v4918_v63, %v10069_v9 }
 0xa3a   :  { %5428 = vmatpush3.xpose.msra.mxu1 %v4669_v57 }
 0xa3b   :  { %v4920_v33 = vadd.f32 %v4919_v60, %v10070_v47 }
 0xa3d   :  { %5430 = vmatmul.mubr.f32.vlgmr.msra.gmra.mxu1 %v4764_v24  ;;  %v4921_v41 = vadd.f32 %v4920_v33, %v10071_v42 }
 0xa3f   :  { %v4922_v55 = vadd.f32 %v4921_v41, %v10072_v19 }
 0xa41   :  { %v4923_v20 = vadd.f32 %v4922_v55, %v10073_v59 }
 0xa43   :  { %v4924_v1 = vadd.f32 %v4923_v20, %v10074_v48 }
 0xa45   :  { %v4925_v14 = vadd.f32 %v4924_v1, %v10075_v49 }
 0xa47   :  { %v4926_v0 = vadd.f32 %v4925_v14, %v10076_v22 }
 0xa49   :  { %v4927_v44 = vadd.f32 %v4926_v0, %v10077_v62  ;;  %v4955_v62 = vrot.slane %v4950_v51, %v10064_v46 }
 0xa4b   :  { %v4928_v43 = vadd.f32 %v4927_v44, %v10078_v7 }
 0xa4d   :  { %v4929_v25 = vadd.f32 %v4928_v43, %v10079_v50 }
 0xa4f   :  { %v4930_v9 = vadd.f32 %v4929_v25, %v10080_v13 }
 0xa51   :  { %v4931_v47 = vrot.slane %v4930_v9, 4 }
 0xa53   :  { %v4932_v42 = vadd.f32 %v4931_v47, %v4930_v9 }
 0xa55   :  { %v4933_v5 = vrot.slane %v4932_v42, 2 }
 0xa57   :  { %v4934_v19 = vadd.f32 %v4933_v5, %v4932_v42 }
 0xa59   :  { %v4935_v61 = vrot.slane %v4934_v19, 1 }
 0xa5b   :  { %v4936_v59 = vadd.f32 %v4935_v61, %v4934_v19 }
 0xafd   :  { %v4831_v15 = vpop.f32.mrf.mxu1 }
 0xafe   :  { %v4845_v53 = vadd.f32 %v4844_v16, %v4831_v15  ;;  %v4937_v34 = vmul.f32 %v4936_v59, %v4831_v15  ;;  %v4943_v56 = vrot.slane %v4831_v15, 2 }
 0xaff   :  { %v5431_v58 = vpop.f32.mrf.mxu1 }
 0xb00   :  { %5465 = vmatmul.mubr.f32.vlgmr.msra.gmra.mxu0 %v4845_v53  ;;  %v4939_v48 = vrot.slane %v4937_v34, 1 }
 0xbc0   :  { %v4912_v49 = vpop.f32.mrf.mxu0 }
 0xbc1   :  { %v4941_v22 = vsub.f32 %v4912_v49, %v4939_v48 }
 0xbc2   :  { %v5466_v8 = vpop.f32.mrf.mxu0 }
 0xbc3   :  { %v4945_v7 = vadd.f32 %v4943_v56, %v4941_v22 }
 0xbc5   :  { %v4956_v45 = vadd.f32 %v4955_v62, %v4945_v7 }
 0xbc7   :  { %v4988_v50 = vmul.f32 -1.442695, %v4956_v45 }
 0xbc9   :  { %5610 = vpow2.f32 %v4988_v50 }
 0xbd6   :  { %v5611_v13 = vpop.eup %5610 }
 0xbd7   :  { %v4960_v39 = vadd.f32 1.0, %v5611_v13 }
 0xbd9   :  { %5612 = vrcp.f32 %v4960_v39 }
 0xbe6   :  { %v5613_v4 = vpop.eup %5612 }
 0xbe7   :  { %4963 = vst [vmem:[%s9252_s12] sm:$0x1] %v5613_v4 }

// kernel: _lambda_.13
= control target key start
LH: loop header
LB: loop body
LE: loop exit
PB: predicated region body
PF: predicated region fallthrough
CT: control target
= control target key end

     0   :  { %v366_v4 = vmov 0.0   ;;  %s577_s0 = inlined_call_operand.vmem [shape: f32[2,256], index: 0, kind: input, shape index: {}]   ;;  %s578_s1 = inlined_call_operand.vmem [shape: f32[256,128], index: 1, kind: input, shape index: {}]   ;;  %s579_s2 = inlined_call_operand.vmem [shape: f32[1,128], index: 2, kind: input, shape index: {}]   ;;  %s580_s3 = inlined_call_operand.vmem [shape: f32[128,128], index: 3, kind: input, shape index: {}]   ;;  %s581_s4 = inlined_call_operand.vmem [shape: f32[1,128], index: 4, kind: input, shape index: {}]   ;;  %s582_s5 = inlined_call_operand.hbm [shape: f32[2,128], index: 5, kind: output, shape index: {}]  }
   0x1   :  { %v53_v0 = vld [vmem:[%s578_s1 + $0xf8] sm:$0xff]  ;;  %v52_v2 = vld [vmem:[%s578_s1 + $0xf0] sm:$0xff]  ;;  %306 = vmatprep.subr.mxu1 %v366_v4  ;;  %v51_v5 = vld [vmem:[%s578_s1 + $0xe8] sm:$0xff] }
   0x2   :  { %v37_v1 = vld [vmem:[%s578_s1 + $0x78] sm:$0xff]  ;;  %254 = vmatprep.subr.mxu0 %v53_v0  ;;  %v36_v3 = vld [vmem:[%s578_s1 + $0x70] sm:$0xff]  ;;  %v35_v6 = vld [vmem:[%s578_s1 + $0x68] sm:$0xff] }
   0x3   :  { %255 = vmatpush3.msra.mxu0 %v37_v1  ;;  %v50_v7 = vld [vmem:[%s578_s1 + $0xe0] sm:$0xff]  ;;  %v49_v9 = vld [vmem:[%s578_s1 + $0xd8] sm:$0xff]  ;;  %v48_v11 = vld [vmem:[%s578_s1 + $0xd0] sm:$0xff] }
   0x4   :  { %256 = vmatprep.subr.mxu0 %v52_v2  ;;  %v34_v8 = vld [vmem:[%s578_s1 + $0x60] sm:$0xff]  ;;  %v33_v10 = vld [vmem:[%s578_s1 + $0x58] sm:$0xff]  ;;  %v32_v12 = vld [vmem:[%s578_s1 + $0x50] sm:$0xff] }
   0x5   :  { %257 = vmatpush3.msra.mxu0 %v36_v3  ;;  %v47_v13 = vld [vmem:[%s578_s1 + $0xc8] sm:$0xff]  ;;  %v442_v14 = vld.sshfl [vmem:[%s577_s0] sm:$0x33 pattern:$0x76325410]  ;;  %v158_v17 = vld [vmem:[%s580_s3 + $0x78] sm:$0xff] }
   0x6   :  { %258 = vmatprep.subr.mxu0 %v51_v5  ;;  %v31_v15 = vld [vmem:[%s578_s1 + $0x48] sm:$0xff]  ;;  %v69_v16 = vcombine.high %v442_v14, %v442_v14  ;;  %v46_v18 = vld [vmem:[%s578_s1 + $0xc0] sm:$0xff]  ;;  %307 = vmatpush3.msra.mxu1 %v158_v17  ;;  %v157_v19 = vld [vmem:[%s580_s3 + $0x70] sm:$0xff] }
   0x7   :  { %259 = vmatpush3.msra.mxu0 %v35_v6  ;;  %v30_v20 = vld [vmem:[%s578_s1 + $0x40] sm:$0xff]  ;;  %v45_v21 = vld [vmem:[%s578_s1 + $0xb8] sm:$0xff]  ;;  %308 = vmatprep.subr.mxu1 %v366_v4  ;;  %v156_v22 = vld [vmem:[%s580_s3 + $0x68] sm:$0xff] }
   0x8   :  { %260 = vmatprep.subr.mxu0 %v50_v7  ;;  %136 = vmatprep.mubr.f32.mxu0 %v69_v16 }
   0x9   :  { %261 = vmatpush3.msra.mxu0 %v34_v8 }
   0xa   :  { %262 = vmatprep.subr.mxu0 %v49_v9 }
   0xb   :  { %263 = vmatpush3.msra.mxu0 %v33_v10 }
   0xc   :  { %264 = vmatprep.subr.mxu0 %v48_v11 }
   0xd   :  { %265 = vmatpush3.msra.mxu0 %v32_v12 }
   0xe   :  { %266 = vmatprep.subr.mxu0 %v47_v13 }
   0xf   :  { %267 = vmatpush3.msra.mxu0 %v31_v15 }
  0x10   :  { %10 = vsyncpa [#allocation3], 0  ;;  %268 = vmatprep.subr.mxu0 %v46_v18  ;;  %v29_v23 = vld [vmem:[%s578_s1 + $0x38] sm:$0xff]  ;;  %309 = vmatpush3.msra.mxu1 %v157_v19  ;;  %v44_v24 = vld [vmem:[%s578_s1 + $0xb0] sm:$0xff]  ;;  %vm367_vm0 = vmmov 0   ;;  %s368_s16 = smov [#allocation2]  }
  0x11   :  { %269 = vmatpush3.msra.mxu0 %v30_v20  ;;  %310 = vmatprep.subr.mxu1 %v366_v4  ;;  %v155_v25 = vld [vmem:[%s580_s3 + $0x60] sm:$0xff]  ;;  %v28_v26 = vld [vmem:[%s578_s1 + $0x30] sm:$0xff]  ;;  %v43_v27 = vld [vmem:[%s578_s1 + $0xa8] sm:$0xff] }
  0x12   :  { %270 = vmatprep.subr.mxu0 %v45_v21  ;;  %311 = vmatpush3.msra.mxu1 %v156_v22  ;;  %v154_v28 = vld [vmem:[%s580_s3 + $0x58] sm:$0xff]  ;;  %v27_v29 = vld [vmem:[%s578_s1 + $0x28] sm:$0xff]  ;;  %v42_v30 = vld [vmem:[%s578_s1 + $0xa0] sm:$0xff] }
  0x13   :  { %271 = vmatpush3.msra.mxu0 %v29_v23  ;;  %312 = vmatprep.subr.mxu1 %v366_v4  ;;  %v153_v31 = vld [vmem:[%s580_s3 + $0x50] sm:$0xff]  ;;  %v26_v32 = vld [vmem:[%s578_s1 + $0x20] sm:$0xff]  ;;  %v41_v33 = vld [vmem:[%s578_s1 + $0x98] sm:$0xff] }
  0x14   :  { %272 = vmatprep.subr.mxu0 %v44_v24  ;;  %313 = vmatpush3.msra.mxu1 %v155_v25  ;;  %v152_v34 = vld [vmem:[%s580_s3 + $0x48] sm:$0xff]  ;;  %v25_v35 = vld [vmem:[%s578_s1 + $0x18] sm:$0xff]  ;;  %v40_v36 = vld [vmem:[%s578_s1 + $0x90] sm:$0xff] }
  0x15   :  { %273 = vmatpush3.msra.mxu0 %v28_v26  ;;  %314 = vmatprep.subr.mxu1 %v366_v4  ;;  %v151_v37 = vld [vmem:[%s580_s3 + $0x40] sm:$0xff]  ;;  %v24_v38 = vld [vmem:[%s578_s1 + $0x10] sm:$0xff]  ;;  %v39_v39 = vld [vmem:[%s578_s1 + $0x88] sm:$0xff] }
  0x16   :  { %274 = vmatprep.subr.mxu0 %v43_v27  ;;  %315 = vmatpush3.msra.mxu1 %v154_v28  ;;  %v150_v40 = vld [vmem:[%s580_s3 + $0x38] sm:$0xff]  ;;  %v23_v41 = vld [vmem:[%s578_s1 + $0x8] sm:$0xff]  ;;  %v38_v42 = vld [vmem:[%s578_s1 + $0x80] sm:$0xff] }
  0x17   :  { %275 = vmatpush3.msra.mxu0 %v27_v29  ;;  %316 = vmatprep.subr.mxu1 %v366_v4  ;;  %v149_v43 = vld [vmem:[%s580_s3 + $0x30] sm:$0xff]  ;;  %v22_v44 = vld [vmem:[%s578_s1] sm:$0xff]  ;;  %v148_v45 = vld [vmem:[%s580_s3 + $0x28] sm:$0xff] }
  0x18   :  { %276 = vmatprep.subr.mxu0 %v42_v30  ;;  %317 = vmatpush3.msra.mxu1 %v153_v31  ;;  %v147_v46 = vld [vmem:[%s580_s3 + $0x20] sm:$0xff]  ;;  %v146_v47 = vld [vmem:[%s580_s3 + $0x18] sm:$0xff]  ;;  %v145_v48 = vld [vmem:[%s580_s3 + $0x10] sm:$0xff] }
  0x19   :  { %277 = vmatpush3.msra.mxu0 %v26_v32  ;;  %318 = vmatprep.subr.mxu1 %v366_v4  ;;  %v144_v49 = vld [vmem:[%s580_s3 + $0x8] sm:$0xff]  ;;  %v143_v50 = vld [vmem:[%s580_s3] sm:$0xff]  ;;  %s243_s3 = sshll.u32 %s368_s16, 4  ;;  %s244_s3 = int_to_ptr.vmem [resolvable:$true] %s243_s3 }
  0x1a   :  { %278 = vmatprep.subr.mxu0 %v41_v33  ;;  %319 = vmatpush3.msra.mxu1 %v152_v34  ;;  %v251_v52 = vld [vmem:[%s579_s2] ss:$0 sm:$0xff]  ;;  %s344_s17 = scalar_lea.vmem %s244_s3, 32  ;;  %p349_p1 = scmp.lt.s32.totalorder %s244_s3, %s244_s3 }
  0x1b   :  { %279 = vmatpush3.msra.mxu0 %v25_v35  ;;  %320 = vmatprep.subr.mxu1 %v366_v4  ;;  %v253_v57 = vld [vmem:[%s581_s4] ss:$0 sm:$0xff]  ;;  %p345_p0 = scmp.ne.s32.totalorder %s244_s3, %s344_s17  ;;  %p350_p2 = scmp.lt.s32.totalorder %s344_s17, %s344_s17 }
  0x1c   :  { %280 = vmatprep.subr.mxu0 %v40_v36  ;;  %321 = vmatpush3.msra.mxu1 %v151_v37 }
  0x1d   :  { %281 = vmatpush3.msra.mxu0 %v24_v38  ;;  %322 = vmatprep.subr.mxu1 %v366_v4  ;;  %p351_p3 = por %p350_p2, %p349_p1 }
  0x1e   :  { %282 = vmatprep.subr.mxu0 %v39_v39  ;;  %323 = vmatpush3.msra.mxu1 %v150_v40 }
  0x1f   :  { %283 = vmatpush3.msra.mxu0 %v23_v41  ;;  %324 = vmatprep.subr.mxu1 %v366_v4  ;;  %p352_p4 = pnand %p351_p3, %p345_p0 }
  0x20   :  { %284 = vmatprep.subr.mxu0 %v38_v42  ;;  %325 = vmatpush3.msra.mxu1 %v149_v43 }
  0x21   :  { %285 = vmatpush3.msra.mxu0 %v22_v44  ;;  %326 = vmatprep.subr.mxu1 %v366_v4 }
  0x22   :  { %137 = vmatmul.mubr.f32.vlgmr.msra.gmra.mxu0 %v442_v14  ;;  %327 = vmatpush3.msra.mxu1 %v148_v45 }
  0x23   :  { %328 = vmatprep.subr.mxu1 %v366_v4  ;;  %338 = vmatprep.mubr.msk.f32.mxu1 %vm367_vm0, %v366_v4 }
  0x24   :  { %329 = vmatpush3.msra.mxu1 %v147_v46 }
  0x25   :  { %330 = vmatprep.subr.mxu1 %v366_v4 }
  0x26   :  { %331 = vmatpush3.msra.mxu1 %v146_v47 }
  0x27   :  { %332 = vmatprep.subr.mxu1 %v366_v4 }
  0x28   :  { %333 = vmatpush3.msra.mxu1 %v145_v48 }
  0x29   :  { %334 = vmatprep.subr.mxu1 %v366_v4 }
  0x2a   :  { %335 = vmatpush3.msra.mxu1 %v144_v49 }
  0x2b   :  { %336 = vmatprep.subr.mxu1 %v366_v4 }
  0x2c   :  { %337 = vmatpush3.msra.mxu1 %v143_v50 }
  0xe2   :  { %v286_v51 = vpop.f32.mrf.mxu0 }
  0xe4   :  { %v287_v53 = vpop.f32.mrf.mxu0 }
  0xe5   :  { %v288_v54 = vadd.f32 %v287_v53, %v286_v51 }
  0xe7   :  { %v139_v55 = vadd.f32 %v288_v54, %v251_v52 }
  0xe9   :  { %v142_v56 = vmax.f32 %v139_v55, 0.0 }
  0xeb   :  { %339 = vmatmul.mubr.f32.vlgmr.msra.gmra.mxu1 %v142_v56 }
 0x1ab   :  { %v232_v58 = vpop.f32.mrf.mxu1 }
 0x1ac   :  { %v233_v59 = vadd.f32 %v253_v57, %v232_v58 }
 0x1ad   :  { %v340_v60 = vpop.f32.mrf.mxu1 }
 0x1ae   :  { %236 = vst [vmem:[#allocation2] sm:$0x3] %v233_v59 }
 0x1af   :  { %355 = shalt.err (!%p352_p4)
}
 0x1b0   :  { %246 = dma.vmem_to_hbm [thread:$0]  %s244_s3, 32, %s582_s5, [#allocation3]  }
 0x1b1   :  { %364 = dma.done.wait [#allocation3], 32  }
 0x1b2   :  { %365 = vsyncadd [#allocation3], 4294967264 }
 0x1b3   :  { %250 = vsyncpa [#allocation3], 1 }

</bundles_post_ra>
